<compile_context>
chip_gen: v7x
topology: tpu7x:2x2x1
jax: 0.10.0
libtpu: 0.0.40
codegen_flags: <defaults>
</compile_context>

<pallas_src>
import functools

import jax
import jax.numpy as jnp
from jax import lax
from jax.experimental import pallas as pl
from jax.experimental.pallas import tpu as pltpu


def _skew_rel_logits(rel2, seq_len, pad_width):
    """Relative -> absolute indexing ("skew"), batched over rows.

    rel2: [R, P] f32 with rows ordered (..., i) where i = row % seq_len is the
    query position; rel2[r, m] = q_i . E[m] for m < 2T-1, zero for m >= 2T-1.
    Returns [R, T] with out[r, k] = rel2[r, k - i + T - 1], i.e. the unmasked
    relative_to_absolute_indexing of the reference module.

    Implemented as a log2(T)-stage conditional LEFT-rotate network:
    pltpu.roll (XLU lane rotation, otherwise-idle slot) + per-row selects.
    """
    T, P = seq_len, pad_width
    R = rel2.shape[0]
    # per-row left-rotate amount (computed once for all heads/batches)
    i = lax.broadcasted_iota(jnp.int32, (R, 1), 0) % T
    lshift = (T - 1) - i
    out = rel2
    nbits = max(1, (T - 1).bit_length())
    for b in range(nbits):
        step = 1 << b
        # uniform left rotate by `step`: out[j] <- out[(j + step) % P].
        # pltpu.roll follows jnp.roll semantics, so left-rotate == shift P-step.
        rolled = pltpu.roll(out, shift=P - step, axis=1)
        take = (lshift & step) > 0
        out = jnp.where(take, rolled, out)
    # Invariant: the kept columns only ever read source columns
    # k + (T-1-i) <= 2T-2 < P, so neither the zero pad [2T-1, P) nor any
    # rotation wrap-around is ever selected (P >= 2T asserted in the wrapper).
    return out[:, :T]


def _mha_kernel(x_ref, wqkv_ref, wo_ref, we_ref, out_ref, *,
                n_head, d_qkv, seq_len, block_b, pad_width, d_model,
                compute_dtype):
    """One block of `block_b` batch elements per grid step.

    x_ref:   [Bb, T, D]          wqkv_ref: [D, 3*H*dq]
    wo_ref:  [H*dq, D]           we_ref:   [H*dq, H*P]   (block-diagonal E^T)
    out_ref: [Bb, T, D] f32
    """
    T, dq, H, Bb, P, D = seq_len, d_qkv, n_head, block_b, pad_width, d_model
    HD = H * dq
    approx = jnp.dtype(compute_dtype) != jnp.dtype(jnp.float32)

    # ---- fused Q/K/V projection: one [Bb*T, D] @ [D, 3HD] MXU matmul ----
    x2 = x_ref[...].reshape(Bb * T, D)
    qkv = jnp.dot(x2, wqkv_ref[...], preferred_element_type=jnp.float32)
    qkv = qkv.astype(compute_dtype)           # MXU operand dtype downstream
    q_all = qkv[:, :HD]                       # columns ordered (head, dq)

    # ---- relative positional logits, all heads in ONE lane-dense matmul ----
    # we_ref is block-diagonal, so rel_all[:, h*P + m] = q_h . E_h[m]
    rel_all = jnp.dot(q_all, we_ref[...], preferred_element_type=jnp.float32)
    # stack heads along sublanes -> rows ordered (h, b, t); skew once for all.
    rel2 = jnp.concatenate([rel_all[:, h * P:(h + 1) * P] for h in range(H)],
                           axis=0)                              # [H*Bb*T, P]
    pos_g = _skew_rel_logits(rel2, T, P).reshape(H * Bb, T, T)  # [G, T, T]

    # ---- head-major [G, T, dq] views (G = H*Bb), built with safe ops ----
    def head_major(z):
        return jnp.concatenate(
            [z[:, h * dq:(h + 1) * dq].reshape(Bb, T, dq) for h in range(H)],
            axis=0)
    q_g = head_major(q_all)
    k_g = head_major(qkv[:, HD:2 * HD])       # 1/sqrt(dq) folded into W_k
    v_g = head_major(qkv[:, 2 * HD:3 * HD])

    # ---- content logits + softmax, batched over all (head, batch) pairs ----
    content = jnp.einsum('gqd,gkd->gqk', q_g, k_g,
                         preferred_element_type=jnp.float32)    # [G, T, T]
    logits = content + pos_g
    m = jnp.max(logits, axis=-1, keepdims=True)
    e = jnp.exp(logits - m)
    s = jnp.sum(e, axis=-1, keepdims=True)
    if approx:
        probs = e * pl.reciprocal(s, approx=True)   # EUP slot, bf16 fast path
    else:
        probs = e / s                               # exact, f32 parity path
    # TODO(synk): nn.Dropout(p=0.1) omitted -> eval/inference semantics.

    o_g = jnp.einsum('gqk,gkd->gqd', probs.astype(compute_dtype), v_g,
                     preferred_element_type=jnp.float32)        # [G, T, dq]

    # ---- reassemble heads on lanes, fused output projection ----
    o_all = jnp.concatenate([o_g[h * Bb:(h + 1) * Bb] for h in range(H)],
                            axis=-1)                            # [Bb, T, HD]
    o2 = o_all.reshape(Bb * T, HD).astype(compute_dtype)
    out = jnp.dot(o2, wo_ref[...], preferred_element_type=jnp.float32)
    out_ref[...] = out.reshape(Bb, T, D)


def multi_head_attention(x_tbf, w_q, w_k, w_v, w_o, rel_embeddings,
                         compute_dtype=jnp.bfloat16, block_b=None):
    """x_tbf: [T, B, d_model] (PyTorch layout). Returns [T, B, d_model] f32.

    compute_dtype: dtype of the MXU operands (bfloat16 = fast path;
    float32 = bit-closer to the PyTorch reference). Softmax and all
    accumulations are float32 either way.
    """
    T, B, D = x_tbf.shape
    H, _, dq = w_q.shape
    HD = H * dq
    max_rel = (rel_embeddings.shape[1] + 1) // 2
    # TODO(synk): T > max_relative_pos path (zero-pad + -1e8 clip) unimplemented.
    assert T <= max_rel
    scale = 1.0 / (dq ** 0.5)

    # Batch block per grid step: target ~128 MXU rows (v5e MXU is 128x128;
    # on v6e/v7x 256 is also good, keeping the grid length >= 2 for v7x TCs).
    if block_b is None:
        target = max(1, 128 // T)
        block_b = max(d for d in range(1, B + 1) if B % d == 0 and d <= target)
    assert B % block_b == 0

    # ---- weight fusion (reshape / fold only, once per call) ----
    # Fold 1/sqrt(dq) into W_k; the positional term keeps the unscaled q,
    # exactly as in the reference.
    wq2 = jnp.transpose(w_q, (1, 0, 2)).reshape(D, HD)
    wk2 = jnp.transpose(w_k * scale, (1, 0, 2)).reshape(D, HD)
    wv2 = jnp.transpose(w_v, (1, 0, 2)).reshape(D, HD)
    w_qkv = jnp.concatenate([wq2, wk2, wv2], axis=1).astype(compute_dtype)
    w_o_f = w_o.reshape(HD, D).astype(compute_dtype)             # [HD, D]

    # ---- relative embeddings -> block-diagonal, lane-padded weight ----
    # P: lane-padded relative width (multiple of 128, >= 2T) so the in-kernel
    # rel matmul output and the skew operate on full 128-lane vregs.
    P = max(128, ((2 * T + 127) // 128) * 128)
    assert P >= 2 * T
    start = max_rel - T
    e_used = rel_embeddings[:, start:start + 2 * T - 1, :, 0]    # [H, 2T-1, dq]
    e_t = jnp.swapaxes(e_used, 1, 2)                             # [H, dq, 2T-1]
    w_e = jnp.zeros((HD, H * P), jnp.float32)
    for h in range(H):
        w_e = w_e.at[h * dq:(h + 1) * dq, h * P:h * P + 2 * T - 1].set(e_t[h])
    w_e = w_e.astype(compute_dtype)                              # [HD, H*P]

    # batch-major, lane-dense activations (cast fuses with the transpose).
    # TODO(synk): adopt batch-major at the caller to drop both transposes.
    x_btf = jnp.transpose(x_tbf, (1, 0, 2)).astype(compute_dtype)  # [B, T, D]

    kernel = functools.partial(_mha_kernel, n_head=H, d_qkv=dq, seq_len=T,
                               block_b=block_b, pad_width=P, d_model=D,
                               compute_dtype=compute_dtype)

    flops = (2 * B * T * D * 3 * HD          # fused QKV projection
             + 2 * B * T * HD * H * P        # block-diagonal rel matmul
             + 4 * B * H * T * T * dq        # content logits + probs @ V
             + 2 * B * T * HD * D)           # output projection
    bytes_accessed = 4 * (2 * B * T * D + D * 3 * HD + HD * D + HD * H * P)

    out_btf = pl.pallas_call(
        kernel,
        out_shape=jax.ShapeDtypeStruct((B, T, D), jnp.float32),
        grid=(B // block_b,),
        in_specs=[
            pl.BlockSpec((block_b, T, D), lambda b: (b, 0, 0)),   # x block
            pl.BlockSpec((D, 3 * HD), lambda b: (0, 0)),          # fused W_qkv
            pl.BlockSpec((HD, D), lambda b: (0, 0)),              # fused W_o
            pl.BlockSpec((HD, H * P), lambda b: (0, 0)),          # block-diag E
        ],
        out_specs=pl.BlockSpec((block_b, T, D), lambda b: (b, 0, 0)),
        compiler_params=pltpu.CompilerParams(
            dimension_semantics=("parallel",)),
        cost_estimate=pl.CostEstimate(flops=flops,
                                      transcendentals=B * H * T * T,
                                      bytes_accessed=bytes_accessed),
        # NOTE: at production sizes, set vmem_limit_bytes and consider
        # pipeline_mode=pl.Buffered(1) on the grid-invariant weight specs.
    )(x_btf, w_qkv, w_o_f, w_e)

    return jnp.transpose(out_btf, (1, 0, 2))                     # [T, B, D]


if __name__ == "__main__":
    # Small shapes consistent with the module, chosen lane/row dense:
    # d_model = 128, n_head = 4 -> d_qkv = 32; Bblk*T = 128 rows per step,
    # grid = 2 steps.
    T, B = 16, 16
    d_model, n_head = 128, 4
    d_qkv = d_model // n_head
    max_rel = 100  # relative_positional_distance

    key = jax.random.PRNGKey(0)
    ks = jax.random.split(key, 6)

    # deterministic parameter init (xavier-normal-like std; torch shapes)
    std_qkv = (2.0 / (d_model * d_qkv + n_head * d_qkv)) ** 0.5
    std_o = (2.0 / (d_qkv * d_model + n_head * d_model)) ** 0.5
    w_q = jax.random.normal(ks[0], (n_head, d_model, d_qkv), jnp.float32) * std_qkv
    w_k = jax.random.normal(ks[1], (n_head, d_model, d_qkv), jnp.float32) * std_qkv
    w_v = jax.random.normal(ks[2], (n_head, d_model, d_qkv), jnp.float32) * std_qkv
    w_o = jax.random.normal(ks[3], (n_head, d_qkv, d_model), jnp.float32) * std_o
    # LearnedRelativePositionalEmbedding: [n_head, 2*max_rel-1, d_qkv, 1]
    rel_emb = (jax.random.normal(ks[4], (n_head, 2 * max_rel - 1, d_qkv, 1),
                                 jnp.float32) * d_qkv ** -0.5)
    x = jax.random.normal(ks[5], (T, B, d_model), jnp.float32)

    # ---- pure-JAX reference (mirrors the PyTorch forward, eval mode) ----
    hp = jax.lax.Precision.HIGHEST
    q = jnp.einsum('tbf,hfa->bhta', x, w_q, precision=hp)
    k = jnp.einsum('tbf,hfa->bhta', x, w_k, precision=hp)
    v = jnp.einsum('tbf,hfa->bhta', x, w_v, precision=hp)
    logits = jnp.einsum('bhqa,bhka->bhqk', q, k, precision=hp) / d_qkv ** 0.5
    start = max_rel - T
    e_used = rel_emb[:, start:start + 2 * T - 1, :, 0]
    idx = (jnp.arange(T)[None, :] - jnp.arange(T)[:, None]) + (T - 1)
    e_abs = e_used[:, idx, :]
    logits = logits + jnp.einsum('bhqd,hqkd->bhqk', q, e_abs, precision=hp)
    probs = jax.nn.softmax(logits, axis=-1)
    o = jnp.einsum('bhqk,bhka->bhqa', probs, v, precision=hp)
    ref = jnp.einsum('bhta,haf->tbf', o, w_o, precision=hp)

    # f32 MXU-operand path: tight tolerance vs. the f32 reference
    out_f32 = multi_head_attention(x, w_q, w_k, w_v, w_o, rel_emb,
                                   compute_dtype=jnp.float32)
    out_f32 = jax.block_until_ready(out_f32)
    assert out_f32.shape == (T, B, d_model)
    err_f32 = float(jnp.max(jnp.abs(out_f32 - ref)))
    assert jnp.allclose(out_f32, ref, atol=3e-3, rtol=3e-3), err_f32

    # default bf16 MXU-operand path: loose tolerance (bf16 double rounding of
    # q/k/v after the f32 QKV accumulation + approx reciprocal)
    out_bf16 = multi_head_attention(x, w_q, w_k, w_v, w_o, rel_emb)
    out_bf16 = jax.block_until_ready(out_bf16)
    assert out_bf16.shape == (T, B, d_model)
    err_bf16 = float(jnp.max(jnp.abs(out_bf16 - ref)))
    assert jnp.allclose(out_bf16, ref, atol=1e-1, rtol=1e-1), err_bf16

    print("KERNEL_OK")
</pallas_src>

<mosaic_0001>
module attributes {stable_mosaic.version = 11 : i64} {
  func.func @_mha_kernel(%arg0: i32, %arg1: memref<8x16x128xf32, #tpu.memory_space<vmem>>, %arg2: memref<128x384xf32, #tpu.memory_space<vmem>>, %arg3: memref<128x128xf32, #tpu.memory_space<vmem>>, %arg4: memref<128x512xf32, #tpu.memory_space<vmem>>, %arg5: memref<8x16x128xf32, #tpu.memory_space<vmem>>) attributes {dimension_semantics = [#tpu.dimension_semantics<parallel>], iteration_bounds = array<i64: 2>, scalar_prefetch = 0 : i64, scratch_operands = 0 : i64, tpu.core_type = #tpu.core_type<tc>, window_params = [{transform_indices = @transform_0, window_bounds = array<i64: 8, 16, 128>}, {pipeline_mode = #tpu.pipeline_mode<synchronous>, transform_indices = @transform_1, window_bounds = array<i64: 128, 384>}, {pipeline_mode = #tpu.pipeline_mode<synchronous>, transform_indices = @transform_2, window_bounds = array<i64: 128, 128>}, {pipeline_mode = #tpu.pipeline_mode<synchronous>, transform_indices = @transform_3, window_bounds = array<i64: 128, 512>}, {transform_indices = @transform_4, window_bounds = array<i64: 8, 16, 128>}]} {
    %c0 = arith.constant 0 : index
    %c0_0 = arith.constant 0 : index
    %c0_1 = arith.constant 0 : index
    %0 = vector.load %arg1[%c0, %c0_0, %c0_1] : memref<8x16x128xf32, #tpu.memory_space<vmem>>, vector<8x16x128xf32>
    %1 = vector.shape_cast %0 : vector<8x16x128xf32> to vector<128x128xf32>
    %c0_2 = arith.constant 0 : index
    %c0_3 = arith.constant 0 : index
    %2 = vector.load %arg2[%c0_2, %c0_3] : memref<128x384xf32, #tpu.memory_space<vmem>>, vector<128x384xf32>
    %cst = arith.constant dense<0.000000e+00> : vector<128x384xf32>
    %3 = tpu.matmul %1, %2, %cst {dimension_numbers = #tpu.dot_dimension_numbers<[1], [0], [0], [1], [0, 0, 1, 1], [], []>} : vector<128x128xf32>, vector<128x384xf32>, vector<128x384xf32> -> vector<128x384xf32>
    %4 = vector.extract_strided_slice %3 {offsets = [0, 0], sizes = [128, 128], strides = [1, 1]} : vector<128x384xf32> to vector<128x128xf32>
    %c0_4 = arith.constant 0 : index
    %c0_5 = arith.constant 0 : index
    %5 = vector.load %arg4[%c0_4, %c0_5] : memref<128x512xf32, #tpu.memory_space<vmem>>, vector<128x512xf32>
    %cst_6 = arith.constant dense<0.000000e+00> : vector<128x512xf32>
    %6 = tpu.matmul %4, %5, %cst_6 {dimension_numbers = #tpu.dot_dimension_numbers<[1], [0], [0], [1], [0, 0, 1, 1], [], []>} : vector<128x128xf32>, vector<128x512xf32>, vector<128x512xf32> -> vector<128x512xf32>
    %7 = vector.extract_strided_slice %6 {offsets = [0, 0], sizes = [128, 128], strides = [1, 1]} : vector<128x512xf32> to vector<128x128xf32>
    %8 = vector.extract_strided_slice %6 {offsets = [0, 128], sizes = [128, 128], strides = [1, 1]} : vector<128x512xf32> to vector<128x128xf32>
    %9 = vector.extract_strided_slice %6 {offsets = [0, 256], sizes = [128, 128], strides = [1, 1]} : vector<128x512xf32> to vector<128x128xf32>
    %10 = vector.extract_strided_slice %6 {offsets = [0, 384], sizes = [128, 128], strides = [1, 1]} : vector<128x512xf32> to vector<128x128xf32>
    %11 = tpu.concatenate %7, %8, %9, %10 in 0 : vector<128x128xf32>, vector<128x128xf32>, vector<128x128xf32>, vector<128x128xf32> -> vector<512x128xf32>
    %12 = tpu.iota {dimensions = array<i32: 0>} : vector<512x1xi32>
    %c16_i32 = arith.constant 16 : i32
    %c0_i32 = arith.constant 0 : i32
    %13 = arith.cmpi eq, %c16_i32, %c0_i32 : i32
    %c1_i32 = arith.constant 1 : i32
    %14 = arith.select %13, %c1_i32, %c16_i32 : i32
    %15 = vector.broadcast %14 : i32 to vector<512x1xi32>
    %16 = arith.remsi %12, %15 : vector<512x1xi32>
    %c0_i32_7 = arith.constant 0 : i32
    %17 = vector.broadcast %c0_i32_7 : i32 to vector<512x1xi32>
    %18 = arith.cmpi ne, %16, %17 : vector<512x1xi32>
    %c0_i32_8 = arith.constant 0 : i32
    %19 = vector.broadcast %c0_i32_8 : i32 to vector<512x1xi32>
    %20 = arith.cmpi slt, %16, %19 : vector<512x1xi32>
    %c0_i32_9 = arith.constant 0 : i32
    %21 = arith.cmpi slt, %14, %c0_i32_9 : i32
    %22 = vector.broadcast %21 : i1 to vector<512x1xi1>
    %23 = vector.broadcast %22 : vector<512x1xi1> to vector<512x1xi1>
    %24 = arith.xori %20, %23 : vector<512x1xi1>
    %25 = arith.andi %24, %18 : vector<512x1xi1>
    %26 = vector.broadcast %14 : i32 to vector<512x1xi32>
    %27 = arith.addi %16, %26 : vector<512x1xi32>
    %28 = arith.select %25, %27, %16 : vector<512x1xi1>, vector<512x1xi32>
    %c15_i32 = arith.constant 15 : i32
    %29 = vector.broadcast %c15_i32 : i32 to vector<512x1xi32>
    %30 = arith.subi %29, %28 : vector<512x1xi32>
    %c127_i32 = arith.constant 127 : i32
    %31 = tpu.dynamic_rotate %11 by %c127_i32 dim 1 : vector<512x128xf32>, i32 -> vector<512x128xf32>
    %c1_i32_10 = arith.constant 1 : i32
    %32 = vector.broadcast %c1_i32_10 : i32 to vector<512x1xi32>
    %33 = arith.andi %30, %32 : vector<512x1xi32>
    %c0_i32_11 = arith.constant 0 : i32
    %34 = vector.broadcast %c0_i32_11 : i32 to vector<512x1xi32>
    %35 = arith.cmpi sgt, %33, %34 : vector<512x1xi32>
    %36 = vector.shape_cast %35 : vector<512x1xi1> to vector<512x1xi1>
    %37 = vector.broadcast %36 : vector<512x1xi1> to vector<512x128xi1>
    %38 = arith.select %37, %31, %11 : vector<512x128xi1>, vector<512x128xf32>
    %c126_i32 = arith.constant 126 : i32
    %39 = tpu.dynamic_rotate %38 by %c126_i32 dim 1 : vector<512x128xf32>, i32 -> vector<512x128xf32>
    %c2_i32 = arith.constant 2 : i32
    %40 = vector.broadcast %c2_i32 : i32 to vector<512x1xi32>
    %41 = arith.andi %30, %40 : vector<512x1xi32>
    %c0_i32_12 = arith.constant 0 : i32
    %42 = vector.broadcast %c0_i32_12 : i32 to vector<512x1xi32>
    %43 = arith.cmpi sgt, %41, %42 : vector<512x1xi32>
    %44 = vector.shape_cast %43 : vector<512x1xi1> to vector<512x1xi1>
    %45 = vector.broadcast %44 : vector<512x1xi1> to vector<512x128xi1>
    %46 = arith.select %45, %39, %38 : vector<512x128xi1>, vector<512x128xf32>
    %c124_i32 = arith.constant 124 : i32
    %47 = tpu.dynamic_rotate %46 by %c124_i32 dim 1 : vector<512x128xf32>, i32 -> vector<512x128xf32>
    %c4_i32 = arith.constant 4 : i32
    %48 = vector.broadcast %c4_i32 : i32 to vector<512x1xi32>
    %49 = arith.andi %30, %48 : vector<512x1xi32>
    %c0_i32_13 = arith.constant 0 : i32
    %50 = vector.broadcast %c0_i32_13 : i32 to vector<512x1xi32>
    %51 = arith.cmpi sgt, %49, %50 : vector<512x1xi32>
    %52 = vector.shape_cast %51 : vector<512x1xi1> to vector<512x1xi1>
    %53 = vector.broadcast %52 : vector<512x1xi1> to vector<512x128xi1>
    %54 = arith.select %53, %47, %46 : vector<512x128xi1>, vector<512x128xf32>
    %c120_i32 = arith.constant 120 : i32
    %55 = tpu.dynamic_rotate %54 by %c120_i32 dim 1 : vector<512x128xf32>, i32 -> vector<512x128xf32>
    %c8_i32 = arith.constant 8 : i32
    %56 = vector.broadcast %c8_i32 : i32 to vector<512x1xi32>
    %57 = arith.andi %30, %56 : vector<512x1xi32>
    %c0_i32_14 = arith.constant 0 : i32
    %58 = vector.broadcast %c0_i32_14 : i32 to vector<512x1xi32>
    %59 = arith.cmpi sgt, %57, %58 : vector<512x1xi32>
    %60 = vector.shape_cast %59 : vector<512x1xi1> to vector<512x1xi1>
    %61 = vector.broadcast %60 : vector<512x1xi1> to vector<512x128xi1>
    %62 = arith.select %61, %55, %54 : vector<512x128xi1>, vector<512x128xf32>
    %63 = vector.extract_strided_slice %62 {offsets = [0, 0], sizes = [512, 16], strides = [1, 1]} : vector<512x128xf32> to vector<512x16xf32>
    %64 = vector.shape_cast %63 : vector<512x16xf32> to vector<32x16x16xf32>
    %65 = vector.extract_strided_slice %4 {offsets = [0, 0], sizes = [128, 32], strides = [1, 1]} : vector<128x128xf32> to vector<128x32xf32>
    %66 = vector.shape_cast %65 : vector<128x32xf32> to vector<8x16x32xf32>
    %67 = vector.extract_strided_slice %4 {offsets = [0, 32], sizes = [128, 32], strides = [1, 1]} : vector<128x128xf32> to vector<128x32xf32>
    %68 = vector.shape_cast %67 : vector<128x32xf32> to vector<8x16x32xf32>
    %69 = vector.extract_strided_slice %4 {offsets = [0, 64], sizes = [128, 32], strides = [1, 1]} : vector<128x128xf32> to vector<128x32xf32>
    %70 = vector.shape_cast %69 : vector<128x32xf32> to vector<8x16x32xf32>
    %71 = vector.extract_strided_slice %4 {offsets = [0, 96], sizes = [128, 32], strides = [1, 1]} : vector<128x128xf32> to vector<128x32xf32>
    %72 = vector.shape_cast %71 : vector<128x32xf32> to vector<8x16x32xf32>
    %73 = tpu.concatenate %66, %68, %70, %72 in 0 : vector<8x16x32xf32>, vector<8x16x32xf32>, vector<8x16x32xf32>, vector<8x16x32xf32> -> vector<32x16x32xf32>
    %74 = vector.extract_strided_slice %3 {offsets = [0, 128], sizes = [128, 128], strides = [1, 1]} : vector<128x384xf32> to vector<128x128xf32>
    %75 = vector.extract_strided_slice %74 {offsets = [0, 0], sizes = [128, 32], strides = [1, 1]} : vector<128x128xf32> to vector<128x32xf32>
    %76 = vector.shape_cast %75 : vector<128x32xf32> to vector<8x16x32xf32>
    %77 = vector.extract_strided_slice %74 {offsets = [0, 32], sizes = [128, 32], strides = [1, 1]} : vector<128x128xf32> to vector<128x32xf32>
    %78 = vector.shape_cast %77 : vector<128x32xf32> to vector<8x16x32xf32>
    %79 = vector.extract_strided_slice %74 {offsets = [0, 64], sizes = [128, 32], strides = [1, 1]} : vector<128x128xf32> to vector<128x32xf32>
    %80 = vector.shape_cast %79 : vector<128x32xf32> to vector<8x16x32xf32>
    %81 = vector.extract_strided_slice %74 {offsets = [0, 96], sizes = [128, 32], strides = [1, 1]} : vector<128x128xf32> to vector<128x32xf32>
    %82 = vector.shape_cast %81 : vector<128x32xf32> to vector<8x16x32xf32>
    %83 = tpu.concatenate %76, %78, %80, %82 in 0 : vector<8x16x32xf32>, vector<8x16x32xf32>, vector<8x16x32xf32>, vector<8x16x32xf32> -> vector<32x16x32xf32>
    %84 = vector.extract_strided_slice %3 {offsets = [0, 256], sizes = [128, 128], strides = [1, 1]} : vector<128x384xf32> to vector<128x128xf32>
    %85 = vector.extract_strided_slice %84 {offsets = [0, 0], sizes = [128, 32], strides = [1, 1]} : vector<128x128xf32> to vector<128x32xf32>
    %86 = vector.shape_cast %85 : vector<128x32xf32> to vector<8x16x32xf32>
    %87 = vector.extract_strided_slice %84 {offsets = [0, 32], sizes = [128, 32], strides = [1, 1]} : vector<128x128xf32> to vector<128x32xf32>
    %88 = vector.shape_cast %87 : vector<128x32xf32> to vector<8x16x32xf32>
    %89 = vector.extract_strided_slice %84 {offsets = [0, 64], sizes = [128, 32], strides = [1, 1]} : vector<128x128xf32> to vector<128x32xf32>
    %90 = vector.shape_cast %89 : vector<128x32xf32> to vector<8x16x32xf32>
    %91 = vector.extract_strided_slice %84 {offsets = [0, 96], sizes = [128, 32], strides = [1, 1]} : vector<128x128xf32> to vector<128x32xf32>
    %92 = vector.shape_cast %91 : vector<128x32xf32> to vector<8x16x32xf32>
    %93 = tpu.concatenate %86, %88, %90, %92 in 0 : vector<8x16x32xf32>, vector<8x16x32xf32>, vector<8x16x32xf32>, vector<8x16x32xf32> -> vector<32x16x32xf32>
    "tpu.trace_start"() <{level = 10 : i32, message = "gqd,gkd->gqk"}> : () -> ()
    %cst_15 = arith.constant dense<0.000000e+00> : vector<32x16x16xf32>
    %94 = tpu.matmul %73, %83, %cst_15 {dimension_numbers = #tpu.dot_dimension_numbers<[2], [2], [1], [1], [0, 0, 0, 1, 1, 1], [0], [0]>} : vector<32x16x32xf32>, vector<32x16x32xf32>, vector<32x16x16xf32> -> vector<32x16x16xf32>
    "tpu.trace_stop"() : () -> ()
    %95 = arith.addf %94, %64 : vector<32x16x16xf32>
    %cst_16 = arith.constant dense<0xFF800000> : vector<32x16xf32>
    %96 = vector.multi_reduction <maximumf>, %95, %cst_16 [2] : vector<32x16x16xf32> to vector<32x16xf32>
    %97 = vector.shape_cast %96 : vector<32x16xf32> to vector<32x16x1xf32>
    %98 = vector.broadcast %97 : vector<32x16x1xf32> to vector<32x16x16xf32>
    %99 = arith.subf %95, %98 : vector<32x16x16xf32>
    %100 = math.exp %99 : vector<32x16x16xf32>
    %cst_17 = arith.constant dense<0.000000e+00> : vector<32x16xf32>
    %101 = vector.multi_reduction <add>, %100, %cst_17 [2] : vector<32x16x16xf32> to vector<32x16xf32>
    %102 = vector.shape_cast %101 : vector<32x16xf32> to vector<32x16x1xf32>
    %103 = vector.broadcast %102 : vector<32x16x1xf32> to vector<32x16x16xf32>
    %104 = arith.divf %100, %103 : vector<32x16x16xf32>
    "tpu.trace_start"() <{level = 10 : i32, message = "gqk,gkd->gqd"}> : () -> ()
    %cst_18 = arith.constant dense<0.000000e+00> : vector<32x16x32xf32>
    %105 = tpu.matmul %104, %93, %cst_18 {dimension_numbers = #tpu.dot_dimension_numbers<[2], [1], [1], [2], [0, 0, 0, 1, 1, 2], [0], [0]>} : vector<32x16x16xf32>, vector<32x16x32xf32>, vector<32x16x32xf32> -> vector<32x16x32xf32>
    "tpu.trace_stop"() : () -> ()
    %106 = vector.extract_strided_slice %105 {offsets = [0, 0, 0], sizes = [8, 16, 32], strides = [1, 1, 1]} : vector<32x16x32xf32> to vector<8x16x32xf32>
    %107 = vector.extract_strided_slice %105 {offsets = [8, 0, 0], sizes = [8, 16, 32], strides = [1, 1, 1]} : vector<32x16x32xf32> to vector<8x16x32xf32>
    %108 = vector.extract_strided_slice %105 {offsets = [16, 0, 0], sizes = [8, 16, 32], strides = [1, 1, 1]} : vector<32x16x32xf32> to vector<8x16x32xf32>
    %109 = vector.extract_strided_slice %105 {offsets = [24, 0, 0], sizes = [8, 16, 32], strides = [1, 1, 1]} : vector<32x16x32xf32> to vector<8x16x32xf32>
    %110 = tpu.concatenate %106, %107, %108, %109 in 2 : vector<8x16x32xf32>, vector<8x16x32xf32>, vector<8x16x32xf32>, vector<8x16x32xf32> -> vector<8x16x128xf32>
    %111 = vector.shape_cast %110 : vector<8x16x128xf32> to vector<128x128xf32>
    %c0_19 = arith.constant 0 : index
    %c0_20 = arith.constant 0 : index
    %112 = vector.load %arg3[%c0_19, %c0_20] : memref<128x128xf32, #tpu.memory_space<vmem>>, vector<128x128xf32>
    %cst_21 = arith.constant dense<0.000000e+00> : vector<128x128xf32>
    %113 = tpu.matmul %111, %112, %cst_21 {dimension_numbers = #tpu.dot_dimension_numbers<[1], [0], [0], [1], [0, 0, 1, 1], [], []>} : vector<128x128xf32>, vector<128x128xf32>, vector<128x128xf32> -> vector<128x128xf32>
    %114 = vector.shape_cast %113 : vector<128x128xf32> to vector<8x16x128xf32>
    %c0_22 = arith.constant 0 : index
    %c0_23 = arith.constant 0 : index
    %c0_24 = arith.constant 0 : index
    %115 = vector.load %arg5[%c0_22, %c0_23, %c0_24] : memref<8x16x128xf32, #tpu.memory_space<vmem>>, vector<8x16x128xf32>
    tpu.vector_store %arg5[%c0_22, %c0_23, %c0_24], %114 {strides = array<i32>} : memref<8x16x128xf32, #tpu.memory_space<vmem>>, vector<8x16x128xf32>,
    return
  }
  func.func @transform_0(%arg0: i32) -> (i32, i32, i32) {
    %c0_i32 = arith.constant 0 : i32
    %c0_i32_0 = arith.constant 0 : i32
    %c0_i32_1 = arith.constant 0 : i32
    return %arg0, %c0_i32, %c0_i32_0 : i32, i32, i32
  }
  func.func @transform_1(%arg0: i32) -> (i32, i32) {
    %c0_i32 = arith.constant 0 : i32
    %c0_i32_0 = arith.constant 0 : i32
    %c0_i32_1 = arith.constant 0 : i32
    return %c0_i32, %c0_i32_0 : i32, i32
  }
  func.func @transform_2(%arg0: i32) -> (i32, i32) {
    %c0_i32 = arith.constant 0 : i32
    %c0_i32_0 = arith.constant 0 : i32
    %c0_i32_1 = arith.constant 0 : i32
    return %c0_i32, %c0_i32_0 : i32, i32
  }
  func.func @transform_3(%arg0: i32) -> (i32, i32) {
    %c0_i32 = arith.constant 0 : i32
    %c0_i32_0 = arith.constant 0 : i32
    %c0_i32_1 = arith.constant 0 : i32
    return %c0_i32, %c0_i32_0 : i32, i32
  }
  func.func @transform_4(%arg0: i32) -> (i32, i32, i32) {
    %c0_i32 = arith.constant 0 : i32
    %c0_i32_0 = arith.constant 0 : i32
    %c0_i32_1 = arith.constant 0 : i32
    return %arg0, %c0_i32, %c0_i32_0 : i32, i32, i32
  }
}

</mosaic_0001>

<bundles_post_ra>
// kernel: tpu_custom_call.1
= control target key start
LH: loop header
LB: loop body
LE: loop exit
PB: predicated region body
PF: predicated region fallthrough
CT: control target
= control target key end

     0   :  { %9 = vsyncpa [#allocation3], 0  ;;  %s18035_s0 = inlined_call_operand.hbm [shape: f32[16,16,128], index: 0, kind: input, shape index: {}]   ;;  %s18036_s1 = inlined_call_operand.hbm [shape: f32[128,384], index: 1, kind: input, shape index: {}]   ;;  %s18037_s2 = inlined_call_operand.hbm [shape: f32[128,128], index: 2, kind: input, shape index: {}]   ;;  %s18038_s3 = inlined_call_operand.hbm [shape: f32[128,512], index: 3, kind: input, shape index: {}]   ;;  %s18039_s4 = inlined_call_operand.hbm [shape: f32[16,16,128], index: 4, kind: output, shape index: {}]  }
   0x1   :  { %11 = vsyncpa [#allocation3 + $0x1], 0 }
   0x2   :  { %12 = vsyncpa [#allocation6], 0 }
   0x3   :  { %13 = vsyncpa [#allocation9], 0 }
   0x4   :  { %14 = vsyncpa [#allocation4], 0 }
   0x5   :  { %16 = vsyncpa [#allocation4 + $0x1], 0  ;;  %s13121_s15 = smov 0   ;;  %s13123_s16 = smov 0  }
   0x6   :  { %s13125_s17 = smov 0   ;;  %s13127_s18 = smov 0  }
   0x7 LB: > { %s13142_s19 = sadd.s32 4294967295, %s13073_s18   ;;  %s10582_s20 = sadd.s32 4294967294, %s13073_s18   ;;  %s13073_s18 = sphi %s13127_s18, %s19367_s18   ;;  %s13069_s17 = sphi %s13125_s17, %s19366_s17   ;;  %s13065_s16 = sphi %s13123_s16, %s19365_s16   ;;  %s13061_s15 = sphi %s13121_s15, %s19364_s15  }
   0x8   : > { %p42_p0 = scmp.ne.s32.totalorder %s13065_s16, %s13061_s15  ;;  %p18040_p1 = scmp.eq.s32.totalorder %s13142_s19, 0 }
   0x9   : > { %p135_p3 = scmp.eq.s32.totalorder %s10582_s20, 1  ;;  %p10583_p5 = scmp.ge.s32.totalorder %s13073_s18, 1 }
   0xa   : > { %p13151_p4 = por %p18040_p1, %p42_p0  ;;  %p142_p7 = scmp.lt.s32.totalorder %s13073_s18, 3 }
   0xb   : > { %p13156_p6 = por %p135_p3, %p42_p0  ;;  %s13075_s24 = smov [#allocation5]  }
   0xc   : > { %s18374_s21 = scalar_select %p13151_p4, 1, 0 }
   0xd   : > { %s18375_s22 = scalar_select %p13156_p6, 1, 0 }
   0xe   : > { %p13161_p8 = pnand %p10583_p5, %p142_p7  ;;  %s154_s25 = sshll.u32 %s13075_s24, 4  ;;  %s13165_s25 = int_to_ptr.vmem [resolvable:$true] %s154_s25 }
   0xf   : > { %s13076_s27 = smov [#allocation7]   ;;  %s12885_s5 = scalar_lea.hbm %s18036_s1, 6144 }
  0x10   : > { %s18376_s23 = scalar_select %p13161_p8, 1, 0 }
  0x11   : > { %p12192_p9 = pneg %p13161_p8  ;;  %s167_s28 = sshll.u32 %s13076_s27, 4  ;;  %s13176_s28 = int_to_ptr.vmem [resolvable:$true] %s167_s28 }
  0x12   : > { %p12886_p12 = scmp.ne.s32.totalorder %s18036_s1, %s12885_s5  ;;  %p12892_p5 = scmp.lt.u32.totalorder %s12885_s5, %s18036_s1 }
  0x13   : > { %p13172_p11 = pnand %p12192_p9, %p18040_p1 }
  0x15   : > { %p13186_p13 = pneg %p13172_p11 }
  0x17   : > { %p12888_p0 = pnand %p13186_p13, %p12886_p12 }
  0x19   : > { %p12889_p3 = pneg %p12888_p0 }
  0x1b   : > { %p12894_p7 = pnand %p12892_p5, %p12889_p3 }
  0x1d   : > { %12897 = shalt.err (!%p12894_p7)
}
  0x1e   : > { %s12898_s11 = scalar_lea.vmem %s13165_s25, 6144  ;;  %p12906_p2 = scmp.lt.s32.totalorder %s13165_s25, %s13165_s25 }
  0x1f   : > { %p12899_p9 = scmp.ne.s32.totalorder %s13165_s25, %s12898_s11  ;;  %p12907_p6 = scmp.lt.s32.totalorder %s12898_s11, %s12898_s11 }
  0x21   : > { %p12901_p10 = pnand %p12899_p9, %p13186_p13  ;;  %p12908_p12 = por %p12907_p6, %p12906_p2 }
  0x23   : > { %p12902_p1 = pneg %p12901_p10 }
  0x25   : > { %p12909_p0 = pnand %p12908_p12, %p12902_p1 }
  0x27   : > { %12912 = shalt.err (!%p12909_p0)
}
  0x28   : > { %s13077_s12 = smov 384   ;;  %s13078_s13 = smov 24  }
  0x29   : > { %12195 = dma.hbm_to_vmem [thread:$0]  (!%p13172_p11), %s18036_s1, 6144, %s13165_s25, [#allocation6], %s13077_s12, %s13077_s12, %s13078_s13  }
  0x2a   : > { %s12913_s29 = scalar_lea.hbm %s18037_s2, 2048 }
  0x2b   : > { %p12914_p2 = scmp.ne.s32.totalorder %s18037_s2, %s12913_s29  ;;  %p12920_p10 = scmp.lt.u32.totalorder %s12913_s29, %s18037_s2 }
  0x2d   : > { %p12916_p1 = pnand %p12914_p2, %p13186_p13 }
  0x2f   : > { %p12917_p6 = pneg %p12916_p1 }
  0x31   : > { %p12922_p3 = pnand %p12920_p10, %p12917_p6 }
  0x33   : > { %12925 = shalt.err (!%p12922_p3)
}
  0x34   : > { %s12926_s25 = scalar_lea.vmem %s13176_s28, 2048  ;;  %p12934_p12 = scmp.lt.s32.totalorder %s13176_s28, %s13176_s28 }
  0x35   : > { %p12927_p5 = scmp.ne.s32.totalorder %s13176_s28, %s12926_s25  ;;  %p12935_p0 = scmp.lt.s32.totalorder %s12926_s25, %s12926_s25 }
  0x37   : > { %p12929_p7 = pnand %p12927_p5, %p13186_p13  ;;  %p12936_p2 = por %p12935_p0, %p12934_p12 }
  0x39   : > { %p12930_p9 = pneg %p12929_p7 }
  0x3b   : > { %p12937_p1 = pnand %p12936_p2, %p12930_p9 }
  0x3d   : > { %12940 = shalt.err (!%p12937_p1)
}
  0x3e   : > { %s13079_s9 = smov 128   ;;  %s13080_s10 = smov 8  }
  0x3f   : > { %12198 = dma.hbm_to_vmem [thread:$0]  (!%p13172_p11), %s18037_s2, 2048, %s13176_s28, [#allocation6], %s13079_s9, %s13079_s9, %s13080_s10  }
  0x40   : > { %s13081_s13 = smov [#allocation8]   ;;  %s12941_s27 = scalar_lea.hbm %s18038_s3, 8192 }
  0x41   : > { %s180_s14 = sshll.u32 %s13081_s13, 4  ;;  %p12942_p6 = scmp.ne.s32.totalorder %s18038_s3, %s12941_s27  ;;  %s181_s14 = int_to_ptr.vmem [resolvable:$true] %s180_s14 }
  0x42   : > { %p12948_p5 = scmp.lt.u32.totalorder %s12941_s27, %s18038_s3 }
  0x43   : > { %p12944_p10 = pnand %p12942_p6, %p13186_p13 }
  0x45   : > { %p12945_p3 = pneg %p12944_p10 }
  0x47   : > { %p12950_p7 = pnand %p12948_p5, %p12945_p3 }
  0x49   : > { %12953 = shalt.err (!%p12950_p7)
}
  0x4a   : > { %s12954_s28 = scalar_lea.vmem %s181_s14, 8192  ;;  %p12962_p2 = scmp.lt.s32.totalorder %s181_s14, %s181_s14 }
  0x4b   : > { %p12955_p9 = scmp.ne.s32.totalorder %s181_s14, %s12954_s28  ;;  %p12963_p1 = scmp.lt.s32.totalorder %s12954_s28, %s12954_s28 }
  0x4d   : > { %p12957_p12 = pnand %p12955_p9, %p13186_p13  ;;  %p12964_p4 = por %p12963_p1, %p12962_p2 }
  0x4f   : > { %p12958_p0 = pneg %p12957_p12 }
  0x51   : > { %p12965_p8 = pnand %p12964_p4, %p12958_p0 }
  0x53   : > { %12968 = shalt.err (!%p12965_p8)
}
  0x54   : > { %s13082_s7 = smov 512   ;;  %s13083_s8 = smov 32  }
  0x55   : > { %12201 = dma.hbm_to_vmem [thread:$0]  (!%p13172_p11), %s18038_s3, 8192, %s181_s14, [#allocation9], %s13082_s7, %s13082_s7, %s13083_s8  }
  0x56   : > { %s13252_s12 = sadd.s32 1, %s13073_s18   ;;  %s29_s20 = sadd.s32 1, %s13069_s17 }
  0x57   : > { %s26_s13 = ssub.s32 %s13073_s18, %s13252_s12  ;;  %p36_p8 = scmp.ne.s32.totalorder %s13069_s17, %s13065_s16 }
  0x58   : > { %p27_p4 = scmp.eq.s32.totalorder %s26_s13, 0  ;;  %p37_p13 = scmp.eq.s32.totalorder %s13073_s18, 0 }
  0x59   : > { %p12213_p6 = scmp.lt.s32.totalorder %s13073_s18, 2  ;;  %p18379_p3 = scmp.eq.s32.totalorder %s13142_s19, 1 }
  0x5a   : > { %s13262_s24 = scalar_select %p27_p4, %s13069_s17, %s29_s20  }
  0x5b   : > { %p38_p10 = por %p37_p13, %p36_p8  ;;  %p13266_p5 = por %p18379_p3, %p36_p8 }
  0x5c   : > { %s194_s26 = sand.u32 1, %s13069_s17   ;;  %s10797_s29 = sshll.u32 %s13073_s18, 11 }
  0x5d   : > { %s10588_s14 = sshll.u32 %s194_s26, 7  ;;  %s13275_s6 = scalar_lea.hbm %s18035_s0, %s10797_s29 }
  0x5e   : > { %s198_s28 = scalar_lea.vmem [#allocation2], %s10588_s14  ;;  %p13277_p11 = pnand %p12213_p6, %p38_p10 }
  0x5f   : > { %s206_s7 = sshll.u32 %s198_s28, 4  ;;  %s13283_s25 = scalar_lea.sflag [#allocation3], %s194_s26  ;;  %s13281_s7 = int_to_ptr.vmem [resolvable:$true] %s206_s7 }
  0x60   : > { %s12969_s11 = scalar_lea.hbm %s13275_s6, 2048  ;;  %p12971_p9 = pneg %p13277_p11 }
  0x61   : > { %p12970_p7 = scmp.ne.s32.totalorder %s13275_s6, %s12969_s11  ;;  %s12974_s29 = scalar_lea.hbm %s18035_s0, 4096 }
  0x62   : > { %p12975_p2 = scmp.lt.u32.totalorder %s13275_s6, %s18035_s0  ;;  %p12976_p1 = scmp.lt.u32.totalorder %s12974_s29, %s12969_s11 }
  0x63   : > { %p12972_p12 = pnand %p12971_p9, %p12970_p7  ;;  %p12978_p8 = scmp.lt.u32.totalorder %s12969_s11, %s13275_s6 }
  0x64   : > { %p12977_p4 = por %p12976_p1, %p12975_p2 }
  0x65   : > { %p12973_p0 = pneg %p12972_p12 }
  0x66   : > { %p12979_p13 = por %p12978_p8, %p12977_p4 }
  0x68   : > { %p12980_p6 = pnand %p12979_p13, %p12973_p0 }
  0x6a   : > { %12983 = shalt.err (!%p12980_p6)
}
  0x6b   : > { %s12984_s26 = scalar_lea.vmem %s13281_s7, 2048  ;;  %s13084_s5 = smov [#allocation2]  }
  0x6c   : > { %p12985_p10 = scmp.ne.s32.totalorder %s13281_s7, %s12984_s26  ;;  %s12989_s28 = sshll.u32 %s13084_s5, 4  ;;  %s12990_s28 = int_to_ptr.vmem [resolvable:$false] %s12989_s28 }
  0x6d   : > { %s12991_s13 = scalar_lea.vmem %s12990_s28, 4096  ;;  %p12992_p12 = scmp.lt.s32.totalorder %s13281_s7, %s12990_s28 }
  0x6e   : > { %p12987_p3 = pnand %p12985_p10, %p12971_p9  ;;  %p12993_p2 = scmp.lt.s32.totalorder %s12991_s13, %s12984_s26 }
  0x70   : > { %p12988_p7 = pneg %p12987_p3  ;;  %p12994_p1 = por %p12993_p2, %p12992_p12 }
  0x72   : > { %p12995_p4 = pnand %p12994_p1, %p12988_p7 }
  0x74   : > { %12998 = shalt.err (!%p12995_p4)
}
  0x75   : > { %12205 = dma.hbm_to_vmem [thread:$0]  (!%p13277_p11), %s13275_s6, 2048, %s13281_s7, %s13283_s25, %s13079_s9, %s13079_s9, %s13080_s10  }
  0x76   : > { %p18382_p9 = scmp.ne.s32.totalorder %s18376_s23, 0 }
  0x78   : > { %218 = sbr.rel (%p18382_p9) target bundleno = 2546 (0x9f2), region = 36 }
  0x7f   : > { %s13317_s11 = sand.u32 1, %s13065_s16   ;;  %p18383_p0 = scmp.ne.s32.totalorder %s18374_s21, 0 }
  0x80   : > { %s10593_s20 = sshll.u32 %s13317_s11, 7  ;;  %s221_s29 = scalar_lea.sflag [#allocation3], %s13317_s11 }
  0x81   : > { %s13323_s8 = scalar_lea.vmem [#allocation2], %s10593_s20 }
  0x82   : > { %13044 = dma.done.wait (%p18383_p0), %s221_s29, 2048  }
  0x83   : > { %13046 = vsyncadd (%p18383_p0), %s221_s29, 4294965248  ;;  %p18384_p11 = scmp.eq.s32.totalorder %s13142_s19, 0 }
  0x85   : > { %13048 = dma.done.wait (%p18384_p11), [#allocation6], 8192   ;;  %p18385_p8 = pmov %p18384_p11 }
  0x87   : > { %13050 = vsyncadd (%p18385_p8), [#allocation6], 4294959104  ;;  %p18386_p13 = pmov %p18385_p8 }
  0x88   : > { %p18387_p6 = pmov %p18385_p8 }
  0x89   : > { %13052 = dma.done.wait (%p18386_p13), [#allocation9], 8192  }
  0x8a   : > { %13054 = vsyncadd (%p18387_p6), [#allocation9], 4294959104  ;;  %v13085_v0 = vmov 0.0   ;;  %v280_v1 = vld [vmem:[#allocation5 + $0x8] sm:$0xff]  ;;  %v283_v2 = vld [vmem:[#allocation5 + $0x20] sm:$0xff]  ;;  %s13086_s21 = smov 96  }
  0x8b   : > { %391 = vmatprep.mubr.f32.mxu0 %v13085_v0  ;;  %439 = vmatprep.mubr.f32.mxu1 %v13085_v0  ;;  %v279_v3 = vld [vmem:[#allocation5] sm:$0xff]  ;;  %v11680_v4 = vpack.c.bf16 %v283_v2, %v280_v1  ;;  %v282_v5 = vld [vmem:[#allocation5 + $0x18] sm:$0xff]  ;;  %v289_v7 = vld [vmem:[#allocation5 + $0x50] sm:$0xff]  ;;  %vm4092_vm0 = vcmask 261120   ;;  %s13087_s23 = smov 64   ;;  %s13088_s9 = smov 32  }
  0x8c   : > { %v286_v6 = vld [vmem:[#allocation5 + $0x38] sm:$0xff]  ;;  %v11682_v8 = vpack.c.bf16 %v282_v5, %v279_v3  ;;  %v285_v10 = vld [vmem:[#allocation5 + $0x30] sm:$0xff]  ;;  %v288_v11 = vld [vmem:[#allocation5 + $0x48] sm:$0xff]  ;;  %s13089_s10 = smov 127   ;;  %s13090_s6 = smov 126  }
  0x8d   : > { %v11684_v9 = vpack.c.bf16 %v289_v7, %v286_v6  ;;  %v292_v12 = vld [vmem:[#allocation5 + $0x68] sm:$0xff]  ;;  %11681 = vmatprep.subr.bf16.mxu0 %v11680_v4  ;;  %12160 = vmatprep.subr.bf16.mxu1 %v11680_v4  ;;  %v295_v13 = vld [vmem:[#allocation5 + $0x80] sm:$0xff]  ;;  %v11686_v14 = vpack.c.bf16 %v288_v11, %v285_v10  ;;  %v294_v17 = vld [vmem:[#allocation5 + $0x78] sm:$0xff]  ;;  %s13091_s7 = smov 124   ;;  %s13092_s25 = smov 120  }
  0x8e   : > { %11683 = vmatpush1.bf16.msra.mxu0 %v11682_v8  ;;  %12168 = vmatpush1.bf16.msra.mxu1 %v11682_v8  ;;  %v11688_v15 = vpack.c.bf16 %v295_v13, %v292_v12  ;;  %v291_v16 = vld [vmem:[#allocation5 + $0x60] sm:$0xff]  ;;  %v298_v18 = vld [vmem:[#allocation5 + $0x98] sm:$0xff]  ;;  %v301_v19 = vld [vmem:[#allocation5 + $0xb0] sm:$0xff]  ;;  %s17966_s14 = scalar_lea.vmem [#allocation10], %s10593_s20  ;;  %s10799_s30 = sshll.u32 %s13142_s19, 11 }
  0x8f   : > { %11685 = vmatprep.subr.bf16.mxu0 %v11684_v9  ;;  %12161 = vmatprep.subr.bf16.mxu1 %v11684_v9  ;;  %v11690_v20 = vpack.c.bf16 %v294_v17, %v291_v16  ;;  %v11692_v21 = vpack.c.bf16 %v301_v19, %v298_v18  ;;  %v297_v22 = vld [vmem:[#allocation5 + $0x90] sm:$0xff]  ;;  %v300_v23 = vld [vmem:[#allocation5 + $0xa8] sm:$0xff]  ;;  %v307_v25 = vld [vmem:[#allocation5 + $0xe0] sm:$0xff]  ;;  %s10480_s26 = sshll.u32 %s17966_s14, 4  ;;  %s17987_s13 = scalar_lea.hbm %s18039_s4, %s10799_s30  ;;  %s17989_s26 = int_to_ptr.vmem [resolvable:$true] %s10480_s26 }
  0x90   : > { %v304_v24 = vld [vmem:[#allocation5 + $0xc8] sm:$0xff]  ;;  %v11694_v26 = vpack.c.bf16 %v300_v23, %v297_v22  ;;  %v303_v28 = vld [vmem:[#allocation5 + $0xc0] sm:$0xff]  ;;  %v306_v29 = vld [vmem:[#allocation5 + $0xd8] sm:$0xff]  ;;  %s10466_s20 = scalar_lea.sflag [#allocation4], %s13317_s11  ;;  %s12999_s29 = scalar_lea.vmem %s17989_s26, 2048 }
  0x91   : > { %v11696_v27 = vpack.c.bf16 %v307_v25, %v304_v24  ;;  %v310_v30 = vld [vmem:[#allocation5 + $0xf8] sm:$0xff]  ;;  %v313_v31 = vld [vmem:[#allocation5 + $0x110] sm:$0xff]  ;;  %v11698_v32 = vpack.c.bf16 %v306_v29, %v303_v28  ;;  %v312_v35 = vld [vmem:[#allocation5 + $0x108] sm:$0xff]  ;;  %p13000_p10 = scmp.ne.s32.totalorder %s17989_s26, %s12999_s29  ;;  %s13093_s19 = smov [#allocation10]  }
  0x92   : > { %11687 = vmatpush1.bf16.msra.mxu0 %v11686_v14  ;;  %12169 = vmatpush1.bf16.msra.mxu1 %v11686_v14  ;;  %v11700_v33 = vpack.c.bf16 %v313_v31, %v310_v30  ;;  %v309_v34 = vld [vmem:[#allocation5 + $0xf0] sm:$0xff]  ;;  %v316_v36 = vld [vmem:[#allocation5 + $0x128] sm:$0xff]  ;;  %v319_v37 = vld [vmem:[#allocation5 + $0x140] sm:$0xff] }
  0x93   : > { %11689 = vmatprep.subr.bf16.mxu0 %v11688_v15  ;;  %12162 = vmatprep.subr.bf16.mxu1 %v11688_v15  ;;  %v11702_v38 = vpack.c.bf16 %v312_v35, %v309_v34  ;;  %v11704_v39 = vpack.c.bf16 %v319_v37, %v316_v36  ;;  %v315_v40 = vld [vmem:[#allocation5 + $0x120] sm:$0xff]  ;;  %v318_v41 = vld [vmem:[#allocation5 + $0x138] sm:$0xff]  ;;  %v325_v43 = vld [vmem:[#allocation5 + $0x170] sm:$0xff]  ;;  %p13001_p3 = pnand %p13000_p10, %p13266_p5 }
  0x94   : > { %v322_v42 = vld [vmem:[#allocation5 + $0x158] sm:$0xff]  ;;  %v11706_v44 = vpack.c.bf16 %v318_v41, %v315_v40  ;;  %v321_v46 = vld [vmem:[#allocation5 + $0x150] sm:$0xff]  ;;  %v324_v47 = vld [vmem:[#allocation5 + $0x168] sm:$0xff] }
  0x95   : > { %v11708_v45 = vpack.c.bf16 %v325_v43, %v322_v42  ;;  %v281_v48 = vld [vmem:[#allocation5 + $0x10] sm:$0xff]  ;;  %v284_v49 = vld [vmem:[#allocation5 + $0x28] sm:$0xff]  ;;  %v636_v50 = vld [vmem:[#allocation8 + $0x18] sm:$0xff]  ;;  %v11710_v52 = vpack.c.bf16 %v324_v47, %v321_v46  ;;  %p13002_p7 = pneg %p13001_p3 }
  0x96   : > { %11691 = vmatpush1.bf16.msra.mxu0 %v11690_v20  ;;  %12170 = vmatpush1.bf16.msra.mxu1 %v11690_v20  ;;  %v640_v51 = vld [vmem:[#allocation8 + $0x38] sm:$0xff]  ;;  %v11712_v53 = vpack.c.bf16 %v284_v49, %v281_v48  ;;  %v287_v55 = vld [vmem:[#allocation5 + $0x40] sm:$0xff]  ;;  %v635_v56 = vld [vmem:[#allocation8 + $0x10] sm:$0xff] }
  0x97   : > { %11693 = vmatprep.subr.bf16.mxu0 %v11692_v21  ;;  %12163 = vmatprep.subr.bf16.mxu1 %v11692_v21  ;;  %v11776_v54 = vpack.c.bf16 %v640_v51, %v636_v50  ;;  %v639_v57 = vld [vmem:[#allocation8 + $0x30] sm:$0xff]  ;;  %v290_v58 = vld [vmem:[#allocation5 + $0x58] sm:$0xff]  ;;  %v13340_v61 = vld [vmem:[%s13323_s8] sm:$0xff] }
  0x98   : > { %v644_v59 = vld [vmem:[#allocation8 + $0x58] sm:$0xff]  ;;  %v13343_v62 = vld [vmem:[%s13323_s8 + $0x40] sm:$0xff]  ;;  %v11778_v63 = vpack.c.bf16 %v639_v57, %v635_v56  ;;  %v11716_v1 = vpack.c.bf16 %v290_v58, %v287_v55  ;;  %v293_v2 = vld [vmem:[#allocation5 + $0x70] sm:$0xff] }
  0x99   : > { %v648_v60 = vld [vmem:[#allocation8 + $0x78] sm:$0xff]  ;;  %v643_v4 = vld [vmem:[#allocation8 + $0x50] sm:$0xff]  ;;  %v296_v6 = vld [vmem:[#allocation5 + $0x88] sm:$0xff] }
  0x9a   : > { %11695 = vmatpush1.bf16.msra.mxu0 %v11694_v26  ;;  %12171 = vmatpush1.bf16.msra.mxu1 %v11694_v26  ;;  %v11780_v3 = vpack.c.bf16 %v648_v60, %v644_v59  ;;  %v647_v5 = vld [vmem:[#allocation8 + $0x70] sm:$0xff]  ;;  %v652_v7 = vld [vmem:[#allocation8 + $0x98] sm:$0xff]  ;;  %v13349_v9 = vld [vmem:[%s13323_s8 + $0x8] sm:$0xff]  ;;  %v11720_v12 = vpack.c.bf16 %v296_v6, %v293_v2 }
  0x9b   : > { %11697 = vmatprep.subr.bf16.mxu0 %v11696_v27  ;;  %12164 = vmatprep.subr.bf16.mxu1 %v11696_v27  ;;  %v656_v8 = vld [vmem:[#allocation8 + $0xb8] sm:$0xff]  ;;  %v13353_v10 = vld [vmem:[%s13323_s8 + $0x48] sm:$0xff]  ;;  %v11782_v11 = vpack.c.bf16 %v647_v5, %v643_v4  ;;  %v299_v13 = vld [vmem:[#allocation5 + $0xa0] sm:$0xff] }
  0x9c   : > { %v11784_v14 = vpack.c.bf16 %v656_v8, %v652_v7  ;;  %v651_v15 = vld [vmem:[#allocation8 + $0x90] sm:$0xff]  ;;  %v302_v17 = vld [vmem:[#allocation5 + $0xb8] sm:$0xff]  ;;  %v308_v28 = vld [vmem:[#allocation5 + $0xe8] sm:$0xff] }
  0x9d   : > { %v655_v16 = vld [vmem:[#allocation8 + $0xb0] sm:$0xff]  ;;  %v660_v18 = vld [vmem:[#allocation8 + $0xd8] sm:$0xff]  ;;  %v11724_v23 = vpack.c.bf16 %v302_v17, %v299_v13  ;;  %v311_v35 = vld [vmem:[#allocation5 + $0x100] sm:$0xff] }
  0x9e   : > { %11699 = vmatpush1.bf16.msra.mxu0 %v11698_v32  ;;  %12172 = vmatpush1.bf16.msra.mxu1 %v11698_v32  ;;  %v664_v19 = vld [vmem:[#allocation8 + $0xf8] sm:$0xff]  ;;  %v13359_v20 = vld [vmem:[%s13323_s8 + $0x10] sm:$0xff]  ;;  %v11786_v22 = vpack.c.bf16 %v655_v16, %v651_v15  ;;  %v13379_v42 = vld [vmem:[%s13323_s8 + $0x20] sm:$0xff] }
  0x9f   : > { %11701 = vmatprep.subr.bf16.mxu0 %v11700_v33  ;;  %12165 = vmatprep.subr.bf16.mxu1 %v11700_v33  ;;  %v13363_v21 = vld [vmem:[%s13323_s8 + $0x50] sm:$0xff]  ;;  %v11788_v25 = vpack.c.bf16 %v664_v19, %v660_v18  ;;  %v668_v29 = vld [vmem:[#allocation8 + $0x118] sm:$0xff]  ;;  %v13383_v43 = vld [vmem:[%s13323_s8 + $0x60] sm:$0xff] }
  0xa0   : > { %v305_v24 = vld [vmem:[#allocation5 + $0xd0] sm:$0xff]  ;;  %v672_v30 = vld [vmem:[#allocation8 + $0x138] sm:$0xff]  ;;  %v320_v50 = vld [vmem:[#allocation5 + $0x148] sm:$0xff] }
  0xa1   : > { %v659_v26 = vld [vmem:[#allocation8 + $0xd0] sm:$0xff]  ;;  %v13369_v31 = vld [vmem:[%s13323_s8 + $0x18] sm:$0xff]  ;;  %v11728_v34 = vpack.c.bf16 %v308_v28, %v305_v24  ;;  %v11792_v36 = vpack.c.bf16 %v672_v30, %v668_v29  ;;  %v323_v57 = vld [vmem:[#allocation5 + $0x160] sm:$0xff] }
  0xa2   : > { %11703 = vmatpush1.bf16.msra.mxu0 %v11702_v38  ;;  %12173 = vmatpush1.bf16.msra.mxu1 %v11702_v38  ;;  %v663_v27 = vld [vmem:[#allocation8 + $0xf0] sm:$0xff]  ;;  %v13373_v32 = vld [vmem:[%s13323_s8 + $0x58] sm:$0xff]  ;;  %v638_v13 = vld [vmem:[#allocation8 + $0x28] sm:$0xff] }
  0xa3   : > { %11705 = vmatprep.subr.bf16.mxu0 %v11704_v39  ;;  %12166 = vmatprep.subr.bf16.mxu1 %v11704_v39  ;;  %v11790_v33 = vpack.c.bf16 %v663_v27, %v659_v26  ;;  %v667_v37 = vld [vmem:[#allocation8 + $0x110] sm:$0xff]  ;;  %v314_v39 = vld [vmem:[#allocation5 + $0x118] sm:$0xff]  ;;  %v633_v18 = vld [vmem:[#allocation8] sm:$0xff] }
  0xa4   : > { %v671_v38 = vld [vmem:[#allocation8 + $0x130] sm:$0xff]  ;;  %v676_v40 = vld [vmem:[#allocation8 + $0x158] sm:$0xff]  ;;  %v637_v19 = vld [vmem:[#allocation8 + $0x20] sm:$0xff] }
  0xa5   : > { %v680_v41 = vld [vmem:[#allocation8 + $0x178] sm:$0xff]  ;;  %v317_v46 = vld [vmem:[#allocation5 + $0x130] sm:$0xff]  ;;  %v11746_v24 = vpack.c.bf16 %v637_v19, %v633_v18  ;;  %v641_v26 = vld [vmem:[#allocation8 + $0x40] sm:$0xff] }
  0xa6   : > { %11707 = vmatpush1.bf16.msra.mxu0 %v11706_v44  ;;  %12174 = vmatpush1.bf16.msra.mxu1 %v11706_v44  ;;  %v11794_v44 = vpack.c.bf16 %v671_v38, %v667_v37  ;;  %v11796_v47 = vpack.c.bf16 %v680_v41, %v676_v40  ;;  %v675_v48 = vld [vmem:[#allocation8 + $0x150] sm:$0xff]  ;;  %v684_v51 = vld [vmem:[#allocation8 + $0x198] sm:$0xff]  ;;  %v11736_v56 = vpack.c.bf16 %v320_v50, %v317_v46  ;;  %v645_v27 = vld [vmem:[#allocation8 + $0x60] sm:$0xff] }
  0xa7   : > { %11709 = vmatprep.subr.bf16.mxu0 %v11708_v45  ;;  %12167 = vmatprep.subr.bf16.mxu1 %v11708_v45  ;;  %v11732_v45 = vpack.c.bf16 %v314_v39, %v311_v35  ;;  %v679_v49 = vld [vmem:[#allocation8 + $0x170] sm:$0xff]  ;;  %v696_v2 = vld [vmem:[#allocation8 + $0x1f8] sm:$0xff]  ;;  %v650_v28 = vld [vmem:[#allocation8 + $0x88] sm:$0xff]  ;;  %v11750_v30 = vpack.c.bf16 %v645_v27, %v641_v26 }
  0xa8   : > { %v11798_v55 = vpack.c.bf16 %v679_v49, %v675_v48  ;;  %v683_v59 = vld [vmem:[#allocation8 + $0x190] sm:$0xff]  ;;  %v13411_v15 = vld [vmem:[%s13323_s8 + $0x78] sm:$0xff]  ;;  %v654_v29 = vld [vmem:[#allocation8 + $0xa8] sm:$0xff] }
  0xa9   : > { %v687_v60 = vld [vmem:[#allocation8 + $0x1b0] sm:$0xff]  ;;  %v658_v35 = vld [vmem:[#allocation8 + $0xc8] sm:$0xff]  ;;  %v657_v39 = vld [vmem:[#allocation8 + $0xc0] sm:$0xff] }
  0xaa   : > { %11711 = vmatpush1.bf16.msra.mxu0 %v11710_v52  ;;  %12175 = vmatpush1.bf16.msra.mxu1 %v11710_v52  ;;  %v688_v52 = vld [vmem:[#allocation8 + $0x1b8] sm:$0xff]  ;;  %v13403_v4 = vld [vmem:[%s13323_s8 + $0x70] sm:$0xff]  ;;  %v11802_v5 = vpack.c.bf16 %v687_v60, %v683_v59  ;;  %v666_v40 = vld [vmem:[#allocation8 + $0x108] sm:$0xff] }
  0xab   : > { %11713 = vmatprep.subr.bf16.mxu1 %v11712_v53  ;;  %11777 = vmatprep.subr.bf16.mxu0 %v11776_v54  ;;  %v13393_v54 = vld [vmem:[%s13323_s8 + $0x68] sm:$0xff]  ;;  %v11800_v58 = vpack.c.bf16 %v688_v52, %v684_v51  ;;  %v691_v8 = vld [vmem:[#allocation8 + $0x1d0] sm:$0xff]  ;;  %v673_v49 = vld [vmem:[#allocation8 + $0x140] sm:$0xff] }
  0xac   : > { %v670_v41 = vld [vmem:[#allocation8 + $0x128] sm:$0xff]  ;;  %v677_v50 = vld [vmem:[#allocation8 + $0x160] sm:$0xff]  ;;  %vm13451_vm1 = vmpackc.low %vm4092_vm0, %vm4092_vm0 }
  0xad   : > { %392 = vmatmul.mubr.f32.vlgmr.msra.gmra.mrb[0].mxu0 %v13340_v61  ;;  %440 = vmatmul.mubr.f32.vlgmr.msra.gmra.mrb[0].mxu1 %v13343_v62  ;;  %v674_v46 = vld [vmem:[#allocation8 + $0x148] sm:$0xff] }
  0xae   : > { %397 = vmatprep.mubr.f32.mxu0 %v13085_v0  ;;  %445 = vmatprep.mubr.f32.mxu1 %v13085_v0  ;;  %v682_v51 = vld [vmem:[#allocation8 + $0x188] sm:$0xff] }
  0xaf   : > { %11715 = vmatpush3.bf16.msra.mxu1 %v11712_v53  ;;  %11779 = vmatpush1.bf16.msra.mxu0 %v11778_v63  ;;  %v13389_v53 = vld [vmem:[%s13323_s8 + $0x28] sm:$0xff]  ;;  %v326_v63 = vld [vmem:[#allocation5 + $0x178] sm:$0xff] }
  0xb0   : > { %11717 = vmatprep.subr.bf16.mxu1 %v11716_v1  ;;  %11781 = vmatprep.subr.bf16.mxu0 %v11780_v3  ;;  %v13399_v3 = vld [vmem:[%s13323_s8 + $0x30] sm:$0xff]  ;;  %v11740_v6 = vpack.c.bf16 %v326_v63, %v323_v57  ;;  %v686_v52 = vld [vmem:[#allocation8 + $0x1a8] sm:$0xff]  ;;  %v685_v57 = vld [vmem:[#allocation8 + $0x1a0] sm:$0xff] }
  0xb1   : > { %398 = vmatmul.mubr.f32.gmra.mrb[2].mxu0 %v13349_v9  ;;  %446 = vmatmul.mubr.f32.gmra.mrb[2].mxu1 %v13353_v10  ;;  %v694_v59 = vld [vmem:[#allocation8 + $0x1e8] sm:$0xff]  ;;  %v689_v63 = vld [vmem:[#allocation8 + $0x1c0] sm:$0xff] }
  0xb2   : > { %403 = vmatprep.mubr.f32.mxu0 %v13085_v0  ;;  %451 = vmatprep.mubr.f32.mxu1 %v13085_v0 }
  0xb3   : > { %11719 = vmatpush3.bf16.msra.mxu1 %v11716_v1  ;;  %11783 = vmatpush1.bf16.msra.mxu0 %v11782_v11  ;;  %v692_v1 = vld [vmem:[#allocation8 + $0x1d8] sm:$0xff]  ;;  %v695_v11 = vld [vmem:[#allocation8 + $0x1f0] sm:$0xff] }
  0xb4   : > { %11721 = vmatprep.subr.bf16.mxu1 %v11720_v12  ;;  %11785 = vmatprep.subr.bf16.mxu0 %v11784_v14  ;;  %v11804_v7 = vpack.c.bf16 %v696_v2, %v692_v1  ;;  %v270_v14 = vld [vmem:[%s13323_s8 + $0x38] sm:$0xff]  ;;  %v11806_v16 = vpack.c.bf16 %v695_v11, %v691_v8  ;;  %s13003_s8 = sshll.u32 %s13093_s19, 4  ;;  %s13004_s8 = int_to_ptr.vmem [resolvable:$false] %s13003_s8 }
  0xb5   : > { %404 = vmatmul.mubr.f32.gmra.mrb[4].mxu0 %v13359_v20  ;;  %452 = vmatmul.mubr.f32.gmra.mrb[4].mxu1 %v13363_v21  ;;  %p13006_p12 = scmp.lt.s32.totalorder %s17989_s26, %s13004_s8 }
  0xb6   : > { %409 = vmatprep.mubr.f32.mxu0 %v13085_v0  ;;  %457 = vmatprep.mubr.f32.mxu1 %v13085_v0 }
  0xb7   : > { %11723 = vmatpush3.bf16.msra.mxu1 %v11720_v12  ;;  %11787 = vmatpush1.bf16.msra.mxu0 %v11786_v22  ;;  %v634_v12 = vld [vmem:[#allocation8 + $0x8] sm:$0xff] }
  0xb8   : > { %11725 = vmatprep.subr.bf16.mxu1 %v11724_v23  ;;  %11789 = vmatprep.subr.bf16.mxu0 %v11788_v25  ;;  %v11744_v17 = vpack.c.bf16 %v638_v13, %v634_v12  ;;  %v642_v22 = vld [vmem:[#allocation8 + $0x48] sm:$0xff] }
  0xb9   : > { %410 = vmatmul.mubr.f32.gmra.mrb[6].mxu0 %v13369_v31  ;;  %458 = vmatmul.mubr.f32.gmra.mrb[6].mxu1 %v13373_v32 }
  0xba   : > { %415 = vmatprep.mubr.f32.mxu0 %v13085_v0  ;;  %463 = vmatprep.mubr.f32.mxu1 %v13085_v0 }
  0xbb   : > { %11727 = vmatpush3.bf16.msra.mxu1 %v11724_v23  ;;  %11791 = vmatpush1.bf16.msra.mxu0 %v11790_v33  ;;  %v646_v23 = vld [vmem:[#allocation8 + $0x68] sm:$0xff]  ;;  %v11752_v33 = vpack.c.bf16 %v654_v29, %v650_v28 }
  0xbc   : > { %11729 = vmatprep.subr.bf16.mxu1 %v11728_v34  ;;  %11793 = vmatprep.subr.bf16.mxu0 %v11792_v36  ;;  %v11748_v25 = vpack.c.bf16 %v646_v23, %v642_v22  ;;  %v662_v36 = vld [vmem:[#allocation8 + $0xe8] sm:$0xff] }
  0xbd   : > { %416 = vmatmul.mubr.f32.gmra.mrb[8].mxu0 %v13379_v42  ;;  %464 = vmatmul.mubr.f32.gmra.mrb[8].mxu1 %v13383_v43  ;;  %v11756_v38 = vpack.c.bf16 %v662_v36, %v658_v35 }
  0xbe   : > { %421 = vmatprep.mubr.f32.mxu0 %v13085_v0  ;;  %469 = vmatprep.mubr.f32.mxu1 %v13085_v0 }
  0xbf   : > { %11731 = vmatpush3.bf16.msra.mxu1 %v11728_v34  ;;  %11795 = vmatpush1.bf16.msra.mxu0 %v11794_v44  ;;  %v653_v34 = vld [vmem:[#allocation8 + $0xa0] sm:$0xff]  ;;  %v11760_v44 = vpack.c.bf16 %v670_v41, %v666_v40 }
  0xc0   : > { %11733 = vmatprep.subr.bf16.mxu1 %v11732_v45  ;;  %11797 = vmatprep.subr.bf16.mxu0 %v11796_v47  ;;  %v678_v47 = vld [vmem:[#allocation8 + $0x168] sm:$0xff] }
  0xc1   : > { %422 = vmatmul.mubr.f32.gmra.mrb[10].mxu0 %v13389_v53  ;;  %470 = vmatmul.mubr.f32.gmra.mrb[10].mxu1 %v13393_v54  ;;  %v11764_v48 = vpack.c.bf16 %v678_v47, %v674_v46 }
  0xc2   : > { %427 = vmatprep.mubr.f32.mxu0 %v13085_v0  ;;  %475 = vmatprep.mubr.f32.mxu1 %v13085_v0 }
  0xc3   : > { %11735 = vmatpush3.bf16.msra.mxu1 %v11732_v45  ;;  %11799 = vmatpush1.bf16.msra.mxu0 %v11798_v55  ;;  %v665_v45 = vld [vmem:[#allocation8 + $0x100] sm:$0xff]  ;;  %v11768_v55 = vpack.c.bf16 %v686_v52, %v682_v51 }
  0xc4   : > { %11737 = vmatprep.subr.bf16.mxu1 %v11736_v56  ;;  %11801 = vmatprep.subr.bf16.mxu0 %v11800_v58  ;;  %v690_v58 = vld [vmem:[#allocation8 + $0x1c8] sm:$0xff] }
  0xc5   : > { %428 = vmatmul.mubr.f32.gmra.mrb[12].mxu0 %v13399_v3  ;;  %476 = vmatmul.mubr.f32.gmra.mrb[12].mxu1 %v13403_v4  ;;  %v11772_v60 = vpack.c.bf16 %v694_v59, %v690_v58 }
  0xc6   : > { %433 = vmatprep.mubr.f32.mxu0 %v13085_v0  ;;  %481 = vmatprep.mubr.f32.mxu1 %v13085_v0 }
  0xc7   : > { %11739 = vmatpush3.bf16.msra.mxu1 %v11736_v56  ;;  %11803 = vmatpush1.bf16.msra.mxu0 %v11802_v5  ;;  %v681_v56 = vld [vmem:[#allocation8 + $0x180] sm:$0xff] }
  0xc8   : > { %11741 = vmatprep.subr.bf16.mxu1 %v11740_v6  ;;  %11805 = vmatprep.subr.bf16.mxu0 %v11804_v7 }
  0xc9   : > { %434 = vmatmul.mubr.f32.gmra.mrb[14].mxu0 %v270_v14  ;;  %482 = vmatmul.mubr.f32.gmra.mrb[14].mxu1 %v13411_v15 }
  0xca   : > { %11152 = vmatprep.mubr.f32.mxu1 %v13340_v61  ;;  %922 = vmatprep.mubr.f32.mxu0 %v13085_v0  ;;  %v649_v61 = vld [vmem:[#allocation8 + $0x80] sm:$0xff] }
  0xcb   : > { %11743 = vmatpush3.bf16.msra.mxu1 %v11740_v6  ;;  %11807 = vmatpush1.bf16.msra.mxu0 %v11806_v16  ;;  %v11754_v37 = vpack.c.bf16 %v653_v34, %v649_v61 }
  0xcc   : > { %11745 = vmatprep.subr.bf16.mxu1 %v11744_v17 }
  0xce   : > { %11153 = vmatmul.mubr.f32.vlgmr.msra.gmra.mrb[16].mxu1 %v13349_v9  ;;  %v661_v9 = vld [vmem:[#allocation8 + $0xe0] sm:$0xff] }
  0xcf   : > { %11747 = vmatpush1.bf16.msra.mxu1 %v11746_v24  ;;  %11155 = vmatprep.mubr.f32.mxu1 %v13359_v20  ;;  %v11758_v20 = vpack.c.bf16 %v661_v9, %v657_v39 }
  0xd0   : > { %11749 = vmatprep.subr.bf16.mxu1 %v11748_v25 }
  0xd2   : > { %11156 = vmatmul.mubr.f32.gmra.mrb[18].mxu1 %v13369_v31  ;;  %v669_v31 = vld [vmem:[#allocation8 + $0x120] sm:$0xff] }
  0xd3   : > { %11751 = vmatpush1.bf16.msra.mxu1 %v11750_v30  ;;  %11158 = vmatprep.mubr.f32.mxu1 %v13379_v42  ;;  %v11762_v42 = vpack.c.bf16 %v669_v31, %v665_v45 }
  0xd4   : > { %11753 = vmatprep.subr.bf16.mxu1 %v11752_v33 }
  0xd6   : > { %11159 = vmatmul.mubr.f32.gmra.mrb[20].mxu1 %v13389_v53  ;;  %v11766_v53 = vpack.c.bf16 %v677_v50, %v673_v49 }
  0xd7   : > { %11755 = vmatpush1.bf16.msra.mxu1 %v11754_v37  ;;  %11161 = vmatprep.mubr.f32.mxu1 %v13399_v3 }
  0xd8   : > { %11757 = vmatprep.subr.bf16.mxu1 %v11756_v38 }
  0xda   : > { %11162 = vmatmul.mubr.f32.gmra.mrb[22].mxu1 %v270_v14 }
  0xdb   : > { %11759 = vmatpush1.bf16.msra.mxu1 %v11758_v20  ;;  %11164 = vmatprep.mubr.f32.mxu1 %v13343_v62  ;;  %v11770_v62 = vpack.c.bf16 %v685_v57, %v681_v56 }
  0xdc   : > { %11761 = vmatprep.subr.bf16.mxu1 %v11760_v44 }
  0xde   : > { %11165 = vmatmul.mubr.f32.gmra.mrb[24].mxu1 %v13353_v10  ;;  %v693_v10 = vld [vmem:[#allocation8 + $0x1e0] sm:$0xff] }
  0xdf   : > { %11763 = vmatpush1.bf16.msra.mxu1 %v11762_v42  ;;  %11167 = vmatprep.mubr.f32.mxu1 %v13363_v21  ;;  %v11774_v21 = vpack.c.bf16 %v693_v10, %v689_v63 }
  0xe0   : > { %11765 = vmatprep.subr.bf16.mxu1 %v11764_v48 }
  0xe2   : > { %11168 = vmatmul.mubr.f32.gmra.mrb[26].mxu1 %v13373_v32 }
  0xe3   : > { %11767 = vmatpush1.bf16.msra.mxu1 %v11766_v53  ;;  %11170 = vmatprep.mubr.f32.mxu1 %v13383_v43 }
  0xe4   : > { %11769 = vmatprep.subr.bf16.mxu1 %v11768_v55 }
  0xe6   : > { %11171 = vmatmul.mubr.f32.gmra.mrb[28].mxu1 %v13393_v54 }
  0xe7   : > { %11771 = vmatpush1.bf16.msra.mxu1 %v11770_v62  ;;  %11173 = vmatprep.mubr.f32.mxu1 %v13403_v4 }
  0xe8   : > { %11773 = vmatprep.subr.bf16.mxu1 %v11772_v60 }
  0xea   : > { %11174 = vmatmul.mubr.f32.gmra.mrb[30].mxu1 %v13411_v15 }
  0xeb   : > { %11775 = vmatpush1.bf16.msra.mxu1 %v11774_v21  ;;  %761 = vmatprep.mubr.f32.mxu1 %v13085_v0 }
 0x180   : > { %v13431_v32 = vpop.f32.mrb[0].mxu0  ;;  %v13433_v43 = vpop.f32.mrb[0].mxu1 }
 0x181   : > { %3724 = vrot.lane.b32.xlu0 %v13431_v32, %s13086_s21  ;;  %v395_v1 = vpop.f32.mrb[1].mxu0  ;;  %762 = vmatmul.mubr.f32.vlgmr.msra.gmra.mrb[32].mxu1 %v13431_v32  ;;  %v443_v54 = vpop.f32.mrb[1].mxu1 }
 0x182   : > { %923 = vmatmul.mubr.f32.vlgmr.msra.gmra.mrb[16].mxu0 %v13431_v32  ;;  %767 = vmatprep.mubr.f32.mxu1 %v13085_v0 }
 0x183   : > { %928 = vmatprep.mubr.f32.mxu0 %v13085_v0 }
 0x184   : > { %v13441_v2 = vpop.f32.mrb[2].mxu0  ;;  %v13443_v3 = vpop.f32.mrb[2].mxu1 }
 0x185   : > { %3740 = vrot.lane.b32.xlu0 %v13433_v43, %s13086_s21  ;;  %3726 = vrot.lane.b32.xlu1 %v13441_v2, %s13086_s21  ;;  %v401_v4 = vpop.f32.mrb[3].mxu0  ;;  %v449_v6 = vpop.f32.mrb[3].mxu1 }
 0x186   : > { %v11808_v7 = vpack.c.bf16 %v401_v4, %v395_v1  ;;  %768 = vmatmul.mubr.f32.gmra.mrb[34].mxu1 %v13441_v2  ;;  %929 = vmatmul.mubr.f32.gmra.mrb[18].mxu0 %v13441_v2  ;;  %v11832_v8 = vpack.c.bf16 %v449_v6, %v443_v54  ;;  %v13457_v11 = vpack.i.bf16 %v401_v4, %v395_v1 }
 0x187   : > { %773 = vmatprep.mubr.f32.mxu1 %v13085_v0  ;;  %934 = vmatprep.mubr.f32.mxu0 %v13085_v0  ;;  %v13461_v12 = vpack.i.bf16 %v449_v6, %v443_v54 }
 0x188   : > { %v13463_v13 = vpop.f32.mrb[4].mxu0  ;;  %11810 = vmatprep.subr.msk.bf16.mxu1 %vm13451_vm1, %v11808_v7  ;;  %v13467_v14 = vpop.f32.mrb[4].mxu1  ;;  %11834 = vmatprep.subr.msk.bf16.mxu0 %vm13451_vm1, %v11832_v8 }
 0x189   : > { %3756 = vrot.lane.b32.xlu0 %v13431_v32, %s13087_s23  ;;  %3742 = vrot.lane.b32.xlu1 %v13443_v3, %s13086_s21  ;;  %v407_v15 = vpop.f32.mrb[5].mxu0  ;;  %v455_v16 = vpop.f32.mrb[5].mxu1 }
 0x18a   : > { %774 = vmatmul.mubr.f32.gmra.mrb[36].mxu1 %v13463_v13  ;;  %935 = vmatmul.mubr.f32.gmra.mrb[20].mxu0 %v13463_v13 }
 0x18b   : > { %11813 = vmatpush3.bf16.xpose.msk.msra.mxu1 %vm13451_vm1, %v11808_v7  ;;  %779 = vmatprep.mubr.f32.mxu1 %v13085_v0 }
 0x18c   : > { %v13480_v17 = vpop.f32.mrb[6].mxu0  ;;  %940 = vmatprep.mubr.f32.mxu0 %v13085_v0  ;;  %v13483_v18 = vpop.f32.mrb[6].mxu1  ;;  %11837 = vmatpush3.bf16.xpose.msk.msra.mxu0 %vm13451_vm1, %v11832_v8 }
 0x18d   : > { %3772 = vrot.lane.b32.xlu0 %v13433_v43, %s13087_s23  ;;  %3758 = vrot.lane.b32.xlu1 %v13441_v2, %s13087_s23  ;;  %v413_v19 = vpop.f32.mrb[7].mxu0  ;;  %v461_v22 = vpop.f32.mrb[7].mxu1 }
 0x18e   : > { %780 = vmatmul.mubr.f32.gmra.mrb[38].mxu1 %v13480_v17  ;;  %v13492_v23 = vpack.c.bf16 %v413_v19, %v407_v15  ;;  %941 = vmatmul.mubr.f32.gmra.mrb[22].mxu0 %v13480_v17  ;;  %v13495_v24 = vpack.c.bf16 %v461_v22, %v455_v16  ;;  %v13497_v25 = vpack.i.bf16 %v413_v19, %v407_v15 }
 0x18f   : > { %785 = vmatprep.mubr.f32.mxu1 %v13085_v0  ;;  %946 = vmatprep.mubr.f32.mxu0 %v13085_v0  ;;  %v13501_v26 = vpack.i.bf16 %v461_v22, %v455_v16 }
 0x190   : > { %v13503_v27 = vpop.f32.mrb[8].mxu0  ;;  %11816 = vmatprep.subr.msk.bf16.mxu1 %vm13451_vm1, %v13492_v23  ;;  %v13508_v28 = vpop.f32.mrb[8].mxu1 }
 0x191   : > { %3788 = vrot.lane.b32.xlu0 %v13431_v32, %s13088_s9  ;;  %3774 = vrot.lane.b32.xlu1 %v13443_v3, %s13087_s23  ;;  %v419_v29 = vpop.f32.mrb[9].mxu0  ;;  %v467_v30 = vpop.f32.mrb[9].mxu1 }
 0x192   : > { %786 = vmatmul.mubr.f32.gmra.mrb[40].mxu1 %v13503_v27  ;;  %947 = vmatmul.mubr.f32.gmra.mrb[24].mxu0 %v13503_v27 }
 0x193   : > { %791 = vmatprep.mubr.f32.mxu1 %v13085_v0  ;;  %952 = vmatprep.mubr.f32.mxu0 %v13085_v0 }
 0x194   : > { %v13518_v33 = vpop.f32.mrb[10].mxu0  ;;  %v13520_v61 = vpop.f32.mrb[10].mxu1 }
 0x195   : > { %3804 = vrot.lane.b32.xlu0 %v13433_v43, %s13088_s9  ;;  %3790 = vrot.lane.b32.xlu1 %v13441_v2, %s13088_s9  ;;  %v425_v34 = vpop.f32.mrb[11].mxu0  ;;  %v473_v35 = vpop.f32.mrb[11].mxu1 }
 0x196   : > { %792 = vmatmul.mubr.f32.gmra.mrb[42].mxu1 %v13518_v33  ;;  %v13527_v36 = vpack.c.bf16 %v425_v34, %v419_v29  ;;  %953 = vmatmul.mubr.f32.gmra.mrb[26].mxu0 %v13518_v33  ;;  %v13530_v37 = vpack.c.bf16 %v473_v35, %v467_v30  ;;  %v13532_v38 = vpack.i.bf16 %v425_v34, %v419_v29 }
 0x197   : > { %797 = vmatprep.mubr.f32.mxu1 %v13085_v0  ;;  %958 = vmatprep.mubr.f32.mxu0 %v13085_v0  ;;  %v13536_v39 = vpack.i.bf16 %v473_v35, %v467_v30 }
 0x198   : > { %v13538_v9 = vpop.f32.mrb[12].mxu0  ;;  %v13540_v40 = vpop.f32.mrb[12].mxu1  ;;  %11846 = vmatprep.subr.msk.bf16.mxu0 %vm13451_vm1, %v13530_v37 }
 0x199   : > { %3806 = vrot.lane.b32.xlu1 %v13443_v3, %s13088_s9  ;;  %3730 = vrot.lane.b32.xlu0 %v13480_v17, %s13086_s21  ;;  %v431_v41 = vpop.f32.mrb[13].mxu0  ;;  %v479_v20 = vpop.f32.mrb[13].mxu1 }
 0x19a   : > { %798 = vmatmul.mubr.f32.gmra.mrb[44].mxu1 %v13538_v9  ;;  %959 = vmatmul.mubr.f32.gmra.mrb[28].mxu0 %v13538_v9 }
 0x19b   : > { %803 = vmatprep.mubr.f32.mxu1 %v13085_v0  ;;  %964 = vmatprep.mubr.f32.mxu0 %v13085_v0 }
 0x19c   : > { %v13553_v44 = vpop.f32.mrb[14].mxu0  ;;  %v13555_v45 = vpop.f32.mrb[14].mxu1 }
 0x19d   : > { %12270 = vrot.lane.b32.xlu1 %v13457_v11, %s13086_s21  ;;  %3746 = vrot.lane.b32.xlu0 %v13483_v18, %s13086_s21  ;;  %v437_v31 = vpop.f32.mrb[15].mxu0  ;;  %v485_v46 = vpop.f32.mrb[15].mxu1 }
 0x19e   : > { %804 = vmatmul.mubr.f32.gmra.mrb[46].mxu1 %v13553_v44  ;;  %965 = vmatmul.mubr.f32.gmra.mrb[30].mxu0 %v13553_v44  ;;  %v13563_v47 = vpack.c.bf16 %v437_v31, %v431_v41  ;;  %v13565_v42 = vpack.c.bf16 %v485_v46, %v479_v20  ;;  %v13567_v48 = vpack.i.bf16 %v437_v31, %v431_v41 }
 0x19f   : > { %809 = vmatprep.mubr.f32.mxu1 %v13085_v0  ;;  %970 = vmatprep.mubr.f32.mxu0 %v13085_v0  ;;  %v13571_v49 = vpack.i.bf16 %v485_v46, %v479_v20 }
 0x1a1   : > { %12275 = vrot.lane.b32.xlu1 %v13461_v12, %s13086_s21  ;;  %3762 = vrot.lane.b32.xlu0 %v13480_v17, %s13087_s23  ;;  %v11154_v50 = vpop.f32.mrb[16].mxu1 }
 0x1a2   : > { %810 = vmatmul.mubr.f32.gmra.mrb[48].mxu1 %v13433_v43  ;;  %971 = vmatmul.mubr.f32.gmra.mrb[32].mxu0 %v13433_v43  ;;  %v554_v51 = vpop.f32.mrb[17].mxu1 }
 0x1a3   : > { %815 = vmatprep.mubr.f32.mxu1 %v13085_v0  ;;  %976 = vmatprep.mubr.f32.mxu0 %v13085_v0  ;;  %v13621_v52 = vpack.i.bf16 %v11154_v50, %v554_v51  ;;  %v13629_v55 = vpack.c.bf16 %v11154_v50, %v554_v51 }
 0x1a5   : > { %12280 = vrot.lane.b32.xlu1 %v13457_v11, %s13087_s23  ;;  %3778 = vrot.lane.b32.xlu0 %v13483_v18, %s13087_s23  ;;  %18390 = vst [vmem:[#allocation15_spill] sm:$0xff] %v13621_v52  ;;  %v11157_v53 = vpop.f32.mrb[18].mxu1  ;;  %18391 = vst [vmem:[#allocation16_spill] sm:$0xff] %v13629_v55 }
 0x1a6   : > { %816 = vmatmul.mubr.f32.gmra.mrb[50].mxu1 %v13443_v3  ;;  %977 = vmatmul.mubr.f32.gmra.mrb[34].mxu0 %v13443_v3  ;;  %v564_v56 = vpop.f32.mrb[19].mxu1 }
 0x1a7   : > { %821 = vmatprep.mubr.f32.mxu1 %v13085_v0  ;;  %982 = vmatprep.mubr.f32.mxu0 %v13085_v0  ;;  %v13633_v57 = vpack.i.bf16 %v11157_v53, %v564_v56  ;;  %v13647_v60 = vpack.c.bf16 %v11157_v53, %v564_v56 }
 0x1a9   : > { %12285 = vrot.lane.b32.xlu1 %v13461_v12, %s13087_s23  ;;  %3794 = vrot.lane.b32.xlu0 %v13480_v17, %s13088_s9  ;;  %18392 = vst [vmem:[#allocation17_spill] sm:$0xff] %v13633_v57  ;;  %v11160_v58 = vpop.f32.mrb[20].mxu1  ;;  %18394 = vst [vmem:[#allocation19_spill] sm:$0xff] %v13647_v60 }
 0x1aa   : > { %822 = vmatmul.mubr.f32.gmra.mrb[52].mxu1 %v13467_v14  ;;  %983 = vmatmul.mubr.f32.gmra.mrb[36].mxu0 %v13467_v14  ;;  %v574_v59 = vpop.f32.mrb[21].mxu1 }
 0x1ab   : > { %827 = vmatprep.mubr.f32.mxu1 %v13085_v0  ;;  %988 = vmatprep.mubr.f32.mxu0 %v13085_v0  ;;  %v13641_v62 = vpack.i.bf16 %v11160_v58, %v574_v59  ;;  %v13659_v21 = vpack.c.bf16 %v11160_v58, %v574_v59 }
 0x1ad   : > { %12290 = vrot.lane.b32.xlu1 %v13457_v11, %s13088_s9  ;;  %3810 = vrot.lane.b32.xlu0 %v13483_v18, %s13088_s9  ;;  %18393 = vst [vmem:[#allocation18_spill] sm:$0xff] %v13641_v62  ;;  %18396 = vst [vmem:[#allocation21_spill] sm:$0xff] %v13659_v21 }
 0x1ae   : > { %828 = vmatmul.mubr.f32.gmra.mrb[54].mxu1 %v13483_v18  ;;  %989 = vmatmul.mubr.f32.gmra.mrb[38].mxu0 %v13483_v18 }
 0x1af   : > { %833 = vmatprep.mubr.f32.mxu1 %v13085_v0  ;;  %994 = vmatprep.mubr.f32.mxu0 %v13085_v0 }
 0x1b1   : > { %12295 = vrot.lane.b32.xlu1 %v13461_v12, %s13088_s9  ;;  %12300 = vrot.lane.b32.xlu0 %v13497_v25, %s13086_s21 }
 0x1b2   : > { %834 = vmatmul.mubr.f32.gmra.mrb[56].mxu1 %v13508_v28  ;;  %995 = vmatmul.mubr.f32.gmra.mrb[40].mxu0 %v13508_v28 }
 0x1b3   : > { %839 = vmatprep.mubr.f32.mxu1 %v13085_v0  ;;  %1000 = vmatprep.mubr.f32.mxu0 %v13085_v0 }
 0x1b5   : > { %3728 = vrot.lane.b32.xlu1 %v13463_v13, %s13086_s21  ;;  %12305 = vrot.lane.b32.xlu0 %v13501_v26, %s13086_s21 }
 0x1b6   : > { %840 = vmatmul.mubr.f32.gmra.mrb[58].mxu1 %v13520_v61  ;;  %1001 = vmatmul.mubr.f32.gmra.mrb[42].mxu0 %v13520_v61 }
 0x1b7   : > { %845 = vmatprep.mubr.f32.mxu1 %v13085_v0  ;;  %1006 = vmatprep.mubr.f32.mxu0 %v13085_v0 }
 0x1b9   : > { %3744 = vrot.lane.b32.xlu1 %v13467_v14, %s13086_s21  ;;  %12310 = vrot.lane.b32.xlu0 %v13497_v25, %s13087_s23 }
 0x1ba   : > { %846 = vmatmul.mubr.f32.gmra.mrb[60].mxu1 %v13540_v40  ;;  %1007 = vmatmul.mubr.f32.gmra.mrb[44].mxu0 %v13540_v40 }
 0x1bb   : > { %851 = vmatprep.mubr.f32.mxu1 %v13085_v0  ;;  %1012 = vmatprep.mubr.f32.mxu0 %v13085_v0  ;;  %v11163_v0 = vpop.f32.mrb[22].mxu1 }
 0x1bc   : > { %v584_v63 = vpop.f32.mrb[23].mxu1 }
 0x1bd   : > { %3760 = vrot.lane.b32.xlu1 %v13463_v13, %s13087_s23  ;;  %12315 = vrot.lane.b32.xlu0 %v13501_v26, %s13087_s23  ;;  %v13653_v10 = vpack.i.bf16 %v11163_v0, %v584_v63  ;;  %v13680_v54 = vpack.c.bf16 %v11163_v0, %v584_v63 }
 0x1be   : > { %852 = vmatmul.mubr.f32.gmra.mrb[62].mxu1 %v13555_v45  ;;  %1013 = vmatmul.mubr.f32.gmra.mrb[46].mxu0 %v13555_v45 }
 0x1bf   : > { %11180 = vmatprep.mubr.msk.f32.mxu1 %vm4092_vm0, %v13431_v32  ;;  %11208 = vmatprep.mubr.msk.f32.mxu0 %vm4092_vm0, %v13433_v43  ;;  %18395 = vst [vmem:[#allocation20_spill] sm:$0xff] %v13653_v10  ;;  %v11166_v32 = vpop.f32.mrb[24].mxu1  ;;  %18398 = vst [vmem:[#allocation23_spill] sm:$0xff] %v13680_v54 }
 0x1c0   : > { %v594_v43 = vpop.f32.mrb[25].mxu1 }
 0x1c1   : > { %3776 = vrot.lane.b32.xlu1 %v13467_v14, %s13087_s23  ;;  %12320 = vrot.lane.b32.xlu0 %v13497_v25, %s13088_s9  ;;  %v13676_v1 = vpack.i.bf16 %v11166_v32, %v594_v43  ;;  %v13690_v6 = vpack.c.bf16 %v11166_v32, %v594_v43 }
 0x1c2   : > { %11181 = vmatmul.mubr.msk.f32.vlgmr.msra.gmra.mrb[64].mxu1 %vm4092_vm0, %v13441_v2  ;;  %11209 = vmatmul.mubr.msk.f32.vlgmr.msra.gmra.mrb[48].mxu0 %vm4092_vm0, %v13443_v3  ;;  %v11169_v2 = vpop.f32.mrb[26].mxu1 }
 0x1c3   : > { %11819 = vmatpush3.bf16.xpose.msk.msra.mxu1 %vm13451_vm1, %v13492_v23  ;;  %11187 = vmatprep.mubr.msk.f32.mxu1 %vm4092_vm0, %v13463_v13  ;;  %18397 = vst [vmem:[#allocation22_spill] sm:$0xff] %v13676_v1  ;;  %v604_v3 = vpop.f32.mrb[27].mxu1  ;;  %18400 = vst [vmem:[#allocation25_spill] sm:$0xff] %v13690_v6 }
 0x1c4   : > { %11822 = vmatprep.subr.msk.bf16.mxu1 %vm13451_vm1, %v13527_v36  ;;  %11849 = vmatpush3.bf16.xpose.msk.msra.mxu0 %vm13451_vm1, %v13530_v37  ;;  %v13686_v4 = vpack.i.bf16 %v11169_v2, %v604_v3  ;;  %v11172_v7 = vpop.f32.mrb[28].mxu1  ;;  %v13708_v12 = vpack.c.bf16 %v11169_v2, %v604_v3 }
 0x1c5   : > { %3792 = vrot.lane.b32.xlu1 %v13463_v13, %s13088_s9  ;;  %12325 = vrot.lane.b32.xlu0 %v13501_v26, %s13088_s9  ;;  %v614_v8 = vpop.f32.mrb[29].mxu1 }
 0x1c6   : > { %11222 = vmatprep.mubr.msk.f32.mxu0 %vm4092_vm0, %v13508_v28  ;;  %18399 = vst [vmem:[#allocation24_spill] sm:$0xff] %v13686_v4  ;;  %v13706_v11 = vpack.i.bf16 %v11172_v7, %v614_v8  ;;  %18402 = vst [vmem:[#allocation27_spill] sm:$0xff] %v13708_v12  ;;  %v11175_v13 = vpop.f32.mrb[30].mxu1 }
 0x1c7   : > { %v624_v15 = vpop.f32.mrb[31].mxu1 }
 0x1c8   : > { %18401 = vst [vmem:[#allocation26_spill] sm:$0xff] %v13706_v11  ;;  %v13714_v16 = vpack.i.bf16 %v11175_v13, %v624_v15  ;;  %v13732_v19 = vpack.c.bf16 %v11175_v13, %v624_v15 }
 0x1c9   : > { %3808 = vrot.lane.b32.xlu1 %v13467_v14, %s13088_s9  ;;  %3732 = vrot.lane.b32.xlu0 %v13503_v27, %s13086_s21 }
 0x1ca   : > { %11188 = vmatmul.mubr.msk.f32.vlgmr.msra.gmra.mrb[66].mxu1 %vm4092_vm0, %v13480_v17  ;;  %18403 = vst [vmem:[#allocation28_spill] sm:$0xff] %v13714_v16  ;;  %v13718_v17 = vpack.c.bf16 %v11172_v7, %v614_v8  ;;  %18405 = vst [vmem:[#allocation30_spill] sm:$0xff] %v13732_v19 }
 0x1cb   : > { %11825 = vmatpush3.bf16.xpose.msk.msra.mxu1 %vm13451_vm1, %v13527_v36  ;;  %11194 = vmatprep.mubr.msk.f32.mxu1 %vm4092_vm0, %v13503_v27 }
 0x1cc   : > { %11828 = vmatprep.subr.msk.bf16.mxu1 %vm13451_vm1, %v13563_v47  ;;  %11223 = vmatmul.mubr.msk.f32.vlgmr.msra.gmra.mrb[50].mxu0 %vm4092_vm0, %v13520_v61  ;;  %18404 = vst [vmem:[#allocation29_spill] sm:$0xff] %v13718_v17 }
 0x1cd   : > { %3812 = vrot.lane.b32.xlu1 %v13508_v28, %s13088_s9  ;;  %3748 = vrot.lane.b32.xlu0 %v13508_v28, %s13086_s21 }
 0x1d1   : > { %3764 = vrot.lane.b32.xlu0 %v13503_v27, %s13087_s23  ;;  %3734 = vrot.lane.b32.xlu1 %v13518_v33, %s13086_s21 }
 0x1d2   : > { %11195 = vmatmul.mubr.msk.f32.vlgmr.msra.gmra.mrb[68].mxu1 %vm4092_vm0, %v13518_v33 }
 0x1d3   : > { %11831 = vmatpush3.bf16.xpose.msk.msra.mxu1 %vm13451_vm1, %v13563_v47  ;;  %11201 = vmatprep.mubr.msk.f32.mxu1 %vm4092_vm0, %v13538_v9 }
 0x1d4   : > { %11840 = vmatprep.subr.msk.bf16.mxu1 %vm13451_vm1, %v13495_v24 }
 0x1d5   : > { %3780 = vrot.lane.b32.xlu0 %v13508_v28, %s13087_s23  ;;  %3750 = vrot.lane.b32.xlu1 %v13520_v61, %s13086_s21 }
 0x1d9   : > { %3796 = vrot.lane.b32.xlu0 %v13503_v27, %s13088_s9  ;;  %3766 = vrot.lane.b32.xlu1 %v13518_v33, %s13087_s23 }
 0x1da   : > { %11202 = vmatmul.mubr.msk.f32.vlgmr.msra.gmra.mrb[70].mxu1 %vm4092_vm0, %v13553_v44 }
 0x1db   : > { %11843 = vmatpush3.bf16.xpose.msk.msra.mxu1 %vm13451_vm1, %v13495_v24  ;;  %11215 = vmatprep.mubr.msk.f32.mxu1 %vm4092_vm0, %v13467_v14 }
 0x1dc   : > { %11852 = vmatprep.subr.msk.bf16.mxu1 %vm13451_vm1, %v13565_v42 }
 0x1dd   : > { %3814 = vrot.lane.b32.xlu0 %v13520_v61, %s13088_s9  ;;  %3782 = vrot.lane.b32.xlu1 %v13520_v61, %s13087_s23 }
 0x1e1   : > { %3798 = vrot.lane.b32.xlu1 %v13518_v33, %s13088_s9  ;;  %3738 = vrot.lane.b32.xlu0 %v13553_v44, %s13086_s21 }
 0x1e2   : > { %11216 = vmatmul.mubr.msk.f32.vlgmr.msra.gmra.mrb[72].mxu1 %vm4092_vm0, %v13483_v18 }
 0x1e3   : > { %11855 = vmatpush3.bf16.xpose.msk.msra.mxu1 %vm13451_vm1, %v13565_v42  ;;  %11229 = vmatprep.mubr.msk.f32.mxu1 %vm4092_vm0, %v13540_v40 }
 0x1e5   : > { %12330 = vrot.lane.b32.xlu1 %v13532_v38, %s13086_s21  ;;  %3754 = vrot.lane.b32.xlu0 %v13555_v45, %s13086_s21 }
 0x1e9   : > { %12335 = vrot.lane.b32.xlu1 %v13536_v39, %s13086_s21  ;;  %3770 = vrot.lane.b32.xlu0 %v13553_v44, %s13087_s23 }
 0x1ea   : > { %11230 = vmatmul.mubr.msk.f32.vlgmr.msra.gmra.mrb[74].mxu1 %vm4092_vm0, %v13555_v45 }
 0x1ed   : > { %12340 = vrot.lane.b32.xlu1 %v13532_v38, %s13087_s23  ;;  %3786 = vrot.lane.b32.xlu0 %v13555_v45, %s13087_s23 }
 0x1f1   : > { %12345 = vrot.lane.b32.xlu1 %v13536_v39, %s13087_s23  ;;  %3802 = vrot.lane.b32.xlu0 %v13553_v44, %s13088_s9 }
 0x1f3   : > { %v3725_v14 = vpop.permute.xlu0 %3724 }
 0x1f4   : > { %11236 = vmatprep.mubr.msk.f32.mxu0 %vm4092_vm0, %v3725_v14 }
 0x1f5   : > { %12350 = vrot.lane.b32.xlu1 %v13532_v38, %s13088_s9  ;;  %3818 = vrot.lane.b32.xlu0 %v13555_v45, %s13088_s9 }
 0x1f7   : > { %v13786_v18 = vpop.permute.xlu0 %3740  ;;  %v3727_v22 = vpop.permute.xlu1 %3726 }
 0x1f9   : > { %12355 = vrot.lane.b32.xlu1 %v13536_v39, %s13088_s9  ;;  %12360 = vrot.lane.b32.xlu0 %v13567_v48, %s13086_s21 }
 0x1fb   : > { %v13792_v23 = vpop.permute.xlu0 %3756  ;;  %v13794_v24 = vpop.permute.xlu1 %3742 }
 0x1fd   : > { %3736 = vrot.lane.b32.xlu1 %v13538_v9, %s13086_s21  ;;  %12365 = vrot.lane.b32.xlu0 %v13571_v49, %s13086_s21 }
 0x1ff   : > { %v13800_v25 = vpop.permute.xlu0 %3772  ;;  %v13802_v26 = vpop.permute.xlu1 %3758 }
 0x201   : > { %3752 = vrot.lane.b32.xlu1 %v13540_v40, %s13086_s21  ;;  %12370 = vrot.lane.b32.xlu0 %v13567_v48, %s13087_s23 }
 0x203   : > { %v13808_v27 = vpop.permute.xlu0 %3788  ;;  %v13810_v28 = vpop.permute.xlu1 %3774 }
 0x205   : > { %3768 = vrot.lane.b32.xlu1 %v13538_v9, %s13087_s23  ;;  %12375 = vrot.lane.b32.xlu0 %v13571_v49, %s13087_s23 }
 0x207   : > { %v13816_v29 = vpop.permute.xlu0 %3804  ;;  %v13818_v30 = vpop.permute.xlu1 %3790 }
 0x209   : > { %3784 = vrot.lane.b32.xlu1 %v13540_v40, %s13087_s23  ;;  %12380 = vrot.lane.b32.xlu0 %v13567_v48, %s13088_s9 }
 0x20b   : > { %v13824_v33 = vpop.permute.xlu1 %3806  ;;  %v3731_v61 = vpop.permute.xlu0 %3730 }
 0x20c   : > { %18406 = vst [vmem:[#allocation31_spill] sm:$0xff] %v13824_v33 }
 0x20d   : > { %3800 = vrot.lane.b32.xlu1 %v13538_v9, %s13088_s9  ;;  %12385 = vrot.lane.b32.xlu0 %v13571_v49, %s13088_s9 }
 0x20f   : > { %v12271_v34 = vpop.permute.xlu1 %12270  ;;  %v13830_v35 = vpop.permute.xlu0 %3746 }
 0x210   : > { %v12273_v36 = vunpack.i.h.bf16 %v12271_v34  ;;  %v12272_v37 = vunpack.i.l.bf16 %v12271_v34 }
 0x211   : > { %3816 = vrot.lane.b32.xlu1 %v13540_v40, %s13088_s9 }
 0x212   : > { %v11856_v38 = vpack.c.bf16 %v12273_v36, %v12272_v37 }
 0x213   : > { %v13834_v39 = vpop.permute.xlu1 %12275  ;;  %v13836_v41 = vpop.permute.xlu0 %3762 }
 0x214   : > { %11858 = vmatprep.subr.msk.bf16.mxu0 %vm13451_vm1, %v11856_v38  ;;  %v12278_v19 = vunpack.i.h.bf16 %v13834_v39  ;;  %v12277_v17 = vunpack.i.l.bf16 %v13834_v39 }
 0x215   : > { %11861 = vmatpush3.bf16.xpose.msk.msra.mxu0 %vm13451_vm1, %v11856_v38 }
 0x216   : > { %v11880_v39 = vpack.c.bf16 %v12278_v19, %v12277_v17 }
 0x217   : > { %v13842_v9 = vpop.permute.xlu1 %12280  ;;  %v13844_v20 = vpop.permute.xlu0 %3778 }
 0x21b   : > { %v13846_v44 = vpop.permute.xlu1 %12285  ;;  %v13848_v45 = vpop.permute.xlu0 %3794 }
 0x21c   : > { %18407 = vst [vmem:[#allocation32_spill] sm:$0xff] %v13848_v45  ;;  %11237 = vmatmul.mubr.msk.f32.vlgmr.msra.gmra.mrb[52].mxu0 %vm4092_vm0, %v3727_v22 }
 0x21f   : > { %v13851_v40 = vpop.permute.xlu1 %12290  ;;  %v13853_v31 = vpop.permute.xlu0 %3810 }
 0x220   : > { %18408 = vst [vmem:[#allocation33_spill] sm:$0xff] %v13853_v31 }
 0x223   : > { %v13855_v46 = vpop.permute.xlu1 %12295  ;;  %v12301_v47 = vpop.permute.xlu0 %12300 }
 0x224   : > { %v12303_v42 = vunpack.i.h.bf16 %v12301_v47  ;;  %v12302_v48 = vunpack.i.l.bf16 %v12301_v47 }
 0x226   : > { %v11862_v49 = vpack.c.bf16 %v12303_v42, %v12302_v48 }
 0x227   : > { %v3729_v50 = vpop.permute.xlu1 %3728  ;;  %v13857_v51 = vpop.permute.xlu0 %12305 }
 0x228   : > { %11864 = vmatprep.subr.msk.bf16.mxu1 %vm13451_vm1, %v11862_v49  ;;  %11243 = vmatprep.mubr.msk.f32.mxu1 %vm4092_vm0, %v3729_v50 }
 0x229   : > { %11867 = vmatpush3.bf16.xpose.msk.msra.mxu1 %vm13451_vm1, %v11862_v49 }
 0x22b   : > { %v13864_v53 = vpop.permute.xlu1 %3744  ;;  %v13866_v56 = vpop.permute.xlu0 %12310 }
 0x22f   : > { %v13868_v58 = vpop.permute.xlu1 %3760  ;;  %v13870_v59 = vpop.permute.xlu0 %12315 }
 0x230   : > { %11244 = vmatmul.mubr.msk.f32.vlgmr.msra.gmra.mrb[76].mxu1 %vm4092_vm0, %v3731_v61 }
 0x233   : > { %v13873_v0 = vpop.permute.xlu1 %3776  ;;  %v13875_v63 = vpop.permute.xlu0 %12320 }
 0x237   : > { %v13877_v32 = vpop.permute.xlu1 %3792  ;;  %v13879_v43 = vpop.permute.xlu0 %12325 }
 0x238   : > { %18409 = vst [vmem:[#allocation34_spill] sm:$0xff] %v13879_v43 }
 0x23b   : > { %v13881_v2 = vpop.permute.xlu1 %3808  ;;  %v3733_v3 = vpop.permute.xlu0 %3732 }
 0x23c   : > { %18410 = vst [vmem:[#allocation35_spill] sm:$0xff] %v13881_v2  ;;  %11250 = vmatprep.mubr.msk.f32.mxu0 %vm4092_vm0, %v3733_v3 }
 0x23f   : > { %v13884_v7 = vpop.permute.xlu1 %3812  ;;  %v13886_v8 = vpop.permute.xlu0 %3748 }
 0x240   : > { %18411 = vst [vmem:[#allocation36_spill] sm:$0xff] %v13884_v7  ;;  %v12308_v7 = vunpack.i.h.bf16 %v13857_v51 }
 0x243   : > { %v13888_v13 = vpop.permute.xlu0 %3764  ;;  %v3735_v15 = vpop.permute.xlu1 %3734 }
 0x247   : > { %v13890_v14 = vpop.permute.xlu0 %3780  ;;  %v13892_v22 = vpop.permute.xlu1 %3750 }
 0x24b   : > { %v13894_v61 = vpop.permute.xlu0 %3796  ;;  %v13896_v34 = vpop.permute.xlu1 %3766 }
 0x24f   : > { %v13898_v36 = vpop.permute.xlu0 %3814  ;;  %v13900_v37 = vpop.permute.xlu1 %3782 }
 0x250   : > { %18412 = vst [vmem:[#allocation37_spill] sm:$0xff] %v13898_v36 }
 0x253   : > { %v13902_v38 = vpop.permute.xlu1 %3798  ;;  %v13904_v47 = vpop.permute.xlu0 %3738 }
 0x254   : > { %v13906_v42 = vpop.f32.mrb[32].mxu1 }
 0x255   : > { %18413 = vst [vmem:[#allocation38_spill] sm:$0xff] %v13906_v42  ;;  %v13908_v48 = vpop.f32.mrb[16].mxu0  ;;  %v13910_v49 = vpop.f32.mrb[33].mxu1  ;;  %1916 = vrot.lane.b32.xlu0 %v13906_v42, %s13089_s10 }
 0x256   : > { %18414 = vst [vmem:[#allocation39_spill] sm:$0xff] %v13908_v48  ;;  %18415 = vst [vmem:[#allocation40_spill] sm:$0xff] %v13910_v49  ;;  %v13914_v50 = vpop.f32.mrb[17].mxu0 }
 0x257   : > { %18416 = vst [vmem:[#allocation41_spill] sm:$0xff] %v13914_v50  ;;  %v12331_v3 = vpop.permute.xlu1 %12330  ;;  %v13916_v16 = vpop.permute.xlu0 %3754 }
 0x258   : > { %v12333_v12 = vunpack.i.h.bf16 %v12331_v3  ;;  %v12332_v4 = vunpack.i.l.bf16 %v12331_v3 }
 0x259   : > { %v13920_v6 = vpop.f32.mrb[34].mxu1  ;;  %v13922_v11 = vpop.f32.mrb[18].mxu0  ;;  %1980 = vrot.lane.b32.xlu0 %v13908_v48, %s13089_s10 }
 0x25a   : > { %18417 = vst [vmem:[#allocation42_spill] sm:$0xff] %v13920_v6  ;;  %18418 = vst [vmem:[#allocation43_spill] sm:$0xff] %v13922_v11  ;;  %v11868_v1 = vpack.c.bf16 %v12333_v12, %v12332_v4  ;;  %v13926_v62 = vpop.f32.mrb[35].mxu1  ;;  %1982 = vrot.lane.b32.xlu1 %v13922_v11, %s13089_s10  ;;  %v13930_v10 = vpop.f32.mrb[19].mxu0 }
 0x25b   : > { %18419 = vst [vmem:[#allocation44_spill] sm:$0xff] %v13926_v62  ;;  %18420 = vst [vmem:[#allocation45_spill] sm:$0xff] %v13930_v10  ;;  %v12336_v57 = vpop.permute.xlu1 %12335  ;;  %v13932_v52 = vpop.permute.xlu0 %3770 }
 0x25c   : > { %11870 = vmatprep.subr.msk.bf16.mxu0 %vm13451_vm1, %v11868_v1  ;;  %v12338_v11 = vunpack.i.h.bf16 %v12336_v57 }
 0x25d   : > { %11873 = vmatpush3.bf16.xpose.msk.msra.mxu0 %vm13451_vm1, %v11868_v1  ;;  %1948 = vrot.lane.b32.xlu0 %v13910_v49, %s13089_s10  ;;  %v13940_v4 = vpop.f32.mrb[36].mxu1  ;;  %v13942_v12 = vpop.f32.mrb[20].mxu0  ;;  %v12337_v49 = vunpack.i.l.bf16 %v12336_v57 }
 0x25e   : > { %18421 = vst [vmem:[#allocation46_spill] sm:$0xff] %v13940_v4  ;;  %18422 = vst [vmem:[#allocation47_spill] sm:$0xff] %v13942_v12  ;;  %1950 = vrot.lane.b32.xlu1 %v13926_v62, %s13089_s10  ;;  %11882 = vmatprep.subr.msk.bf16.mxu0 %vm13451_vm1, %v11880_v39  ;;  %v13948_v17 = vpop.f32.mrb[37].mxu1  ;;  %v13950_v19 = vpop.f32.mrb[21].mxu0 }
 0x25f   : > { %v13952_v3 = vpop.permute.xlu1 %12340  ;;  %v13954_v1 = vpop.permute.xlu0 %3786  ;;  %v11892_v57 = vpack.c.bf16 %v12338_v11, %v12337_v49  ;;  %v12283_v49 = vunpack.i.h.bf16 %v13842_v9 }
 0x261   : > { %2012 = vrot.lane.b32.xlu0 %v13914_v50, %s13089_s10  ;;  %v13958_v48 = vpop.f32.mrb[38].mxu1  ;;  %v13960_v42 = vpop.f32.mrb[22].mxu0 }
 0x262   : > { %18423 = vst [vmem:[#allocation48_spill] sm:$0xff] %v13958_v48  ;;  %18424 = vst [vmem:[#allocation49_spill] sm:$0xff] %v13960_v42  ;;  %2014 = vrot.lane.b32.xlu1 %v13930_v10, %s13089_s10  ;;  %v13964_v62 = vpop.f32.mrb[39].mxu1  ;;  %v13966_v54 = vpop.f32.mrb[23].mxu0 }
 0x263   : > { %18425 = vst [vmem:[#allocation50_spill] sm:$0xff] %v13964_v62  ;;  %18426 = vst [vmem:[#allocation51_spill] sm:$0xff] %v13966_v54  ;;  %v13968_v60 = vpop.permute.xlu1 %12345  ;;  %v13970_v31 = vpop.permute.xlu0 %3802 }
 0x264   : > { %18427 = vst [vmem:[#allocation52_spill] sm:$0xff] %v13970_v31  ;;  %11251 = vmatmul.mubr.msk.f32.vlgmr.msra.gmra.mrb[54].mxu0 %vm4092_vm0, %v3735_v15 }
 0x265   : > { %11885 = vmatpush3.bf16.xpose.msk.msra.mxu0 %vm13451_vm1, %v11880_v39  ;;  %11264 = vmatprep.mubr.msk.f32.mxu0 %vm4092_vm0, %v13786_v18  ;;  %v13977_v50 = vpop.f32.mrb[40].mxu1  ;;  %v13979_v10 = vpop.f32.mrb[24].mxu0  ;;  %v12282_v39 = vunpack.i.l.bf16 %v13842_v9 }
 0x266   : > { %18428 = vst [vmem:[#allocation53_spill] sm:$0xff] %v13979_v10  ;;  %1918 = vrot.lane.b32.xlu0 %v13920_v6, %s13089_s10  ;;  %1920 = vrot.lane.b32.xlu1 %v13940_v4, %s13089_s10  ;;  %v13985_v2 = vpop.f32.mrb[41].mxu1  ;;  %v13987_v15 = vpop.f32.mrb[25].mxu0 }
 0x267   : > { %18429 = vst [vmem:[#allocation54_spill] sm:$0xff] %v13985_v2  ;;  %11894 = vmatprep.subr.msk.bf16.mxu0 %vm13451_vm1, %v11892_v57  ;;  %v13991_v11 = vpop.permute.xlu1 %12350  ;;  %v13993_v18 = vpop.permute.xlu0 %3818  ;;  %v11904_v9 = vpack.c.bf16 %v12283_v49, %v12282_v39 }
 0x268   : > { %18430 = vst [vmem:[#allocation55_spill] sm:$0xff] %v13993_v18 }
 0x269   : > { %v13997_v31 = vpop.f32.mrb[42].mxu1  ;;  %v13999_v6 = vpop.f32.mrb[26].mxu0 }
 0x26a   : > { %18431 = vst [vmem:[#allocation56_spill] sm:$0xff] %v13997_v31  ;;  %18432 = vst [vmem:[#allocation57_spill] sm:$0xff] %v13999_v6  ;;  %1922 = vrot.lane.b32.xlu1 %v13958_v48, %s13089_s10  ;;  %1984 = vrot.lane.b32.xlu0 %v13942_v12, %s13089_s10  ;;  %v14005_v4 = vpop.f32.mrb[43].mxu1  ;;  %v14007_v21 = vpop.f32.mrb[27].mxu0  ;;  %v12307_v48 = vunpack.i.l.bf16 %v13857_v51 }
 0x26b   : > { %18433 = vst [vmem:[#allocation58_spill] sm:$0xff] %v14005_v4  ;;  %18434 = vst [vmem:[#allocation59_spill] sm:$0xff] %v14007_v21  ;;  %v14009_v36 = vpop.permute.xlu1 %12355  ;;  %v12361_v18 = vpop.permute.xlu0 %12360 }
 0x26c   : > { %v12363_v45 = vunpack.i.h.bf16 %v12361_v18  ;;  %v12362_v55 = vunpack.i.l.bf16 %v12361_v18  ;;  %11265 = vmatmul.mubr.msk.f32.vlgmr.msra.gmra.mrb[56].mxu0 %vm4092_vm0, %v13794_v24  ;;  %v12342_v18 = vunpack.i.l.bf16 %v13952_v3 }
 0x26d   : > { %11897 = vmatpush3.bf16.xpose.msk.msra.mxu0 %vm13451_vm1, %v11892_v57  ;;  %11278 = vmatprep.mubr.msk.f32.mxu0 %vm4092_vm0, %v13886_v8  ;;  %v14019_v12 = vpop.f32.mrb[44].mxu1  ;;  %v14021_v43 = vpop.f32.mrb[28].mxu0 }
 0x26e   : > { %18435 = vst [vmem:[#allocation60_spill] sm:$0xff] %v14021_v43  ;;  %v11874_v33 = vpack.c.bf16 %v12363_v45, %v12362_v55  ;;  %1952 = vrot.lane.b32.xlu0 %v13948_v17, %s13089_s10  ;;  %1986 = vrot.lane.b32.xlu1 %v13960_v42, %s13089_s10  ;;  %v14027_v24 = vpop.f32.mrb[45].mxu1  ;;  %v14029_v51 = vpop.f32.mrb[29].mxu0  ;;  %v11886_v55 = vpack.c.bf16 %v12308_v7, %v12307_v48  ;;  %v12343_v45 = vunpack.i.h.bf16 %v13952_v3 }
 0x26f   : > { %18436 = vst [vmem:[#allocation61_spill] sm:$0xff] %v14027_v24  ;;  %18437 = vst [vmem:[#allocation62_spill] sm:$0xff] %v14029_v51  ;;  %11906 = vmatprep.subr.msk.bf16.mxu0 %vm13451_vm1, %v11904_v9  ;;  %v3737_v57 = vpop.permute.xlu1 %3736  ;;  %v12366_v8 = vpop.permute.xlu0 %12365 }
 0x270   : > { %11876 = vmatprep.subr.msk.bf16.mxu1 %vm13451_vm1, %v11874_v33  ;;  %11257 = vmatprep.mubr.msk.f32.mxu1 %vm4092_vm0, %v3737_v57  ;;  %v12368_v48 = vunpack.i.h.bf16 %v12366_v8  ;;  %v12367_v3 = vunpack.i.l.bf16 %v12366_v8 }
 0x271   : > { %11879 = vmatpush3.bf16.xpose.msk.msra.mxu1 %vm13451_vm1, %v11874_v33  ;;  %v14040_v49 = vpop.f32.mrb[46].mxu1  ;;  %v14042_v39 = vpop.f32.mrb[30].mxu0  ;;  %v11916_v33 = vpack.c.bf16 %v12343_v45, %v12342_v18 }
 0x272   : > { %18438 = vst [vmem:[#allocation63_spill] sm:$0xff] %v14040_v49  ;;  %18439 = vst [vmem:[#allocation64_spill] sm:$0xff] %v14042_v39  ;;  %2016 = vrot.lane.b32.xlu0 %v13950_v19, %s13089_s10  ;;  %1954 = vrot.lane.b32.xlu1 %v13964_v62, %s13089_s10  ;;  %v14048_v42 = vpop.f32.mrb[47].mxu1  ;;  %v14050_v7 = vpop.f32.mrb[31].mxu0  ;;  %v11898_v8 = vpack.c.bf16 %v12368_v48, %v12367_v3  ;;  %v12312_v48 = vunpack.i.l.bf16 %v13866_v56 }
 0x273   : > { %18440 = vst [vmem:[#allocation65_spill] sm:$0xff] %v14048_v42  ;;  %11888 = vmatprep.subr.msk.bf16.mxu1 %vm13451_vm1, %v11886_v55 }
 0x274   : > { %11279 = vmatmul.mubr.msk.f32.vlgmr.msra.gmra.mrb[58].mxu0 %vm4092_vm0, %v13892_v22 }
 0x275   : > { %11909 = vmatpush3.bf16.xpose.msk.msra.mxu0 %vm13451_vm1, %v11904_v9  ;;  %11292 = vmatprep.mubr.msk.f32.mxu0 %vm4092_vm0, %v13792_v23  ;;  %v14060_v57 = vpop.f32.mrb[48].mxu1  ;;  %v14062_v62 = vpop.f32.mrb[32].mxu0  ;;  %v12288_v23 = vunpack.i.h.bf16 %v13846_v44  ;;  %v12287_v9 = vunpack.i.l.bf16 %v13846_v44 }
 0x276   : > { %1924 = vrot.lane.b32.xlu0 %v13977_v50, %s13089_s10  ;;  %2018 = vrot.lane.b32.xlu1 %v13966_v54, %s13089_s10  ;;  %v14068_v22 = vpop.f32.mrb[49].mxu1  ;;  %v14070_v45 = vpop.f32.mrb[33].mxu0 }
 0x277   : > { %11918 = vmatprep.subr.msk.bf16.mxu0 %vm13451_vm1, %v11916_v33 }
 0x278   : > { %11258 = vmatmul.mubr.msk.f32.vlgmr.msra.gmra.mrb[78].mxu1 %vm4092_vm0, %v13904_v47 }
 0x279   : > { %11891 = vmatpush3.bf16.xpose.msk.msra.mxu1 %vm13451_vm1, %v11886_v55  ;;  %11271 = vmatprep.mubr.msk.f32.mxu1 %vm4092_vm0, %v13864_v53  ;;  %v14082_v18 = vpop.f32.mrb[50].mxu1  ;;  %v14084_v54 = vpop.f32.mrb[34].mxu0  ;;  %v11928_v53 = vpack.c.bf16 %v12288_v23, %v12287_v9  ;;  %v12313_v55 = vunpack.i.h.bf16 %v13866_v56  ;;  %v12348_v9 = vunpack.i.h.bf16 %v13968_v60 }
 0x27a   : > { %1926 = vrot.lane.b32.xlu1 %v13997_v31, %s13089_s10  ;;  %1988 = vrot.lane.b32.xlu0 %v13979_v10, %s13089_s10  ;;  %v14090_v47 = vpop.f32.mrb[51].mxu1  ;;  %v14092_v44 = vpop.f32.mrb[35].mxu0 }
 0x27b   : > { %11900 = vmatprep.subr.msk.bf16.mxu1 %vm13451_vm1, %v11898_v8  ;;  %v3753_v56 = vpop.permute.xlu1 %3752 }
 0x27c   : > { %11293 = vmatmul.mubr.msk.f32.vlgmr.msra.gmra.mrb[60].mxu0 %vm4092_vm0, %v13802_v26 }
 0x27d   : > { %11921 = vmatpush3.bf16.xpose.msk.msra.mxu0 %vm13451_vm1, %v11916_v33  ;;  %11306 = vmatprep.mubr.msk.f32.mxu0 %vm4092_vm0, %v13888_v13  ;;  %v14104_v3 = vpop.f32.mrb[52].mxu1  ;;  %v14106_v31 = vpop.f32.mrb[36].mxu0  ;;  %v11910_v13 = vpack.c.bf16 %v12313_v55, %v12312_v48 }
 0x27e   : > { %1956 = vrot.lane.b32.xlu0 %v13985_v2, %s13089_s10  ;;  %1990 = vrot.lane.b32.xlu1 %v13999_v6, %s13089_s10  ;;  %v14112_v26 = vpop.f32.mrb[53].mxu1  ;;  %v14114_v23 = vpop.f32.mrb[37].mxu0  ;;  %v12347_v2 = vunpack.i.l.bf16 %v13968_v60 }
 0x27f   : > { %11930 = vmatprep.subr.msk.bf16.mxu0 %vm13451_vm1, %v11928_v53  ;;  %v12371_v33 = vpop.permute.xlu0 %12370 }
 0x280   : > { %11272 = vmatmul.mubr.msk.f32.vlgmr.msra.gmra.mrb[80].mxu1 %vm4092_vm0, %v13830_v35  ;;  %v11940_v60 = vpack.c.bf16 %v12348_v9, %v12347_v2  ;;  %v12372_v48 = vunpack.i.l.bf16 %v12371_v33 }
 0x281   : > { %11903 = vmatpush3.bf16.xpose.msk.msra.mxu1 %vm13451_vm1, %v11898_v8  ;;  %11285 = vmatprep.mubr.msk.f32.mxu1 %vm4092_vm0, %v3753_v56  ;;  %v14125_v6 = vpop.f32.mrb[54].mxu1  ;;  %v14127_v10 = vpop.f32.mrb[38].mxu0  ;;  %v12373_v8 = vunpack.i.h.bf16 %v12371_v33 }
 0x282   : > { %2020 = vrot.lane.b32.xlu0 %v13987_v15, %s13089_s10  ;;  %1958 = vrot.lane.b32.xlu1 %v14005_v4, %s13089_s10  ;;  %v14133_v35 = vpop.f32.mrb[55].mxu1  ;;  %v14135_v55 = vpop.f32.mrb[39].mxu0 }
 0x283   : > { %11912 = vmatprep.subr.msk.bf16.mxu1 %vm13451_vm1, %v11910_v13  ;;  %v11922_v33 = vpack.c.bf16 %v12373_v8, %v12372_v48  ;;  %v12317_v8 = vunpack.i.l.bf16 %v13870_v59 }
 0x284   : > { %11307 = vmatmul.mubr.msk.f32.vlgmr.msra.gmra.mrb[62].mxu0 %vm4092_vm0, %v13896_v34 }
 0x285   : > { %11933 = vmatpush3.bf16.xpose.msk.msra.mxu0 %vm13451_vm1, %v11928_v53  ;;  %11320 = vmatprep.mubr.msk.f32.mxu0 %vm4092_vm0, %v13800_v25  ;;  %v14145_v56 = vpop.f32.mrb[56].mxu1  ;;  %v14147_v4 = vpop.f32.mrb[40].mxu0  ;;  %v12293_v25 = vunpack.i.h.bf16 %v13851_v40  ;;  %v12292_v53 = vunpack.i.l.bf16 %v13851_v40 }
 0x286   : > { %1928 = vrot.lane.b32.xlu0 %v14019_v12, %s13089_s10  ;;  %2022 = vrot.lane.b32.xlu1 %v14007_v21, %s13089_s10  ;;  %v14153_v34 = vpop.f32.mrb[57].mxu1  ;;  %v14155_v2 = vpop.f32.mrb[41].mxu0 }
 0x287   : > { %11942 = vmatprep.subr.msk.bf16.mxu0 %vm13451_vm1, %v11940_v60 }
 0x288   : > { %11286 = vmatmul.mubr.msk.f32.vlgmr.msra.gmra.mrb[82].mxu1 %vm4092_vm0, %v13916_v16 }
 0x289   : > { %11915 = vmatpush3.bf16.xpose.msk.msra.mxu1 %vm13451_vm1, %v11910_v13  ;;  %11299 = vmatprep.mubr.msk.f32.mxu1 %vm4092_vm0, %v13868_v58  ;;  %v14167_v9 = vpop.f32.mrb[58].mxu1  ;;  %v14169_v21 = vpop.f32.mrb[42].mxu0  ;;  %v11952_v58 = vpack.c.bf16 %v12293_v25, %v12292_v53  ;;  %v12318_v13 = vunpack.i.h.bf16 %v13870_v59  ;;  %v12353_v53 = vunpack.i.h.bf16 %v13991_v11 }
 0x28a   : > { %1930 = vrot.lane.b32.xlu1 %v14040_v49, %s13089_s10  ;;  %1992 = vrot.lane.b32.xlu0 %v14021_v43, %s13089_s10  ;;  %v14175_v16 = vpop.f32.mrb[59].mxu1  ;;  %v14177_v40 = vpop.f32.mrb[43].mxu0 }
 0x28b   : > { %11924 = vmatprep.subr.msk.bf16.mxu1 %vm13451_vm1, %v11922_v33  ;;  %v3769_v59 = vpop.permute.xlu1 %3768 }
 0x28c   : > { %11321 = vmatmul.mubr.msk.f32.vlgmr.msra.gmra.mrb[64].mxu0 %vm4092_vm0, %v13810_v28 }
 0x28d   : > { %11945 = vmatpush3.bf16.xpose.msk.msra.mxu0 %vm13451_vm1, %v11940_v60  ;;  %11334 = vmatprep.mubr.msk.f32.mxu0 %vm4092_vm0, %v13890_v14  ;;  %v14189_v48 = vpop.f32.mrb[60].mxu1  ;;  %v14191_v49 = vpop.f32.mrb[44].mxu0  ;;  %v11934_v14 = vpack.c.bf16 %v12318_v13, %v12317_v8 }
 0x28e   : > { %1960 = vrot.lane.b32.xlu0 %v14027_v24, %s13089_s10  ;;  %1994 = vrot.lane.b32.xlu1 %v14042_v39, %s13089_s10  ;;  %v14197_v28 = vpop.f32.mrb[61].mxu1  ;;  %v14199_v25 = vpop.f32.mrb[45].mxu0  ;;  %v12352_v24 = vunpack.i.l.bf16 %v13991_v11 }
 0x28f   : > { %11954 = vmatprep.subr.msk.bf16.mxu0 %vm13451_vm1, %v11952_v58  ;;  %v12376_v60 = vpop.permute.xlu0 %12375 }
 0x290   : > { %11300 = vmatmul.mubr.msk.f32.vlgmr.msra.gmra.mrb[84].mxu1 %vm4092_vm0, %v13836_v41  ;;  %v11964_v11 = vpack.c.bf16 %v12353_v53, %v12352_v24  ;;  %v12377_v8 = vunpack.i.l.bf16 %v12376_v60  ;;  %v12297_v24 = vunpack.i.l.bf16 %v13855_v46 }
 0x291   : > { %11927 = vmatpush3.bf16.xpose.msk.msra.mxu1 %vm13451_vm1, %v11922_v33  ;;  %11313 = vmatprep.mubr.msk.f32.mxu1 %vm4092_vm0, %v3769_v59  ;;  %v14210_v39 = vpop.f32.mrb[62].mxu1  ;;  %v14212_v43 = vpop.f32.mrb[46].mxu0  ;;  %v12378_v33 = vunpack.i.h.bf16 %v12376_v60  ;;  %v12322_v60 = vunpack.i.l.bf16 %v13875_v63 }
 0x292   : > { %2024 = vrot.lane.b32.xlu0 %v14029_v51, %s13089_s10  ;;  %1962 = vrot.lane.b32.xlu1 %v14048_v42, %s13089_s10  ;;  %v14218_v41 = vpop.f32.mrb[63].mxu1  ;;  %v14220_v13 = vpop.f32.mrb[47].mxu0 }
 0x293   : > { %18441 = vst [vmem:[#allocation66_spill] sm:$0xff] %v14218_v41  ;;  %18442 = vst [vmem:[#allocation67_spill] sm:$0xff] %v14220_v13  ;;  %11936 = vmatprep.subr.msk.bf16.mxu1 %vm13451_vm1, %v11934_v14 }
 0x294   : > { %11335 = vmatmul.mubr.msk.f32.vlgmr.msra.gmra.mrb[66].mxu0 %vm4092_vm0, %v13900_v37 }
 0x295   : > { %v14226_v59 = vpop.f32.mrb[64].mxu1  ;;  %11957 = vmatpush3.bf16.xpose.msk.msra.mxu0 %vm13451_vm1, %v11952_v58  ;;  %11348 = vmatprep.mubr.msk.f32.mxu0 %vm4092_vm0, %v13808_v27  ;;  %v14232_v42 = vpop.f32.mrb[48].mxu0  ;;  %v12298_v27 = vunpack.i.h.bf16 %v13855_v46  ;;  %v11946_v58 = vpack.c.bf16 %v12378_v33, %v12377_v8  ;;  %v12323_v46 = vunpack.i.h.bf16 %v13875_v63  ;;  %v12357_v33 = vunpack.i.l.bf16 %v14009_v36 }
 0x296   : > { %18443 = vst [vmem:[#allocation68_spill] sm:$0xff] %v14226_v59  ;;  %18444 = vst [vmem:[#allocation69_spill] sm:$0xff] %v14232_v42  ;;  %v14234_v51 = vpop.f32.mrb[65].mxu1  ;;  %1932 = vrot.lane.b32.xlu0 %v14060_v57, %s13089_s10  ;;  %2026 = vrot.lane.b32.xlu1 %v14050_v7, %s13089_s10  ;;  %v14240_v37 = vpop.f32.mrb[49].mxu0  ;;  %v18478_v59 = vld [vmem:[#allocation38_spill] sm:$0xff] }
 0x297   : > { %18445 = vst [vmem:[#allocation70_spill] sm:$0xff] %v14234_v51  ;;  %18446 = vst [vmem:[#allocation71_spill] sm:$0xff] %v14240_v37  ;;  %11966 = vmatprep.subr.msk.bf16.mxu0 %vm13451_vm1, %v11964_v11  ;;  %v3785_v63 = vpop.permute.xlu1 %3784  ;;  %v12381_v8 = vpop.permute.xlu0 %12380 }
 0x298   : > { %11314 = vmatmul.mubr.msk.f32.vlgmr.msra.gmra.mrb[86].mxu1 %vm4092_vm0, %v13932_v52  ;;  %v11976_v52 = vpack.c.bf16 %v12298_v27, %v12297_v24  ;;  %v12382_v27 = vunpack.i.l.bf16 %v12381_v8 }
 0x299   : > { %11939 = vmatpush3.bf16.xpose.msk.msra.mxu1 %vm13451_vm1, %v11934_v14  ;;  %11327 = vmatprep.mubr.msk.f32.mxu1 %vm4092_vm0, %v13873_v0 }
 0x29a   : > { %1934 = vrot.lane.b32.xlu1 %v14082_v18, %s13089_s10  ;;  %1996 = vrot.lane.b32.xlu0 %v14062_v62, %s13089_s10 }
 0x29b   : > { %11948 = vmatprep.subr.msk.bf16.mxu1 %vm13451_vm1, %v11946_v58 }
 0x29c   : > { %11349 = vmatmul.mubr.msk.f32.vlgmr.msra.gmra.mrb[68].mxu0 %vm4092_vm0, %v13818_v30 }
 0x29d   : > { %v14262_v14 = vpop.f32.mrb[66].mxu1  ;;  %11969 = vmatpush3.bf16.xpose.msk.msra.mxu0 %vm13451_vm1, %v11964_v11  ;;  %11362 = vmatprep.mubr.msk.f32.mxu0 %vm4092_vm0, %v13894_v61  ;;  %v11958_v61 = vpack.c.bf16 %v12323_v46, %v12322_v60  ;;  %v12358_v11 = vunpack.i.h.bf16 %v14009_v36  ;;  %v12383_v36 = vunpack.i.h.bf16 %v12381_v8 }
 0x29e   : > { %18447 = vst [vmem:[#allocation72_spill] sm:$0xff] %v14262_v14  ;;  %v14268_v0 = vpop.f32.mrb[67].mxu1  ;;  %1964 = vrot.lane.b32.xlu0 %v14068_v22, %s13089_s10  ;;  %1998 = vrot.lane.b32.xlu1 %v14084_v54, %s13089_s10 }
 0x29f   : > { %18448 = vst [vmem:[#allocation73_spill] sm:$0xff] %v14268_v0  ;;  %11978 = vmatprep.subr.msk.bf16.mxu0 %vm13451_vm1, %v11976_v52  ;;  %v14276_v30 = vpop.f32.mrb[50].mxu0 }
 0x2a0   : > { %18449 = vst [vmem:[#allocation74_spill] sm:$0xff] %v14276_v30  ;;  %11328 = vmatmul.mubr.msk.f32.vlgmr.msra.gmra.mrb[88].mxu1 %vm4092_vm0, %v13844_v20  ;;  %v14280_v53 = vpop.f32.mrb[51].mxu0  ;;  %v11988_v20 = vpack.c.bf16 %v12358_v11, %v12357_v33  ;;  %v3801_v11 = vpop.permute.xlu1 %3800  ;;  %v18459_v33 = vld [vmem:[#allocation32_spill] sm:$0xff] }
 0x2a1   : > { %18450 = vst [vmem:[#allocation75_spill] sm:$0xff] %v14280_v53  ;;  %11951 = vmatpush3.bf16.xpose.msk.msra.mxu1 %vm13451_vm1, %v11946_v58  ;;  %11341 = vmatprep.mubr.msk.f32.mxu1 %vm4092_vm0, %v3785_v63  ;;  %v18472_v53 = vld [vmem:[#allocation23_spill] sm:$0xff] }
 0x2a2   : > { %2028 = vrot.lane.b32.xlu0 %v14070_v45, %s13089_s10  ;;  %1966 = vrot.lane.b32.xlu1 %v14090_v47, %s13089_s10 }
 0x2a3   : > { %11960 = vmatprep.subr.msk.bf16.mxu1 %vm13451_vm1, %v11958_v61 }
 0x2a4   : > { %11363 = vmatmul.mubr.msk.f32.vlgmr.msra.gmra.mrb[70].mxu0 %vm4092_vm0, %v13902_v38  ;;  %v11970_v38 = vpack.c.bf16 %v12383_v36, %v12382_v27  ;;  %v18460_v36 = vld [vmem:[#allocation37_spill] sm:$0xff] }
 0x2a5   : > { %v14295_v24 = vpop.f32.mrb[68].mxu1  ;;  %11981 = vmatpush3.bf16.xpose.msk.msra.mxu0 %vm13451_vm1, %v11976_v52  ;;  %11376 = vmatprep.mubr.msk.f32.mxu0 %vm4092_vm0, %v13816_v29  ;;  %v18453_v29 = vld [vmem:[#allocation31_spill] sm:$0xff] }
 0x2a6   : > { %18451 = vst [vmem:[#allocation76_spill] sm:$0xff] %v14295_v24  ;;  %v14301_v58 = vpop.f32.mrb[69].mxu1  ;;  %1936 = vrot.lane.b32.xlu0 %v14104_v3, %s13089_s10  ;;  %2030 = vrot.lane.b32.xlu1 %v14092_v44, %s13089_s10 }
 0x2a7   : > { %18452 = vst [vmem:[#allocation77_spill] sm:$0xff] %v14301_v58  ;;  %11990 = vmatprep.subr.msk.bf16.mxu0 %vm13451_vm1, %v11988_v20 }
 0x2a8   : > { %11342 = vmatmul.mubr.msk.f32.vlgmr.msra.gmra.mrb[90].mxu1 %vm4092_vm0, %v13954_v1  ;;  %v18454_v1 = vld [vmem:[#allocation34_spill] sm:$0xff] }
 0x2a9   : > { %11963 = vmatpush3.bf16.xpose.msk.msra.mxu1 %vm13451_vm1, %v11958_v61  ;;  %11355 = vmatprep.mubr.msk.f32.mxu1 %vm4092_vm0, %v13877_v32  ;;  %v12328_v52 = vunpack.i.h.bf16 %v18454_v1  ;;  %v12327_v46 = vunpack.i.l.bf16 %v18454_v1  ;;  %v18456_v32 = vld [vmem:[#allocation36_spill] sm:$0xff] }
 0x2aa   : > { %1938 = vrot.lane.b32.xlu1 %v14125_v6, %s13089_s10  ;;  %2000 = vrot.lane.b32.xlu0 %v14106_v31, %s13089_s10  ;;  %v18458_v61 = vld [vmem:[#allocation16_spill] sm:$0xff] }
 0x2ab   : > { %11972 = vmatprep.subr.msk.bf16.mxu1 %vm13451_vm1, %v11970_v38  ;;  %v11982_v8 = vpack.c.bf16 %v12328_v52, %v12327_v46  ;;  %v18463_v52 = vld [vmem:[#allocation21_spill] sm:$0xff]  ;;  %v18464_v46 = vld [vmem:[#allocation52_spill] sm:$0xff] }
 0x2ac   : > { %11377 = vmatmul.mubr.msk.f32.vlgmr.msra.gmra.mrb[72].mxu0 %vm4092_vm0, %v18453_v29 }
 0x2ad   : > { %v14325_v60 = vpop.f32.mrb[70].mxu1  ;;  %11993 = vmatpush3.bf16.xpose.msk.msra.mxu0 %vm13451_vm1, %v11988_v20  ;;  %11390 = vmatprep.mubr.msk.f32.mxu0 %vm4092_vm0, %v18456_v32  ;;  %v12386_v20 = vpop.permute.xlu0 %12385 }
 0x2ae   : > { %18455 = vst [vmem:[#allocation31_spill] sm:$0xff] %v14325_v60  ;;  %v14331_v63 = vpop.f32.mrb[71].mxu1  ;;  %1968 = vrot.lane.b32.xlu0 %v14112_v26, %s13089_s10  ;;  %2002 = vrot.lane.b32.xlu1 %v14127_v10, %s13089_s10  ;;  %v12388_v27 = vunpack.i.h.bf16 %v12386_v20  ;;  %v12387_v29 = vunpack.i.l.bf16 %v12386_v20  ;;  %v3817_v20 = vpop.permute.xlu1 %3816 }
 0x2af   : > { %18457 = vst [vmem:[#allocation34_spill] sm:$0xff] %v14331_v63  ;;  %12001 = vmatprep.subr.bf16.mxu0 %v18458_v61 }
 0x2b0   : > { %11356 = vmatmul.mubr.msk.f32.vlgmr.msra.gmra.mrb[92].mxu1 %vm4092_vm0, %v18459_v33  ;;  %v11994_v32 = vpack.c.bf16 %v12388_v27, %v12387_v29  ;;  %v18469_v29 = vld [vmem:[#allocation19_spill] sm:$0xff] }
 0x2b1   : > { %11975 = vmatpush3.bf16.xpose.msk.msra.mxu1 %vm13451_vm1, %v11970_v38  ;;  %11369 = vmatprep.mubr.msk.f32.mxu1 %vm4092_vm0, %v3801_v11  ;;  %v18465_v11 = vld [vmem:[#allocation35_spill] sm:$0xff] }
 0x2b2   : > { %2032 = vrot.lane.b32.xlu0 %v14114_v23, %s13089_s10  ;;  %1970 = vrot.lane.b32.xlu1 %v14133_v35, %s13089_s10 }
 0x2b3   : > { %11984 = vmatprep.subr.msk.bf16.mxu1 %vm13451_vm1, %v11982_v8 }
 0x2b4   : > { %11391 = vmatmul.mubr.msk.f32.vlgmr.msra.gmra.mrb[74].mxu0 %vm4092_vm0, %v18460_v36  ;;  %v18468_v36 = vld [vmem:[#allocation33_spill] sm:$0xff] }
 0x2b5   : > { %v14351_v1 = vpop.f32.mrb[72].mxu1  ;;  %12003 = vmatpush3.bf16.msra.mxu0 %v18458_v61  ;;  %v1019_v61 = vlaneseq }
 0x2b6   : > { %18461 = vst [vmem:[#allocation36_spill] sm:$0xff] %v14351_v1  ;;  %v14354_v38 = vpop.f32.mrb[73].mxu1  ;;  %1940 = vrot.lane.b32.xlu0 %v14145_v56, %s13089_s10  ;;  %2034 = vrot.lane.b32.xlu1 %v14135_v55, %s13089_s10 }
 0x2b7   : > { %18462 = vst [vmem:[#allocation16_spill] sm:$0xff] %v14354_v38  ;;  %12009 = vmatprep.subr.bf16.mxu0 %v18463_v52  ;;  %v14386_v27 = vshrl.u32 %v1019_v61, 7  ;;  %v18470_v61 = vld [vmem:[#allocation55_spill] sm:$0xff] }
 0x2b8   : > { %11370 = vmatmul.mubr.msk.f32.vlgmr.msra.gmra.mrb[94].mxu1 %vm4092_vm0, %v18464_v46 }
 0x2b9   : > { %11987 = vmatpush3.bf16.xpose.msk.msra.mxu1 %vm13451_vm1, %v11982_v8  ;;  %11383 = vmatprep.mubr.msk.f32.mxu1 %vm4092_vm0, %v18465_v11  ;;  %v1088_v46 = vand.u32 15, %v14386_v27  ;;  %v1052_v11 = vadd.s32 256, %v14386_v27  ;;  %v1022_v5 = vadd.s32 16, %v14386_v27  ;;  %v1054_v30 = vadd.s32 272, %v14386_v27 }
 0x2ba   : > { %1942 = vrot.lane.b32.xlu1 %v14167_v9, %s13089_s10  ;;  %2004 = vrot.lane.b32.xlu0 %v14147_v4, %s13089_s10  ;;  %v1021_v24 = vadd.s32 8, %v14386_v27  ;;  %v1070_v63 = vadd.s32 400, %v14386_v27 }
 0x2bb   : > { %11996 = vmatprep.subr.msk.bf16.mxu1 %vm13451_vm1, %v11994_v32  ;;  %v1312_v52 = vand.u32 15, %v1052_v11  ;;  %v1326_v42 = vand.u32 15, %v1054_v30 }
 0x2bd   : > { %v14373_v33 = vpop.f32.mrb[74].mxu1  ;;  %v14416_v11 = vsub.s32 15, %v1312_v52 }
 0x2be   : > { %18466 = vst [vmem:[#allocation32_spill] sm:$0xff] %v14373_v33  ;;  %1972 = vrot.lane.b32.xlu0 %v14153_v34, %s13089_s10  ;;  %2006 = vrot.lane.b32.xlu1 %v14169_v21, %s13089_s10  ;;  %v14379_v8 = vpop.f32.mrb[75].mxu1  ;;  %v1102_v33 = vand.u32 15, %v1022_v5 }
 0x2bf   : > { %18467 = vst [vmem:[#allocation37_spill] sm:$0xff] %v14379_v8  ;;  %18473 = vst [vmem:[#allocation35_spill] sm:$0xff] %v14416_v11  ;;  %v2076_v52 = vand.u32 1, %v14416_v11 }
 0x2c0   : > { %11384 = vmatmul.mubr.msk.f32.vlgmr.msra.gmra.mrb[96].mxu1 %vm4092_vm0, %v18468_v36  ;;  %v14403_v36 = vsub.s32 15, %v1088_v46  ;;  %v1068_v46 = vadd.s32 384, %v14386_v27  ;;  %v14422_v5 = vsub.s32 15, %v1102_v33  ;;  %v14436_v33 = vsub.s32 15, %v1326_v42 }
 0x2c1   : > { %11999 = vmatpush3.bf16.xpose.msk.msra.mxu1 %vm13451_vm1, %v11994_v32  ;;  %11397 = vmatprep.mubr.msk.f32.mxu1 %vm4092_vm0, %v3817_v20  ;;  %v1036_v20 = vadd.s32 128, %v14386_v27  ;;  %vm14448_vm3 = vcmp.gt.s32.totalorder %v2076_v52, 0  ;;  %v1095_v42 = vand.u32 15, %v1021_v24  ;;  %v1037_v24 = vadd.s32 136, %v14386_v27 }
 0x2c2   : > { %2036 = vrot.lane.b32.xlu0 %v14155_v2, %s13089_s10  ;;  %1974 = vrot.lane.b32.xlu1 %v14175_v16, %s13089_s10  ;;  %18471 = vst [vmem:[#allocation52_spill] sm:$0xff] %v14403_v36  ;;  %18474 = vst [vmem:[#allocation33_spill] sm:$0xff] %v14422_v5  ;;  %v1424_v60 = vand.u32 15, %v1068_v46  ;;  %v2046_v30 = vand.u32 1, %v14422_v5  ;;  %v1053_v46 = vadd.s32 264, %v14386_v27 }
 0x2c3   : > { %12005 = vmatprep.subr.bf16.mxu1 %v18469_v29  ;;  %v1200_v1 = vand.u32 15, %v1036_v20  ;;  %18476 = vst [vmem:[#allocation55_spill] sm:$0xff] %v14436_v33  ;;  %v1207_v11 = vand.u32 15, %v1037_v24 }
 0x2c4   : > { %v14441_v0 = vsub.s32 15, %v1424_v60  ;;  %vm2110_vm4 = vcmp.gt.s32.totalorder %v2046_v30, 0  ;;  %v2078_v60 = vand.u32 1, %v14436_v33  ;;  %v14471_v33 = vsub.s32 15, %v1095_v42 }
 0x2c5   : > { %v14425_v38 = vsub.s32 15, %v1200_v1  ;;  %v1069_v42 = vadd.s32 392, %v14386_v27 }
 0x2c6   : > { %1944 = vrot.lane.b32.xlu0 %v14189_v48, %s13089_s10  ;;  %2038 = vrot.lane.b32.xlu1 %v14177_v40, %s13089_s10  ;;  %18477 = vst [vmem:[#allocation78_spill] sm:$0xff] %v14441_v0  ;;  %18487 = vst [vmem:[#allocation80_spill] sm:$0xff] %v14471_v33  ;;  %vm2142_vm6 = vcmp.gt.s32.totalorder %v2078_v60, 0 }
 0x2c7   : > { %v1917_v32 = vpop.permute.xlu0 %1916  ;;  %18475 = vst [vmem:[#allocation19_spill] sm:$0xff] %v14425_v38 }
 0x2c8   : > { %11398 = vmatmul.mubr.msk.f32.vlgmr.msra.gmra.mrb[98].mxu1 %vm4092_vm0, %v18470_v61 }
 0x2c9   : > { %12007 = vmatpush3.bf16.msra.mxu1 %v18469_v29  ;;  %v2044_v29 = vand.u32 1, %v14403_v36 }
 0x2ca   : > { %1946 = vrot.lane.b32.xlu1 %v14210_v39, %s13089_s10  ;;  %2008 = vrot.lane.b32.xlu0 %v14191_v49, %s13089_s10 }
 0x2cb   : > { %12013 = vmatprep.subr.bf16.mxu1 %v18472_v53  ;;  %v1981_v8 = vpop.permute.xlu0 %1980  ;;  %v1038_v53 = vadd.s32 144, %v14386_v27  ;;  %vm2108_vm2 = vcmp.gt.s32.totalorder %v2044_v29, 0  ;;  %v2060_v29 = vand.u32 1, %v14425_v38  ;;  %v2092_v38 = vand.u32 1, %v14441_v0 }
 0x2cc   : > { %v14412_v61 = vpop.permute.xlu1 %1982  ;;  %v14446_v51 = vsel %vm2108_vm2, %v1917_v32, %v18478_v59  ;;  %v1438_v59 = vand.u32 15, %v1070_v63  ;;  %v1319_v32 = vand.u32 15, %v1053_v46 }
 0x2cd   : > { %v1214_v1 = vand.u32 15, %v1038_v53  ;;  %18479 = vst [vmem:[#allocation38_spill] sm:$0xff] %v14446_v51  ;;  %v1055_v53 = vadd.s32 280, %v14386_v27  ;;  %vm14460_vm5 = vcmp.gt.s32.totalorder %v2060_v29, 0  ;;  %vm14486_vm7 = vcmp.gt.s32.totalorder %v2092_v38, 0 }
 0x2ce   : > { %1976 = vrot.lane.b32.xlu0 %v14197_v28, %s13089_s10  ;;  %2010 = vrot.lane.b32.xlu1 %v14212_v43, %s13089_s10  ;;  %v14481_v0 = vsub.s32 15, %v1438_v59  ;;  %v2045_v59 = vand.u32 1, %v14471_v33  ;;  %v18499_v33 = vld [vmem:[#allocation41_spill] sm:$0xff] }
 0x2cf   : > { %v1949_v37 = vpop.permute.xlu0 %1948  ;;  %v14458_v5 = vsub.s32 15, %v1214_v1  ;;  %v18488_v1 = vld [vmem:[#allocation46_spill] sm:$0xff]  ;;  %v1333_v46 = vand.u32 15, %v1055_v53 }
 0x2d0   : > { %v14427_v20 = vpop.permute.xlu1 %1950  ;;  %18490 = vst [vmem:[#allocation81_spill] sm:$0xff] %v14481_v0  ;;  %v2094_v38 = vand.u32 1, %v14481_v0  ;;  %vm14519_vm9 = vcmp.gt.s32.totalorder %v2045_v59, 0 }
 0x2d1   : > { %18482 = vst [vmem:[#allocation79_spill] sm:$0xff] %v14458_v5  ;;  %v2062_v29 = vand.u32 1, %v14458_v5  ;;  %v18495_v5 = vld [vmem:[#allocation47_spill] sm:$0xff]  ;;  %v14502_v24 = vsub.s32 15, %v1333_v46  ;;  %v1023_v46 = vadd.s32 24, %v14386_v27 }
 0x2d2   : > { %2040 = vrot.lane.b32.xlu0 %v14199_v25, %s13089_s10  ;;  %1978 = vrot.lane.b32.xlu1 %v14218_v41, %s13089_s10  ;;  %v18485_v41 = vld [vmem:[#allocation39_spill] sm:$0xff]  ;;  %vm2158_vm10 = vcmp.gt.s32.totalorder %v2094_v38, 0 }
 0x2d3   : > { %v2013_v14 = vpop.permute.xlu0 %2012  ;;  %v14469_v30 = vsel %vm14448_vm3, %v1981_v8, %v18485_v41  ;;  %v1039_v41 = vadd.s32 152, %v14386_v27  ;;  %v14484_v8 = vsub.s32 15, %v1319_v32  ;;  %18497 = vst [vmem:[#allocation47_spill] sm:$0xff] %v14502_v24  ;;  %vm2126_vm8 = vcmp.gt.s32.totalorder %v2062_v29, 0 }
 0x2d4   : > { %v14443_v58 = vpop.permute.xlu1 %2014  ;;  %18486 = vst [vmem:[#allocation39_spill] sm:$0xff] %v14469_v30  ;;  %v1109_v59 = vand.u32 15, %v1023_v46  ;;  %v1026_v46 = vadd.s32 48, %v14386_v27 }
 0x2d5   : > { %18491 = vst [vmem:[#allocation82_spill] sm:$0xff] %v14484_v8  ;;  %v2077_v52 = vand.u32 1, %v14484_v8  ;;  %v18508_v8 = vld [vmem:[#allocation42_spill] sm:$0xff] }
 0x2d6   : > { %2364 = vrot.lane.b32.xlu0 %v14446_v51, %s13090_s6  ;;  %2042 = vrot.lane.b32.xlu1 %v14220_v13, %s13089_s10 }
 0x2d7   : > { %vm14534_vm11 = vcmp.gt.s32.totalorder %v2077_v52, 0 }
 0x2d8   : > { %v1919_v36 = vpop.permute.xlu0 %1918  ;;  %v1921_v51 = vpop.permute.xlu1 %1920 }
 0x2d9   : > { %v14474_v63 = vsel %vm2110_vm4, %v1921_v51, %v18488_v1  ;;  %v14545_v38 = vsel %vm14519_vm9, %v1919_v36, %v18508_v8  ;;  %v14559_v8 = vsub.s32 15, %v1109_v59  ;;  %v1058_v51 = vadd.s32 304, %v14386_v27 }
 0x2da   : > { %18489 = vst [vmem:[#allocation46_spill] sm:$0xff] %v14474_v63  ;;  %2368 = vrot.lane.b32.xlu0 %v14474_v63, %s13090_s6  ;;  %2428 = vrot.lane.b32.xlu1 %v14469_v30, %s13090_s6  ;;  %v18494_v63 = vld [vmem:[#allocation40_spill] sm:$0xff]  ;;  %v1221_v30 = vand.u32 15, %v1039_v41 }
 0x2db   : > { %v14496_v60 = vsel %vm14460_vm5, %v1949_v37, %v18494_v63  ;;  %v1024_v37 = vadd.s32 32, %v14386_v27  ;;  %v14511_v63 = vsub.s32 15, %v1207_v11  ;;  %v1072_v11 = vadd.s32 416, %v14386_v27  ;;  %18511 = vst [vmem:[#allocation88_spill] sm:$0xff] %v14559_v8 }
 0x2dc   : > { %v14491_v53 = vpop.permute.xlu1 %1922  ;;  %v1985_v1 = vpop.permute.xlu0 %1984 }
 0x2dd   : > { %v14500_v32 = vsel %vm2142_vm6, %v1985_v1, %v18495_v5  ;;  %18498 = vst [vmem:[#allocation83_spill] sm:$0xff] %v14511_v63  ;;  %v1431_v5 = vand.u32 15, %v1069_v42  ;;  %v2079_v42 = vand.u32 1, %v14502_v24  ;;  %v1071_v24 = vadd.s32 408, %v14386_v27 }
 0x2de   : > { %18496 = vst [vmem:[#allocation40_spill] sm:$0xff] %v14500_v32  ;;  %2432 = vrot.lane.b32.xlu0 %v14500_v32, %s13090_s6  ;;  %2396 = vrot.lane.b32.xlu1 %v14496_v60, %s13090_s6  ;;  %v14517_v32 = vsel %vm14486_vm7, %v2013_v14, %v18499_v33  ;;  %v14532_v14 = vsub.s32 15, %v1221_v30  ;;  %v1116_v33 = vand.u32 15, %v1024_v37  ;;  %v1452_v37 = vand.u32 15, %v1072_v11 }
 0x2df   : > { %18500 = vst [vmem:[#allocation41_spill] sm:$0xff] %v14517_v32  ;;  %vm2143_vm12 = vcmp.gt.s32.totalorder %v2079_v42, 0  ;;  %v1445_v29 = vand.u32 15, %v1071_v24  ;;  %v1056_v42 = vadd.s32 288, %v14386_v27  ;;  %v1130_v24 = vand.u32 15, %v1026_v46  ;;  %v18521_v46 = vld [vmem:[#allocation50_spill] sm:$0xff] }
 0x2e0   : > { %v1953_v1 = vpop.permute.xlu0 %1952  ;;  %v1987_v13 = vpop.permute.xlu1 %1986  ;;  %18504 = vst [vmem:[#allocation85_spill] sm:$0xff] %v14532_v14  ;;  %v2063_v52 = vand.u32 1, %v14532_v14 }
 0x2e1   : > { %v14524_v41 = vsel %vm2126_vm8, %v1953_v1, %v13948_v17  ;;  %v14538_v17 = vsub.s32 15, %v1431_v5  ;;  %v14555_v5 = vsub.s32 15, %v1116_v33  ;;  %v18514_v33 = vld [vmem:[#allocation49_spill] sm:$0xff] }
 0x2e2   : > { %18503 = vst [vmem:[#allocation84_spill] sm:$0xff] %v14524_v41  ;;  %2400 = vrot.lane.b32.xlu0 %v14524_v41, %s13090_s6  ;;  %2460 = vrot.lane.b32.xlu1 %v14517_v32, %s13090_s6  ;;  %v2061_v41 = vand.u32 1, %v14511_v63  ;;  %v14573_v32 = vsub.s32 15, %v1452_v37  ;;  %vm2127_vm14 = vcmp.gt.s32.totalorder %v2063_v52, 0  ;;  %v1340_v52 = vand.u32 15, %v1056_v42 }
 0x2e3   : > { %18507 = vst [vmem:[#allocation86_spill] sm:$0xff] %v14538_v17  ;;  %18510 = vst [vmem:[#allocation87_spill] sm:$0xff] %v14555_v5  ;;  %v2093_v36 = vand.u32 1, %v14538_v17  ;;  %v2048_v59 = vand.u32 1, %v14555_v5  ;;  %v1354_v42 = vand.u32 15, %v1058_v51 }
 0x2e4   : > { %v2017_v1 = vpop.permute.xlu0 %2016  ;;  %v1955_v0 = vpop.permute.xlu1 %1954  ;;  %vm2125_vm13 = vcmp.gt.s32.totalorder %v2061_v41, 0  ;;  %18516 = vst [vmem:[#allocation89_spill] sm:$0xff] %v14573_v32  ;;  %v14586_v41 = vsub.s32 15, %v1445_v29  ;;  %v14605_v29 = vsub.s32 15, %v1130_v24  ;;  %v18528_v24 = vld [vmem:[#allocation45_spill] sm:$0xff] }
 0x2e5   : > { %v14548_v30 = vsel %vm2158_vm10, %v2017_v1, %v13950_v19  ;;  %v18512_v1 = vld [vmem:[#allocation43_spill] sm:$0xff]  ;;  %vm14581_vm15 = vcmp.gt.s32.totalorder %v2093_v36, 0  ;;  %v14597_v5 = vsel %vm2127_vm14, %v1955_v0, %v18521_v46  ;;  %v1040_v36 = vadd.s32 160, %v14386_v27 }
 0x2e6   : > { %18509 = vst [vmem:[#allocation42_spill] sm:$0xff] %v14548_v30  ;;  %2464 = vrot.lane.b32.xlu0 %v14548_v30, %s13090_s6  ;;  %2366 = vrot.lane.b32.xlu1 %v14545_v38, %s13090_s6  ;;  %v14568_v14 = vsel %vm14534_vm11, %v14412_v61, %v18512_v1  ;;  %v14571_v30 = vsel %vm2143_vm12, %v1987_v13, %v18514_v33  ;;  %v2047_v13 = vand.u32 1, %v14559_v8  ;;  %18519 = vst [vmem:[#allocation90_spill] sm:$0xff] %v14586_v41  ;;  %v18520_v33 = vld [vmem:[#allocation44_spill] sm:$0xff] }
 0x2e7   : > { %18513 = vst [vmem:[#allocation43_spill] sm:$0xff] %v14568_v14  ;;  %18515 = vst [vmem:[#allocation49_spill] sm:$0xff] %v14571_v30  ;;  %vm2112_vm1 = vcmp.gt.s32.totalorder %v2048_v59, 0  ;;  %v2095_v46 = vand.u32 1, %v14586_v41  ;;  %v1025_v59 = vadd.s32 40, %v14386_v27  ;;  %v14626_v51 = vsel %vm14581_vm15, %v14443_v58, %v18528_v24 }
 0x2e8   : > { %v1925_v19 = vpop.permute.xlu0 %1924  ;;  %v14561_v11 = vpop.permute.xlu1 %2018  ;;  %18522 = vst [vmem:[#allocation44_spill] sm:$0xff] %v14597_v5  ;;  %18523 = vst [vmem:[#allocation50_spill] sm:$0xff] %v14605_v29  ;;  %vm14610_vm2 = vcmp.gt.s32.totalorder %v2047_v13, 0  ;;  %v14638_v41 = vsub.s32 15, %v1354_v42  ;;  %v1074_v58 = vadd.s32 432, %v14386_v27 }
 0x2e9   : > { %18529 = vst [vmem:[#allocation45_spill] sm:$0xff] %v14626_v51  ;;  %v14629_v13 = vsel %vm2112_vm1, %v1925_v19, %v13977_v50  ;;  %vm14641_vm4 = vcmp.gt.s32.totalorder %v2095_v46, 0  ;;  %v1123_v19 = vand.u32 15, %v1025_v59  ;;  %v1027_v59 = vadd.s32 56, %v14386_v27 }
 0x2ea   : > { %2434 = vrot.lane.b32.xlu0 %v14571_v30, %s13090_s6  ;;  %2430 = vrot.lane.b32.xlu1 %v14568_v14, %s13090_s6  ;;  %v14594_v30 = vsel %vm2125_vm13, %v14427_v20, %v18520_v33  ;;  %v2096_v14 = vand.u32 1, %v14573_v32  ;;  %v1042_v20 = vadd.s32 176, %v14386_v27  ;;  %v14616_v32 = vsub.s32 15, %v1340_v52  ;;  %18530 = vst [vmem:[#allocation93_spill] sm:$0xff] %v14629_v13  ;;  %18532 = vst [vmem:[#allocation95_spill] sm:$0xff] %v14638_v41 }
 0x2eb   : > { %v2050_v52 = vand.u32 1, %v14605_v29  ;;  %v2082_v29 = vand.u32 1, %v14638_v41  ;;  %v14668_v0 = vsub.s32 15, %v1123_v19  ;;  %v1137_v19 = vand.u32 15, %v1027_v59 }
 0x2ec   : > { %v14588_v37 = vpop.permute.xlu1 %1926  ;;  %v14590_v1 = vpop.permute.xlu0 %1988  ;;  %18527 = vst [vmem:[#allocation92_spill] sm:$0xff] %v14616_v32  ;;  %vm2160_vm3 = vcmp.gt.s32.totalorder %v2096_v14, 0  ;;  %v1242_v61 = vand.u32 15, %v1042_v20  ;;  %v2080_v14 = vand.u32 1, %v14616_v32  ;;  %v1073_v59 = vadd.s32 424, %v14386_v27 }
 0x2ed   : > { %vm2114_vm5 = vcmp.gt.s32.totalorder %v2050_v52, 0  ;;  %18540 = vst [vmem:[#allocation99_spill] sm:$0xff] %v14668_v0  ;;  %vm2146_vm7 = vcmp.gt.s32.totalorder %v2082_v29, 0 }
 0x2ee   : > { %2402 = vrot.lane.b32.xlu0 %v14597_v5, %s13090_s6  ;;  %2398 = vrot.lane.b32.xlu1 %v14594_v30, %s13090_s6  ;;  %v14666_v32 = vsub.s32 15, %v1242_v61  ;;  %vm14670_vm6 = vcmp.gt.s32.totalorder %v2080_v14, 0 }
 0x2ef   : > { %v14608_v33 = vpop.f32.mrb[52].mxu0 }
 0x2f0   : > { %18524 = vst [vmem:[#allocation91_spill] sm:$0xff] %v14608_v33  ;;  %v14618_v5 = vpop.permute.xlu0 %1956  ;;  %v14620_v8 = vpop.permute.xlu1 %1990  ;;  %v1228_v33 = vand.u32 15, %v1040_v36  ;;  %v1057_v36 = vadd.s32 296, %v14386_v27  ;;  %18539 = vst [vmem:[#allocation98_spill] sm:$0xff] %v14666_v32  ;;  %v2066_v14 = vand.u32 1, %v14666_v32  ;;  %v14705_v32 = vsub.s32 15, %v1137_v19 }
 0x2f1   : > { %v14631_v17 = vpop.f32.mrb[53].mxu0 }
 0x2f2   : > { %18531 = vst [vmem:[#allocation94_spill] sm:$0xff] %v14631_v17  ;;  %2372 = vrot.lane.b32.xlu0 %v14629_v13, %s13090_s6  ;;  %2462 = vrot.lane.b32.xlu1 %v14626_v51, %s13090_s6  ;;  %v18535_v13 = vld [vmem:[#allocation48_spill] sm:$0xff]  ;;  %v14655_v20 = vsub.s32 15, %v1228_v33  ;;  %v18543_v51 = vld [vmem:[#allocation51_spill] sm:$0xff]  ;;  %18550 = vst [vmem:[#allocation103_spill] sm:$0xff] %v14705_v32  ;;  %vm2130_vm9 = vcmp.gt.s32.totalorder %v2066_v14, 0 }
 0x2f3   : > { %v14653_v42 = vsel %vm14610_vm2, %v14491_v53, %v18535_v13  ;;  %v1466_v53 = vand.u32 15, %v1074_v58  ;;  %v1041_v13 = vadd.s32 168, %v14386_v27  ;;  %v14681_v52 = vsel %vm14641_vm4, %v14561_v11, %v18543_v51 }
 0x2f4   : > { %v2021_v24 = vpop.permute.xlu0 %2020  ;;  %v14647_v17 = vpop.permute.xlu1 %1958  ;;  %18536 = vst [vmem:[#allocation48_spill] sm:$0xff] %v14653_v42  ;;  %18537 = vst [vmem:[#allocation96_spill] sm:$0xff] %v14655_v20  ;;  %v2064_v61 = vand.u32 1, %v14655_v20  ;;  %v2049_v11 = vand.u32 1, %v14668_v0  ;;  %v1043_v33 = vadd.s32 184, %v14386_v27  ;;  %v2051_v0 = vand.u32 1, %v14705_v32 }
 0x2f5   : > { %v14658_v46 = vsel %vm2160_vm3, %v2021_v24, %v13987_v15  ;;  %v1347_v15 = vand.u32 15, %v1057_v36  ;;  %18544 = vst [vmem:[#allocation51_spill] sm:$0xff] %v14681_v52  ;;  %v1059_v36 = vadd.s32 312, %v14386_v27  ;;  %v14693_v50 = vsub.s32 15, %v1466_v53  ;;  %v18551_v53 = vld [vmem:[#allocation60_spill] sm:$0xff] }
 0x2f6   : > { %18538 = vst [vmem:[#allocation97_spill] sm:$0xff] %v14658_v46  ;;  %2468 = vrot.lane.b32.xlu0 %v14658_v46, %s13090_s6  ;;  %2370 = vrot.lane.b32.xlu1 %v14653_v42, %s13090_s6  ;;  %vm2128_vm8 = vcmp.gt.s32.totalorder %v2064_v61, 0  ;;  %vm14716_vm10 = vcmp.gt.s32.totalorder %v2049_v11, 0  ;;  %v1076_v11 = vadd.s32 448, %v14386_v27  ;;  %vm2115_vm13 = vcmp.gt.s32.totalorder %v2051_v0, 0 }
 0x2f7   : > { %18546 = vst [vmem:[#allocation101_spill] sm:$0xff] %v14693_v50  ;;  %v14696_v51 = vsub.s32 15, %v1347_v15  ;;  %v1361_v15 = vand.u32 15, %v1059_v36  ;;  %v18558_v36 = vld [vmem:[#allocation61_spill] sm:$0xff] }
 0x2f8   : > { %v1929_v24 = vpop.permute.xlu0 %1928  ;;  %v14675_v46 = vpop.permute.xlu1 %2022 }
 0x2f9   : > { %v14685_v58 = vsel %vm2114_vm5, %v1929_v24, %v14019_v12  ;;  %18547 = vst [vmem:[#allocation102_spill] sm:$0xff] %v14696_v51  ;;  %v1235_v12 = vand.u32 15, %v1041_v13  ;;  %v2098_v13 = vand.u32 1, %v14693_v50  ;;  %v2081_v61 = vand.u32 1, %v14696_v51  ;;  %v18565_v51 = vld [vmem:[#allocation56_spill] sm:$0xff] }
 0x2fa   : > { %18545 = vst [vmem:[#allocation100_spill] sm:$0xff] %v14685_v58  ;;  %2376 = vrot.lane.b32.xlu0 %v14685_v58, %s13090_s6  ;;  %2466 = vrot.lane.b32.xlu1 %v14681_v52, %s13090_s6  ;;  %v18548_v58 = vld [vmem:[#allocation53_spill] sm:$0xff]  ;;  %v14733_v52 = vsub.s32 15, %v1361_v15  ;;  %v1028_v15 = vadd.s32 64, %v14386_v27 }
 0x2fb   : > { %v14703_v29 = vsel %vm14670_vm6, %v14590_v1, %v18548_v58  ;;  %v14726_v14 = vsub.s32 15, %v1235_v12  ;;  %vm2162_vm11 = vcmp.gt.s32.totalorder %v2098_v13, 0  ;;  %vm14741_vm12 = vcmp.gt.s32.totalorder %v2081_v61, 0 }
 0x2fc   : > { %v1931_v24 = vpop.permute.xlu1 %1930  ;;  %v1993_v41 = vpop.permute.xlu0 %1992  ;;  %18549 = vst [vmem:[#allocation53_spill] sm:$0xff] %v14703_v29  ;;  %18560 = vst [vmem:[#allocation105_spill] sm:$0xff] %v14733_v52  ;;  %v1144_v1 = vand.u32 15, %v1028_v15  ;;  %v1062_v12 = vadd.s32 336, %v14386_v27 }
 0x2fd   : > { %v14708_v20 = vsel %vm2146_vm7, %v1993_v41, %v18551_v53  ;;  %v1459_v41 = vand.u32 15, %v1073_v59  ;;  %v1075_v53 = vadd.s32 440, %v14386_v27  ;;  %18557 = vst [vmem:[#allocation104_spill] sm:$0xff] %v14726_v14  ;;  %v2065_v13 = vand.u32 1, %v14726_v14 }
 0x2fe   : > { %18552 = vst [vmem:[#allocation60_spill] sm:$0xff] %v14708_v20  ;;  %2440 = vrot.lane.b32.xlu0 %v14708_v20, %s13090_s6  ;;  %2436 = vrot.lane.b32.xlu1 %v14703_v29, %s13090_s6  ;;  %v18555_v20 = vld [vmem:[#allocation54_spill] sm:$0xff] }
 0x2ff   : > { %v14724_v29 = vsel %vm2128_vm8, %v14618_v5, %v18555_v20  ;;  %v1249_v5 = vand.u32 15, %v1043_v33  ;;  %v14745_v59 = vsub.s32 15, %v1459_v41  ;;  %v1473_v32 = vand.u32 15, %v1075_v53  ;;  %v18566_v33 = vld [vmem:[#allocation62_spill] sm:$0xff] }
 0x300   : > { %v1961_v58 = vpop.permute.xlu0 %1960  ;;  %v1995_v19 = vpop.permute.xlu1 %1994  ;;  %18556 = vst [vmem:[#allocation54_spill] sm:$0xff] %v14724_v29  ;;  %v1480_v41 = vand.u32 15, %v1076_v11  ;;  %v1060_v11 = vadd.s32 320, %v14386_v27  ;;  %vm2129_vm14 = vcmp.gt.s32.totalorder %v2065_v13, 0 }
 0x301   : > { %v14729_v50 = vsel %vm2130_vm9, %v1961_v58, %v18558_v36  ;;  %18564 = vst [vmem:[#allocation107_spill] sm:$0xff] %v14745_v59  ;;  %v14761_v42 = vsub.s32 15, %v1249_v5  ;;  %v18571_v5 = vld [vmem:[#allocation57_spill] sm:$0xff] }
 0x302   : > { %18559 = vst [vmem:[#allocation61_spill] sm:$0xff] %v14729_v50  ;;  %2408 = vrot.lane.b32.xlu0 %v14729_v50, %s13090_s6  ;;  %2404 = vrot.lane.b32.xlu1 %v14724_v29, %s13090_s6  ;;  %v14752_v50 = vsel %vm14716_vm10, %v14588_v37, %v18565_v51  ;;  %v2083_v29 = vand.u32 1, %v14733_v52  ;;  %v1030_v37 = vadd.s32 80, %v14386_v27  ;;  %v2097_v51 = vand.u32 1, %v14745_v59 }
 0x303   : > { %v14739_v20 = vpop.f32.mrb[76].mxu1  ;;  %18569 = vst [vmem:[#allocation108_spill] sm:$0xff] %v14761_v42  ;;  %v14783_v52 = vsub.s32 15, %v1480_v41  ;;  %v2067_v15 = vand.u32 1, %v14761_v42  ;;  %v1368_v13 = vand.u32 15, %v1060_v11  ;;  %v1382_v11 = vand.u32 15, %v1062_v12 }
 0x304   : > { %18561 = vst [vmem:[#allocation106_spill] sm:$0xff] %v14739_v20  ;;  %v2025_v58 = vpop.permute.xlu0 %2024  ;;  %v1963_v36 = vpop.permute.xlu1 %1962  ;;  %vm2147_vm15 = vcmp.gt.s32.totalorder %v2083_v29, 0  ;;  %vm14791_vm1 = vcmp.gt.s32.totalorder %v2097_v51, 0  ;;  %v1044_v51 = vadd.s32 192, %v14386_v27  ;;  %v18588_v12 = vld [vmem:[#allocation65_spill] sm:$0xff] }
 0x305   : > { %v14756_v61 = vsel %vm2162_vm11, %v2025_v58, %v18566_v33  ;;  %v14758_v20 = vpop.f32.mrb[77].mxu1  ;;  %v14771_v58 = vsub.s32 15, %v1473_v32  ;;  %v14778_v33 = vsel %vm14741_vm12, %v14620_v8, %v18571_v5  ;;  %18575 = vst [vmem:[#allocation110_spill] sm:$0xff] %v14783_v52  ;;  %v1158_v32 = vand.u32 15, %v1030_v37  ;;  %v18579_v5 = vld [vmem:[#allocation58_spill] sm:$0xff]  ;;  %v18581_v37 = vld [vmem:[#allocation64_spill] sm:$0xff] }
 0x306   : > { %18567 = vst [vmem:[#allocation56_spill] sm:$0xff] %v14756_v61  ;;  %18568 = vst [vmem:[#allocation62_spill] sm:$0xff] %v14758_v20  ;;  %2472 = vrot.lane.b32.xlu0 %v14756_v61, %s13090_s6  ;;  %2374 = vrot.lane.b32.xlu1 %v14752_v50, %s13090_s6  ;;  %v18573_v20 = vld [vmem:[#allocation63_spill] sm:$0xff]  ;;  %v14804_v42 = vsel %vm2129_vm14, %v14647_v17, %v18579_v5  ;;  %v2100_v59 = vand.u32 1, %v14783_v52  ;;  %vm2131_vm2 = vcmp.gt.s32.totalorder %v2067_v15, 0  ;;  %v1046_v17 = vadd.s32 208, %v14386_v27 }
 0x307   : > { %18570 = vst [vmem:[#allocation109_spill] sm:$0xff] %v14771_v58  ;;  %18572 = vst [vmem:[#allocation57_spill] sm:$0xff] %v14778_v33  ;;  %v14781_v61 = vsel %vm2115_vm13, %v1931_v24, %v18573_v20  ;;  %v14795_v24 = vsub.s32 15, %v1144_v1  ;;  %v2099_v20 = vand.u32 1, %v14771_v58  ;;  %v14815_v1 = vsub.s32 15, %v1158_v32  ;;  %v18587_v58 = vld [vmem:[#allocation59_spill] sm:$0xff] }
 0x308   : > { %v14769_v53 = vpop.permute.xlu0 %1932  ;;  %v2027_v0 = vpop.permute.xlu1 %2026  ;;  %18574 = vst [vmem:[#allocation63_spill] sm:$0xff] %v14781_v61  ;;  %18580 = vst [vmem:[#allocation58_spill] sm:$0xff] %v14804_v42  ;;  %v14824_v15 = vsub.s32 15, %v1368_v13  ;;  %v14834_v32 = vsel %vm14791_vm1, %v14675_v46, %v18587_v58  ;;  %vm2164_vm4 = vcmp.gt.s32.totalorder %v2100_v59, 0  ;;  %v1078_v8 = vadd.s32 464, %v14386_v27 }
 0x309   : > { %18578 = vst [vmem:[#allocation111_spill] sm:$0xff] %v14795_v24  ;;  %18583 = vst [vmem:[#allocation112_spill] sm:$0xff] %v14815_v1  ;;  %v2052_v5 = vand.u32 1, %v14795_v24  ;;  %vm14819_vm3 = vcmp.gt.s32.totalorder %v2099_v20, 0  ;;  %v14837_v24 = vsel %vm2131_vm2, %v1963_v36, %v18588_v12  ;;  %v1256_v20 = vand.u32 15, %v1044_v51 }
 0x30a   : > { %2378 = vrot.lane.b32.xlu0 %v14781_v61, %s13090_s6  ;;  %2438 = vrot.lane.b32.xlu1 %v14778_v33, %s13090_s6  ;;  %v14807_v61 = vsel %vm2147_vm15, %v1995_v19, %v18581_v37  ;;  %v1029_v37 = vadd.s32 72, %v14386_v27  ;;  %18586 = vst [vmem:[#allocation113_spill] sm:$0xff] %v14824_v15  ;;  %18589 = vst [vmem:[#allocation59_spill] sm:$0xff] %v14837_v24  ;;  %v2054_v13 = vand.u32 1, %v14815_v1  ;;  %v1270_v33 = vand.u32 15, %v1046_v17 }
 0x30b   : > { %18582 = vst [vmem:[#allocation64_spill] sm:$0xff] %v14807_v61  ;;  %vm14847_vm5 = vcmp.gt.s32.totalorder %v2052_v5, 0  ;;  %v2084_v59 = vand.u32 1, %v14824_v15  ;;  %v1061_v58 = vadd.s32 328, %v14386_v27  ;;  %v14860_v17 = vsub.s32 15, %v1256_v20 }
 0x30c   : > { %v14798_v29 = vpop.permute.xlu1 %1934  ;;  %v14800_v41 = vpop.permute.xlu0 %1996  ;;  %v1151_v36 = vand.u32 15, %v1029_v37  ;;  %v1031_v1 = vadd.s32 88, %v14386_v27  ;;  %vm2118_vm6 = vcmp.gt.s32.totalorder %v2054_v13, 0  ;;  %v1045_v20 = vadd.s32 200, %v14386_v27 }
 0x30d   : > { %18593 = vst [vmem:[#allocation114_spill] sm:$0xff] %v14860_v17  ;;  %vm14875_vm7 = vcmp.gt.s32.totalorder %v2084_v59, 0  ;;  %v14886_v13 = vsel %vm14847_vm5, %v14769_v53, %v14060_v57  ;;  %v1047_v19 = vadd.s32 216, %v14386_v27 }
 0x30e   : > { %2442 = vrot.lane.b32.xlu0 %v14807_v61, %s13090_s6  ;;  %2406 = vrot.lane.b32.xlu1 %v14804_v42, %s13090_s6  ;;  %v14844_v42 = vsub.s32 15, %v1382_v11  ;;  %v14858_v11 = vsel %vm14819_vm3, %v2027_v0, %v14050_v7  ;;  %v1494_v7 = vand.u32 15, %v1078_v8  ;;  %v14873_v0 = vsub.s32 15, %v1151_v36 }
 0x30f   : > { %v1165_v36 = vand.u32 15, %v1031_v1  ;;  %v1077_v1 = vadd.s32 456, %v14386_v27 }
 0x310   : > { %v14826_v52 = vpop.permute.xlu0 %1964  ;;  %v14828_v61 = vpop.permute.xlu1 %1998  ;;  %18590 = vst [vmem:[#allocation65_spill] sm:$0xff] %v14844_v42  ;;  %v2086_v37 = vand.u32 1, %v14844_v42  ;;  %18596 = vst [vmem:[#allocation117_spill] sm:$0xff] %v14873_v0  ;;  %v14898_v46 = vsub.s32 15, %v1494_v7  ;;  %v2053_v57 = vand.u32 1, %v14873_v0 }
 0x312   : > { %2410 = vrot.lane.b32.xlu0 %v14837_v24, %s13090_s6  ;;  %2470 = vrot.lane.b32.xlu1 %v14834_v32, %s13090_s6  ;;  %v14871_v24 = vsub.s32 15, %v1270_v33  ;;  %v2068_v33 = vand.u32 1, %v14860_v17  ;;  %vm2150_vm8 = vcmp.gt.s32.totalorder %v2086_v37, 0  ;;  %18600 = vst [vmem:[#allocation119_spill] sm:$0xff] %v14898_v46  ;;  %v14908_v37 = vsel %vm14875_vm7, %v14800_v41, %v14062_v62 }
 0x313   : > { %vm14921_vm11 = vcmp.gt.s32.totalorder %v2053_v57, 0  ;;  %v1080_v57 = vadd.s32 480, %v14386_v27 }
 0x314   : > { %v2029_v51 = vpop.permute.xlu0 %2028  ;;  %v14853_v12 = vpop.permute.xlu1 %1966  ;;  %18595 = vst [vmem:[#allocation116_spill] sm:$0xff] %v14871_v24  ;;  %v2070_v59 = vand.u32 1, %v14871_v24  ;;  %vm2132_vm9 = vcmp.gt.s32.totalorder %v2068_v33, 0  ;;  %v14910_v24 = vsub.s32 15, %v1165_v36  ;;  %v1079_v36 = vadd.s32 472, %v14386_v27 }
 0x315   : > { %v14863_v5 = vsel %vm2164_vm4, %v2029_v51, %v14070_v45  ;;  %v1375_v45 = vand.u32 15, %v1061_v58  ;;  %v1063_v58 = vadd.s32 344, %v14386_v27 }
 0x316   : > { %18594 = vst [vmem:[#allocation115_spill] sm:$0xff] %v14863_v5  ;;  %2476 = vrot.lane.b32.xlu0 %v14863_v5, %s13090_s6  ;;  %2474 = vrot.lane.b32.xlu1 %v14858_v11, %s13090_s6  ;;  %18602 = vst [vmem:[#allocation121_spill] sm:$0xff] %v14910_v24  ;;  %vm2134_vm10 = vcmp.gt.s32.totalorder %v2070_v59, 0 }
 0x317   : > { %v14901_v53 = vsub.s32 15, %v1375_v45  ;;  %v1389_v45 = vand.u32 15, %v1063_v58 }
 0x318   : > { %v1937_v51 = vpop.permute.xlu0 %1936  ;;  %v14880_v5 = vpop.permute.xlu1 %2030 }
 0x319   : > { %v14890_v8 = vsel %vm2118_vm6, %v1937_v51, %v14104_v3  ;;  %18601 = vst [vmem:[#allocation120_spill] sm:$0xff] %v14901_v53  ;;  %v1263_v3 = vand.u32 15, %v1045_v20  ;;  %v2102_v20 = vand.u32 1, %v14898_v46  ;;  %v2085_v41 = vand.u32 1, %v14901_v53 }
 0x31a   : > { %18599 = vst [vmem:[#allocation118_spill] sm:$0xff] %v14890_v8  ;;  %2384 = vrot.lane.b32.xlu0 %v14890_v8, %s13090_s6  ;;  %2380 = vrot.lane.b32.xlu1 %v14886_v13, %s13090_s6  ;;  %v2055_v46 = vand.u32 1, %v14910_v24  ;;  %v14938_v8 = vsub.s32 15, %v1389_v45  ;;  %v1501_v45 = vand.u32 15, %v1079_v36 }
 0x31b   : > { %v14931_v59 = vsub.s32 15, %v1263_v3  ;;  %vm2166_vm12 = vcmp.gt.s32.totalorder %v2102_v20, 0  ;;  %vm14944_vm13 = vcmp.gt.s32.totalorder %v2085_v41, 0  ;;  %v1508_v41 = vand.u32 15, %v1080_v57 }
 0x31c   : > { %v1939_v51 = vpop.permute.xlu1 %1938  ;;  %v2001_v42 = vpop.permute.xlu0 %2000  ;;  %18608 = vst [vmem:[#allocation125_spill] sm:$0xff] %v14938_v8  ;;  %vm2119_vm14 = vcmp.gt.s32.totalorder %v2055_v46, 0  ;;  %v1064_v57 = vadd.s32 352, %v14386_v27 }
 0x31d   : > { %v14913_v7 = vsel %vm2150_vm8, %v2001_v42, %v14106_v31  ;;  %v1487_v31 = vand.u32 15, %v1077_v1  ;;  %18606 = vst [vmem:[#allocation123_spill] sm:$0xff] %v14931_v59  ;;  %v2069_v20 = vand.u32 1, %v14931_v59 }
 0x31e   : > { %18603 = vst [vmem:[#allocation122_spill] sm:$0xff] %v14913_v7  ;;  %2448 = vrot.lane.b32.xlu0 %v14913_v7, %s13090_s6  ;;  %2444 = vrot.lane.b32.xlu1 %v14908_v37, %s13090_s6  ;;  %v14929_v7 = vsel %vm2132_vm9, %v14826_v52, %v14068_v22  ;;  %v1277_v22 = vand.u32 15, %v1047_v19  ;;  %v1066_v52 = vadd.s32 368, %v14386_v27 }
 0x31f   : > { %vm2133_vm15 = vcmp.gt.s32.totalorder %v2069_v20, 0  ;;  %v1396_v20 = vand.u32 15, %v1064_v57 }
 0x320   : > { %v1969_v42 = vpop.permute.xlu0 %1968  ;;  %v2003_v33 = vpop.permute.xlu1 %2002  ;;  %v14962_v24 = vsub.s32 15, %v1277_v22  ;;  %v14979_v22 = vsel %vm14944_vm13, %v14828_v61, %v14084_v54  ;;  %v1410_v57 = vand.u32 15, %v1066_v52  ;;  %v1082_v54 = vadd.s32 496, %v14386_v27 }
 0x321   : > { %v14934_v58 = vsel %vm2134_vm10, %v1969_v42, %v14112_v26  ;;  %v14948_v26 = vsub.s32 15, %v1487_v31  ;;  %v1032_v42 = vadd.s32 96, %v14386_v27  ;;  %v2087_v31 = vand.u32 1, %v14938_v8 }
 0x322   : > { %18607 = vst [vmem:[#allocation124_spill] sm:$0xff] %v14934_v58  ;;  %2416 = vrot.lane.b32.xlu0 %v14934_v58, %s13090_s6  ;;  %2412 = vrot.lane.b32.xlu1 %v14929_v7, %s13090_s6  ;;  %v14955_v58 = vsel %vm14921_vm11, %v14798_v29, %v14082_v18  ;;  %18613 = vst [vmem:[#allocation128_spill] sm:$0xff] %v14962_v24  ;;  %v1034_v18 = vadd.s32 112, %v14386_v27 }
 0x323   : > { %18611 = vst [vmem:[#allocation126_spill] sm:$0xff] %v14948_v26  ;;  %v2101_v29 = vand.u32 1, %v14948_v26  ;;  %v1172_v62 = vand.u32 15, %v1032_v42  ;;  %vm2151_vm1 = vcmp.gt.s32.totalorder %v2087_v31, 0  ;;  %v2071_v42 = vand.u32 1, %v14962_v24 }
 0x324   : > { %v2033_v3 = vpop.permute.xlu0 %2032  ;;  %v1971_v1 = vpop.permute.xlu1 %1970  ;;  %v15005_v31 = vsel %vm2133_vm15, %v14853_v12, %v14090_v47  ;;  %v1050_v47 = vadd.s32 240, %v14386_v27 }
 0x325   : > { %v14959_v19 = vsel %vm2166_vm12, %v2033_v3, %v14114_v23  ;;  %v14972_v23 = vsub.s32 15, %v1501_v45  ;;  %v14982_v3 = vsel %vm2119_vm14, %v1939_v51, %v14125_v6  ;;  %v1186_v45 = vand.u32 15, %v1034_v18 }
 0x326   : > { %18612 = vst [vmem:[#allocation127_spill] sm:$0xff] %v14959_v19  ;;  %2480 = vrot.lane.b32.xlu0 %v14959_v19, %s13090_s6  ;;  %2382 = vrot.lane.b32.xlu1 %v14955_v58, %s13090_s6  ;;  %18615 = vst [vmem:[#allocation130_spill] sm:$0xff] %v14982_v3  ;;  %v14984_v19 = vsub.s32 15, %v1508_v41  ;;  %vm14992_vm2 = vcmp.gt.s32.totalorder %v2101_v29, 0  ;;  %v14996_v6 = vsub.s32 15, %v1172_v62  ;;  %v15008_v18 = vsel %vm2151_vm1, %v2003_v33, %v14127_v10 }
 0x327   : > { %18614 = vst [vmem:[#allocation129_spill] sm:$0xff] %v14972_v23  ;;  %v2103_v61 = vand.u32 1, %v14972_v23  ;;  %18620 = vst [vmem:[#allocation133_spill] sm:$0xff] %v15008_v18  ;;  %v1048_v29 = vadd.s32 224, %v14386_v27  ;;  %vm2135_vm3 = vcmp.gt.s32.totalorder %v2071_v42, 0  ;;  %v15016_v62 = vsub.s32 15, %v1186_v45 }
 0x328   : > { %v14970_v36 = vpop.permute.xlu0 %1940  ;;  %v2035_v46 = vpop.permute.xlu1 %2034  ;;  %18616 = vst [vmem:[#allocation131_spill] sm:$0xff] %v14984_v19  ;;  %18619 = vst [vmem:[#allocation132_spill] sm:$0xff] %v14996_v6  ;;  %v2104_v24 = vand.u32 1, %v14984_v19  ;;  %v2056_v12 = vand.u32 1, %v14996_v6  ;;  %v1033_v33 = vadd.s32 104, %v14386_v27  ;;  %v15025_v42 = vsub.s32 15, %v1396_v20 }
 0x329   : > { %18621 = vst [vmem:[#allocation134_spill] sm:$0xff] %v15016_v62  ;;  %vm15020_vm4 = vcmp.gt.s32.totalorder %v2103_v61, 0  ;;  %v15035_v45 = vsel %vm14992_vm2, %v14880_v5, %v14092_v44  ;;  %v15038_v52 = vsel %vm2135_vm3, %v1971_v1, %v14133_v35  ;;  %v1284_v61 = vand.u32 15, %v1048_v29 }
 0x32a   : > { %2386 = vrot.lane.b32.xlu0 %v14982_v3, %s13090_s6  ;;  %2446 = vrot.lane.b32.xlu1 %v14979_v22, %s13090_s6  ;;  %18624 = vst [vmem:[#allocation135_spill] sm:$0xff] %v15025_v42  ;;  %18625 = vst [vmem:[#allocation136_spill] sm:$0xff] %v15038_v52  ;;  %vm2168_vm5 = vcmp.gt.s32.totalorder %v2104_v24, 0  ;;  %v2058_v20 = vand.u32 1, %v15016_v62  ;;  %v15045_v6 = vsub.s32 15, %v1410_v57  ;;  %v1298_v3 = vand.u32 15, %v1050_v47 }
 0x32b   : > { %vm15048_vm6 = vcmp.gt.s32.totalorder %v2056_v12, 0  ;;  %v1179_v35 = vand.u32 15, %v1033_v33  ;;  %v2088_v24 = vand.u32 1, %v15025_v42  ;;  %v1065_v5 = vadd.s32 360, %v14386_v27 }
 0x32c   : > { %v14999_v51 = vpop.permute.xlu1 %1942  ;;  %v15001_v41 = vpop.permute.xlu0 %2004  ;;  %18626 = vst [vmem:[#allocation137_spill] sm:$0xff] %v15045_v6  ;;  %v15059_v57 = vsel %vm15020_vm4, %v2035_v46, %v14135_v55  ;;  %v15061_v47 = vsub.s32 15, %v1284_v61  ;;  %v1035_v62 = vadd.s32 120, %v14386_v27  ;;  %vm2122_vm7 = vcmp.gt.s32.totalorder %v2058_v20, 0 }
 0x32d   : > { %v2090_v33 = vand.u32 1, %v15045_v6  ;;  %v1522_v55 = vand.u32 15, %v1082_v54  ;;  %v15076_v10 = vsub.s32 15, %v1179_v35  ;;  %vm15078_vm8 = vcmp.gt.s32.totalorder %v2088_v24, 0 }
 0x32e   : > { %2450 = vrot.lane.b32.xlu0 %v15008_v18, %s13090_s6  ;;  %2414 = vrot.lane.b32.xlu1 %v15005_v31, %s13090_s6  ;;  %18629 = vst [vmem:[#allocation138_spill] sm:$0xff] %v15061_v47  ;;  %v1403_v61 = vand.u32 15, %v1065_v5  ;;  %v2072_v20 = vand.u32 1, %v15061_v47  ;;  %v1193_v24 = vand.u32 15, %v1035_v62  ;;  %v1081_v62 = vadd.s32 488, %v14386_v27 }
 0x32f   : > { %18633 = vst [vmem:[#allocation142_spill] sm:$0xff] %v15076_v10  ;;  %vm2154_vm9 = vcmp.gt.s32.totalorder %v2090_v33, 0  ;;  %v2057_v44 = vand.u32 1, %v15076_v10  ;;  %v15113_v33 = vsel %vm15078_vm8, %v15001_v41, %v14147_v4 }
 0x330   : > { %v15027_v19 = vpop.permute.xlu0 %1972  ;;  %v15029_v18 = vpop.permute.xlu1 %2006  ;;  %vm2136_vm10 = vcmp.gt.s32.totalorder %v2072_v20, 0 }
 0x331   : > { %vm15128_vm12 = vcmp.gt.s32.totalorder %v2057_v44, 0 }
 0x332   : > { %2418 = vrot.lane.b32.xlu0 %v15038_v52, %s13090_s6  ;;  %2478 = vrot.lane.b32.xlu1 %v15035_v45, %s13090_s6  ;;  %v15072_v52 = vsub.s32 15, %v1298_v3  ;;  %v15089_v3 = vsel %vm15048_vm6, %v14970_v36, %v14145_v56  ;;  %v1067_v56 = vadd.s32 376, %v14386_v27  ;;  %v15103_v36 = vsub.s32 15, %v1522_v55 }
 0x334   : > { %v2037_v1 = vpop.permute.xlu0 %2036  ;;  %v15054_v29 = vpop.permute.xlu1 %1974  ;;  %18631 = vst [vmem:[#allocation140_spill] sm:$0xff] %v15072_v52  ;;  %v2074_v5 = vand.u32 1, %v15072_v52  ;;  %18637 = vst [vmem:[#allocation144_spill] sm:$0xff] %v15103_v36  ;;  %v15115_v52 = vsub.s32 15, %v1193_v24 }
 0x335   : > { %v15064_v12 = vsel %vm2168_vm5, %v2037_v1, %v14155_v2  ;;  %v1049_v1 = vadd.s32 232, %v14386_v27  ;;  %v1051_v2 = vadd.s32 248, %v14386_v27 }
 0x336   : > { %18630 = vst [vmem:[#allocation139_spill] sm:$0xff] %v15064_v12  ;;  %2484 = vrot.lane.b32.xlu0 %v15064_v12, %s13090_s6  ;;  %2482 = vrot.lane.b32.xlu1 %v15059_v57, %s13090_s6  ;;  %18639 = vst [vmem:[#allocation146_spill] sm:$0xff] %v15115_v52  ;;  %vm2138_vm11 = vcmp.gt.s32.totalorder %v2074_v5, 0  ;;  %v15137_v5 = vsel %vm2136_vm10, %v15027_v19, %v14153_v34  ;;  %v1083_v34 = vadd.s32 504, %v14386_v27 }
 0x337   : > { %v15074_v46 = vpop.f32.mrb[54].mxu0 }
 0x338   : > { %18632 = vst [vmem:[#allocation141_spill] sm:$0xff] %v15074_v46  ;;  %v1945_v12 = vpop.permute.xlu0 %1944  ;;  %v15083_v42 = vpop.permute.xlu1 %2038 }
 0x339   : > { %v15093_v54 = vsel %vm2122_vm7, %v1945_v12, %v14189_v48  ;;  %v15095_v35 = vpop.f32.mrb[55].mxu0  ;;  %v15106_v48 = vsub.s32 15, %v1403_v61  ;;  %v1291_v12 = vand.u32 15, %v1049_v1  ;;  %v1417_v61 = vand.u32 15, %v1067_v56 }
 0x33a   : > { %18636 = vst [vmem:[#allocation143_spill] sm:$0xff] %v15095_v35  ;;  %2392 = vrot.lane.b32.xlu0 %v15093_v54, %s13090_s6  ;;  %2388 = vrot.lane.b32.xlu1 %v15089_v3, %s13090_s6  ;;  %v2106_v1 = vand.u32 1, %v15103_v36  ;;  %v1515_v56 = vand.u32 15, %v1081_v62  ;;  %v2059_v36 = vand.u32 1, %v15115_v52 }
 0x33b   : > { %18638 = vst [vmem:[#allocation145_spill] sm:$0xff] %v15106_v48  ;;  %v15133_v20 = vsub.s32 15, %v1291_v12  ;;  %v1305_v12 = vand.u32 15, %v1051_v2 }
 0x33c   : > { %v1947_v46 = vpop.permute.xlu1 %1946  ;;  %v2009_v35 = vpop.permute.xlu0 %2008  ;;  %vm2170_vm13 = vcmp.gt.s32.totalorder %v2106_v1, 0  ;;  %vm2123_vm15 = vcmp.gt.s32.totalorder %v2059_v36, 0 }
 0x33d   : > { %v15118_v55 = vsel %vm2154_vm9, %v2009_v35, %v14191_v49  ;;  %v2089_v49 = vand.u32 1, %v15106_v48  ;;  %18644 = vst [vmem:[#allocation149_spill] sm:$0xff] %v15133_v20  ;;  %v15169_v2 = vsub.s32 15, %v1305_v12  ;;  %v15184_v36 = vsel %vm2123_vm15, %v1947_v46, %v14210_v39 }
 0x33e   : > { %18640 = vst [vmem:[#allocation147_spill] sm:$0xff] %v15118_v55  ;;  %2456 = vrot.lane.b32.xlu0 %v15118_v55, %s13090_s6  ;;  %2452 = vrot.lane.b32.xlu1 %v15113_v33, %s13090_s6 }
 0x33f   : > { %v15126_v4 = vpop.f32.mrb[56].mxu0  ;;  %vm15152_vm14 = vcmp.gt.s32.totalorder %v2089_v49, 0  ;;  %18650 = vst [vmem:[#allocation153_spill] sm:$0xff] %v15169_v2 }
 0x340   : > { %18641 = vst [vmem:[#allocation148_spill] sm:$0xff] %v15126_v4  ;;  %v1977_v35 = vpop.permute.xlu0 %1976  ;;  %v2011_v24 = vpop.permute.xlu1 %2010  ;;  %v15145_v4 = vsub.s32 15, %v1417_v61  ;;  %v15160_v61 = vsel %vm15128_vm12, %v14999_v51, %v14167_v9  ;;  %v1529_v9 = vand.u32 15, %v1083_v34  ;;  %v2075_v34 = vand.u32 1, %v15169_v2 }
 0x341   : > { %v15141_v55 = vsel %vm2138_vm11, %v1977_v35, %v14197_v28  ;;  %v15143_v44 = vpop.f32.mrb[57].mxu0  ;;  %v2073_v35 = vand.u32 1, %v15133_v20 }
 0x342   : > { %18645 = vst [vmem:[#allocation150_spill] sm:$0xff] %v15143_v44  ;;  %18646 = vst [vmem:[#allocation151_spill] sm:$0xff] %v15145_v4  ;;  %2424 = vrot.lane.b32.xlu0 %v15141_v55, %s13090_s6  ;;  %2420 = vrot.lane.b32.xlu1 %v15137_v5, %s13090_s6  ;;  %v15163_v44 = vsub.s32 15, %v1515_v56  ;;  %v2091_v27 = vand.u32 1, %v15145_v4  ;;  %vm2139_vm4 = vcmp.gt.s32.totalorder %v2075_v34, 0  ;;  %v18661_v34 = vld [vmem:[#allocation52_spill] sm:$0xff] }
 0x343   : > { %vm2137_vm1 = vcmp.gt.s32.totalorder %v2073_v35, 0 }
 0x344   : > { %v2041_v28 = vpop.permute.xlu0 %2040  ;;  %v1979_v62 = vpop.permute.xlu1 %1978  ;;  %18649 = vst [vmem:[#allocation152_spill] sm:$0xff] %v15163_v44  ;;  %v2105_v12 = vand.u32 1, %v15163_v44  ;;  %vm2155_vm2 = vcmp.gt.s32.totalorder %v2091_v27, 0  ;;  %v15202_v46 = vsel %vm2137_vm1, %v15054_v29, %v14175_v16  ;;  %v18658_v29 = vld [vmem:[#allocation66_spill] sm:$0xff] }
 0x345   : > { %v15166_v1 = vsel %vm2170_vm13, %v2041_v28, %v14199_v25  ;;  %v15181_v25 = vsel %vm15152_vm14, %v15029_v18, %v14169_v21  ;;  %v15190_v28 = vsub.s32 15, %v1529_v9  ;;  %v15205_v19 = vsel %vm2155_vm2, %v2011_v24, %v14212_v43 }
 0x346   : > { %2488 = vrot.lane.b32.xlu0 %v15166_v1, %s13090_s6  ;;  %2390 = vrot.lane.b32.xlu1 %v15160_v61, %s13090_s6  ;;  %18655 = vst [vmem:[#allocation158_spill] sm:$0xff] %v15205_v19  ;;  %vm2169_vm3 = vcmp.gt.s32.totalorder %v2105_v12, 0  ;;  %v15223_v24 = vsel %vm2139_vm4, %v1979_v62, %v18658_v29  ;;  %v18664_v62 = vld [vmem:[#allocation67_spill] sm:$0xff] }
 0x347   : > { %v15175_v51 = vpop.f32.mrb[58].mxu0  ;;  %18653 = vst [vmem:[#allocation156_spill] sm:$0xff] %v15190_v28  ;;  %v2107_v27 = vand.u32 1, %v15190_v28  ;;  %v15220_v43 = vsel %vm2169_vm3, %v15083_v42, %v14177_v40  ;;  %18659 = vst [vmem:[#allocation66_spill] sm:$0xff] %v15223_v24 }
 0x348   : > { %18651 = vst [vmem:[#allocation154_spill] sm:$0xff] %v15175_v51  ;;  %v2365_v41 = vpop.permute.xlu0 %2364  ;;  %v2043_v49 = vpop.permute.xlu1 %2042 }
 0x349   : > { %v15186_v56 = vpop.f32.mrb[59].mxu0  ;;  %vm2171_vm5 = vcmp.gt.s32.totalorder %v2107_v27, 0  ;;  %v18667_v27 = vld [vmem:[#allocation35_spill] sm:$0xff] }
 0x34a   : > { %18652 = vst [vmem:[#allocation155_spill] sm:$0xff] %v15186_v56  ;;  %2394 = vrot.lane.b32.xlu0 %v15184_v36, %s13090_s6  ;;  %2454 = vrot.lane.b32.xlu1 %v15181_v25, %s13090_s6  ;;  %v2492_v56 = vand.u32 2, %v18661_v34  ;;  %v15238_v29 = vsel %vm2171_vm5, %v2043_v49, %v18664_v62  ;;  %v18669_v34 = vld [vmem:[#allocation38_spill] sm:$0xff] }
 0x34b   : > { %v15196_v21 = vpop.f32.mrb[78].mxu1  ;;  %18665 = vst [vmem:[#allocation67_spill] sm:$0xff] %v15238_v29 }
 0x34c   : > { %18654 = vst [vmem:[#allocation157_spill] sm:$0xff] %v15196_v21  ;;  %v15198_v18 = vpop.permute.xlu0 %2368  ;;  %v2429_v39 = vpop.permute.xlu1 %2428  ;;  %v18662_v21 = vld [vmem:[#allocation80_spill] sm:$0xff]  ;;  %vm2556_vm6 = vcmp.gt.s32.totalorder %v2492_v56, 0  ;;  %v18673_v56 = vld [vmem:[#allocation19_spill] sm:$0xff] }
 0x34d   : > { %v15207_v35 = vpop.f32.mrb[79].mxu1  ;;  %v15250_v2 = vsel %vm2556_vm6, %v2365_v41, %v18669_v34 }
 0x34e   : > { %18656 = vst [vmem:[#allocation159_spill] sm:$0xff] %v15207_v35  ;;  %2458 = vrot.lane.b32.xlu0 %v15205_v19, %s13090_s6  ;;  %2422 = vrot.lane.b32.xlu1 %v15202_v46, %s13090_s6  ;;  %v2493_v35 = vand.u32 2, %v18662_v21  ;;  %v2524_v19 = vand.u32 2, %v18667_v27  ;;  %18670 = vst [vmem:[#allocation38_spill] sm:$0xff] %v15250_v2  ;;  %v18678_v27 = vld [vmem:[#allocation78_spill] sm:$0xff] }
 0x34f   : > { %v15214_v9 = vpop.f32.mrb[60].mxu0 }
 0x350   : > { %18657 = vst [vmem:[#allocation160_spill] sm:$0xff] %v15214_v9  ;;  %v15216_v51 = vpop.permute.xlu0 %2432  ;;  %v2397_v16 = vpop.permute.xlu1 %2396  ;;  %vm2557_vm7 = vcmp.gt.s32.totalorder %v2493_v35, 0  ;;  %vm2588_vm8 = vcmp.gt.s32.totalorder %v2524_v19, 0  ;;  %v2509_v35 = vand.u32 2, %v14511_v63 }
 0x351   : > { %v15225_v12 = vpop.f32.mrb[61].mxu0 }
 0x352   : > { %18660 = vst [vmem:[#allocation161_spill] sm:$0xff] %v15225_v12  ;;  %2426 = vrot.lane.b32.xlu0 %v15223_v24, %s13090_s6  ;;  %2486 = vrot.lane.b32.xlu1 %v15220_v43, %s13090_s6  ;;  %vm2573_vm10 = vcmp.gt.s32.totalorder %v2509_v35, 0 }
 0x353   : > { %v15233_v9 = vpop.f32.mrb[80].mxu1 }
 0x354   : > { %18663 = vst [vmem:[#allocation162_spill] sm:$0xff] %v15233_v9  ;;  %v15235_v40 = vpop.permute.xlu0 %2400  ;;  %v2461_v42 = vpop.permute.xlu1 %2460 }
 0x355   : > { %v15240_v12 = vpop.f32.mrb[81].mxu1 }
 0x356   : > { %18666 = vst [vmem:[#allocation163_spill] sm:$0xff] %v15240_v12  ;;  %2490 = vrot.lane.b32.xlu1 %v15238_v29, %s13090_s6  ;;  %v2508_v12 = vand.u32 2, %v18673_v56 }
 0x357   : > { %v15245_v24 = vpop.f32.mrb[62].mxu0 }
 0x358   : > { %18668 = vst [vmem:[#allocation164_spill] sm:$0xff] %v15245_v24  ;;  %v15247_v21 = vpop.permute.xlu0 %2464  ;;  %v2367_v9 = vpop.permute.xlu1 %2366  ;;  %vm2572_vm9 = vcmp.gt.s32.totalorder %v2508_v12, 0  ;;  %v18683_v12 = vld [vmem:[#allocation55_spill] sm:$0xff] }
 0x359   : > { %v15253_v49 = vsel %vm2557_vm7, %v2367_v9, %v14545_v38  ;;  %v15255_v62 = vpop.f32.mrb[63].mxu0  ;;  %v18675_v9 = vld [vmem:[#allocation39_spill] sm:$0xff]  ;;  %v15281_v29 = vsel %vm2572_vm9, %v2397_v16, %v14496_v60 }
 0x35a   : > { %18671 = vst [vmem:[#allocation165_spill] sm:$0xff] %v15253_v49  ;;  %18672 = vst [vmem:[#allocation166_spill] sm:$0xff] %v15255_v62  ;;  %2812 = vrot.lane.b32.xlu1 %v15250_v2, %s13091_s7  ;;  %2814 = vrot.lane.b32.xlu0 %v15253_v49, %s13091_s7  ;;  %v15268_v34 = vsel %vm2588_vm8, %v2429_v39, %v18675_v9  ;;  %v18677_v62 = vld [vmem:[#allocation33_spill] sm:$0xff]  ;;  %v2540_v2 = vand.u32 2, %v18678_v27  ;;  %v18684_v27 = vld [vmem:[#allocation82_spill] sm:$0xff] }
 0x35b   : > { %v15263_v24 = vpop.f32.mrb[82].mxu1  ;;  %v2494_v56 = vand.u32 2, %v18677_v62  ;;  %18680 = vst [vmem:[#allocation169_spill] sm:$0xff] %v15281_v29  ;;  %v2525_v62 = vand.u32 2, %v18684_v27 }
 0x35c   : > { %18674 = vst [vmem:[#allocation167_spill] sm:$0xff] %v15263_v24  ;;  %v15265_v41 = vpop.permute.xlu0 %2434  ;;  %v2431_v38 = vpop.permute.xlu1 %2430  ;;  %vm2604_vm12 = vcmp.gt.s32.totalorder %v2540_v2, 0 }
 0x35d   : > { %v15270_v19 = vpop.f32.mrb[83].mxu1  ;;  %vm2558_vm11 = vcmp.gt.s32.totalorder %v2494_v56, 0  ;;  %v18688_v56 = vld [vmem:[#allocation41_spill] sm:$0xff]  ;;  %vm2589_vm14 = vcmp.gt.s32.totalorder %v2525_v62, 0 }
 0x35e   : > { %18676 = vst [vmem:[#allocation39_spill] sm:$0xff] %v15270_v19  ;;  %2876 = vrot.lane.b32.xlu1 %v15268_v34, %s13091_s7  ;;  %v2526_v19 = vand.u32 2, %v18683_v12  ;;  %v18692_v12 = vld [vmem:[#allocation86_spill] sm:$0xff] }
 0x35f   : > { %v15276_v49 = vpop.f32.mrb[64].mxu0 }
 0x360   : > { %18679 = vst [vmem:[#allocation168_spill] sm:$0xff] %v15276_v49  ;;  %v15278_v24 = vpop.permute.xlu0 %2402  ;;  %v2399_v63 = vpop.permute.xlu1 %2398  ;;  %v15303_v49 = vsel %vm2604_vm12, %v2461_v42, %v18688_v56  ;;  %vm2590_vm13 = vcmp.gt.s32.totalorder %v2526_v19, 0  ;;  %v18696_v19 = vld [vmem:[#allocation43_spill] sm:$0xff] }
 0x361   : > { %v15284_v39 = vsel %vm2573_vm10, %v2399_v63, %v14594_v30  ;;  %v15286_v9 = vpop.f32.mrb[65].mxu0  ;;  %v18686_v30 = vld [vmem:[#allocation46_spill] sm:$0xff]  ;;  %18689 = vst [vmem:[#allocation41_spill] sm:$0xff] %v15303_v49 }
 0x362   : > { %18681 = vst [vmem:[#allocation170_spill] sm:$0xff] %v15284_v39  ;;  %18682 = vst [vmem:[#allocation171_spill] sm:$0xff] %v15286_v9  ;;  %2844 = vrot.lane.b32.xlu1 %v15281_v29, %s13091_s7  ;;  %2846 = vrot.lane.b32.xlu0 %v15284_v39, %s13091_s7  ;;  %v15300_v16 = vsel %vm2558_vm11, %v15198_v18, %v18686_v30  ;;  %v18691_v9 = vld [vmem:[#allocation79_spill] sm:$0xff]  ;;  %v2541_v29 = vand.u32 2, %v18692_v12  ;;  %v18694_v30 = vld [vmem:[#allocation40_spill] sm:$0xff] }
 0x363   : > { %v15294_v35 = vpop.f32.mrb[84].mxu1  ;;  %18687 = vst [vmem:[#allocation46_spill] sm:$0xff] %v15300_v16  ;;  %v2510_v27 = vand.u32 2, %v18691_v9  ;;  %v15319_v56 = vsel %vm2590_vm13, %v15216_v51, %v18694_v30  ;;  %v18699_v12 = vld [vmem:[#allocation81_spill] sm:$0xff]  ;;  %v18702_v30 = vld [vmem:[#allocation84_spill] sm:$0xff] }
 0x364   : > { %18685 = vst [vmem:[#allocation172_spill] sm:$0xff] %v15294_v35  ;;  %v15296_v60 = vpop.permute.xlu0 %2372  ;;  %v2463_v63 = vpop.permute.xlu1 %2462  ;;  %18695 = vst [vmem:[#allocation40_spill] sm:$0xff] %v15319_v56  ;;  %v2542_v9 = vand.u32 2, %v18699_v12  ;;  %vm2605_vm1 = vcmp.gt.s32.totalorder %v2541_v29, 0 }
 0x365   : > { %v15305_v2 = vpop.f32.mrb[85].mxu1  ;;  %vm2574_vm15 = vcmp.gt.s32.totalorder %v2510_v27, 0  ;;  %v18704_v27 = vld [vmem:[#allocation45_spill] sm:$0xff] }
 0x366   : > { %18690 = vst [vmem:[#allocation173_spill] sm:$0xff] %v15305_v2  ;;  %2908 = vrot.lane.b32.xlu1 %v15303_v49, %s13091_s7  ;;  %2816 = vrot.lane.b32.xlu0 %v15300_v16, %s13091_s7  ;;  %v15322_v2 = vsel %vm2589_vm14, %v2431_v38, %v18696_v19  ;;  %v18700_v49 = vld [vmem:[#allocation88_spill] sm:$0xff]  ;;  %v15338_v19 = vsel %vm2574_vm15, %v15235_v40, %v18702_v30  ;;  %vm2606_vm2 = vcmp.gt.s32.totalorder %v2542_v9, 0  ;;  %v18709_v30 = vld [vmem:[#allocation42_spill] sm:$0xff] }
 0x367   : > { %v15313_v35 = vpop.f32.mrb[66].mxu0  ;;  %18697 = vst [vmem:[#allocation43_spill] sm:$0xff] %v15322_v2  ;;  %v2495_v16 = vand.u32 2, %v18700_v49  ;;  %18703 = vst [vmem:[#allocation84_spill] sm:$0xff] %v15338_v19  ;;  %v18706_v49 = vld [vmem:[#allocation47_spill] sm:$0xff]  ;;  %v18711_v9 = vld [vmem:[#allocation48_spill] sm:$0xff] }
 0x368   : > { %18693 = vst [vmem:[#allocation174_spill] sm:$0xff] %v15313_v35  ;;  %v15315_v18 = vpop.permute.xlu0 %2468  ;;  %v2371_v42 = vpop.permute.xlu1 %2370  ;;  %v2527_v12 = vand.u32 2, %v18706_v49 }
 0x369   : > { %v15324_v62 = vpop.f32.mrb[67].mxu0  ;;  %vm2559_vm3 = vcmp.gt.s32.totalorder %v2495_v16, 0 }
 0x36a   : > { %18698 = vst [vmem:[#allocation175_spill] sm:$0xff] %v15324_v62  ;;  %2878 = vrot.lane.b32.xlu1 %v15322_v2, %s13091_s7  ;;  %2880 = vrot.lane.b32.xlu0 %v15319_v56, %s13091_s7  ;;  %v15341_v62 = vsel %vm2605_vm1, %v2463_v63, %v18704_v27  ;;  %v18707_v2 = vld [vmem:[#allocation90_spill] sm:$0xff]  ;;  %v15357_v27 = vsel %vm2606_vm2, %v15247_v21, %v18709_v30  ;;  %vm2591_vm4 = vcmp.gt.s32.totalorder %v2527_v12, 0  ;;  %v18717_v30 = vld [vmem:[#allocation49_spill] sm:$0xff]  ;;  %v18719_v12 = vld [vmem:[#allocation51_spill] sm:$0xff] }
 0x36b   : > { %v15332_v35 = vpop.f32.mrb[86].mxu1  ;;  %v2543_v56 = vand.u32 2, %v18707_v2  ;;  %18710 = vst [vmem:[#allocation42_spill] sm:$0xff] %v15357_v27  ;;  %v18714_v2 = vld [vmem:[#allocation85_spill] sm:$0xff] }
 0x36c   : > { %18701 = vst [vmem:[#allocation176_spill] sm:$0xff] %v15332_v35  ;;  %v15334_v51 = vpop.permute.xlu0 %2376  ;;  %v2467_v38 = vpop.permute.xlu1 %2466  ;;  %v2511_v49 = vand.u32 2, %v18714_v2 }
 0x36d   : > { %v15343_v29 = vpop.f32.mrb[87].mxu1  ;;  %vm2607_vm5 = vcmp.gt.s32.totalorder %v2543_v56, 0  ;;  %v18722_v56 = vld [vmem:[#allocation89_spill] sm:$0xff] }
 0x36e   : > { %18705 = vst [vmem:[#allocation45_spill] sm:$0xff] %v15343_v29  ;;  %2848 = vrot.lane.b32.xlu0 %v15338_v19, %s13091_s7  ;;  %2910 = vrot.lane.b32.xlu1 %v15341_v62, %s13091_s7  ;;  %v15360_v29 = vsel %vm2559_vm3, %v2371_v42, %v18711_v9  ;;  %v18715_v19 = vld [vmem:[#allocation87_spill] sm:$0xff]  ;;  %v15376_v9 = vsel %vm2591_vm4, %v15265_v41, %v18717_v30  ;;  %vm2575_vm6 = vcmp.gt.s32.totalorder %v2511_v49, 0  ;;  %v2544_v2 = vand.u32 2, %v18722_v56  ;;  %v18725_v30 = vld [vmem:[#allocation44_spill] sm:$0xff]  ;;  %v18727_v49 = vld [vmem:[#allocation93_spill] sm:$0xff] }
 0x36f   : > { %v15351_v35 = vpop.f32.mrb[68].mxu0  ;;  %18712 = vst [vmem:[#allocation48_spill] sm:$0xff] %v15360_v29  ;;  %v2496_v39 = vand.u32 2, %v18715_v19  ;;  %18718 = vst [vmem:[#allocation49_spill] sm:$0xff] %v15376_v9 }
 0x370   : > { %18708 = vst [vmem:[#allocation177_spill] sm:$0xff] %v15351_v35  ;;  %v15353_v40 = vpop.permute.xlu0 %2440  ;;  %v2437_v63 = vpop.permute.xlu1 %2436  ;;  %vm2608_vm8 = vcmp.gt.s32.totalorder %v2544_v2, 0  ;;  %v18734_v2 = vld [vmem:[#allocation53_spill] sm:$0xff] }
 0x371   : > { %v15362_v16 = vpop.f32.mrb[69].mxu0  ;;  %vm2560_vm7 = vcmp.gt.s32.totalorder %v2496_v39, 0 }
 0x372   : > { %18713 = vst [vmem:[#allocation178_spill] sm:$0xff] %v15362_v16  ;;  %2912 = vrot.lane.b32.xlu0 %v15357_v27, %s13091_s7  ;;  %2818 = vrot.lane.b32.xlu1 %v15360_v29, %s13091_s7  ;;  %v15379_v16 = vsel %vm2607_vm5, %v2467_v38, %v18719_v12  ;;  %v18723_v27 = vld [vmem:[#allocation92_spill] sm:$0xff]  ;;  %v15395_v12 = vsel %vm2575_vm6, %v15278_v24, %v18725_v30 }
 0x373   : > { %v15370_v35 = vpop.f32.mrb[88].mxu1  ;;  %18720 = vst [vmem:[#allocation51_spill] sm:$0xff] %v15379_v16  ;;  %v2528_v29 = vand.u32 2, %v18723_v27  ;;  %18726 = vst [vmem:[#allocation44_spill] sm:$0xff] %v15395_v12  ;;  %v15399_v39 = vsel %vm2560_vm7, %v15296_v60, %v18727_v49  ;;  %v18730_v27 = vld [vmem:[#allocation96_spill] sm:$0xff]  ;;  %v18733_v49 = vld [vmem:[#allocation97_spill] sm:$0xff] }
 0x374   : > { %18716 = vst [vmem:[#allocation179_spill] sm:$0xff] %v15370_v35  ;;  %v15372_v21 = vpop.permute.xlu0 %2408  ;;  %v2405_v42 = vpop.permute.xlu1 %2404  ;;  %18728 = vst [vmem:[#allocation93_spill] sm:$0xff] %v15399_v39  ;;  %v2512_v56 = vand.u32 2, %v18730_v27  ;;  %v18737_v27 = vld [vmem:[#allocation50_spill] sm:$0xff] }
 0x375   : > { %v15381_v19 = vpop.f32.mrb[89].mxu1  ;;  %vm2592_vm9 = vcmp.gt.s32.totalorder %v2528_v29, 0 }
 0x376   : > { %18721 = vst [vmem:[#allocation180_spill] sm:$0xff] %v15381_v19  ;;  %2882 = vrot.lane.b32.xlu0 %v15376_v9, %s13091_s7  ;;  %2914 = vrot.lane.b32.xlu1 %v15379_v16, %s13091_s7  ;;  %v18731_v16 = vld [vmem:[#allocation99_spill] sm:$0xff]  ;;  %v15418_v29 = vsel %vm2592_vm9, %v2437_v63, %v18734_v2  ;;  %vm2576_vm10 = vcmp.gt.s32.totalorder %v2512_v56, 0  ;;  %v18740_v63 = vld [vmem:[#allocation54_spill] sm:$0xff] }
 0x377   : > { %v15389_v35 = vpop.f32.mrb[70].mxu0  ;;  %v2497_v9 = vand.u32 2, %v18731_v16  ;;  %18735 = vst [vmem:[#allocation97_spill] sm:$0xff] %v15418_v29  ;;  %v2498_v16 = vand.u32 2, %v18737_v27  ;;  %v15431_v2 = vsel %vm2576_vm10, %v2405_v42, %v18740_v63  ;;  %v2513_v27 = vand.u32 2, %v14726_v14  ;;  %v18750_v14 = vld [vmem:[#allocation98_spill] sm:$0xff] }
 0x378   : > { %18724 = vst [vmem:[#allocation181_spill] sm:$0xff] %v15389_v35  ;;  %v15391_v41 = vpop.permute.xlu0 %2472  ;;  %v2375_v38 = vpop.permute.xlu1 %2374  ;;  %v15415_v35 = vsel %vm2608_vm8, %v15315_v18, %v18733_v49  ;;  %18741 = vst [vmem:[#allocation54_spill] sm:$0xff] %v15431_v2 }
 0x379   : > { %v15401_v19 = vpop.f32.mrb[71].mxu0  ;;  %vm2561_vm11 = vcmp.gt.s32.totalorder %v2497_v9, 0  ;;  %vm2562_vm12 = vcmp.gt.s32.totalorder %v2498_v16, 0  ;;  %v18744_v9 = vld [vmem:[#allocation95_spill] sm:$0xff]  ;;  %v18748_v16 = vld [vmem:[#allocation57_spill] sm:$0xff]  ;;  %vm2577_vm15 = vcmp.gt.s32.totalorder %v2513_v27, 0 }
 0x37a   : > { %18729 = vst [vmem:[#allocation182_spill] sm:$0xff] %v15401_v19  ;;  %2850 = vrot.lane.b32.xlu0 %v15395_v12, %s13091_s7  ;;  %2820 = vrot.lane.b32.xlu1 %v15399_v39, %s13091_s7  ;;  %v18738_v12 = vld [vmem:[#allocation102_spill] sm:$0xff] }
 0x37b   : > { %v15409_v24 = vpop.f32.mrb[90].mxu1  ;;  %v2529_v39 = vand.u32 2, %v18738_v12  ;;  %v2530_v12 = vand.u32 2, %v18744_v9  ;;  %v2514_v9 = vand.u32 2, %v18750_v14 }
 0x37c   : > { %18732 = vst [vmem:[#allocation183_spill] sm:$0xff] %v15409_v24  ;;  %v15411_v30 = vpop.permute.xlu0 %2378  ;;  %v2439_v60 = vpop.permute.xlu1 %2438 }
 0x37d   : > { %v15420_v19 = vpop.f32.mrb[91].mxu1  ;;  %vm2593_vm13 = vcmp.gt.s32.totalorder %v2529_v39, 0  ;;  %vm2594_vm14 = vcmp.gt.s32.totalorder %v2530_v12, 0  ;;  %v18754_v12 = vld [vmem:[#allocation58_spill] sm:$0xff]  ;;  %vm2578_vm1 = vcmp.gt.s32.totalorder %v2514_v9, 0 }
 0x37e   : > { %18736 = vst [vmem:[#allocation53_spill] sm:$0xff] %v15420_v19  ;;  %2916 = vrot.lane.b32.xlu0 %v15415_v35, %s13091_s7  ;;  %2884 = vrot.lane.b32.xlu1 %v15418_v29, %s13091_s7  ;;  %v15434_v19 = vsel %vm2561_vm11, %v2375_v38, %v14752_v50  ;;  %v18746_v50 = vld [vmem:[#allocation100_spill] sm:$0xff] }
 0x37f   : > { %v15428_v24 = vpop.f32.mrb[72].mxu0  ;;  %18742 = vst [vmem:[#allocation185_spill] sm:$0xff] %v15434_v19  ;;  %v15448_v38 = vsel %vm2562_vm12, %v15334_v51, %v18746_v50 }
 0x380   : > { %18739 = vst [vmem:[#allocation184_spill] sm:$0xff] %v15428_v24  ;;  %v2443_v18 = vpop.permute.xlu0 %2442  ;;  %v2407_v49 = vpop.permute.xlu1 %2406  ;;  %18747 = vst [vmem:[#allocation100_spill] sm:$0xff] %v15448_v38 }
 0x381   : > { %v15436_v56 = vpop.f32.mrb[73].mxu0 }
 0x382   : > { %18743 = vst [vmem:[#allocation186_spill] sm:$0xff] %v15436_v56  ;;  %2852 = vrot.lane.b32.xlu1 %v15431_v2, %s13091_s7  ;;  %2822 = vrot.lane.b32.xlu0 %v15434_v19, %s13091_s7  ;;  %v15451_v56 = vsel %vm2593_vm13, %v2439_v60, %v18748_v16  ;;  %v18751_v2 = vld [vmem:[#allocation107_spill] sm:$0xff]  ;;  %v18753_v60 = vld [vmem:[#allocation60_spill] sm:$0xff] }
 0x383   : > { %v15444_v24 = vpop.f32.mrb[92].mxu1  ;;  %v2545_v29 = vand.u32 2, %v18751_v2  ;;  %v15465_v16 = vsel %vm2594_vm14, %v15353_v40, %v18753_v60  ;;  %v18757_v2 = vld [vmem:[#allocation101_spill] sm:$0xff] }
 0x384   : > { %18745 = vst [vmem:[#allocation187_spill] sm:$0xff] %v15444_v24  ;;  %v2411_v42 = vpop.permute.xlu0 %2410  ;;  %v2471_v63 = vpop.permute.xlu1 %2470  ;;  %v2546_v14 = vand.u32 2, %v18757_v2  ;;  %v18760_v60 = vld [vmem:[#allocation61_spill] sm:$0xff] }
 0x385   : > { %v15453_v39 = vpop.f32.mrb[93].mxu1  ;;  %vm2609_vm2 = vcmp.gt.s32.totalorder %v2545_v29, 0  ;;  %v18764_v29 = vld [vmem:[#allocation105_spill] sm:$0xff] }
 0x386   : > { %18749 = vst [vmem:[#allocation57_spill] sm:$0xff] %v15453_v39  ;;  %2824 = vrot.lane.b32.xlu0 %v15448_v38, %s13091_s7  ;;  %2886 = vrot.lane.b32.xlu1 %v15451_v56, %s13091_s7  ;;  %v15468_v39 = vsel %vm2577_vm15, %v2407_v49, %v18754_v12  ;;  %v18758_v38 = vld [vmem:[#allocation103_spill] sm:$0xff]  ;;  %v15484_v12 = vsel %vm2578_vm1, %v15372_v21, %v18760_v60  ;;  %vm2610_vm3 = vcmp.gt.s32.totalorder %v2546_v14, 0  ;;  %v18765_v2 = vld [vmem:[#allocation109_spill] sm:$0xff]  ;;  %v18766_v60 = vld [vmem:[#allocation56_spill] sm:$0xff] }
 0x387   : > { %v15461_v24 = vpop.f32.mrb[74].mxu0  ;;  %18755 = vst [vmem:[#allocation60_spill] sm:$0xff] %v15468_v39  ;;  %v2499_v19 = vand.u32 2, %v18758_v38  ;;  %18761 = vst [vmem:[#allocation61_spill] sm:$0xff] %v15484_v12  ;;  %v15487_v9 = vsel %vm2609_vm2, %v2471_v63, %v14834_v32  ;;  %v2531_v38 = vand.u32 2, %v18764_v29  ;;  %v15501_v32 = vsel %vm2610_vm3, %v15391_v41, %v18766_v60  ;;  %v18767_v63 = vld [vmem:[#allocation63_spill] sm:$0xff] }
 0x388   : > { %18752 = vst [vmem:[#allocation188_spill] sm:$0xff] %v15461_v24  ;;  %v2477_v51 = vpop.permute.xlu0 %2476  ;;  %v2475_v50 = vpop.permute.xlu1 %2474  ;;  %18762 = vst [vmem:[#allocation190_spill] sm:$0xff] %v15487_v9 }
 0x389   : > { %v15470_v27 = vpop.f32.mrb[75].mxu0  ;;  %vm2563_vm4 = vcmp.gt.s32.totalorder %v2499_v19, 0  ;;  %vm2595_vm5 = vcmp.gt.s32.totalorder %v2531_v38, 0  ;;  %v18768_v19 = vld [vmem:[#allocation108_spill] sm:$0xff] }
 0x38a   : > { %18756 = vst [vmem:[#allocation58_spill] sm:$0xff] %v15470_v27  ;;  %2888 = vrot.lane.b32.xlu0 %v15465_v16, %s13091_s7  ;;  %2854 = vrot.lane.b32.xlu1 %v15468_v39, %s13091_s7  ;;  %v2547_v39 = vand.u32 2, %v18765_v2  ;;  %v15505_v14 = vsel %vm2563_vm4, %v15411_v30, %v18767_v63  ;;  %v18769_v2 = vld [vmem:[#allocation111_spill] sm:$0xff]  ;;  %v18773_v63 = vld [vmem:[#allocation110_spill] sm:$0xff] }
 0x38b   : > { %v15478_v24 = vpop.f32.mrb[94].mxu1  ;;  %v2500_v29 = vand.u32 2, %v18769_v2  ;;  %v2548_v2 = vand.u32 2, %v18773_v63 }
 0x38c   : > { %18759 = vst [vmem:[#allocation189_spill] sm:$0xff] %v15478_v24  ;;  %v15480_v40 = vpop.permute.xlu0 %2384  ;;  %v2381_v49 = vpop.permute.xlu1 %2380  ;;  %vm2611_vm6 = vcmp.gt.s32.totalorder %v2547_v39, 0 }
 0x38d   : > { %v15489_v27 = vpop.f32.mrb[95].mxu1  ;;  %v15521_v38 = vsel %vm2611_vm6, %v2475_v50, %v14858_v11  ;;  %vm2564_vm8 = vcmp.gt.s32.totalorder %v2500_v29, 0  ;;  %vm2612_vm9 = vcmp.gt.s32.totalorder %v2548_v2, 0  ;;  %v2501_v29 = vand.u32 2, %v14873_v0 }
 0x38e   : > { %18763 = vst [vmem:[#allocation191_spill] sm:$0xff] %v15489_v27  ;;  %2856 = vrot.lane.b32.xlu0 %v15484_v12, %s13091_s7  ;;  %2918 = vrot.lane.b32.xlu1 %v15487_v9, %s13091_s7  ;;  %v2515_v27 = vand.u32 2, %v18768_v19  ;;  %v18771_v12 = vld [vmem:[#allocation64_spill] sm:$0xff]  ;;  %v2532_v19 = vand.u32 2, %v14824_v15  ;;  %v15537_v50 = vsel %vm2564_vm8, %v2381_v49, %v14886_v13 }
 0x38f   : > { %v15518_v30 = vsel %vm2595_vm5, %v2443_v18, %v18771_v12  ;;  %v18774_v12 = vld [vmem:[#allocation59_spill] sm:$0xff]  ;;  %v18778_v49 = vld [vmem:[#allocation112_spill] sm:$0xff]  ;;  %vm2565_vm12 = vcmp.gt.s32.totalorder %v2501_v29, 0  ;;  %v2517_v29 = vand.u32 2, %v14931_v59 }
 0x390   : > { %v15497_v24 = vpop.permute.xlu0 %2448  ;;  %v2445_v21 = vpop.permute.xlu1 %2444  ;;  %vm2579_vm7 = vcmp.gt.s32.totalorder %v2515_v27, 0  ;;  %vm2596_vm10 = vcmp.gt.s32.totalorder %v2532_v19, 0  ;;  %v2516_v27 = vand.u32 2, %v14860_v17  ;;  %v2502_v19 = vand.u32 2, %v18778_v49  ;;  %v18780_v49 = vld [vmem:[#allocation118_spill] sm:$0xff] }
 0x391   : > { %v15534_v11 = vsel %vm2579_vm7, %v2411_v42, %v18774_v12  ;;  %v18776_v12 = vld [vmem:[#allocation115_spill] sm:$0xff]  ;;  %v15551_v13 = vsel %vm2596_vm10, %v2445_v21, %v14908_v37  ;;  %v2533_v17 = vand.u32 2, %v14901_v53  ;;  %v18779_v21 = vld [vmem:[#allocation65_spill] sm:$0xff]  ;;  %vm2581_vm1 = vcmp.gt.s32.totalorder %v2517_v29, 0 }
 0x392   : > { %2920 = vrot.lane.b32.xlu0 %v15501_v32, %s13091_s7  ;;  %2826 = vrot.lane.b32.xlu1 %v15505_v14, %s13091_s7  ;;  %v15548_v63 = vsel %vm2612_vm9, %v2477_v51, %v18776_v12  ;;  %vm2580_vm11 = vcmp.gt.s32.totalorder %v2516_v27, 0  ;;  %vm2566_vm13 = vcmp.gt.s32.totalorder %v2502_v19, 0  ;;  %v2534_v27 = vand.u32 2, %v18779_v21  ;;  %v18783_v21 = vld [vmem:[#allocation122_spill] sm:$0xff] }
 0x393   : > { %v15513_v9 = vpop.f32.mrb[96].mxu1  ;;  %vm2597_vm14 = vcmp.gt.s32.totalorder %v2533_v17, 0 }
 0x394   : > { %18770 = vst [vmem:[#allocation56_spill] sm:$0xff] %v15513_v9  ;;  %v15515_v41 = vpop.permute.xlu0 %2416  ;;  %v2413_v60 = vpop.permute.xlu1 %2412  ;;  %vm2598_vm15 = vcmp.gt.s32.totalorder %v2534_v27, 0  ;;  %v18785_v27 = vld [vmem:[#allocation121_spill] sm:$0xff] }
 0x395   : > { %v15523_v39 = vpop.f32.mrb[97].mxu1  ;;  %v15562_v12 = vsel %vm2580_vm11, %v2413_v60, %v14929_v7  ;;  %v15575_v7 = vsel %vm2566_vm13, %v15480_v40, %v18780_v49  ;;  %v18782_v60 = vld [vmem:[#allocation116_spill] sm:$0xff]  ;;  %v15588_v40 = vsel %vm2598_vm15, %v15497_v24, %v18783_v21  ;;  %v2503_v29 = vand.u32 2, %v18785_v27  ;;  %v18789_v27 = vld [vmem:[#allocation127_spill] sm:$0xff] }
 0x396   : > { %18772 = vst [vmem:[#allocation63_spill] sm:$0xff] %v15523_v39  ;;  %2890 = vrot.lane.b32.xlu0 %v15518_v30, %s13091_s7  ;;  %2922 = vrot.lane.b32.xlu1 %v15521_v38, %s13091_s7  ;;  %v2518_v17 = vand.u32 2, %v18782_v60  ;;  %v2551_v21 = vand.u32 2, %v14972_v23 }
 0x397   : > { %vm2567_vm5 = vcmp.gt.s32.totalorder %v2503_v29, 0  ;;  %v18794_v29 = vld [vmem:[#allocation132_spill] sm:$0xff] }
 0x398   : > { %v15531_v9 = vpop.permute.xlu0 %2480  ;;  %v2383_v18 = vpop.permute.xlu1 %2382  ;;  %vm2582_vm2 = vcmp.gt.s32.totalorder %v2518_v17, 0  ;;  %vm2615_vm7 = vcmp.gt.s32.totalorder %v2551_v21, 0  ;;  %v2504_v23 = vand.u32 2, %v18794_v29  ;;  %v18797_v21 = vld [vmem:[#allocation135_spill] sm:$0xff]  ;;  %v18798_v29 = vld [vmem:[#allocation136_spill] sm:$0xff] }
 0x399   : > { %v15565_v37 = vsel %vm2565_vm12, %v2383_v18, %v14955_v58  ;;  %v2549_v18 = vand.u32 2, %v14948_v26 }
 0x39a   : > { %2858 = vrot.lane.b32.xlu0 %v15534_v11, %s13091_s7  ;;  %2828 = vrot.lane.b32.xlu1 %v15537_v50, %s13091_s7  ;;  %vm2568_vm9 = vcmp.gt.s32.totalorder %v2504_v23, 0 }
 0x39b   : > { %v15545_v39 = vpop.f32.mrb[98].mxu1  ;;  %vm2613_vm3 = vcmp.gt.s32.totalorder %v2549_v18, 0 }
 0x39c   : > { %18775 = vst [vmem:[#allocation64_spill] sm:$0xff] %v15545_v39  ;;  %v2387_v15 = vpop.permute.xlu0 %2386  ;;  %v2447_v42 = vpop.permute.xlu1 %2446 }
 0x39d   : > { %v15553_v2 = vpop.f32.mrb[99].mxu1  ;;  %v15578_v58 = vsel %vm2597_vm14, %v2447_v42, %v14979_v22  ;;  %v18784_v42 = vld [vmem:[#allocation119_spill] sm:$0xff] }
 0x39e   : > { %18777 = vst [vmem:[#allocation59_spill] sm:$0xff] %v15553_v2  ;;  %2924 = vrot.lane.b32.xlu0 %v15548_v63, %s13091_s7  ;;  %2892 = vrot.lane.b32.xlu1 %v15551_v13, %s13091_s7  ;;  %18781 = vst [vmem:[#allocation115_spill] sm:$0xff] %v15578_v58  ;;  %v2550_v49 = vand.u32 2, %v18784_v42 }
 0x3a0   : > { %v2451_v39 = vpop.permute.xlu0 %2450  ;;  %v2415_v51 = vpop.permute.xlu1 %2414  ;;  %vm2614_vm4 = vcmp.gt.s32.totalorder %v2550_v49, 0 }
 0x3a1   : > { %v15591_v22 = vsel %vm2581_vm1, %v2415_v51, %v15005_v31  ;;  %v2535_v51 = vand.u32 2, %v14938_v8  ;;  %v18795_v8 = vld [vmem:[#allocation133_spill] sm:$0xff] }
 0x3a2   : > { %2860 = vrot.lane.b32.xlu1 %v15562_v12, %s13091_s7  ;;  %2830 = vrot.lane.b32.xlu0 %v15565_v37, %s13091_s7 }
 0x3a3   : > { %vm2599_vm6 = vcmp.gt.s32.totalorder %v2535_v51, 0 }
 0x3a4   : > { %v2419_v2 = vpop.permute.xlu0 %2418  ;;  %v2479_v53 = vpop.permute.xlu1 %2478 }
 0x3a5   : > { %v15604_v31 = vsel %vm2613_vm3, %v2479_v53, %v15035_v45  ;;  %v18791_v53 = vld [vmem:[#allocation130_spill] sm:$0xff] }
 0x3a6   : > { %2832 = vrot.lane.b32.xlu0 %v15575_v7, %s13091_s7  ;;  %2894 = vrot.lane.b32.xlu1 %v15578_v58, %s13091_s7  ;;  %v18786_v58 = vld [vmem:[#allocation124_spill] sm:$0xff]  ;;  %18788 = vst [vmem:[#allocation122_spill] sm:$0xff] %v15604_v31  ;;  %v15617_v45 = vsel %vm2567_vm5, %v2387_v15, %v18791_v53  ;;  %v2536_v53 = vand.u32 2, %v18797_v21 }
 0x3a7   : > { %v15601_v24 = vsel %vm2582_vm2, %v15515_v41, %v18786_v58  ;;  %v15614_v41 = vsel %vm2614_vm4, %v15531_v9, %v18789_v27  ;;  %18792 = vst [vmem:[#allocation127_spill] sm:$0xff] %v15617_v45  ;;  %v18793_v58 = vld [vmem:[#allocation128_spill] sm:$0xff]  ;;  %v15626_v9 = vsel %vm2599_vm6, %v2451_v39, %v18795_v8  ;;  %v18796_v27 = vld [vmem:[#allocation131_spill] sm:$0xff] }
 0x3a8   : > { %v2485_v19 = vpop.permute.xlu0 %2484  ;;  %v2483_v59 = vpop.permute.xlu1 %2482  ;;  %18787 = vst [vmem:[#allocation118_spill] sm:$0xff] %v15601_v24  ;;  %18790 = vst [vmem:[#allocation124_spill] sm:$0xff] %v15614_v41  ;;  %v2519_v49 = vand.u32 2, %v18793_v58  ;;  %v2552_v51 = vand.u32 2, %v18796_v27  ;;  %vm2600_vm11 = vcmp.gt.s32.totalorder %v2536_v53, 0 }
 0x3a9   : > { %v15629_v15 = vsel %vm2615_vm7, %v2483_v59, %v15059_v57  ;;  %v2520_v59 = vand.u32 2, %v15061_v47  ;;  %v2505_v57 = vand.u32 2, %v15076_v10 }
 0x3aa   : > { %2896 = vrot.lane.b32.xlu0 %v15588_v40, %s13091_s7  ;;  %2862 = vrot.lane.b32.xlu1 %v15591_v22, %s13091_s7  ;;  %vm2583_vm8 = vcmp.gt.s32.totalorder %v2519_v49, 0  ;;  %vm2616_vm10 = vcmp.gt.s32.totalorder %v2552_v51, 0  ;;  %v18799_v49 = vld [vmem:[#allocation139_spill] sm:$0xff]  ;;  %v2537_v51 = vand.u32 2, %v15106_v48 }
 0x3ab   : > { %vm2584_vm12 = vcmp.gt.s32.totalorder %v2520_v59, 0  ;;  %vm2569_vm13 = vcmp.gt.s32.totalorder %v2505_v57, 0  ;;  %v2521_v59 = vand.u32 2, %v15133_v20  ;;  %v18803_v20 = vld [vmem:[#allocation147_spill] sm:$0xff] }
 0x3ac   : > { %v2393_v26 = vpop.permute.xlu0 %2392  ;;  %v2389_v60 = vpop.permute.xlu1 %2388  ;;  %vm2601_vm15 = vcmp.gt.s32.totalorder %v2537_v51, 0 }
 0x3ad   : > { %v15641_v8 = vsel %vm2568_vm9, %v2389_v60, %v15089_v3  ;;  %v18800_v60 = vld [vmem:[#allocation134_spill] sm:$0xff]  ;;  %vm2585_vm2 = vcmp.gt.s32.totalorder %v2521_v59, 0 }
 0x3ae   : > { %2864 = vrot.lane.b32.xlu0 %v15601_v24, %s13091_s7  ;;  %2926 = vrot.lane.b32.xlu1 %v15604_v31, %s13091_s7 }
 0x3b0   : > { %v2457_v17 = vpop.permute.xlu0 %2456  ;;  %v2453_v18 = vpop.permute.xlu1 %2452 }
 0x3b1   : > { %v15653_v3 = vsel %vm2600_vm11, %v2453_v18, %v15113_v33  ;;  %v2538_v18 = vand.u32 2, %v15045_v6 }
 0x3b2   : > { %2928 = vrot.lane.b32.xlu0 %v15614_v41, %s13091_s7  ;;  %2834 = vrot.lane.b32.xlu1 %v15617_v45, %s13091_s7  ;;  %v15638_v41 = vsel %vm2583_vm8, %v2419_v2, %v18798_v29  ;;  %v15650_v2 = vsel %vm2616_vm10, %v2485_v19, %v18799_v49  ;;  %v2506_v29 = vand.u32 2, %v18800_v60 }
 0x3b3   : > { %vm2602_vm1 = vcmp.gt.s32.totalorder %v2538_v18, 0  ;;  %v2507_v18 = vand.u32 2, %v15115_v52 }
 0x3b4   : > { %v2425_v31 = vpop.permute.xlu0 %2424  ;;  %v2421_v24 = vpop.permute.xlu1 %2420  ;;  %vm2570_vm14 = vcmp.gt.s32.totalorder %v2506_v29, 0  ;;  %v2553_v29 = vand.u32 2, %v15163_v44 }
 0x3b5   : > { %v15662_v19 = vsel %vm2584_vm12, %v2421_v24, %v15137_v5  ;;  %v15674_v49 = vsel %vm2570_vm14, %v2393_v26, %v15093_v54  ;;  %v15686_v26 = vsel %vm2602_vm1, %v2457_v17, %v18803_v20  ;;  %vm2571_vm6 = vcmp.gt.s32.totalorder %v2507_v18, 0 }
 0x3b6   : > { %2898 = vrot.lane.b32.xlu0 %v15626_v9, %s13091_s7  ;;  %2930 = vrot.lane.b32.xlu1 %v15629_v15, %s13091_s7  ;;  %vm2617_vm4 = vcmp.gt.s32.totalorder %v2553_v29, 0  ;;  %v2539_v17 = vand.u32 2, %v15145_v4 }
 0x3b8   : > { %v2391_v45 = vpop.permute.xlu1 %2390  ;;  %v2489_v23 = vpop.permute.xlu0 %2488  ;;  %vm2603_vm7 = vcmp.gt.s32.totalorder %v2539_v17, 0 }
 0x3b9   : > { %v15665_v33 = vsel %vm2569_vm13, %v2391_v45, %v15160_v61  ;;  %v18802_v61 = vld [vmem:[#allocation140_spill] sm:$0xff] }
 0x3ba   : > { %2866 = vrot.lane.b32.xlu0 %v15638_v41, %s13091_s7  ;;  %2836 = vrot.lane.b32.xlu1 %v15641_v8, %s13091_s7  ;;  %v2522_v24 = vand.u32 2, %v18802_v61 }
 0x3bc   : > { %v2455_v39 = vpop.permute.xlu1 %2454  ;;  %v2395_v53 = vpop.permute.xlu0 %2394  ;;  %vm2586_vm3 = vcmp.gt.s32.totalorder %v2522_v24, 0 }
 0x3bd   : > { %v15677_v5 = vsel %vm2601_vm15, %v2455_v39, %v15181_v25  ;;  %v18805_v25 = vld [vmem:[#allocation144_spill] sm:$0xff]  ;;  %v15698_v20 = vsel %vm2586_vm3, %v2425_v31, %v15141_v55  ;;  %v18809_v31 = vld [vmem:[#allocation153_spill] sm:$0xff] }
 0x3be   : > { %2932 = vrot.lane.b32.xlu0 %v15650_v2, %s13091_s7  ;;  %2900 = vrot.lane.b32.xlu1 %v15653_v3, %s13091_s7  ;;  %18801 = vst [vmem:[#allocation130_spill] sm:$0xff] %v15677_v5  ;;  %v2554_v39 = vand.u32 2, %v18805_v25  ;;  %18806 = vst [vmem:[#allocation136_spill] sm:$0xff] %v15698_v20 }
 0x3c0   : > { %v2423_v27 = vpop.permute.xlu1 %2422  ;;  %v2459_v45 = vpop.permute.xlu0 %2458  ;;  %vm2618_vm5 = vcmp.gt.s32.totalorder %v2554_v39, 0  ;;  %v18810_v39 = vld [vmem:[#allocation52_spill] sm:$0xff] }
 0x3c1   : > { %v15689_v54 = vsel %vm2585_vm2, %v2423_v27, %v15202_v46  ;;  %v2555_v27 = vand.u32 2, %v15190_v28  ;;  %v15710_v55 = vsel %vm2618_vm5, %v2489_v23, %v15166_v1  ;;  %v2940_v18 = vand.u32 4, %v18810_v39  ;;  %v18813_v23 = vld [vmem:[#allocation67_spill] sm:$0xff] }
 0x3c2   : > { %2868 = vrot.lane.b32.xlu1 %v15662_v19, %s13091_s7  ;;  %2838 = vrot.lane.b32.xlu0 %v15665_v33, %s13091_s7  ;;  %18804 = vst [vmem:[#allocation133_spill] sm:$0xff] %v15689_v54  ;;  %18807 = vst [vmem:[#allocation139_spill] sm:$0xff] %v15710_v55 }
 0x3c3   : > { %vm2619_vm8 = vcmp.gt.s32.totalorder %v2555_v27, 0  ;;  %vm3004_vm10 = vcmp.gt.s32.totalorder %v2940_v18, 0  ;;  %v18816_v27 = vld [vmem:[#allocation35_spill] sm:$0xff] }
 0x3c4   : > { %v2487_v57 = vpop.permute.xlu1 %2486  ;;  %v2427_v59 = vpop.permute.xlu0 %2426  ;;  %v2972_v39 = vand.u32 4, %v18816_v27  ;;  %v18820_v18 = vld [vmem:[#allocation19_spill] sm:$0xff] }
 0x3c5   : > { %v15701_v46 = vsel %vm2617_vm4, %v2487_v57, %v15220_v43  ;;  %v15713_v43 = vsel %vm2571_vm6, %v2395_v53, %v15184_v36  ;;  %v2523_v57 = vand.u32 2, %v18809_v31  ;;  %v18815_v53 = vld [vmem:[#allocation80_spill] sm:$0xff]  ;;  %v18817_v31 = vld [vmem:[#allocation66_spill] sm:$0xff] }
 0x3c6   : > { %2840 = vrot.lane.b32.xlu0 %v15674_v49, %s13091_s7  ;;  %2902 = vrot.lane.b32.xlu1 %v15677_v5, %s13091_s7  ;;  %18808 = vst [vmem:[#allocation134_spill] sm:$0xff] %v15713_v43  ;;  %v2941_v17 = vand.u32 4, %v18815_v53  ;;  %vm3036_vm12 = vcmp.gt.s32.totalorder %v2972_v39, 0  ;;  %v2956_v53 = vand.u32 4, %v18820_v18  ;;  %v18832_v18 = vld [vmem:[#allocation46_spill] sm:$0xff] }
 0x3c7   : > { %vm2587_vm9 = vcmp.gt.s32.totalorder %v2523_v57, 0  ;;  %v18819_v57 = vld [vmem:[#allocation83_spill] sm:$0xff] }
 0x3c8   : > { %v2491_v51 = vpop.permute.xlu1 %2490  ;;  %vm3005_vm11 = vcmp.gt.s32.totalorder %v2941_v17, 0  ;;  %vm3020_vm14 = vcmp.gt.s32.totalorder %v2956_v53, 0  ;;  %v18825_v17 = vld [vmem:[#allocation78_spill] sm:$0xff] }
 0x3c9   : > { %v15725_v36 = vsel %vm2619_vm8, %v2491_v51, %v18813_v23  ;;  %v2957_v23 = vand.u32 4, %v18819_v57  ;;  %v2988_v39 = vand.u32 4, %v18825_v17  ;;  %v18826_v57 = vld [vmem:[#allocation170_spill] sm:$0xff] }
 0x3ca   : > { %2904 = vrot.lane.b32.xlu0 %v15686_v26, %s13091_s7  ;;  %2870 = vrot.lane.b32.xlu1 %v15689_v54, %s13091_s7  ;;  %18814 = vst [vmem:[#allocation52_spill] sm:$0xff] %v15725_v36 }
 0x3cb   : > { %vm3021_vm13 = vcmp.gt.s32.totalorder %v2957_v23, 0  ;;  %vm3052_vm1 = vcmp.gt.s32.totalorder %v2988_v39, 0  ;;  %v18831_v23 = vld [vmem:[#allocation82_spill] sm:$0xff] }
 0x3cc   : > { %v2813_v5 = vpop.permute.xlu1 %2812  ;;  %v2815_v24 = vpop.permute.xlu0 %2814 }
 0x3ce   : > { %2872 = vrot.lane.b32.xlu0 %v15698_v20, %s13091_s7  ;;  %2934 = vrot.lane.b32.xlu1 %v15701_v46, %s13091_s7  ;;  %v18811_v20 = vld [vmem:[#allocation158_spill] sm:$0xff] }
 0x3cf   : > { %v15722_v1 = vsel %vm2603_vm7, %v2459_v45, %v18811_v20  ;;  %v15734_v45 = vsel %vm2587_vm9, %v2427_v59, %v18817_v31  ;;  %v18818_v20 = vld [vmem:[#allocation38_spill] sm:$0xff] }
 0x3d0   : > { %v2877_v29 = vpop.permute.xlu1 %2876  ;;  %18812 = vst [vmem:[#allocation147_spill] sm:$0xff] %v15722_v1  ;;  %v3196_v51 = vsel %vm3004_vm10, %v2813_v5, %v18818_v20  ;;  %v18824_v5 = vld [vmem:[#allocation33_spill] sm:$0xff] }
 0x3d1   : > { %v15746_v59 = vsel %vm3036_vm12, %v2877_v29, %v15268_v34  ;;  %v2942_v31 = vand.u32 4, %v18824_v5  ;;  %v18830_v29 = vld [vmem:[#allocation55_spill] sm:$0xff]  ;;  %v2973_v5 = vand.u32 4, %v18831_v23 }
 0x3d2   : > { %2936 = vrot.lane.b32.xlu0 %v15710_v55, %s13091_s7  ;;  %2842 = vrot.lane.b32.xlu1 %v15713_v43, %s13091_s7  ;;  %18823 = vst [vmem:[#allocation67_spill] sm:$0xff] %v15746_v59  ;;  %v2974_v53 = vand.u32 4, %v18830_v29 }
 0x3d3   : > { %vm3006_vm15 = vcmp.gt.s32.totalorder %v2942_v31, 0  ;;  %vm3037_vm3 = vcmp.gt.s32.totalorder %v2973_v5, 0  ;;  %v18836_v31 = vld [vmem:[#allocation79_spill] sm:$0xff]  ;;  %v18841_v5 = vld [vmem:[#allocation81_spill] sm:$0xff] }
 0x3d4   : > { %v2847_v28 = vpop.permute.xlu0 %2846  ;;  %v2845_v52 = vpop.permute.xlu1 %2844  ;;  %vm3038_vm2 = vcmp.gt.s32.totalorder %v2974_v53, 0  ;;  %v2958_v39 = vand.u32 4, %v18836_v31  ;;  %v2990_v53 = vand.u32 4, %v18841_v5  ;;  %v18843_v31 = vld [vmem:[#allocation84_spill] sm:$0xff]  ;;  %v18848_v5 = vld [vmem:[#allocation42_spill] sm:$0xff] }
 0x3d6   : > { %2906 = vrot.lane.b32.xlu0 %v15722_v1, %s13091_s7  ;;  %2938 = vrot.lane.b32.xlu1 %v15725_v36, %s13091_s7  ;;  %v18821_v1 = vld [vmem:[#allocation165_spill] sm:$0xff]  ;;  %vm3022_vm4 = vcmp.gt.s32.totalorder %v2958_v39, 0  ;;  %vm3054_vm6 = vcmp.gt.s32.totalorder %v2990_v53, 0  ;;  %v18847_v39 = vld [vmem:[#allocation90_spill] sm:$0xff]  ;;  %v18853_v53 = vld [vmem:[#allocation87_spill] sm:$0xff] }
 0x3d7   : > { %v15743_v54 = vsel %vm3005_vm11, %v2815_v24, %v18821_v1  ;;  %v15755_v24 = vsel %vm3021_vm13, %v2847_v28, %v18826_v57  ;;  %v18828_v1 = vld [vmem:[#allocation169_spill] sm:$0xff] }
 0x3d8   : > { %v2817_v43 = vpop.permute.xlu0 %2816  ;;  %v2909_v55 = vpop.permute.xlu1 %2908  ;;  %18822 = vst [vmem:[#allocation158_spill] sm:$0xff] %v15743_v54  ;;  %18827 = vst [vmem:[#allocation66_spill] sm:$0xff] %v15755_v24  ;;  %v15758_v34 = vsel %vm3020_vm14, %v2845_v52, %v18828_v1  ;;  %v18834_v57 = vld [vmem:[#allocation41_spill] sm:$0xff]  ;;  %v18837_v1 = vld [vmem:[#allocation86_spill] sm:$0xff] }
 0x3d9   : > { %18829 = vst [vmem:[#allocation38_spill] sm:$0xff] %v15758_v34  ;;  %v15767_v28 = vsel %vm3006_vm15, %v2817_v43, %v18832_v18  ;;  %v15770_v52 = vsel %vm3052_vm1, %v2909_v55, %v18834_v57  ;;  %v2989_v23 = vand.u32 4, %v18837_v1  ;;  %v18839_v18 = vld [vmem:[#allocation43_spill] sm:$0xff]  ;;  %v18842_v57 = vld [vmem:[#allocation88_spill] sm:$0xff] }
 0x3da   : > { %2874 = vrot.lane.b32.xlu0 %v15734_v45, %s13091_s7  ;;  %3260 = vrot.lane.b32.xlu1 %v3196_v51, %s13092_s25  ;;  %18833 = vst [vmem:[#allocation165_spill] sm:$0xff] %v15767_v28  ;;  %18835 = vst [vmem:[#allocation170_spill] sm:$0xff] %v15770_v52  ;;  %v2943_v1 = vand.u32 4, %v18842_v57 }
 0x3db   : > { %vm3053_vm5 = vcmp.gt.s32.totalorder %v2989_v23, 0 }
 0x3dc   : > { %v2881_v27 = vpop.permute.xlu0 %2880  ;;  %v2879_v36 = vpop.permute.xlu1 %2878  ;;  %vm3007_vm7 = vcmp.gt.s32.totalorder %v2943_v1, 0 }
 0x3dd   : > { %v15782_v55 = vsel %vm3037_vm3, %v2879_v36, %v18839_v18  ;;  %v2991_v18 = vand.u32 4, %v18847_v39  ;;  %v2944_v39 = vand.u32 4, %v18853_v53 }
 0x3de   : > { %3262 = vrot.lane.b32.xlu0 %v15743_v54, %s13092_s25  ;;  %3324 = vrot.lane.b32.xlu1 %v15746_v59, %s13092_s25  ;;  %v18838_v54 = vld [vmem:[#allocation40_spill] sm:$0xff]  ;;  %18840 = vst [vmem:[#allocation169_spill] sm:$0xff] %v15782_v55 }
 0x3df   : > { %v15779_v43 = vsel %vm3038_vm2, %v2881_v27, %v18838_v54  ;;  %v18846_v27 = vld [vmem:[#allocation47_spill] sm:$0xff]  ;;  %vm3055_vm9 = vcmp.gt.s32.totalorder %v2991_v18, 0  ;;  %vm3008_vm11 = vcmp.gt.s32.totalorder %v2944_v39, 0 }
 0x3e0   : > { %v2849_v20 = vpop.permute.xlu0 %2848  ;;  %v2911_v51 = vpop.permute.xlu1 %2910  ;;  %v2975_v23 = vand.u32 4, %v18846_v27  ;;  %v18863_v39 = vld [vmem:[#allocation99_spill] sm:$0xff] }
 0x3e1   : > { %v15791_v54 = vsel %vm3022_vm4, %v2849_v20, %v18843_v31  ;;  %v15794_v36 = vsel %vm3053_vm5, %v2911_v51, %v15341_v62  ;;  %v18850_v31 = vld [vmem:[#allocation48_spill] sm:$0xff]  ;;  %v18852_v51 = vld [vmem:[#allocation85_spill] sm:$0xff] }
 0x3e2   : > { %3294 = vrot.lane.b32.xlu0 %v15755_v24, %s13092_s25  ;;  %3292 = vrot.lane.b32.xlu1 %v15758_v34, %s13092_s25  ;;  %18844 = vst [vmem:[#allocation55_spill] sm:$0xff] %v15791_v54  ;;  %18845 = vst [vmem:[#allocation46_spill] sm:$0xff] %v15794_v36  ;;  %vm3039_vm8 = vcmp.gt.s32.totalorder %v2975_v23, 0  ;;  %v2959_v1 = vand.u32 4, %v18852_v51  ;;  %v18857_v23 = vld [vmem:[#allocation89_spill] sm:$0xff] }
 0x3e3   : > { %v2992_v18 = vand.u32 4, %v18857_v23 }
 0x3e4   : > { %v2913_v17 = vpop.permute.xlu0 %2912  ;;  %v2819_v59 = vpop.permute.xlu1 %2818  ;;  %vm3023_vm10 = vcmp.gt.s32.totalorder %v2959_v1, 0  ;;  %v2945_v1 = vand.u32 4, %v18863_v39 }
 0x3e5   : > { %v15803_v20 = vsel %vm3054_vm6, %v2913_v17, %v18848_v5  ;;  %v15806_v62 = vsel %vm3007_vm7, %v2819_v59, %v18850_v31  ;;  %v18855_v5 = vld [vmem:[#allocation51_spill] sm:$0xff]  ;;  %v18858_v31 = vld [vmem:[#allocation92_spill] sm:$0xff]  ;;  %vm3056_vm12 = vcmp.gt.s32.totalorder %v2992_v18, 0 }
 0x3e6   : > { %3264 = vrot.lane.b32.xlu0 %v15767_v28, %s13092_s25  ;;  %3356 = vrot.lane.b32.xlu1 %v15770_v52, %s13092_s25  ;;  %18849 = vst [vmem:[#allocation41_spill] sm:$0xff] %v15803_v20  ;;  %18851 = vst [vmem:[#allocation40_spill] sm:$0xff] %v15806_v62  ;;  %v2976_v53 = vand.u32 4, %v18858_v31  ;;  %vm3009_vm14 = vcmp.gt.s32.totalorder %v2945_v1, 0 }
 0x3e8   : > { %v2883_v24 = vpop.permute.xlu0 %2882  ;;  %v2915_v34 = vpop.permute.xlu1 %2914  ;;  %vm3040_vm13 = vcmp.gt.s32.totalorder %v2976_v53, 0  ;;  %v18868_v53 = vld [vmem:[#allocation50_spill] sm:$0xff] }
 0x3e9   : > { %v15818_v59 = vsel %vm3055_vm9, %v2915_v34, %v18855_v5  ;;  %v18864_v5 = vld [vmem:[#allocation96_spill] sm:$0xff]  ;;  %v2946_v18 = vand.u32 4, %v18868_v53 }
 0x3ea   : > { %3328 = vrot.lane.b32.xlu0 %v15779_v43, %s13092_s25  ;;  %3326 = vrot.lane.b32.xlu1 %v15782_v55, %s13092_s25  ;;  %18856 = vst [vmem:[#allocation43_spill] sm:$0xff] %v15818_v59  ;;  %v2960_v31 = vand.u32 4, %v18864_v5  ;;  %v18876_v53 = vld [vmem:[#allocation100_spill] sm:$0xff] }
 0x3eb   : > { %vm3010_vm1 = vcmp.gt.s32.totalorder %v2946_v18, 0  ;;  %v18879_v18 = vld [vmem:[#allocation107_spill] sm:$0xff] }
 0x3ec   : > { %v2851_v28 = vpop.permute.xlu0 %2850  ;;  %v2821_v52 = vpop.permute.xlu1 %2820  ;;  %vm3024_vm15 = vcmp.gt.s32.totalorder %v2960_v31, 0  ;;  %v18874_v31 = vld [vmem:[#allocation95_spill] sm:$0xff] }
 0x3ed   : > { %v2978_v1 = vand.u32 4, %v18874_v31 }
 0x3ee   : > { %3296 = vrot.lane.b32.xlu0 %v15791_v54, %s13092_s25  ;;  %3358 = vrot.lane.b32.xlu1 %v15794_v36, %s13092_s25  ;;  %v18854_v54 = vld [vmem:[#allocation49_spill] sm:$0xff] }
 0x3ef   : > { %v15815_v17 = vsel %vm3039_vm8, %v2883_v24, %v18854_v54  ;;  %v18861_v54 = vld [vmem:[#allocation93_spill] sm:$0xff]  ;;  %vm3042_vm3 = vcmp.gt.s32.totalorder %v2978_v1, 0  ;;  %v18883_v1 = vld [vmem:[#allocation103_spill] sm:$0xff] }
 0x3f0   : > { %v2917_v57 = vpop.permute.xlu0 %2916  ;;  %v2885_v55 = vpop.permute.xlu1 %2884  ;;  %v15830_v34 = vsel %vm3008_vm11, %v2821_v52, %v18861_v54  ;;  %v18869_v54 = vld [vmem:[#allocation102_spill] sm:$0xff] }
 0x3f1   : > { %18862 = vst [vmem:[#allocation42_spill] sm:$0xff] %v15830_v34  ;;  %v2977_v39 = vand.u32 4, %v18869_v54 }
 0x3f2   : > { %3360 = vrot.lane.b32.xlu0 %v15803_v20, %s13092_s25  ;;  %3266 = vrot.lane.b32.xlu1 %v15806_v62, %s13092_s25  ;;  %v18859_v20 = vld [vmem:[#allocation44_spill] sm:$0xff] }
 0x3f3   : > { %v15827_v24 = vsel %vm3023_vm10, %v2851_v28, %v18859_v20  ;;  %v15839_v28 = vsel %vm3056_vm12, %v2917_v57, %v15415_v35  ;;  %v18866_v20 = vld [vmem:[#allocation97_spill] sm:$0xff]  ;;  %v18872_v57 = vld [vmem:[#allocation54_spill] sm:$0xff]  ;;  %vm3041_vm2 = vcmp.gt.s32.totalorder %v2977_v39, 0 }
 0x3f4   : > { %v2823_v36 = vpop.permute.xlu0 %2822  ;;  %v2853_v27 = vpop.permute.xlu1 %2852  ;;  %18860 = vst [vmem:[#allocation84_spill] sm:$0xff] %v15827_v24  ;;  %18865 = vst [vmem:[#allocation48_spill] sm:$0xff] %v15839_v28  ;;  %v15842_v52 = vsel %vm3040_vm13, %v2885_v55, %v18866_v20  ;;  %v18875_v20 = vld [vmem:[#allocation104_spill] sm:$0xff] }
 0x3f5   : > { %18867 = vst [vmem:[#allocation49_spill] sm:$0xff] %v15842_v52  ;;  %v15854_v55 = vsel %vm3024_vm15, %v2853_v27, %v18872_v57  ;;  %v2961_v54 = vand.u32 4, %v18875_v20  ;;  %v2993_v57 = vand.u32 4, %v18879_v18  ;;  %v2947_v18 = vand.u32 4, %v18883_v1 }
 0x3f6   : > { %3330 = vrot.lane.b32.xlu0 %v15815_v17, %s13092_s25  ;;  %3362 = vrot.lane.b32.xlu1 %v15818_v59, %s13092_s25  ;;  %18873 = vst [vmem:[#allocation44_spill] sm:$0xff] %v15854_v55 }
 0x3f7   : > { %vm3025_vm4 = vcmp.gt.s32.totalorder %v2961_v54, 0  ;;  %vm3057_vm6 = vcmp.gt.s32.totalorder %v2993_v57, 0  ;;  %vm3011_vm8 = vcmp.gt.s32.totalorder %v2947_v18, 0 }
 0x3f8   : > { %v2825_v62 = vpop.permute.xlu0 %2824  ;;  %v2887_v51 = vpop.permute.xlu1 %2886 }
 0x3f9   : > { %v15866_v27 = vsel %vm3041_vm2, %v2887_v51, %v15451_v56  ;;  %v18882_v51 = vld [vmem:[#allocation101_spill] sm:$0xff] }
 0x3fa   : > { %3298 = vrot.lane.b32.xlu0 %v15827_v24, %s13092_s25  ;;  %3268 = vrot.lane.b32.xlu1 %v15830_v34, %s13092_s25  ;;  %v18870_v24 = vld [vmem:[#allocation185_spill] sm:$0xff]  ;;  %18877 = vst [vmem:[#allocation93_spill] sm:$0xff] %v15866_v27  ;;  %v2994_v54 = vand.u32 4, %v18882_v51 }
 0x3fb   : > { %v15851_v35 = vsel %vm3009_vm14, %v2823_v36, %v18870_v24  ;;  %v15863_v36 = vsel %vm3010_vm1, %v2825_v62, %v18876_v53  ;;  %v18878_v24 = vld [vmem:[#allocation98_spill] sm:$0xff]  ;;  %v18880_v53 = vld [vmem:[#allocation60_spill] sm:$0xff] }
 0x3fc   : > { %v2889_v59 = vpop.permute.xlu0 %2888  ;;  %v2855_v23 = vpop.permute.xlu1 %2854  ;;  %18871 = vst [vmem:[#allocation51_spill] sm:$0xff] %v15851_v35  ;;  %v2962_v39 = vand.u32 4, %v18878_v24  ;;  %v18884_v24 = vld [vmem:[#allocation61_spill] sm:$0xff]  ;;  %vm3058_vm7 = vcmp.gt.s32.totalorder %v2994_v54, 0  ;;  %v18890_v54 = vld [vmem:[#allocation111_spill] sm:$0xff] }
 0x3fd   : > { %v15875_v62 = vsel %vm3042_vm3, %v2889_v59, %v15465_v16  ;;  %v15878_v56 = vsel %vm3025_vm4, %v2855_v23, %v18880_v53  ;;  %v18885_v59 = vld [vmem:[#allocation190_spill] sm:$0xff]  ;;  %v18888_v53 = vld [vmem:[#allocation109_spill] sm:$0xff] }
 0x3fe   : > { %3364 = vrot.lane.b32.xlu0 %v15839_v28, %s13092_s25  ;;  %3332 = vrot.lane.b32.xlu1 %v15842_v52, %s13092_s25  ;;  %18881 = vst [vmem:[#allocation97_spill] sm:$0xff] %v15878_v56  ;;  %vm3026_vm5 = vcmp.gt.s32.totalorder %v2962_v39, 0  ;;  %v18887_v39 = vld [vmem:[#allocation105_spill] sm:$0xff]  ;;  %v2995_v1 = vand.u32 4, %v18888_v53 }
 0x3ff   : > { %v2979_v57 = vand.u32 4, %v18887_v39 }
 0x400   : > { %v2857_v5 = vpop.permute.xlu0 %2856  ;;  %v2919_v34 = vpop.permute.xlu1 %2918  ;;  %vm3059_vm10 = vcmp.gt.s32.totalorder %v2995_v1, 0  ;;  %v18892_v1 = vld [vmem:[#allocation113_spill] sm:$0xff] }
 0x401   : > { %v15887_v16 = vsel %vm3026_vm5, %v2857_v5, %v18884_v24  ;;  %v15890_v23 = vsel %vm3057_vm6, %v2919_v34, %v18885_v59  ;;  %vm3043_vm9 = vcmp.gt.s32.totalorder %v2979_v57, 0  ;;  %v18889_v24 = vld [vmem:[#allocation108_spill] sm:$0xff]  ;;  %v2948_v59 = vand.u32 4, %v18890_v54 }
 0x402   : > { %3270 = vrot.lane.b32.xlu0 %v15851_v35, %s13092_s25  ;;  %3300 = vrot.lane.b32.xlu1 %v15854_v55, %s13092_s25  ;;  %18886 = vst [vmem:[#allocation185_spill] sm:$0xff] %v15890_v23  ;;  %v2963_v18 = vand.u32 4, %v18889_v24  ;;  %v2980_v57 = vand.u32 4, %v18892_v1 }
 0x403   : > { %vm3012_vm12 = vcmp.gt.s32.totalorder %v2948_v59, 0 }
 0x404   : > { %v2921_v52 = vpop.permute.xlu0 %2920  ;;  %v2827_v28 = vpop.permute.xlu1 %2826  ;;  %vm3027_vm11 = vcmp.gt.s32.totalorder %v2963_v18, 0  ;;  %vm3044_vm14 = vcmp.gt.s32.totalorder %v2980_v57, 0 }
 0x405   : > { %v15899_v5 = vsel %vm3058_vm7, %v2921_v52, %v15501_v32  ;;  %v15902_v34 = vsel %vm3011_vm8, %v2827_v28, %v15505_v14  ;;  %v18891_v28 = vld [vmem:[#allocation110_spill] sm:$0xff] }
 0x406   : > { %3272 = vrot.lane.b32.xlu0 %v15863_v36, %s13092_s25  ;;  %3334 = vrot.lane.b32.xlu1 %v15866_v27, %s13092_s25  ;;  %v2996_v52 = vand.u32 4, %v18891_v28 }
 0x408   : > { %v2891_v20 = vpop.permute.xlu0 %2890  ;;  %v2923_v35 = vpop.permute.xlu1 %2922  ;;  %vm3060_vm13 = vcmp.gt.s32.totalorder %v2996_v52, 0  ;;  %v18896_v52 = vld [vmem:[#allocation120_spill] sm:$0xff] }
 0x409   : > { %v15911_v32 = vsel %vm3043_vm9, %v2891_v20, %v15518_v30  ;;  %v15914_v14 = vsel %vm3059_vm10, %v2923_v35, %v15521_v38  ;;  %v2949_v35 = vand.u32 4, %v14873_v0  ;;  %v18893_v20 = vld [vmem:[#allocation114_spill] sm:$0xff]  ;;  %v2981_v57 = vand.u32 4, %v18896_v52 }
 0x40a   : > { %3336 = vrot.lane.b32.xlu0 %v15875_v62, %s13092_s25  ;;  %3302 = vrot.lane.b32.xlu1 %v15878_v56, %s13092_s25  ;;  %v2964_v18 = vand.u32 4, %v18893_v20 }
 0x40b   : > { %vm3013_vm15 = vcmp.gt.s32.totalorder %v2949_v35, 0  ;;  %vm3045_vm3 = vcmp.gt.s32.totalorder %v2981_v57, 0  ;;  %v18900_v35 = vld [vmem:[#allocation123_spill] sm:$0xff]  ;;  %v18904_v57 = vld [vmem:[#allocation126_spill] sm:$0xff] }
 0x40c   : > { %v2859_v27 = vpop.permute.xlu0 %2858  ;;  %v2829_v55 = vpop.permute.xlu1 %2828  ;;  %vm3028_vm1 = vcmp.gt.s32.totalorder %v2964_v18, 0  ;;  %v2965_v18 = vand.u32 4, %v18900_v35  ;;  %v2997_v35 = vand.u32 4, %v18904_v57 }
 0x40d   : > { %v15923_v30 = vsel %vm3027_vm11, %v2859_v27, %v15534_v11  ;;  %v15926_v38 = vsel %vm3012_vm12, %v2829_v55, %v15537_v50  ;;  %v18895_v55 = vld [vmem:[#allocation112_spill] sm:$0xff] }
 0x40e   : > { %3304 = vrot.lane.b32.xlu0 %v15887_v16, %s13092_s25  ;;  %3366 = vrot.lane.b32.xlu1 %v15890_v23, %s13092_s25  ;;  %v2950_v27 = vand.u32 4, %v18895_v55  ;;  %vm3029_vm5 = vcmp.gt.s32.totalorder %v2965_v18, 0  ;;  %vm3061_vm7 = vcmp.gt.s32.totalorder %v2997_v35, 0 }
 0x410   : > { %v2925_v56 = vpop.permute.xlu0 %2924  ;;  %v2893_v51 = vpop.permute.xlu1 %2892  ;;  %vm3014_vm2 = vcmp.gt.s32.totalorder %v2950_v27, 0 }
 0x411   : > { %v15935_v11 = vsel %vm3060_vm13, %v2925_v56, %v15548_v63  ;;  %v15938_v50 = vsel %vm3044_vm14, %v2893_v51, %v15551_v13  ;;  %v18899_v56 = vld [vmem:[#allocation65_spill] sm:$0xff] }
 0x412   : > { %3368 = vrot.lane.b32.xlu0 %v15899_v5, %s13092_s25  ;;  %3274 = vrot.lane.b32.xlu1 %v15902_v34, %s13092_s25  ;;  %18894 = vst [vmem:[#allocation54_spill] sm:$0xff] %v15938_v50  ;;  %v2982_v51 = vand.u32 4, %v18899_v56 }
 0x414   : > { %v2831_v23 = vpop.permute.xlu0 %2830  ;;  %v2861_v53 = vpop.permute.xlu1 %2860  ;;  %vm3046_vm4 = vcmp.gt.s32.totalorder %v2982_v51, 0  ;;  %v18906_v51 = vld [vmem:[#allocation125_spill] sm:$0xff] }
 0x415   : > { %v15947_v63 = vsel %vm3013_vm15, %v2831_v23, %v15565_v37  ;;  %v15950_v13 = vsel %vm3028_vm1, %v2861_v53, %v15562_v12  ;;  %v18901_v23 = vld [vmem:[#allocation115_spill] sm:$0xff]  ;;  %v18903_v53 = vld [vmem:[#allocation116_spill] sm:$0xff]  ;;  %v2983_v18 = vand.u32 4, %v18906_v51 }
 0x416   : > { %3338 = vrot.lane.b32.xlu0 %v15911_v32, %s13092_s25  ;;  %3370 = vrot.lane.b32.xlu1 %v15914_v14, %s13092_s25  ;;  %18897 = vst [vmem:[#allocation95_spill] sm:$0xff] %v15947_v63  ;;  %18898 = vst [vmem:[#allocation100_spill] sm:$0xff] %v15950_v13  ;;  %v2966_v27 = vand.u32 4, %v18903_v53 }
 0x417   : > { %vm3047_vm9 = vcmp.gt.s32.totalorder %v2983_v18, 0  ;;  %v18913_v18 = vld [vmem:[#allocation132_spill] sm:$0xff] }
 0x418   : > { %v2833_v54 = vpop.permute.xlu0 %2832  ;;  %v2895_v24 = vpop.permute.xlu1 %2894  ;;  %vm3030_vm6 = vcmp.gt.s32.totalorder %v2966_v27, 0  ;;  %v2967_v27 = vand.u32 4, %v18793_v58 }
 0x419   : > { %v15959_v37 = vsel %vm3014_vm2, %v2833_v54, %v15575_v7  ;;  %v15962_v12 = vsel %vm3045_vm3, %v2895_v24, %v18901_v23  ;;  %v2998_v54 = vand.u32 4, %v18784_v42  ;;  %v18911_v42 = vld [vmem:[#allocation124_spill] sm:$0xff] }
 0x41a   : > { %3306 = vrot.lane.b32.xlu0 %v15923_v30, %s13092_s25  ;;  %3276 = vrot.lane.b32.xlu1 %v15926_v38, %s13092_s25  ;;  %18902 = vst [vmem:[#allocation60_spill] sm:$0xff] %v15962_v12  ;;  %vm3031_vm11 = vcmp.gt.s32.totalorder %v2967_v27, 0 }
 0x41b   : > { %vm3062_vm8 = vcmp.gt.s32.totalorder %v2998_v54, 0 }
 0x41c   : > { %v2897_v59 = vpop.permute.xlu0 %2896  ;;  %v2863_v1 = vpop.permute.xlu1 %2862 }
 0x41d   : > { %v15971_v7 = vsel %vm3046_vm4, %v2897_v59, %v15588_v40  ;;  %v15974_v24 = vsel %vm3029_vm5, %v2863_v1, %v15591_v22  ;;  %v18908_v59 = vld [vmem:[#allocation122_spill] sm:$0xff]  ;;  %v18910_v1 = vld [vmem:[#allocation121_spill] sm:$0xff] }
 0x41e   : > { %3372 = vrot.lane.b32.xlu0 %v15935_v11, %s13092_s25  ;;  %3340 = vrot.lane.b32.xlu1 %v15938_v50, %s13092_s25  ;;  %18905 = vst [vmem:[#allocation61_spill] sm:$0xff] %v15974_v24  ;;  %v2951_v35 = vand.u32 4, %v18910_v1  ;;  %v18914_v1 = vld [vmem:[#allocation127_spill] sm:$0xff] }
 0x420   : > { %v2865_v0 = vpop.permute.xlu0 %2864  ;;  %v2927_v20 = vpop.permute.xlu1 %2926  ;;  %vm3015_vm10 = vcmp.gt.s32.totalorder %v2951_v35, 0 }
 0x421   : > { %v15986_v22 = vsel %vm3061_vm7, %v2927_v20, %v18908_v59  ;;  %v2952_v59 = vand.u32 4, %v18913_v18  ;;  %v18970_v18 = vld [vmem:[#allocation55_spill] sm:$0xff] }
 0x422   : > { %3278 = vrot.lane.b32.xlu0 %v15947_v63, %s13092_s25  ;;  %3308 = vrot.lane.b32.xlu1 %v15950_v13, %s13092_s25  ;;  %18909 = vst [vmem:[#allocation190_spill] sm:$0xff] %v15986_v22 }
 0x423   : > { %vm3016_vm13 = vcmp.gt.s32.totalorder %v2952_v59, 0 }
 0x424   : > { %v2929_v52 = vpop.permute.xlu0 %2928  ;;  %v2835_v50 = vpop.permute.xlu1 %2834 }
 0x426   : > { %3280 = vrot.lane.b32.xlu0 %v15959_v37, %s13092_s25  ;;  %3342 = vrot.lane.b32.xlu1 %v15962_v12, %s13092_s25  ;;  %v18907_v12 = vld [vmem:[#allocation118_spill] sm:$0xff] }
 0x427   : > { %v15983_v40 = vsel %vm3030_vm6, %v2865_v0, %v18907_v12  ;;  %v15995_v0 = vsel %vm3062_vm8, %v2929_v52, %v18911_v42  ;;  %v18912_v12 = vld [vmem:[#allocation129_spill] sm:$0xff]  ;;  %v16007_v42 = vsel %vm3015_vm10, %v2835_v50, %v18914_v1  ;;  %v2984_v52 = vand.u32 4, %v18797_v21  ;;  %v18951_v21 = vld [vmem:[#allocation70_spill] sm:$0xff] }
 0x428   : > { %v2899_v63 = vpop.permute.xlu0 %2898  ;;  %v2931_v13 = vpop.permute.xlu1 %2930  ;;  %v2999_v54 = vand.u32 4, %v18912_v12  ;;  %v3001_v1 = vand.u32 4, %v15163_v44 }
 0x429   : > { %v15998_v20 = vsel %vm3047_vm9, %v2899_v63, %v15626_v9  ;;  %v2953_v63 = vand.u32 4, %v15076_v10  ;;  %vm3048_vm14 = vcmp.gt.s32.totalorder %v2984_v52, 0  ;;  %v2954_v52 = vand.u32 4, %v18800_v60 }
 0x42a   : > { %3344 = vrot.lane.b32.xlu0 %v15971_v7, %s13092_s25  ;;  %3310 = vrot.lane.b32.xlu1 %v15974_v24, %s13092_s25  ;;  %vm3063_vm12 = vcmp.gt.s32.totalorder %v2999_v54, 0  ;;  %vm3065_vm2 = vcmp.gt.s32.totalorder %v3001_v1, 0 }
 0x42b   : > { %v16019_v50 = vsel %vm3063_vm12, %v2931_v13, %v15629_v15  ;;  %vm3017_vm15 = vcmp.gt.s32.totalorder %v2953_v63, 0  ;;  %v18919_v13 = vld [vmem:[#allocation131_spill] sm:$0xff]  ;;  %vm3018_vm4 = vcmp.gt.s32.totalorder %v2954_v52, 0 }
 0x42c   : > { %v2867_v23 = vpop.permute.xlu0 %2866  ;;  %v2837_v57 = vpop.permute.xlu1 %2836  ;;  %18915 = vst [vmem:[#allocation105_spill] sm:$0xff] %v16019_v50 }
 0x42d   : > { %v16010_v9 = vsel %vm3031_vm11, %v2867_v23, %v15638_v41  ;;  %v16022_v41 = vsel %vm3016_vm13, %v2837_v57, %v15641_v8  ;;  %v2968_v23 = vand.u32 4, %v15061_v47  ;;  %v3000_v57 = vand.u32 4, %v18919_v13  ;;  %v18947_v47 = vld [vmem:[#allocation19_spill] sm:$0xff] }
 0x42e   : > { %3312 = vrot.lane.b32.xlu0 %v15983_v40, %s13092_s25  ;;  %3374 = vrot.lane.b32.xlu1 %v15986_v22, %s13092_s25  ;;  %18916 = vst [vmem:[#allocation110_spill] sm:$0xff] %v16022_v41 }
 0x42f   : > { %vm3032_vm1 = vcmp.gt.s32.totalorder %v2968_v23, 0  ;;  %vm3064_vm3 = vcmp.gt.s32.totalorder %v3000_v57, 0  ;;  %v2970_v57 = vand.u32 4, %v18802_v61  ;;  %v18950_v61 = vld [vmem:[#allocation79_spill] sm:$0xff] }
 0x430   : > { %v2933_v24 = vpop.permute.xlu0 %2932  ;;  %v2901_v51 = vpop.permute.xlu1 %2900 }
 0x431   : > { %v16031_v15 = vsel %vm3048_vm14, %v2901_v51, %v15653_v3  ;;  %v2985_v51 = vand.u32 4, %v15106_v48  ;;  %vm3034_vm8 = vcmp.gt.s32.totalorder %v2970_v57, 0  ;;  %v18933_v57 = vld [vmem:[#allocation153_spill] sm:$0xff] }
 0x432   : > { %3346 = vrot.lane.b32.xlu0 %v15998_v20, %s13092_s25  ;;  %3376 = vrot.lane.b32.xlu1 %v15995_v0, %s13092_s25  ;;  %18917 = vst [vmem:[#allocation112_spill] sm:$0xff] %v16031_v15 }
 0x433   : > { %vm3049_vm5 = vcmp.gt.s32.totalorder %v2985_v51, 0 }
 0x434   : > { %v2839_v22 = vpop.permute.xlu0 %2838  ;;  %v2869_v58 = vpop.permute.xlu1 %2868 }
 0x435   : > { %v16034_v8 = vsel %vm3017_vm15, %v2839_v22, %v15665_v33  ;;  %v16043_v3 = vsel %vm3032_vm1, %v2869_v58, %v15662_v19  ;;  %v2986_v22 = vand.u32 4, %v15045_v6  ;;  %v16055_v58 = vsel %vm3064_vm3, %v2933_v24, %v15650_v2  ;;  %v18924_v19 = vld [vmem:[#allocation149_spill] sm:$0xff] }
 0x436   : > { %3314 = vrot.lane.b32.xlu0 %v16010_v9, %s13092_s25  ;;  %3282 = vrot.lane.b32.xlu1 %v16007_v42, %s13092_s25  ;;  %18918 = vst [vmem:[#allocation65_spill] sm:$0xff] %v16034_v8  ;;  %18920 = vst [vmem:[#allocation115_spill] sm:$0xff] %v16043_v3  ;;  %v3002_v24 = vand.u32 4, %v18805_v25  ;;  %v18946_v25 = vld [vmem:[#allocation158_spill] sm:$0xff] }
 0x437   : > { %18922 = vst [vmem:[#allocation118_spill] sm:$0xff] %v16055_v58  ;;  %vm3050_vm6 = vcmp.gt.s32.totalorder %v2986_v22, 0 }
 0x438   : > { %v2841_v35 = vpop.permute.xlu0 %2840  ;;  %v2903_v27 = vpop.permute.xlu1 %2902  ;;  %vm3066_vm9 = vcmp.gt.s32.totalorder %v3002_v24, 0  ;;  %v18938_v24 = vld [vmem:[#allocation156_spill] sm:$0xff] }
 0x43a   : > { %3378 = vrot.lane.b32.xlu0 %v16019_v50, %s13092_s25  ;;  %3284 = vrot.lane.b32.xlu1 %v16022_v41, %s13092_s25  ;;  %v3404_v41 = vand.u32 8, %v18947_v47  ;;  %v18953_v50 = vld [vmem:[#allocation68_spill] sm:$0xff]  ;;  %v18973_v47 = vld [vmem:[#allocation47_spill] sm:$0xff] }
 0x43c   : > { %v2905_v54 = vpop.permute.xlu0 %2904  ;;  %v2871_v59 = vpop.permute.xlu1 %2870  ;;  %vm16161_vm3 = vcmp.gt.s32.totalorder %v3404_v41, 0 }
 0x43e   : > { %3286 = vrot.lane.b32.xlu0 %v16034_v8, %s13092_s25  ;;  %3348 = vrot.lane.b32.xlu1 %v16031_v15, %s13092_s25  ;;  %v18925_v8 = vld [vmem:[#allocation130_spill] sm:$0xff] }
 0x43f   : > { %v16067_v2 = vsel %vm3049_vm5, %v2903_v27, %v18925_v8  ;;  %v18930_v8 = vld [vmem:[#allocation136_spill] sm:$0xff] }
 0x440   : > { %v2873_v63 = vpop.permute.xlu0 %2872  ;;  %v2935_v44 = vpop.permute.xlu1 %2934  ;;  %18926 = vst [vmem:[#allocation124_spill] sm:$0xff] %v16067_v2 }
 0x441   : > { %v16046_v33 = vsel %vm3065_vm2, %v2935_v44, %v15701_v46  ;;  %v16058_v44 = vsel %vm3018_vm4, %v2841_v35, %v15674_v49  ;;  %v2969_v46 = vand.u32 4, %v18924_v19  ;;  %v16070_v49 = vsel %vm3050_vm6, %v2905_v54, %v15686_v26  ;;  %v18928_v19 = vld [vmem:[#allocation133_spill] sm:$0xff]  ;;  %v18932_v54 = vld [vmem:[#allocation146_spill] sm:$0xff] }
 0x442   : > { %18921 = vst [vmem:[#allocation116_spill] sm:$0xff] %v16046_v33  ;;  %3316 = vrot.lane.b32.xlu1 %v16043_v3, %s13092_s25  ;;  %3382 = vrot.lane.b32.xlu0 %v16046_v33, %s13092_s25  ;;  %18923 = vst [vmem:[#allocation122_spill] sm:$0xff] %v16058_v44  ;;  %v2987_v35 = vand.u32 4, %v15145_v4  ;;  %v16082_v26 = vsel %vm3034_vm8, %v2873_v63, %v18930_v8  ;;  %v2971_v4 = vand.u32 4, %v18933_v57  ;;  %v18934_v3 = vld [vmem:[#allocation139_spill] sm:$0xff]  ;;  %v3003_v8 = vand.u32 4, %v18938_v24 }
 0x443   : > { %18927 = vst [vmem:[#allocation129_spill] sm:$0xff] %v16070_v49  ;;  %vm3033_vm7 = vcmp.gt.s32.totalorder %v2969_v46, 0  ;;  %18931 = vst [vmem:[#allocation131_spill] sm:$0xff] %v16082_v26  ;;  %v2955_v46 = vand.u32 4, %v18932_v54  ;;  %v18939_v57 = vld [vmem:[#allocation134_spill] sm:$0xff]  ;;  %vm6749_vm2 = vcmask 130048  }
 0x444   : > { %v2937_v23 = vpop.permute.xlu0 %2936  ;;  %v2843_v1 = vpop.permute.xlu1 %2842  ;;  %v16079_v27 = vsel %vm3033_vm7, %v2871_v59, %v18928_v19  ;;  %vm3051_vm10 = vcmp.gt.s32.totalorder %v2987_v35, 0  ;;  %v18936_v19 = vld [vmem:[#allocation147_spill] sm:$0xff]  ;;  %vm3035_vm12 = vcmp.gt.s32.totalorder %v2971_v4, 0  ;;  %vm3067_vm13 = vcmp.gt.s32.totalorder %v3003_v8, 0 }
 0x445   : > { %18929 = vst [vmem:[#allocation127_spill] sm:$0xff] %v16079_v27  ;;  %v16091_v59 = vsel %vm3066_vm9, %v2937_v23, %v18934_v3  ;;  %vm3019_vm11 = vcmp.gt.s32.totalorder %v2955_v46, 0 }
 0x446   : > { %3380 = vrot.lane.b32.xlu1 %v16055_v58, %s13092_s25  ;;  %3288 = vrot.lane.b32.xlu0 %v16058_v44, %s13092_s25  ;;  %18935 = vst [vmem:[#allocation130_spill] sm:$0xff] %v16091_v59  ;;  %v16104_v54 = vsel %vm3019_vm11, %v2843_v1, %v18939_v57  ;;  %v3406_v44 = vand.u32 8, %v18950_v61 }
 0x447   : > { %18940 = vst [vmem:[#allocation136_spill] sm:$0xff] %v16104_v54 }
 0x448   : > { %v2907_v52 = vpop.permute.xlu0 %2906  ;;  %v2939_v33 = vpop.permute.xlu1 %2938  ;;  %vm16169_vm4 = vcmp.gt.s32.totalorder %v3406_v44, 0  ;;  %v18965_v44 = vld [vmem:[#allocation173_spill] sm:$0xff] }
 0x449   : > { %v16094_v63 = vsel %vm3051_vm10, %v2907_v52, %v18936_v19  ;;  %v18942_v52 = vld [vmem:[#allocation52_spill] sm:$0xff] }
 0x44a   : > { %3350 = vrot.lane.b32.xlu1 %v16067_v2, %s13092_s25  ;;  %3352 = vrot.lane.b32.xlu0 %v16070_v49, %s13092_s25  ;;  %18937 = vst [vmem:[#allocation133_spill] sm:$0xff] %v16094_v63  ;;  %v16118_v46 = vsel %vm3067_vm13, %v2939_v33, %v18942_v52 }
 0x44b   : > { %18943 = vst [vmem:[#allocation147_spill] sm:$0xff] %v16118_v46 }
 0x44c   : > { %v2875_v51 = vpop.permute.xlu0 %2874  ;;  %v3261_v22 = vpop.permute.xlu1 %3260 }
 0x44d   : > { %v16107_v3 = vsel %vm3035_vm12, %v2875_v51, %v15734_v45 }
 0x44e   : > { %3318 = vrot.lane.b32.xlu1 %v16079_v27, %s13092_s25  ;;  %3320 = vrot.lane.b32.xlu0 %v16082_v26, %s13092_s25  ;;  %18941 = vst [vmem:[#allocation139_spill] sm:$0xff] %v16107_v3  ;;  %v3422_v26 = vand.u32 8, %v18830_v29 }
 0x450   : > { %v3263_v2 = vpop.permute.xlu0 %3262  ;;  %v3325_v48 = vpop.permute.xlu1 %3324  ;;  %vm16145_vm1 = vcmp.gt.s32.totalorder %v3422_v26, 0  ;;  %v18958_v26 = vld [vmem:[#allocation78_spill] sm:$0xff] }
 0x452   : > { %3384 = vrot.lane.b32.xlu1 %v16091_v59, %s13092_s25  ;;  %3354 = vrot.lane.b32.xlu0 %v16094_v63, %s13092_s25  ;;  %v18944_v63 = vld [vmem:[#allocation80_spill] sm:$0xff] }
 0x454   : > { %v16101_v35 = vpop.permute.xlu0 %3294  ;;  %v3293_v27 = vpop.permute.xlu1 %3292 }
 0x456   : > { %3322 = vrot.lane.b32.xlu0 %v16107_v3, %s13092_s25  ;;  %3290 = vrot.lane.b32.xlu1 %v16104_v54, %s13092_s25  ;;  %v3389_v54 = vand.u32 8, %v18944_v63 }
 0x458   : > { %v16113_v4 = vpop.permute.xlu0 %3264  ;;  %v16115_v23 = vpop.permute.xlu1 %3356  ;;  %vm3453_vm14 = vcmp.gt.s32.totalorder %v3389_v54, 0 }
 0x459   : > { %v3645_v49 = vsel %vm3453_vm14, %v3263_v2, %v18946_v25  ;;  %v18955_v25 = vld [vmem:[#allocation67_spill] sm:$0xff] }
 0x45a   : > { %3386 = vrot.lane.b32.xlu0 %v16118_v46, %s13092_s25  ;;  %v18945_v46 = vld [vmem:[#allocation35_spill] sm:$0xff]  ;;  %v16158_v6 = vadd.f32 %v18953_v50, %v3645_v49  ;;  %v18962_v49 = vld [vmem:[#allocation161_spill] sm:$0xff] }
 0x45b   : > { %v3420_v59 = vand.u32 8, %v18945_v46  ;;  %v16151_v46 = vadd.f32 %v18951_v21, %v3261_v22  ;;  %v18961_v22 = vld [vmem:[#allocation81_spill] sm:$0xff] }
 0x45c   : > { %v3329_v1 = vpop.permute.xlu0 %3328  ;;  %v16122_v45 = vpop.permute.xlu1 %3326  ;;  %18954 = vst [vmem:[#allocation52_spill] sm:$0xff] %v16158_v6  ;;  %v3438_v50 = vand.u32 8, %v18961_v22  ;;  %v6753_v63 = vsel %vm6749_vm2, %v16158_v6, -inf  ;;  %v18969_v22 = vld [vmem:[#allocation82_spill] sm:$0xff] }
 0x45d   : > { %vm3484_vm15 = vcmp.gt.s32.totalorder %v3420_v59, 0  ;;  %18952 = vst [vmem:[#allocation134_spill] sm:$0xff] %v16151_v46  ;;  %v3436_v59 = vand.u32 8, %v18958_v26  ;;  %v3678_v21 = vsel %vm16145_vm1, %v3329_v1, %v15779_v43  ;;  %v18964_v26 = vld [vmem:[#allocation38_spill] sm:$0xff] }
 0x45e   : > { %v3676_v2 = vsel %vm3484_vm15, %v3325_v48, %v18955_v25  ;;  %v6750_v25 = vsel %vm6749_vm2, %v16151_v46, -inf  ;;  %v3660_v43 = vsel %vm16161_vm3, %v3293_v27, %v18964_v26  ;;  %v16187_v1 = vadd.f32 %v18965_v44, %v3678_v21  ;;  %v18975_v6 = vld [vmem:[#allocation170_spill] sm:$0xff]  ;;  %v18988_v27 = vld [vmem:[#allocation57_spill] sm:$0xff] }
 0x45f   : > { %v16175_v58 = vadd.f32 %v18962_v49, %v3676_v2  ;;  %vm16191_vm5 = vcmp.gt.s32.totalorder %v3436_v59, 0  ;;  %v3421_v49 = vand.u32 8, %v18969_v22  ;;  %vm16199_vm6 = vcmp.gt.s32.totalorder %v3438_v50, 0  ;;  %v18985_v2 = vld [vmem:[#allocation178_spill] sm:$0xff] }
 0x460   : > { %v3297_v51 = vpop.permute.xlu0 %3296  ;;  %v16124_v57 = vpop.permute.xlu1 %3358  ;;  %18966 = vst [vmem:[#allocation35_spill] sm:$0xff] %v16187_v1  ;;  %v3423_v21 = vand.u32 8, %v18973_v47  ;;  %v6852_v50 = vsel %vm6749_vm2, %v16187_v1, -inf  ;;  %v18987_v1 = vld [vmem:[#allocation169_spill] sm:$0xff]  ;;  %v18996_v47 = vld [vmem:[#allocation160_spill] sm:$0xff] }
 0x461   : > { %18963 = vst [vmem:[#allocation80_spill] sm:$0xff] %v16175_v58  ;;  %v3662_v46 = vsel %vm16169_vm4, %v3297_v51, %v18970_v18  ;;  %v6846_v22 = vsel %vm6749_vm2, %v16175_v58, -inf  ;;  %v3692_v18 = vsel %vm16191_vm5, %v16115_v23, %v18975_v6  ;;  %v18976_v51 = vld [vmem:[#allocation62_spill] sm:$0xff]  ;;  %vm16223_vm7 = vcmp.gt.s32.totalorder %v3421_v49, 0  ;;  %v18984_v23 = vld [vmem:[#allocation85_spill] sm:$0xff] }
 0x462   : > { %v16218_v61 = vadd.f32 %v18976_v51, %v3662_v46  ;;  %vm16230_vm8 = vcmp.gt.s32.totalorder %v3423_v21, 0  ;;  %v3407_v46 = vand.u32 8, %v18984_v23 }
 0x464   : > { %v3361_v19 = vpop.permute.xlu0 %3360  ;;  %v16126_v8 = vpop.permute.xlu1 %3266  ;;  %18977 = vst [vmem:[#allocation158_spill] sm:$0xff] %v16218_v61  ;;  %vm16262_vm10 = vcmp.gt.s32.totalorder %v3407_v46, 0 }
 0x468   : > { %v16128_v24 = vpop.permute.xlu0 %3330  ;;  %v16130_v3 = vpop.permute.xlu1 %3362 }
 0x46c   : > { %v16133_v33 = vpop.permute.xlu0 %3298  ;;  %v16135_v52 = vpop.permute.xlu1 %3268 }
 0x470   : > { %v16139_v10 = vpop.permute.xlu0 %3364  ;;  %v16141_v15 = vpop.permute.xlu1 %3332 }
 0x474   : > { %v16153_v54 = vpop.permute.xlu0 %3270  ;;  %v16155_v29 = vpop.permute.xlu1 %3300 }
 0x478   : > { %v16177_v48 = vpop.permute.xlu0 %3272  ;;  %v16179_v41 = vpop.permute.xlu1 %3334 }
 0x479   : > { %6751 = vmax.xlane.f32.xlu0 %v6750_v25  ;;  %v18974_v25 = vld [vmem:[#allocation94_spill] sm:$0xff] }
 0x47a   : > { %6754 = vmax.xlane.f32.xlu1 %v6753_v63  ;;  %v16205_v26 = vadd.f32 %v18974_v25, %v3660_v43  ;;  %v18978_v43 = vld [vmem:[#allocation83_spill] sm:$0xff]  ;;  %v18981_v25 = vld [vmem:[#allocation41_spill] sm:$0xff] }
 0x47b   : > { %v3405_v63 = vand.u32 8, %v18978_v43  ;;  %v3694_v58 = vsel %vm16199_vm6, %v3361_v19, %v18981_v25  ;;  %v3677_v19 = vsel %vm16223_vm7, %v16122_v45, %v18987_v1  ;;  %v18992_v25 = vld [vmem:[#allocation86_spill] sm:$0xff] }
 0x47c   : > { %v16207_v59 = vpop.permute.xlu0 %3336  ;;  %v16209_v44 = vpop.permute.xlu1 %3302  ;;  %v6798_v43 = vsel %vm6749_vm2, %v16205_v26, -inf  ;;  %v16249_v21 = vadd.f32 %v18988_v27, %v3694_v58  ;;  %v3437_v23 = vand.u32 8, %v18992_v25  ;;  %v18995_v58 = vld [vmem:[#allocation87_spill] sm:$0xff]  ;;  %v19011_v45 = vld [vmem:[#allocation106_spill] sm:$0xff] }
 0x47d   : > { %6847 = vmax.xlane.f32.xlu0 %v6846_v22  ;;  %v16236_v22 = vadd.f32 %v18985_v2, %v3692_v18  ;;  %v6804_v18 = vsel %vm6749_vm2, %v16218_v61, -inf  ;;  %vm16253_vm9 = vcmp.gt.s32.totalorder %v3405_v63, 0  ;;  %v3679_v2 = vsel %vm16230_vm8, %v16128_v24, %v15815_v17  ;;  %v18998_v61 = vld [vmem:[#allocation66_spill] sm:$0xff]  ;;  %v18999_v24 = vld [vmem:[#allocation172_spill] sm:$0xff] }
 0x47e   : > { %6853 = vmax.xlane.f32.xlu1 %v6852_v50  ;;  %18989 = vst [vmem:[#allocation79_spill] sm:$0xff] %v16249_v21  ;;  %v3392_v1 = vand.u32 8, %v18995_v58  ;;  %v3661_v17 = vsel %vm16253_vm9, %v16101_v35, %v18998_v61  ;;  %v16281_v6 = vadd.f32 %v18999_v24, %v3679_v2  ;;  %v6900_v46 = vsel %vm6749_vm2, %v16249_v21, -inf  ;;  %v19007_v61 = vld [vmem:[#allocation89_spill] sm:$0xff]  ;;  %v19008_v2 = vld [vmem:[#allocation91_spill] sm:$0xff]  ;;  %v19010_v21 = vld [vmem:[#allocation46_spill] sm:$0xff] }
 0x47f   : > { %18986 = vst [vmem:[#allocation19_spill] sm:$0xff] %v16236_v22  ;;  %v6894_v25 = vsel %vm6749_vm2, %v16236_v22, -inf  ;;  %vm16286_vm11 = vcmp.gt.s32.totalorder %v3437_v23, 0  ;;  %v3440_v50 = vand.u32 8, %v19007_v61  ;;  %v19019_v58 = vld [vmem:[#allocation177_spill] sm:$0xff] }
 0x480   : > { %v16238_v51 = vpop.permute.xlu0 %3304  ;;  %v16240_v49 = vpop.permute.xlu1 %3366  ;;  %19000 = vst [vmem:[#allocation68_spill] sm:$0xff] %v16281_v6  ;;  %vm16294_vm12 = vcmp.gt.s32.totalorder %v3392_v1, 0  ;;  %v19022_v35 = vld [vmem:[#allocation77_spill] sm:$0xff] }
 0x481   : > { %6799 = vmax.xlane.f32.xlu0 %v6798_v43  ;;  %v16268_v43 = vadd.f32 %v18996_v47, %v3677_v19  ;;  %v19001_v19 = vld [vmem:[#allocation33_spill] sm:$0xff]  ;;  %v19004_v47 = vld [vmem:[#allocation84_spill] sm:$0xff]  ;;  %vm16326_vm14 = vcmp.gt.s32.totalorder %v3440_v50, 0 }
 0x482   : > { %6805 = vmax.xlane.f32.xlu1 %v6804_v18  ;;  %v3390_v18 = vand.u32 8, %v19001_v19  ;;  %v3663_v22 = vsel %vm16262_vm10, %v16133_v33, %v19004_v47  ;;  %v3693_v33 = vsel %vm16286_vm11, %v16124_v57, %v19010_v21  ;;  %v19014_v47 = vld [vmem:[#allocation88_spill] sm:$0xff]  ;;  %v19031_v57 = vld [vmem:[#allocation182_spill] sm:$0xff] }
 0x483   : > { %18997 = vst [vmem:[#allocation70_spill] sm:$0xff] %v16268_v43  ;;  %v6849_v19 = vsel %vm6749_vm2, %v16268_v43, -inf  ;;  %v16313_v1 = vadd.f32 %v19011_v45, %v3663_v22  ;;  %v3391_v61 = vand.u32 8, %v19014_v47  ;;  %v19018_v22 = vld [vmem:[#allocation50_spill] sm:$0xff] }
 0x484   : > { %v16270_v63 = vpop.permute.xlu0 %3368  ;;  %v16272_v27 = vpop.permute.xlu1 %3274  ;;  %vm16317_vm13 = vcmp.gt.s32.totalorder %v3390_v18, 0  ;;  %v3394_v21 = vand.u32 8, %v19018_v22 }
 0x485   : > { %6895 = vmax.xlane.f32.xlu0 %v6894_v25  ;;  %v16300_v25 = vadd.f32 %v19008_v2, %v3661_v17  ;;  %v6855_v17 = vsel %vm6749_vm2, %v16281_v6, -inf  ;;  %v19015_v2 = vld [vmem:[#allocation42_spill] sm:$0xff]  ;;  %v19021_v6 = vld [vmem:[#allocation165_spill] sm:$0xff]  ;;  %vm16349_vm15 = vcmp.gt.s32.totalorder %v3391_v61, 0 }
 0x486   : > { %6901 = vmax.xlane.f32.xlu1 %v6900_v46  ;;  %v3648_v43 = vsel %vm16294_vm12, %v16135_v52, %v19015_v2  ;;  %v3646_v52 = vsel %vm16317_vm13, %v16113_v4, %v19021_v6  ;;  %v19025_v2 = vld [vmem:[#allocation90_spill] sm:$0xff]  ;;  %vm16358_vm1 = vcmp.gt.s32.totalorder %v3394_v21, 0  ;;  %v19029_v6 = vld [vmem:[#allocation73_spill] sm:$0xff] }
 0x487   : > { %19009 = vst [vmem:[#allocation67_spill] sm:$0xff] %v16300_v25  ;;  %v6801_v47 = vsel %vm6749_vm2, %v16300_v25, -inf  ;;  %v16345_v50 = vadd.f32 %v19022_v35, %v3648_v43  ;;  %v3439_v22 = vand.u32 8, %v19025_v2  ;;  %v3426_v43 = vand.u32 8, %v18874_v31  ;;  %v19030_v2 = vld [vmem:[#allocation40_spill] sm:$0xff] }
 0x488   : > { %v16302_v24 = vpop.permute.xlu0 %3338  ;;  %v16304_v23 = vpop.permute.xlu1 %3370  ;;  %v16364_v46 = vadd.f32 %v19029_v6, %v3646_v52  ;;  %v3650_v6 = vsel %vm16358_vm1, %v16177_v48, %v15863_v36  ;;  %v19041_v48 = vld [vmem:[#allocation34_spill] sm:$0xff] }
 0x489   : > { %6850 = vmax.xlane.f32.xlu0 %v6849_v19  ;;  %v16332_v19 = vadd.f32 %v19019_v58, %v3693_v33  ;;  %v6807_v33 = vsel %vm6749_vm2, %v16313_v1, -inf  ;;  %v19026_v58 = vld [vmem:[#allocation48_spill] sm:$0xff]  ;;  %v6762_v31 = vsel %vm6749_vm2, %v16345_v50, -inf  ;;  %vm16381_vm3 = vcmp.gt.s32.totalorder %v3439_v22, 0 }
 0x48a   : > { %6856 = vmax.xlane.f32.xlu1 %v6855_v17  ;;  %v3696_v25 = vsel %vm16326_vm14, %v16139_v10, %v19026_v58  ;;  %v3647_v10 = vsel %vm16349_vm15, %v16126_v8, %v19030_v2  ;;  %vm16390_vm4 = vcmp.gt.s32.totalorder %v3426_v43, 0  ;;  %v16407_v4 = vadd.f32 %v19041_v48, %v3650_v6  ;;  %v19047_v6 = vld [vmem:[#allocation101_spill] sm:$0xff] }
 0x48b   : > { %19020 = vst [vmem:[#allocation78_spill] sm:$0xff] %v16332_v19  ;;  %v6897_v35 = vsel %vm6749_vm2, %v16332_v19, -inf  ;;  %v16377_v21 = vadd.f32 %v19031_v57, %v3696_v25  ;;  %v19038_v25 = vld [vmem:[#allocation98_spill] sm:$0xff]  ;;  %v6756_v57 = vsel %vm6749_vm2, %v16364_v46, -inf }
 0x48c   : > { %v16334_v18 = vpop.permute.xlu0 %3306  ;;  %v16336_v45 = vpop.permute.xlu1 %3276  ;;  %v3410_v17 = vand.u32 8, %v19038_v25  ;;  %v19044_v25 = vld [vmem:[#allocation96_spill] sm:$0xff] }
 0x48d   : > { %6802 = vmax.xlane.f32.xlu0 %v6801_v47  ;;  %19032 = vst [vmem:[#allocation81_spill] sm:$0xff] %v16377_v21 }
 0x48e   : > { %6808 = vmax.xlane.f32.xlu1 %v6807_v33  ;;  %v19035_v33 = vld [vmem:[#allocation92_spill] sm:$0xff]  ;;  %vm16422_vm6 = vcmp.gt.s32.totalorder %v3410_v17, 0  ;;  %v6768_v17 = vsel %vm6749_vm2, %v16407_v4, -inf }
 0x48f   : > { %v3424_v58 = vand.u32 8, %v19035_v33  ;;  %v19040_v33 = vld [vmem:[#allocation43_spill] sm:$0xff] }
 0x490   : > { %v16366_v61 = vpop.permute.xlu0 %3372  ;;  %v16368_v47 = vpop.permute.xlu1 %3340  ;;  %v3695_v36 = vsel %vm16381_vm3, %v16130_v3, %v19040_v33  ;;  %v3682_v3 = vsel %vm16390_vm4, %v16207_v59, %v15875_v62  ;;  %v19048_v33 = vld [vmem:[#allocation187_spill] sm:$0xff]  ;;  %v19051_v59 = vld [vmem:[#allocation45_spill] sm:$0xff] }
 0x491   : > { %6898 = vmax.xlane.f32.xlu0 %v6897_v35  ;;  %v19039_v35 = vld [vmem:[#allocation72_spill] sm:$0xff]  ;;  %vm16413_vm5 = vcmp.gt.s32.totalorder %v3424_v58, 0  ;;  %v16428_v48 = vadd.f32 %v19048_v33, %v3695_v36  ;;  %v16439_v8 = vadd.f32 %v19051_v59, %v3682_v3  ;;  %v3666_v33 = vsel %vm16422_vm6, %v16238_v51, %v15887_v16  ;;  %v19060_v51 = vld [vmem:[#allocation159_spill] sm:$0xff] }
 0x492   : > { %6763 = vmax.xlane.f32.xlu1 %v6762_v31  ;;  %v16396_v2 = vadd.f32 %v19039_v35, %v3647_v10  ;;  %v6906_v10 = vsel %vm6749_vm2, %v16377_v21, -inf  ;;  %v3408_v35 = vand.u32 8, %v19044_v25  ;;  %v19050_v21 = vld [vmem:[#allocation49_spill] sm:$0xff]  ;;  %v16469_v52 = vadd.f32 %v19060_v51, %v3666_v33  ;;  %v19067_v51 = vld [vmem:[#allocation51_spill] sm:$0xff] }
 0x493   : > { %19049 = vst [vmem:[#allocation161_spill] sm:$0xff] %v16428_v48  ;;  %v3680_v62 = vsel %vm16413_vm5, %v16141_v15, %v19050_v21  ;;  %v19057_v21 = vld [vmem:[#allocation103_spill] sm:$0xff]  ;;  %v3427_v33 = vand.u32 8, %v18887_v39 }
 0x494   : > { %v16398_v22 = vpop.permute.xlu1 %3308  ;;  %v16409_v43 = vpop.permute.xlu0 %3278  ;;  %v6759_v25 = vsel %vm6749_vm2, %v16396_v2, -inf  ;;  %vm16444_vm7 = vcmp.gt.s32.totalorder %v3408_v35, 0  ;;  %v3395_v31 = vand.u32 8, %v19057_v21  ;;  %v6903_v35 = vsel %vm6749_vm2, %v16428_v48, -inf  ;;  %v19063_v21 = vld [vmem:[#allocation102_spill] sm:$0xff]  ;;  %v19068_v15 = vld [vmem:[#allocation191_spill] sm:$0xff] }
 0x495   : > { %6757 = vmax.xlane.f32.xlu0 %v6756_v57  ;;  %v3442_v57 = vand.u32 8, %v19047_v6  ;;  %v6816_v39 = vsel %vm6749_vm2, %v16469_v52, -inf  ;;  %vm16514_vm12 = vcmp.gt.s32.totalorder %v3427_v33, 0 }
 0x496   : > { %6907 = vmax.xlane.f32.xlu1 %v6906_v10  ;;  %v19052_v10 = vld [vmem:[#allocation99_spill] sm:$0xff]  ;;  %vm16484_vm10 = vcmp.gt.s32.totalorder %v3395_v31, 0  ;;  %v3444_v31 = vand.u32 8, %v18891_v28 }
 0x497   : > { %v3393_v36 = vand.u32 8, %v19052_v10  ;;  %vm16452_vm8 = vcmp.gt.s32.totalorder %v3442_v57, 0  ;;  %v19059_v10 = vld [vmem:[#allocation44_spill] sm:$0xff] }
 0x498   : > { %v16430_v58 = vpop.permute.xlu1 %3342  ;;  %v16457_v3 = vpop.permute.xlu0 %3280  ;;  %v3664_v16 = vsel %vm16444_vm7, %v16155_v29, %v19059_v10  ;;  %v3698_v29 = vsel %vm16452_vm8, %v16270_v63, %v15899_v5  ;;  %vm16576_vm1 = vcmp.gt.s32.totalorder %v3444_v31, 0  ;;  %v19109_v31 = vld [vmem:[#allocation189_spill] sm:$0xff] }
 0x499   : > { %6760 = vmax.xlane.f32.xlu0 %v6759_v25  ;;  %v19058_v25 = vld [vmem:[#allocation166_spill] sm:$0xff]  ;;  %vm16475_vm9 = vcmp.gt.s32.totalorder %v3393_v36, 0  ;;  %v16499_v5 = vadd.f32 %v19068_v15, %v3698_v29  ;;  %v19075_v29 = vld [vmem:[#allocation108_spill] sm:$0xff] }
 0x49a   : > { %6769 = vmax.xlane.f32.xlu1 %v6768_v17  ;;  %v16460_v59 = vadd.f32 %v19058_v25, %v3680_v62  ;;  %v6864_v17 = vsel %vm6749_vm2, %v16439_v8, -inf  ;;  %v3425_v25 = vand.u32 8, %v19063_v21  ;;  %v3649_v21 = vsel %vm16475_vm9, %v16153_v54, %v19067_v51 }
 0x49b   : > { %19069 = vst [vmem:[#allocation38_spill] sm:$0xff] %v16499_v5  ;;  %v3651_v54 = vsel %vm16484_vm10, %v16272_v27, %v15902_v34  ;;  %v19078_v27 = vld [vmem:[#allocation31_spill] sm:$0xff]  ;;  %v6912_v33 = vsel %vm6749_vm2, %v16499_v5, -inf }
 0x49c   : > { %v16471_v57 = vpop.permute.xlu1 %3310  ;;  %v6858_v36 = vsel %vm6749_vm2, %v16460_v59, -inf  ;;  %v16501_v63 = vpop.permute.xlu0 %3344  ;;  %vm16505_vm11 = vcmp.gt.s32.totalorder %v3425_v25, 0  ;;  %v19076_v25 = vld [vmem:[#allocation76_spill] sm:$0xff]  ;;  %v16531_v6 = vadd.f32 %v19078_v27, %v3651_v54  ;;  %v19085_v27 = vld [vmem:[#allocation97_spill] sm:$0xff] }
 0x49d   : > { %6904 = vmax.xlane.f32.xlu0 %v6903_v35  ;;  %v19066_v35 = vld [vmem:[#allocation143_spill] sm:$0xff]  ;;  %v16522_v51 = vadd.f32 %v19076_v25, %v3649_v21  ;;  %v3683_v25 = vsel %vm16514_vm12, %v16302_v24, %v15911_v32  ;;  %v19086_v24 = vld [vmem:[#allocation176_spill] sm:$0xff] }
 0x49e   : > { %6865 = vmax.xlane.f32.xlu1 %v6864_v17  ;;  %v16490_v10 = vadd.f32 %v19066_v35, %v3664_v16  ;;  %v19072_v16 = vld [vmem:[#allocation104_spill] sm:$0xff]  ;;  %v3411_v35 = vand.u32 8, %v19075_v29  ;;  %v19081_v21 = vld [vmem:[#allocation107_spill] sm:$0xff]  ;;  %v16561_v62 = vadd.f32 %v19086_v24, %v3683_v25  ;;  %v6771_v28 = vsel %vm6749_vm2, %v16531_v6, -inf }
 0x49f   : > { %v3409_v17 = vand.u32 8, %v19072_v16  ;;  %v19077_v16 = vld [vmem:[#allocation93_spill] sm:$0xff]  ;;  %v3441_v29 = vand.u32 8, %v19081_v21  ;;  %v3398_v25 = vand.u32 8, %v18895_v55 }
 0x4a0   : > { %v6810_v15 = vsel %vm6749_vm2, %v16490_v10, -inf  ;;  %v3681_v34 = vsel %vm16505_vm11, %v16179_v41, %v19077_v16  ;;  %vm16544_vm14 = vcmp.gt.s32.totalorder %v3411_v35, 0  ;;  %v16549_v54 = vpop.permute.xlu0 %3312  ;;  %v6765_v16 = vsel %vm6749_vm2, %v16522_v51, -inf  ;;  %v19094_v41 = vld [vmem:[#allocation157_spill] sm:$0xff] }
 0x4a1   : > { %6859 = vmax.xlane.f32.xlu0 %v6858_v36  ;;  %v16519_v36 = vpop.permute.xlu1 %3374  ;;  %vm16535_vm13 = vcmp.gt.s32.totalorder %v3409_v17, 0  ;;  %v19084_v17 = vld [vmem:[#allocation164_spill] sm:$0xff]  ;;  %vm16567_vm15 = vcmp.gt.s32.totalorder %v3441_v29, 0  ;;  %v6867_v55 = vsel %vm6749_vm2, %v16561_v62, -inf  ;;  %vm16606_vm4 = vcmp.gt.s32.totalorder %v3398_v25, 0 }
 0x4a2   : > { %6817 = vmax.xlane.f32.xlu1 %v6816_v39  ;;  %v3665_v32 = vsel %vm16535_vm13, %v16209_v44, %v19085_v27  ;;  %v3667_v44 = vsel %vm16544_vm14, %v16334_v18, %v15923_v30  ;;  %v19093_v27 = vld [vmem:[#allocation185_spill] sm:$0xff] }
 0x4a3   : > { %v3697_v24 = vsel %vm16567_vm15, %v16240_v49, %v19093_v27  ;;  %v16591_v30 = vadd.f32 %v19094_v41, %v3667_v44  ;;  %v3700_v49 = vsel %vm16576_vm1, %v16366_v61, %v15935_v11  ;;  %v19102_v61 = vld [vmem:[#allocation186_spill] sm:$0xff]  ;;  %v19106_v27 = vld [vmem:[#allocation113_spill] sm:$0xff]  ;;  %v3654_v41 = vsel %vm16606_vm4, %v16457_v3, %v15959_v37  ;;  %v19111_v3 = vld [vmem:[#allocation16_spill] sm:$0xff] }
 0x4a4   : > { %v16593_v18 = vpop.permute.xlu0 %3346  ;;  %v16623_v39 = vadd.f32 %v19102_v61, %v3700_v49  ;;  %v16653_v49 = vadd.f32 %v19111_v3, %v3654_v41 }
 0x4a5   : > { %6811 = vmax.xlane.f32.xlu0 %v6810_v15  ;;  %v16552_v15 = vadd.f32 %v19084_v17, %v3681_v34  ;;  %v16563_v35 = vpop.permute.xlu1 %3376  ;;  %v19092_v17 = vld [vmem:[#allocation141_spill] sm:$0xff] }
 0x4a6   : > { %6913 = vmax.xlane.f32.xlu1 %v6912_v33  ;;  %v19089_v33 = vld [vmem:[#allocation109_spill] sm:$0xff]  ;;  %19103 = vst [vmem:[#allocation82_spill] sm:$0xff] %v16623_v39 }
 0x4a7   : > { %v3443_v21 = vand.u32 8, %v19089_v33  ;;  %v6861_v29 = vsel %vm6749_vm2, %v16552_v15, -inf  ;;  %v3430_v33 = vand.u32 8, %v18899_v56  ;;  %v6819_v56 = vsel %vm6749_vm2, %v16591_v30, -inf }
 0x4a9   : > { %6766 = vmax.xlane.f32.xlu0 %v6765_v16  ;;  %v16582_v16 = vadd.f32 %v19092_v17, %v3665_v32  ;;  %vm16597_vm3 = vcmp.gt.s32.totalorder %v3443_v21, 0  ;;  %v19097_v32 = vld [vmem:[#allocation111_spill] sm:$0xff]  ;;  %v16611_v44 = vpop.permute.xlu1 %3282  ;;  %v19100_v21 = vld [vmem:[#allocation181_spill] sm:$0xff]  ;;  %vm16636_vm6 = vcmp.gt.s32.totalorder %v3430_v33, 0 }
 0x4aa   : > { %6772 = vmax.xlane.f32.xlu1 %v6771_v28  ;;  %v3396_v28 = vand.u32 8, %v19097_v32  ;;  %v16614_v17 = vadd.f32 %v19100_v21, %v3697_v24  ;;  %v3699_v11 = vsel %vm16597_vm3, %v16304_v23, %v15914_v14  ;;  %v3428_v24 = vand.u32 8, %v19106_v27  ;;  %v19114_v21 = vld [vmem:[#allocation114_spill] sm:$0xff]  ;;  %v19120_v14 = vld [vmem:[#allocation180_spill] sm:$0xff] }
 0x4ab   : > { %v3414_v23 = vand.u32 8, %v18903_v53  ;;  %v16644_v32 = vadd.f32 %v19109_v31, %v3699_v11  ;;  %v6918_v53 = vsel %vm6749_vm2, %v16623_v39, -inf  ;;  %v19117_v11 = vld [vmem:[#allocation119_spill] sm:$0xff]  ;;  %v19121_v31 = vld [vmem:[#allocation117_spill] sm:$0xff] }
 0x4ac   : > { %19101 = vst [vmem:[#allocation173_spill] sm:$0xff] %v16614_v17  ;;  %vm16627_vm5 = vcmp.gt.s32.totalorder %v3396_v28, 0  ;;  %v6909_v28 = vsel %vm6749_vm2, %v16614_v17, -inf  ;;  %vm16659_vm7 = vcmp.gt.s32.totalorder %v3428_v24, 0  ;;  %v3446_v61 = vand.u32 8, %v19117_v11  ;;  %v19119_v24 = vld [vmem:[#allocation54_spill] sm:$0xff] }
 0x4ad   : > { %6862 = vmax.xlane.f32.xlu0 %v6861_v29  ;;  %v6813_v29 = vsel %vm6749_vm2, %v16582_v16, -inf  ;;  %19110 = vst [vmem:[#allocation55_spill] sm:$0xff] %v16644_v32  ;;  %v3652_v37 = vsel %vm16627_vm5, %v16336_v45, %v15926_v38  ;;  %v16655_v34 = vpop.permute.xlu1 %3284  ;;  %v3686_v38 = vsel %vm16636_vm6, %v16501_v63, %v15971_v7  ;;  %vm16668_vm8 = vcmp.gt.s32.totalorder %v3414_v23, 0 }
 0x4ae   : > { %6868 = vmax.xlane.f32.xlu1 %v6867_v55  ;;  %v16641_v55 = vpop.permute.xlu0 %3314  ;;  %v6915_v27 = vsel %vm6749_vm2, %v16644_v32, -inf  ;;  %v3684_v41 = vsel %vm16659_vm7, %v16368_v47, %v19119_v24  ;;  %v16683_v7 = vadd.f32 %v19120_v14, %v3686_v38  ;;  %v6780_v23 = vsel %vm6749_vm2, %v16653_v49, -inf  ;;  %v19127_v38 = vld [vmem:[#allocation171_spill] sm:$0xff]  ;;  %v19132_v24 = vld [vmem:[#allocation120_spill] sm:$0xff] }
 0x4af   : > { %v3670_v47 = vsel %vm16668_vm8, %v16549_v54, %v15983_v40  ;;  %vm16698_vm10 = vcmp.gt.s32.totalorder %v3446_v61, 0  ;;  %v16706_v11 = vadd.f32 %v19127_v38, %v3684_v41  ;;  %v19129_v54 = vld [vmem:[#allocation163_spill] sm:$0xff]  ;;  %v3429_v41 = vand.u32 8, %v19132_v24 }
 0x4b0   : > { %v16715_v45 = vadd.f32 %v19129_v54, %v3670_v47  ;;  %v6876_v61 = vsel %vm6749_vm2, %v16683_v7, -inf  ;;  %v3702_v14 = vsel %vm16698_vm10, %v16563_v35, %v15995_v0  ;;  %v19137_v38 = vld [vmem:[#allocation95_spill] sm:$0xff] }
 0x4b1   : > { %6814 = vmax.xlane.f32.xlu0 %v6813_v29  ;;  %v3412_v29 = vand.u32 8, %v19114_v21  ;;  %v16703_v21 = vpop.permute.xlu1 %3348  ;;  %v19138_v35 = vld [vmem:[#allocation63_spill] sm:$0xff]  ;;  %vm16751_vm13 = vcmp.gt.s32.totalorder %v3429_v41, 0 }
 0x4b2   : > { %6820 = vmax.xlane.f32.xlu1 %v6819_v56  ;;  %v19118_v56 = vld [vmem:[#allocation71_spill] sm:$0xff]  ;;  %v16685_v63 = vpop.permute.xlu0 %3378  ;;  %v16745_v3 = vadd.f32 %v19138_v35, %v3702_v14  ;;  %v19146_v14 = vld [vmem:[#allocation69_spill] sm:$0xff] }
 0x4b3   : > { %v16674_v25 = vadd.f32 %v19118_v56, %v3652_v37  ;;  %vm16690_vm9 = vcmp.gt.s32.totalorder %v3412_v29, 0  ;;  %v19128_v56 = vld [vmem:[#allocation100_spill] sm:$0xff] }
 0x4b4   : > { %v3668_v40 = vsel %vm16690_vm9, %v16398_v22, %v19128_v56  ;;  %v19133_v22 = vld [vmem:[#allocation125_spill] sm:$0xff]  ;;  %19139 = vst [vmem:[#allocation47_spill] sm:$0xff] %v16745_v3  ;;  %v3448_v56 = vand.u32 8, %v18919_v13 }
 0x4b5   : > { %6910 = vmax.xlane.f32.xlu0 %v6909_v28  ;;  %v3397_v28 = vand.u32 8, %v19121_v31  ;;  %v6774_v29 = vsel %vm6749_vm2, %v16674_v25, -inf  ;;  %v19148_v31 = vld [vmem:[#allocation36_spill] sm:$0xff] }
 0x4b6   : > { %6919 = vmax.xlane.f32.xlu1 %v6918_v53  ;;  %v19126_v53 = vld [vmem:[#allocation121_spill] sm:$0xff]  ;;  %v16733_v37 = vpop.permute.xlu0 %3286  ;;  %vm16819_vm4 = vcmp.gt.s32.totalorder %v3448_v56, 0  ;;  %v19166_v56 = vld [vmem:[#allocation132_spill] sm:$0xff] }
 0x4b7   : > { %v3399_v33 = vand.u32 8, %v19126_v53  ;;  %vm16719_vm11 = vcmp.gt.s32.totalorder %v3397_v28, 0  ;;  %v19136_v28 = vld [vmem:[#allocation150_spill] sm:$0xff]  ;;  %v6870_v53 = vsel %vm6749_vm2, %v16706_v11, -inf }
 0x4b8   : > { %v16736_v47 = vadd.f32 %v19136_v28, %v3668_v40  ;;  %v3653_v0 = vsel %vm16719_vm11, %v16409_v43, %v19137_v38  ;;  %v19142_v40 = vld [vmem:[#allocation123_spill] sm:$0xff]  ;;  %v19147_v28 = vld [vmem:[#allocation60_spill] sm:$0xff] }
 0x4b9   : > { %6916 = vmax.xlane.f32.xlu0 %v6915_v27  ;;  %vm16729_vm12 = vcmp.gt.s32.totalorder %v3399_v33, 0  ;;  %v16747_v33 = vpop.permute.xlu1 %3316  ;;  %v3413_v54 = vand.u32 8, %v19142_v40  ;;  %v19145_v27 = vld [vmem:[#allocation128_spill] sm:$0xff] }
 0x4ba   : > { %6781 = vmax.xlane.f32.xlu1 %v6780_v23  ;;  %v3431_v23 = vand.u32 8, %v19133_v22  ;;  %v3655_v43 = vsel %vm16729_vm12, %v16611_v44, %v16007_v42  ;;  %v3415_v24 = vand.u32 8, %v19145_v27  ;;  %v16766_v22 = vadd.f32 %v19146_v14, %v3653_v0  ;;  %v16777_v44 = vpop.permute.xlu0 %3382  ;;  %v19151_v0 = vld [vmem:[#allocation126_spill] sm:$0xff]  ;;  %v19155_v14 = vld [vmem:[#allocation61_spill] sm:$0xff] }
 0x4bb   : > { %v6822_v41 = vsel %vm6749_vm2, %v16736_v47, -inf  ;;  %v16775_v42 = vadd.f32 %v19148_v31, %v3655_v43  ;;  %vm16781_vm15 = vcmp.gt.s32.totalorder %v3413_v54, 0  ;;  %v3445_v35 = vand.u32 8, %v19151_v0  ;;  %v19154_v43 = vld [vmem:[#allocation168_spill] sm:$0xff]  ;;  %v19174_v31 = vld [vmem:[#allocation58_spill] sm:$0xff] }
 0x4bc   : > { %vm16760_vm14 = vcmp.gt.s32.totalorder %v3431_v23, 0  ;;  %v6924_v23 = vsel %vm6749_vm2, %v16745_v3, -inf  ;;  %vm16790_vm1 = vcmp.gt.s32.totalorder %v3415_v24, 0  ;;  %v6777_v27 = vsel %vm6749_vm2, %v16766_v22, -inf  ;;  %v19231_v3 = vld [vmem:[#allocation174_spill] sm:$0xff] }
 0x4bd   : > { %6775 = vmax.xlane.f32.xlu0 %v6774_v29  ;;  %v6828_v29 = vsel %vm6749_vm2, %v16715_v45, -inf  ;;  %v3381_v40 = vpop.permute.xlu1 %3380  ;;  %v6783_v24 = vsel %vm6749_vm2, %v16775_v42, -inf  ;;  %vm16809_vm3 = vcmp.gt.s32.totalorder %v3445_v35, 0  ;;  %v19162_v35 = vld [vmem:[#allocation190_spill] sm:$0xff] }
 0x4be   : > { %6877 = vmax.xlane.f32.xlu1 %v6876_v61  ;;  %v3669_v61 = vsel %vm16781_vm15, %v16471_v57, %v19155_v14  ;;  %v3402_v57 = vand.u32 8, %v18800_v60 }
 0x4c0   : > { %vm16847_vm6 = vcmp.gt.s32.totalorder %v3402_v57, 0 }
 0x4c1   : > { %6871 = vmax.xlane.f32.xlu0 %v6870_v53  ;;  %v3685_v53 = vsel %vm16751_vm13, %v16430_v58, %v19147_v28  ;;  %v3687_v58 = vsel %vm16760_vm14, %v16593_v18, %v15998_v20  ;;  %v19156_v20 = vld [vmem:[#allocation179_spill] sm:$0xff]  ;;  %v3447_v28 = vand.u32 8, %v18912_v12  ;;  %v19163_v12 = vld [vmem:[#allocation162_spill] sm:$0xff]  ;;  %v16835_v60 = vpop.permute.xlu1 %3350 }
 0x4c2   : > { %6829 = vmax.xlane.f32.xlu1 %v6828_v29  ;;  %v16796_v54 = vadd.f32 %v19154_v43, %v3685_v53  ;;  %v16805_v18 = vadd.f32 %v19156_v20, %v3687_v58  ;;  %v3289_v53 = vpop.permute.xlu0 %3288  ;;  %v3400_v43 = vand.u32 8, %v19166_v56  ;;  %v19182_v29 = vld [vmem:[#allocation140_spill] sm:$0xff] }
 0x4c3   : > { %vm16839_vm5 = vcmp.gt.s32.totalorder %v3447_v28, 0  ;;  %v19173_v28 = vld [vmem:[#allocation105_spill] sm:$0xff] }
 0x4c4   : > { %v6873_v0 = vsel %vm6749_vm2, %v16796_v54, -inf  ;;  %v6879_v58 = vsel %vm6749_vm2, %v16805_v18, -inf  ;;  %vm16866_vm7 = vcmp.gt.s32.totalorder %v3400_v43, 0 }
 0x4c5   : > { %6823 = vmax.xlane.f32.xlu0 %v6822_v41  ;;  %v3671_v41 = vsel %vm16790_vm1, %v16641_v55, %v16010_v9  ;;  %v3701_v9 = vsel %vm16809_vm3, %v16519_v36, %v19162_v35  ;;  %v19186_v36 = vld [vmem:[#allocation37_spill] sm:$0xff] }
 0x4c6   : > { %6925 = vmax.xlane.f32.xlu1 %v6924_v23  ;;  %v19161_v23 = vld [vmem:[#allocation148_spill] sm:$0xff]  ;;  %v16833_v55 = vadd.f32 %v19163_v12, %v3671_v41  ;;  %v3353_v57 = vpop.permute.xlu0 %3352 }
 0x4c7   : > { %v16824_v38 = vadd.f32 %v19161_v23, %v3669_v61  ;;  %v19170_v61 = vld [vmem:[#allocation137_spill] sm:$0xff]  ;;  %v3703_v23 = vsel %vm16839_vm5, %v16685_v63, %v19173_v28 }
 0x4c8   : > { %v3434_v20 = vand.u32 8, %v19170_v61  ;;  %v19183_v61 = vld [vmem:[#allocation56_spill] sm:$0xff] }
 0x4c9   : > { %6778 = vmax.xlane.f32.xlu0 %v6777_v27  ;;  %v19167_v27 = vld [vmem:[#allocation118_spill] sm:$0xff]  ;;  %v6825_v41 = vsel %vm6749_vm2, %v16824_v38, -inf  ;;  %v16882_v43 = vadd.f32 %v19183_v61, %v3703_v23  ;;  %v19194_v61 = vld [vmem:[#allocation75_spill] sm:$0xff] }
 0x4ca   : > { %6784 = vmax.xlane.f32.xlu1 %v6783_v24  ;;  %v3704_v14 = vsel %vm16819_vm4, %v3381_v40, %v19167_v27  ;;  %v19171_v24 = vld [vmem:[#allocation184_spill] sm:$0xff]  ;;  %vm16874_vm8 = vcmp.gt.s32.totalorder %v3434_v20, 0  ;;  %v3418_v27 = vand.u32 8, %v19182_v29  ;;  %v19189_v23 = vld [vmem:[#allocation138_spill] sm:$0xff]  ;;  %v3321_v35 = vpop.permute.xlu0 %3320 }
 0x4cb   : > { %v16853_v13 = vadd.f32 %v19171_v24, %v3701_v9  ;;  %v16862_v40 = vadd.f32 %v19174_v31, %v3704_v14  ;;  %v19178_v9 = vld [vmem:[#allocation135_spill] sm:$0xff]  ;;  %v16879_v14 = vpop.permute.xlu1 %3318  ;;  %19184 = vst [vmem:[#allocation62_spill] sm:$0xff] %v16882_v43  ;;  %v19204_v31 = vld [vmem:[#allocation146_spill] sm:$0xff] }
 0x4cc   : > { %v3432_v12 = vand.u32 8, %v19178_v9  ;;  %v19190_v9 = vld [vmem:[#allocation129_spill] sm:$0xff]  ;;  %vm16903_vm10 = vcmp.gt.s32.totalorder %v3418_v27, 0 }
 0x4cd   : > { %6874 = vmax.xlane.f32.xlu0 %v6873_v0  ;;  %19172 = vst [vmem:[#allocation94_spill] sm:$0xff] %v16853_v13  ;;  %19175 = vst [vmem:[#allocation170_spill] sm:$0xff] %v16862_v40  ;;  %v6831_v0 = vsel %vm6749_vm2, %v16833_v55, -inf  ;;  %v6921_v24 = vsel %vm6749_vm2, %v16853_v13, -inf  ;;  %v6930_v28 = vsel %vm6749_vm2, %v16862_v40, -inf  ;;  %v19216_v40 = vld [vmem:[#allocation65_spill] sm:$0xff] }
 0x4ce   : > { %6880 = vmax.xlane.f32.xlu1 %v6879_v58  ;;  %v19179_v58 = vld [vmem:[#allocation122_spill] sm:$0xff]  ;;  %vm16895_vm9 = vcmp.gt.s32.totalorder %v3432_v12, 0  ;;  %v6927_v12 = vsel %vm6749_vm2, %v16882_v43, -inf }
 0x4cf   : > { %v3658_v56 = vsel %vm16847_vm6, %v3289_v53, %v19179_v58  ;;  %v3690_v58 = vsel %vm16874_vm8, %v3353_v57, %v19190_v9  ;;  %v19196_v57 = vld [vmem:[#allocation53_spill] sm:$0xff]  ;;  %v3385_v27 = vpop.permute.xlu1 %3384 }
 0x4d0   : > { %v16891_v20 = vadd.f32 %v19186_v36, %v3658_v56  ;;  %v19193_v56 = vld [vmem:[#allocation144_spill] sm:$0xff]  ;;  %v16918_v36 = vadd.f32 %v19196_v57, %v3690_v58  ;;  %v3403_v58 = vand.u32 8, %v19204_v31  ;;  %v19206_v57 = vld [vmem:[#allocation115_spill] sm:$0xff]  ;;  %v19211_v31 = vld [vmem:[#allocation130_spill] sm:$0xff] }
 0x4d1   : > { %6826 = vmax.xlane.f32.xlu0 %v6825_v41  ;;  %v19185_v41 = vld [vmem:[#allocation110_spill] sm:$0xff]  ;;  %v3450_v29 = vand.u32 8, %v19193_v56  ;;  %v19201_v56 = vld [vmem:[#allocation131_spill] sm:$0xff] }
 0x4d2   : > { %6832 = vmax.xlane.f32.xlu1 %v6831_v0  ;;  %v3656_v53 = vsel %vm16866_vm7, %v16655_v34, %v19185_v41  ;;  %v3416_v0 = vand.u32 8, %v19189_v23  ;;  %v19195_v41 = vld [vmem:[#allocation112_spill] sm:$0xff]  ;;  %19197 = vst [vmem:[#allocation83_spill] sm:$0xff] %v16918_v36  ;;  %v19198_v23 = vld [vmem:[#allocation142_spill] sm:$0xff]  ;;  %v19207_v34 = vld [vmem:[#allocation39_spill] sm:$0xff]  ;;  %vm16958_vm14 = vcmp.gt.s32.totalorder %v3403_v58, 0 }
 0x4d3   : > { %v3688_v63 = vsel %vm16895_vm9, %v16703_v21, %v19195_v41  ;;  %v3401_v9 = vand.u32 8, %v19198_v23  ;;  %vm16930_vm12 = vcmp.gt.s32.totalorder %v3450_v29, 0  ;;  %v6888_v29 = vsel %vm6749_vm2, %v16918_v36, -inf }
 0x4d4   : > { %vm16923_vm11 = vcmp.gt.s32.totalorder %v3416_v0, 0  ;;  %vm10271_vm7 = vcmask 785408  }
 0x4d5   : > { %6922 = vmax.xlane.f32.xlu0 %v6921_v24  ;;  %v16909_v24 = vadd.f32 %v19194_v61, %v3656_v53  ;;  %v3674_v61 = vsel %vm16903_vm10, %v3321_v35, %v19201_v56  ;;  %v3672_v23 = vsel %vm16923_vm11, %v16747_v33, %v19206_v57  ;;  %vm16949_vm13 = vcmp.gt.s32.totalorder %v3401_v9, 0  ;;  %v19212_v53 = vld [vmem:[#allocation151_spill] sm:$0xff] }
 0x4d6   : > { %6931 = vmax.xlane.f32.xlu1 %v6930_v28  ;;  %v6792_v28 = vsel %vm6749_vm2, %v16891_v20, -inf  ;;  %v16945_v35 = vadd.f32 %v19207_v34, %v3674_v61  ;;  %v3435_v33 = vand.u32 8, %v19212_v53  ;;  %v19215_v57 = vld [vmem:[#allocation155_spill] sm:$0xff]  ;;  %v3657_v21 = vsel %vm16949_vm13, %v16733_v37, %v19216_v40  ;;  %v19225_v40 = vld [vmem:[#allocation153_spill] sm:$0xff]  ;;  %v19228_v61 = vld [vmem:[#allocation32_spill] sm:$0xff] }
 0x4d7   : > { %v6786_v0 = vsel %vm6749_vm2, %v16909_v24, -inf  ;;  %v16963_v34 = vadd.f32 %v19215_v57, %v3672_v23  ;;  %v19221_v23 = vld [vmem:[#allocation149_spill] sm:$0xff]  ;;  %v19222_v57 = vld [vmem:[#allocation136_spill] sm:$0xff] }
 0x4d8   : > { %v6840_v58 = vsel %vm6749_vm2, %v16945_v35, -inf  ;;  %v3417_v53 = vand.u32 8, %v19221_v23  ;;  %vm16984_vm1 = vcmp.gt.s32.totalorder %v3435_v33, 0 }
 0x4d9   : > { %6928 = vmax.xlane.f32.xlu0 %v6927_v12  ;;  %v19205_v12 = vld [vmem:[#allocation175_spill] sm:$0xff] }
 0x4da   : > { %6793 = vmax.xlane.f32.xlu1 %v6792_v28  ;;  %v16936_v41 = vadd.f32 %v19205_v12, %v3688_v63  ;;  %v19210_v63 = vld [vmem:[#allocation145_spill] sm:$0xff]  ;;  %v3706_v12 = vsel %vm16930_vm12, %v3385_v27, %v19211_v31  ;;  %v3355_v27 = vpop.permute.xlu0 %3354  ;;  %v3419_v28 = vand.u32 8, %v19225_v40  ;;  %vm3481_vm3 = vcmp.gt.s32.totalorder %v3417_v53, 0 }
 0x4db   : > { %v3433_v56 = vand.u32 8, %v19210_v63 }
 0x4dc   : > { %v6882_v9 = vsel %vm6749_vm2, %v16936_v41, -inf  ;;  %vm3483_vm4 = vcmp.gt.s32.totalorder %v3419_v28, 0  ;;  %v19236_v28 = vld [vmem:[#allocation156_spill] sm:$0xff] }
 0x4dd   : > { %6787 = vmax.xlane.f32.xlu0 %v6786_v0  ;;  %v3291_v0 = vpop.permute.xlu1 %3290  ;;  %vm16976_vm15 = vcmp.gt.s32.totalorder %v3433_v56, 0  ;;  %v6834_v56 = vsel %vm6749_vm2, %v16963_v34, -inf }
 0x4de   : > { %6889 = vmax.xlane.f32.xlu1 %v6888_v29  ;;  %v19217_v29 = vld [vmem:[#allocation59_spill] sm:$0xff]  ;;  %v3659_v43 = vsel %vm16958_vm14, %v3291_v0, %v19222_v57 }
 0x4df   : > { %v16972_v63 = vadd.f32 %v19217_v29, %v3706_v12  ;;  %v19226_v12 = vld [vmem:[#allocation74_spill] sm:$0xff]  ;;  %v19227_v29 = vld [vmem:[#allocation124_spill] sm:$0xff]  ;;  %v16999_v0 = vadd.f32 %v19228_v61, %v3659_v43  ;;  %v19232_v43 = vld [vmem:[#allocation127_spill] sm:$0xff] }
 0x4e0   : > { %v3689_v23 = vsel %vm16976_vm15, %v16835_v60, %v19227_v29  ;;  %v19233_v29 = vld [vmem:[#allocation183_spill] sm:$0xff] }
 0x4e1   : > { %19218 = vst [vmem:[#allocation41_spill] sm:$0xff] %v16972_v63  ;;  %6883 = vmax.xlane.f32.xlu0 %v6882_v9  ;;  %v16990_v9 = vadd.f32 %v19226_v12, %v3657_v21  ;;  %v6936_v33 = vsel %vm6749_vm2, %v16972_v63, -inf  ;;  %v19230_v21 = vld [vmem:[#allocation133_spill] sm:$0xff]  ;;  %v3323_v12 = vpop.permute.xlu0 %3322  ;;  %v17008_v31 = vadd.f32 %v19231_v3, %v3689_v23  ;;  %v6795_v53 = vsel %vm6749_vm2, %v16999_v0, -inf  ;;  %v19237_v3 = vld [vmem:[#allocation154_spill] sm:$0xff] }
 0x4e2   : > { %6841 = vmax.xlane.f32.xlu1 %v6840_v58  ;;  %v19229_v58 = vld [vmem:[#allocation152_spill] sm:$0xff]  ;;  %v3691_v40 = vsel %vm16984_vm1, %v3355_v27, %v19230_v21  ;;  %v19235_v27 = vld [vmem:[#allocation139_spill] sm:$0xff]  ;;  %v19252_v63 = vld [vmem:[#allocation134_spill] sm:$0xff] }
 0x4e3   : > { %v3449_v57 = vand.u32 8, %v19229_v58  ;;  %v6789_v60 = vsel %vm6749_vm2, %v16990_v9, -inf  ;;  %v17015_v61 = vadd.f32 %v19233_v29, %v3691_v40  ;;  %v3675_v37 = vsel %vm3483_vm4, %v3323_v12, %v19235_v27  ;;  %v19239_v40 = vld [vmem:[#allocation167_spill] sm:$0xff] }
 0x4e4   : > { %v6885_v58 = vsel %vm6749_vm2, %v17008_v31, -inf }
 0x4e5   : > { %6835 = vmax.xlane.f32.xlu0 %v6834_v56  ;;  %v3673_v56 = vsel %vm3481_vm3, %v16879_v14, %v19232_v43  ;;  %19234 = vst [vmem:[#allocation85_spill] sm:$0xff] %v17015_v61  ;;  %vm3513_vm5 = vcmp.gt.s32.totalorder %v3449_v57, 0  ;;  %v19238_v14 = vld [vmem:[#allocation116_spill] sm:$0xff]  ;;  %v6891_v57 = vsel %vm6749_vm2, %v17015_v61, -inf  ;;  %v3387_v12 = vpop.permute.xlu0 %3386 }
 0x4e6   : > { %6937 = vmax.xlane.f32.xlu1 %v6936_v33  ;;  %v3451_v33 = vand.u32 8, %v19236_v28  ;;  %v17022_v23 = vadd.f32 %v19237_v3, %v3673_v56  ;;  %v3705_v21 = vsel %vm3513_vm5, %v16777_v44, %v19238_v14  ;;  %v19240_v43 = vld [vmem:[#allocation188_spill] sm:$0xff] }
 0x4e7   : > { %v17034_v29 = vadd.f32 %v19240_v43, %v3705_v21  ;;  %v19247_v43 = vld [vmem:[#allocation20_spill] sm:$0xff] }
 0x4e8   : > { %vm3515_vm6 = vcmp.gt.s32.totalorder %v3451_v33, 0  ;;  %v6837_v56 = vsel %vm6749_vm2, %v17022_v23, -inf }
 0x4e9   : > { %6790 = vmax.xlane.f32.xlu0 %v6789_v60  ;;  %v17029_v60 = vadd.f32 %v19239_v40, %v3675_v37  ;;  %19241 = vst [vmem:[#allocation178_spill] sm:$0xff] %v17034_v29  ;;  %v19243_v37 = vld [vmem:[#allocation64_spill] sm:$0xff]  ;;  %v6933_v33 = vsel %vm6749_vm2, %v17034_v29, -inf  ;;  %v19246_v40 = vld [vmem:[#allocation17_spill] sm:$0xff] }
 0x4ea   : > { %6796 = vmax.xlane.f32.xlu1 %v6795_v53  ;;  %v19242_v53 = vld [vmem:[#allocation147_spill] sm:$0xff]  ;;  %v19251_v29 = vld [vmem:[#allocation80_spill] sm:$0xff] }
 0x4eb   : > { %v3707_v27 = vsel %vm3515_vm6, %v3387_v12, %v19242_v53  ;;  %v6843_v44 = vsel %vm6749_vm2, %v17029_v60, -inf }
 0x4ec   : > { %v17042_v28 = vadd.f32 %v19243_v37, %v3707_v27  ;;  %v19248_v27 = vld [vmem:[#allocation18_spill] sm:$0xff] }
 0x4ed   : > { %6886 = vmax.xlane.f32.xlu0 %v6885_v58  ;;  %v19245_v58 = vld [vmem:[#allocation15_spill] sm:$0xff] }
 0x4ee   : > { %6892 = vmax.xlane.f32.xlu1 %v6891_v57  ;;  %19244 = vst [vmem:[#allocation169_spill] sm:$0xff] %v17042_v28  ;;  %v6939_v3 = vsel %vm6749_vm2, %v17042_v28, -inf }
 0x4f1   : > { %6838 = vmax.xlane.f32.xlu0 %v6837_v56 }
 0x4f2   : > { %6844 = vmax.xlane.f32.xlu1 %v6843_v44 }
 0x4f5   : > { %6934 = vmax.xlane.f32.xlu0 %v6933_v33 }
 0x4f9   : > { %6940 = vmax.xlane.f32.xlu0 %v6939_v3 }
 0x503   : > { %12390 = vrot.lane.b32.xlu1 %v19245_v58, %s13086_s21  ;;  %v19254_v58 = vld [vmem:[#allocation52_spill] sm:$0xff] }
 0x506   : > { %v6752_v14 = vpop.xlane.xlu0 %6751 }
 0x507   : > { %v6755_v21 = vpop.xlane.xlu1 %6754  ;;  %12395 = vrot.lane.b32.xlu1 %v19246_v40, %s13086_s21  ;;  %v6942_v13 = vsub.f32 %v19252_v63, %v6752_v14 }
 0x508   : > { %v6943_v48 = vsub.f32 %v19254_v58, %v6755_v21  ;;  %v19258_v21 = vld [vmem:[#allocation67_spill] sm:$0xff] }
 0x509   : > { %v7006_v5 = vmul.f32 1.442695, %v6942_v13 }
 0x50a   : > { %v6848_v57 = vpop.xlane.xlu0 %6847 }
 0x50b   : > { %v6854_v12 = vpop.xlane.xlu1 %6853  ;;  %12405 = vrot.lane.b32.xlu1 %v19247_v43, %s13086_s21  ;;  %v6974_v28 = vsub.f32 %v19251_v29, %v6848_v57  ;;  %v7008_v57 = vmul.f32 1.442695, %v6943_v48 }
 0x50d   : > { %v7070_v40 = vmul.f32 1.442695, %v6974_v28  ;;  %v19256_v28 = vld [vmem:[#allocation70_spill] sm:$0xff] }
 0x50e   : > { %v6800_v56 = vpop.xlane.xlu0 %6799 }
 0x50f   : > { %v6806_v53 = vpop.xlane.xlu1 %6805  ;;  %12400 = vrot.lane.b32.xlu0 %v19248_v27, %s13086_s21  ;;  %v6958_v43 = vsub.f32 %v16205_v26, %v6800_v56  ;;  %12629 = vpow2.f32 %v7070_v40  ;;  %v19257_v56 = vld [vmem:[#allocation158_spill] sm:$0xff] }
 0x510   : > { %12631 = vpow2.f32 %v7006_v5 }
 0x512   : > { %v17056_v44 = vpop.xlane.xlu0 %6895 }
 0x513   : > { %19249 = vst [vmem:[#allocation57_spill] sm:$0xff] %v17056_v44  ;;  %v17058_v37 = vpop.xlane.xlu1 %6901  ;;  %v19255_v44 = vld [vmem:[#allocation35_spill] sm:$0xff] }
 0x514   : > { %19250 = vst [vmem:[#allocation86_spill] sm:$0xff] %v17058_v37  ;;  %v7038_v37 = vmul.f32 1.442695, %v6958_v43  ;;  %v6976_v19 = vsub.f32 %v19255_v44, %v6854_v12 }
 0x516   : > { %v6851_v33 = vpop.xlane.xlu0 %6850  ;;  %12633 = vpow2.f32 %v7038_v37  ;;  %v7074_v13 = vmul.f32 1.442695, %v6976_v19  ;;  %v19259_v37 = vld [vmem:[#allocation68_spill] sm:$0xff] }
 0x517   : > { %v6857_v3 = vpop.xlane.xlu1 %6856  ;;  %v6975_v26 = vsub.f32 %v19256_v28, %v6851_v33 }
 0x518   : > { %v6977_v33 = vsub.f32 %v19259_v37, %v6857_v3 }
 0x519   : > { %v7072_v5 = vmul.f32 1.442695, %v6975_v26  ;;  %v17076_v43 = vpop.eup %12629 }
 0x51a   : > { %v6803_v39 = vpop.xlane.xlu0 %6802  ;;  %v17080_v44 = vpop.eup %12631  ;;  %v7076_v3 = vmul.f32 1.442695, %v6977_v33 }
 0x51b   : > { %v17062_v32 = vpop.xlane.xlu1 %6808  ;;  %v6959_v40 = vsub.f32 %v19258_v21, %v6803_v39 }
 0x51c   : > { %v6961_v28 = vsub.f32 %v16313_v1, %v17062_v32 }
 0x51e   : > { %v17065_v17 = vpop.xlane.xlu0 %6898  ;;  %v7044_v32 = vmul.f32 1.442695, %v6961_v28 }
 0x51f   : > { %19253 = vst [vmem:[#allocation87_spill] sm:$0xff] %v17065_v17  ;;  %v6764_v27 = vpop.xlane.xlu1 %6763  ;;  %v6960_v17 = vsub.f32 %v19257_v56, %v6806_v53  ;;  %v7040_v53 = vmul.f32 1.442695, %v6959_v40 }
 0x521   : > { %v7042_v12 = vmul.f32 1.442695, %v6960_v17  ;;  %v7230_v17 = vsel %vm6749_vm2, %v17076_v43, 0.0 }
 0x522   : > { %v6758_v29 = vpop.xlane.xlu0 %6757 }
 0x523   : > { %v6944_v63 = vsub.f32 %v16364_v46, %v6758_v29  ;;  %v17070_v14 = vpop.xlane.xlu1 %6907  ;;  %v7134_v29 = vsel %vm6749_vm2, %v17080_v44, 0.0 }
 0x525   : > { %v7010_v61 = vmul.f32 1.442695, %v6944_v63 }
 0x526   : > { %v6761_v36 = vpop.xlane.xlu0 %6760 }
 0x527   : > { %12635 = vpow2.f32 %v7010_v61  ;;  %v6770_v58 = vpop.xlane.xlu1 %6769  ;;  %v6945_v46 = vsub.f32 %v16396_v2, %v6761_v36  ;;  %v6946_v61 = vsub.f32 %v16345_v50, %v6764_v27  ;;  %v17088_v2 = vpop.eup %12633 }
 0x528   : > { %12637 = vpow2.f32 %v7008_v57  ;;  %v7182_v26 = vsel %vm6749_vm2, %v17088_v2, 0.0 }
 0x529   : > { %12639 = vpow2.f32 %v7074_v13  ;;  %v7012_v39 = vmul.f32 1.442695, %v6945_v46  ;;  %v7014_v57 = vmul.f32 1.442695, %v6946_v61 }
 0x52a   : > { %v17078_v48 = vpop.xlane.xlu0 %6904  ;;  %12641 = vpow2.f32 %v7072_v5 }
 0x52b   : > { %v17082_v19 = vpop.xlane.xlu1 %6865  ;;  %12643 = vpow2.f32 %v7042_v12  ;;  %v6948_v12 = vsub.f32 %v16407_v4, %v6770_v58 }
 0x52c   : > { %12645 = vpow2.f32 %v7040_v53 }
 0x52d   : > { %12647 = vpow2.f32 %v7012_v39  ;;  %v7018_v4 = vmul.f32 1.442695, %v6948_v12 }
 0x52e   : > { %v6860_v36 = vpop.xlane.xlu0 %6859  ;;  %7231 = vadd.xlane.f32.xlu0 %v7230_v17  ;;  %12649 = vpow2.f32 %v7014_v57 }
 0x52f   : > { %7135 = vadd.xlane.f32.xlu1 %v7134_v29  ;;  %v6818_v63 = vpop.xlane.xlu1 %6817  ;;  %v6978_v50 = vsub.f32 %v16460_v59, %v6860_v36  ;;  %12651 = vpow2.f32 %v7076_v3 }
 0x530   : > { %v6964_v58 = vsub.f32 %v16469_v52, %v6818_v63 }
 0x531   : > { %v17093_v27 = vpop.eup %12635  ;;  %v7078_v40 = vmul.f32 1.442695, %v6978_v50 }
 0x532   : > { %v17099_v13 = vpop.eup %12637  ;;  %v6812_v56 = vpop.xlane.xlu0 %6811  ;;  %7183 = vadd.xlane.f32.xlu0 %v7182_v26  ;;  %v7140_v5 = vsel %vm6749_vm2, %v17093_v27, 0.0  ;;  %v7050_v52 = vmul.f32 1.442695, %v6964_v58 }
 0x533   : > { %v17103_v21 = vpop.eup %12639  ;;  %v17105_v59 = vpop.xlane.xlu1 %6913  ;;  %7141 = vadd.xlane.f32.xlu1 %v7140_v5  ;;  %v6962_v1 = vsub.f32 %v16490_v10, %v6812_v56  ;;  %v7137_v46 = vsel %vm6749_vm2, %v17099_v13, 0.0  ;;  %12653 = vpow2.f32 %v7078_v40 }
 0x534   : > { %19260 = vst [vmem:[#allocation160_spill] sm:$0xff] %v17103_v21  ;;  %v17111_v53 = vpop.eup %12641  ;;  %v7236_v37 = vsel %vm6749_vm2, %v17103_v21, 0.0  ;;  %12655 = vpow2.f32 %v7044_v32 }
 0x535   : > { %v17115_v33 = vpop.eup %12643  ;;  %v7046_v10 = vmul.f32 1.442695, %v6962_v1  ;;  %v7233_v36 = vsel %vm6749_vm2, %v17111_v53, 0.0 }
 0x536   : > { %v6767_v61 = vpop.xlane.xlu0 %6766  ;;  %7138 = vadd.xlane.f32.xlu0 %v7137_v46  ;;  %v17121_v29 = vpop.eup %12645  ;;  %v7188_v50 = vsel %vm6749_vm2, %v17115_v33, 0.0 }
 0x537   : > { %v6773_v39 = vpop.xlane.xlu1 %6772  ;;  %7237 = vadd.xlane.f32.xlu1 %v7236_v37  ;;  %v6947_v17 = vsub.f32 %v16522_v51, %v6767_v61  ;;  %v17125_v3 = vpop.eup %12647  ;;  %12657 = vpow2.f32 %v7046_v10  ;;  %v7185_v56 = vsel %vm6749_vm2, %v17121_v29, 0.0 }
 0x538   : > { %12659 = vpow2.f32 %v7018_v4  ;;  %v6949_v63 = vsub.f32 %v16531_v6, %v6773_v39  ;;  %v17131_v5 = vpop.eup %12649  ;;  %v7143_v1 = vsel %vm6749_vm2, %v17125_v3, 0.0 }
 0x539   : > { %v7016_v51 = vmul.f32 1.442695, %v6947_v17  ;;  %v17135_v32 = vpop.eup %12651  ;;  %v7146_v37 = vsel %vm6749_vm2, %v17131_v5, 0.0 }
 0x53a   : > { %v6863_v57 = vpop.xlane.xlu0 %6862  ;;  %7234 = vadd.xlane.f32.xlu0 %v7233_v36  ;;  %19261 = vst [vmem:[#allocation66_spill] sm:$0xff] %v17135_v32  ;;  %v7020_v6 = vmul.f32 1.442695, %v6949_v63  ;;  %v7239_v17 = vsel %vm6749_vm2, %v17135_v32, 0.0 }
 0x53b   : > { %v6869_v28 = vpop.xlane.xlu1 %6868  ;;  %7189 = vadd.xlane.f32.xlu1 %v7188_v50  ;;  %v6979_v26 = vsub.f32 %v16552_v15, %v6863_v57  ;;  %12661 = vpow2.f32 %v7016_v51 }
 0x53c   : > { %12663 = vpow2.f32 %v7050_v52 }
 0x53d   : > { %v7080_v15 = vmul.f32 1.442695, %v6979_v26  ;;  %v17141_v39 = vpop.eup %12653 }
 0x53e   : > { %v6815_v40 = vpop.xlane.xlu0 %6814  ;;  %7186 = vadd.xlane.f32.xlu0 %v7185_v56  ;;  %v17147_v4 = vpop.eup %12655  ;;  %v7242_v57 = vsel %vm6749_vm2, %v17141_v39, 0.0 }
 0x53f   : > { %v6821_v12 = vpop.xlane.xlu1 %6820  ;;  %7144 = vadd.xlane.f32.xlu1 %v7143_v1  ;;  %v6963_v46 = vsub.f32 %v16582_v16, %v6815_v40  ;;  %v6980_v16 = vsub.f32 %v16439_v8, %v17082_v19  ;;  %12665 = vpow2.f32 %v7080_v15  ;;  %v7191_v26 = vsel %vm6749_vm2, %v17147_v4, 0.0 }
 0x540   : > { %v6965_v61 = vsub.f32 %v16591_v30, %v6821_v12  ;;  %12667 = vpow2.f32 %v7020_v6  ;;  %v6981_v19 = vsub.f32 %v16561_v62, %v6869_v28 }
 0x541   : > { %v7048_v30 = vmul.f32 1.442695, %v6963_v46  ;;  %v17155_v50 = vpop.eup %12657  ;;  %v7082_v8 = vmul.f32 1.442695, %v6980_v16 }
 0x542   : > { %v17143_v10 = vpop.xlane.xlu0 %6910  ;;  %7147 = vadd.xlane.f32.xlu0 %v7146_v37  ;;  %v7052_v36 = vmul.f32 1.442695, %v6965_v61  ;;  %v17161_v52 = vpop.eup %12659  ;;  %v7194_v40 = vsel %vm6749_vm2, %v17155_v50, 0.0  ;;  %v7084_v62 = vmul.f32 1.442695, %v6981_v19 }
 0x543   : > { %v17149_v58 = vpop.xlane.xlu1 %6919  ;;  %7240 = vadd.xlane.f32.xlu1 %v7239_v17  ;;  %12669 = vpow2.f32 %v7048_v30  ;;  %v7152_v46 = vsel %vm6749_vm2, %v17161_v52, 0.0 }
 0x544   : > { %12671 = vpow2.f32 %v7052_v36 }
 0x545   : > { %v17167_v1 = vpop.eup %12661  ;;  %12673 = vpow2.f32 %v7082_v8 }
 0x546   : > { %v17157_v51 = vpop.xlane.xlu0 %6916  ;;  %7243 = vadd.xlane.f32.xlu0 %v7242_v57  ;;  %v17171_v6 = vpop.eup %12663  ;;  %v7149_v37 = vsel %vm6749_vm2, %v17167_v1, 0.0 }
 0x547   : > { %v6782_v63 = vpop.xlane.xlu1 %6781  ;;  %7192 = vadd.xlane.f32.xlu1 %v7191_v26  ;;  %v7200_v36 = vsel %vm6749_vm2, %v17171_v6, 0.0 }
 0x548   : > { %v6952_v56 = vsub.f32 %v16653_v49, %v6782_v63 }
 0x549   : > { %v17177_v17 = vpop.eup %12665 }
 0x54a   : > { %v7026_v12 = vmul.f32 1.442695, %v6952_v56  ;;  %7195 = vadd.xlane.f32.xlu0 %v7194_v40  ;;  %v6776_v15 = vpop.xlane.xlu0 %6775  ;;  %19262 = vst [vmem:[#allocation172_spill] sm:$0xff] %v17177_v17  ;;  %v17181_v57 = vpop.eup %12667  ;;  %v7245_v8 = vsel %vm6749_vm2, %v17177_v17, 0.0 }
 0x54b   : > { %v6878_v61 = vpop.xlane.xlu1 %6877  ;;  %7153 = vadd.xlane.f32.xlu1 %v7152_v46  ;;  %v6950_v49 = vsub.f32 %v16674_v25, %v6776_v15 }
 0x54c   : > { %v6984_v28 = vsub.f32 %v16683_v7, %v6878_v61  ;;  %12675 = vpow2.f32 %v7026_v12  ;;  %v7155_v12 = vsel %vm6749_vm2, %v17181_v57, 0.0 }
 0x54d   : > { %12677 = vpow2.f32 %v7084_v62  ;;  %v7022_v25 = vmul.f32 1.442695, %v6950_v49  ;;  %v17187_v19 = vpop.eup %12669 }
 0x54e   : > { %v7090_v16 = vmul.f32 1.442695, %v6984_v28  ;;  %7150 = vadd.xlane.f32.xlu0 %v7149_v37  ;;  %v6872_v30 = vpop.xlane.xlu0 %6871  ;;  %v17191_v15 = vpop.eup %12671 }
 0x54f   : > { %v6830_v26 = vpop.xlane.xlu1 %6829  ;;  %7201 = vadd.xlane.f32.xlu1 %v7200_v36  ;;  %v6982_v7 = vsub.f32 %v16706_v11, %v6872_v30  ;;  %v17198_v62 = vpop.eup %12673  ;;  %v7203_v28 = vsel %vm6749_vm2, %v17191_v15, 0.0 }
 0x550   : > { %v6968_v63 = vsub.f32 %v16715_v45, %v6830_v26  ;;  %12679 = vpow2.f32 %v7090_v16  ;;  %v7197_v45 = vsel %vm6749_vm2, %v17187_v19, 0.0  ;;  %19264 = vst [vmem:[#allocation84_spill] sm:$0xff] %v17198_v62  ;;  %v7248_v26 = vsel %vm6749_vm2, %v17198_v62, 0.0  ;;  %v19292_v62 = vld [vmem:[#allocation79_spill] sm:$0xff] }
 0x551   : > { %12681 = vpow2.f32 %v7022_v25  ;;  %v7086_v11 = vmul.f32 1.442695, %v6982_v7 }
 0x552   : > { %v7058_v56 = vmul.f32 1.442695, %v6968_v63  ;;  %7246 = vadd.xlane.f32.xlu0 %v7245_v8  ;;  %v6824_v40 = vpop.xlane.xlu0 %6823 }
 0x553   : > { %v6966_v46 = vsub.f32 %v16736_v47, %v6824_v40  ;;  %v17194_v61 = vpop.xlane.xlu1 %6925  ;;  %7156 = vadd.xlane.f32.xlu1 %v7155_v12 }
 0x554   : > { %19263 = vst [vmem:[#allocation33_spill] sm:$0xff] %v17194_v61  ;;  %12683 = vpow2.f32 %v7058_v56 }
 0x555   : > { %v7054_v16 = vmul.f32 1.442695, %v6966_v46  ;;  %12685 = vpow2.f32 %v7086_v11 }
 0x556   : > { %7198 = vadd.xlane.f32.xlu0 %v7197_v45  ;;  %v6779_v49 = vpop.xlane.xlu0 %6778  ;;  %v17202_v37 = vpop.eup %12675 }
 0x557   : > { %v6951_v47 = vsub.f32 %v16766_v22, %v6779_v49  ;;  %v6785_v30 = vpop.xlane.xlu1 %6784  ;;  %7204 = vadd.xlane.f32.xlu1 %v7203_v28  ;;  %v17208_v25 = vpop.eup %12677  ;;  %v7164_v8 = vsel %vm6749_vm2, %v17202_v37, 0.0  ;;  %12687 = vpow2.f32 %v7054_v16 }
 0x558   : > { %v6953_v36 = vsub.f32 %v16775_v42, %v6785_v30  ;;  %19265 = vst [vmem:[#allocation89_spill] sm:$0xff] %v17208_v25  ;;  %v7251_v46 = vsel %vm6749_vm2, %v17208_v25, 0.0 }
 0x559   : > { %v7024_v22 = vmul.f32 1.442695, %v6951_v47 }
 0x55a   : > { %v7028_v7 = vmul.f32 1.442695, %v6953_v36  ;;  %7249 = vadd.xlane.f32.xlu0 %v7248_v26  ;;  %v6875_v63 = vpop.xlane.xlu0 %6874  ;;  %v17212_v56 = vpop.eup %12679 }
 0x55b   : > { %19266 = vst [vmem:[#allocation91_spill] sm:$0xff] %v17212_v56  ;;  %v6983_v40 = vsub.f32 %v16796_v54, %v6875_v63  ;;  %v6881_v12 = vpop.xlane.xlu1 %6880  ;;  %7165 = vadd.xlane.f32.xlu1 %v7164_v8  ;;  %v17218_v11 = vpop.eup %12681  ;;  %v7260_v28 = vsel %vm6749_vm2, %v17212_v56, 0.0 }
 0x55c   : > { %12689 = vpow2.f32 %v7028_v7  ;;  %v6985_v42 = vsub.f32 %v16805_v18, %v6881_v12  ;;  %v7158_v36 = vsel %vm6749_vm2, %v17218_v11, 0.0 }
 0x55d   : > { %12691 = vpow2.f32 %v7024_v22  ;;  %v7088_v54 = vmul.f32 1.442695, %v6983_v40 }
 0x55e   : > { %v7092_v45 = vmul.f32 1.442695, %v6985_v42  ;;  %7252 = vadd.xlane.f32.xlu0 %v7251_v46  ;;  %v6827_v49 = vpop.xlane.xlu0 %6826  ;;  %v17222_v16 = vpop.eup %12683 }
 0x55f   : > { %v6833_v47 = vpop.xlane.xlu1 %6832  ;;  %7261 = vadd.xlane.f32.xlu1 %v7260_v28  ;;  %v6967_v18 = vsub.f32 %v16824_v38, %v6827_v49  ;;  %v17228_v26 = vpop.eup %12685  ;;  %v7212_v8 = vsel %vm6749_vm2, %v17222_v16, 0.0 }
 0x560   : > { %12693 = vpow2.f32 %v7092_v45  ;;  %v6969_v30 = vsub.f32 %v16833_v55, %v6833_v47  ;;  %19267 = vst [vmem:[#allocation46_spill] sm:$0xff] %v17228_v26  ;;  %v7254_v55 = vsel %vm6749_vm2, %v17228_v26, 0.0 }
 0x561   : > { %12695 = vpow2.f32 %v7088_v54  ;;  %v7056_v40 = vmul.f32 1.442695, %v6967_v18  ;;  %v17236_v38 = vpop.eup %12687 }
 0x562   : > { %v7060_v7 = vmul.f32 1.442695, %v6969_v30  ;;  %7159 = vadd.xlane.f32.xlu0 %v7158_v36  ;;  %v17230_v63 = vpop.xlane.xlu0 %6922  ;;  %v7206_v28 = vsel %vm6749_vm2, %v17236_v38, 0.0 }
 0x563   : > { %v17234_v22 = vpop.xlane.xlu1 %6931  ;;  %7213 = vadd.xlane.f32.xlu1 %v7212_v8 }
 0x564   : > { %19268 = vst [vmem:[#allocation106_spill] sm:$0xff] %v17234_v22  ;;  %12697 = vpow2.f32 %v7060_v7 }
 0x565   : > { %12699 = vpow2.f32 %v7056_v40 }
 0x566   : > { %v17240_v12 = vpop.eup %12689  ;;  %7255 = vadd.xlane.f32.xlu0 %v7254_v55  ;;  %v17242_v42 = vpop.xlane.xlu0 %6928 }
 0x567   : > { %19269 = vst [vmem:[#allocation88_spill] sm:$0xff] %v17242_v42  ;;  %v6794_v46 = vpop.xlane.xlu1 %6793  ;;  %v7167_v45 = vsel %vm6749_vm2, %v17240_v12, 0.0  ;;  %v17246_v49 = vpop.eup %12691 }
 0x568   : > { %7168 = vadd.xlane.f32.xlu1 %v7167_v45  ;;  %v7161_v40 = vsel %vm6749_vm2, %v17246_v49, 0.0 }
 0x56a   : > { %v17250_v54 = vpop.eup %12693  ;;  %7207 = vadd.xlane.f32.xlu0 %v7206_v28  ;;  %v6788_v47 = vpop.xlane.xlu0 %6787 }
 0x56b   : > { %19270 = vst [vmem:[#allocation42_spill] sm:$0xff] %v17250_v54  ;;  %v6954_v18 = vsub.f32 %v16909_v24, %v6788_v47  ;;  %v17253_v30 = vpop.xlane.xlu1 %6889  ;;  %v7263_v36 = vsel %vm6749_vm2, %v17250_v54, 0.0  ;;  %v17257_v7 = vpop.eup %12695 }
 0x56c   : > { %7264 = vadd.xlane.f32.xlu1 %v7263_v36  ;;  %19271 = vst [vmem:[#allocation50_spill] sm:$0xff] %v17257_v7  ;;  %v7257_v36 = vsel %vm6749_vm2, %v17257_v7, 0.0 }
 0x56d   : > { %v7030_v8 = vmul.f32 1.442695, %v6954_v18 }
 0x56e   : > { %v17261_v55 = vpop.eup %12697  ;;  %7162 = vadd.xlane.f32.xlu0 %v7161_v40  ;;  %v6884_v45 = vpop.xlane.xlu0 %6883 }
 0x56f   : > { %12701 = vpow2.f32 %v7030_v8  ;;  %v6986_v28 = vsub.f32 %v16936_v41, %v6884_v45  ;;  %v6842_v24 = vpop.xlane.xlu1 %6841  ;;  %v7215_v47 = vsel %vm6749_vm2, %v17261_v55, 0.0  ;;  %v17268_v18 = vpop.eup %12699 }
 0x570   : > { %7216 = vadd.xlane.f32.xlu1 %v7215_v47  ;;  %v7209_v41 = vsel %vm6749_vm2, %v17268_v18, 0.0 }
 0x571   : > { %v7094_v54 = vmul.f32 1.442695, %v6986_v28 }
 0x572   : > { %7258 = vadd.xlane.f32.xlu0 %v7257_v36  ;;  %v6836_v56 = vpop.xlane.xlu0 %6835  ;;  %v6956_v36 = vsub.f32 %v16891_v20, %v6794_v46 }
 0x573   : > { %12703 = vpow2.f32 %v7094_v54  ;;  %v6970_v40 = vsub.f32 %v16963_v34, %v6836_v56  ;;  %v17271_v25 = vpop.xlane.xlu1 %6937 }
 0x574   : > { %19272 = vst [vmem:[#allocation177_spill] sm:$0xff] %v17271_v25 }
 0x575   : > { %v7062_v8 = vmul.f32 1.442695, %v6970_v40 }
 0x576   : > { %7210 = vadd.xlane.f32.xlu0 %v7209_v41  ;;  %v6791_v45 = vpop.xlane.xlu0 %6790 }
 0x577   : > { %12705 = vpow2.f32 %v7062_v8  ;;  %v6955_v28 = vsub.f32 %v16990_v9, %v6791_v45  ;;  %v6797_v47 = vpop.xlane.xlu1 %6796  ;;  %v7034_v8 = vmul.f32 1.442695, %v6956_v36  ;;  %v6972_v9 = vsub.f32 %v16945_v35, %v6842_v24 }
 0x579   : > { %v17276_v7 = vpop.eup %12701  ;;  %v7032_v22 = vmul.f32 1.442695, %v6955_v28 }
 0x57a   : > { %v6887_v54 = vpop.xlane.xlu0 %6886  ;;  %v7170_v34 = vsel %vm6749_vm2, %v17276_v7, 0.0 }
 0x57b   : > { %12707 = vpow2.f32 %v7032_v22  ;;  %v6987_v56 = vsub.f32 %v17008_v31, %v6887_v54  ;;  %7171 = vadd.xlane.f32.xlu0 %v7170_v34  ;;  %v6893_v40 = vpop.xlane.xlu1 %6892  ;;  %v7066_v31 = vmul.f32 1.442695, %v6972_v9  ;;  %v6957_v22 = vsub.f32 %v16999_v0, %v6797_v47  ;;  %v19275_v0 = vld [vmem:[#allocation83_spill] sm:$0xff] }
 0x57c   : > { %v6988_v47 = vsub.f32 %v19275_v0, %v17253_v30 }
 0x57d   : > { %v17282_v41 = vpop.eup %12703  ;;  %v7096_v45 = vmul.f32 1.442695, %v6987_v56  ;;  %v7036_v36 = vmul.f32 1.442695, %v6957_v22 }
 0x57e   : > { %19273 = vst [vmem:[#allocation165_spill] sm:$0xff] %v17282_v41  ;;  %v6839_v25 = vpop.xlane.xlu0 %6838  ;;  %v7266_v20 = vsel %vm6749_vm2, %v17282_v41, 0.0 }
 0x57f   : > { %12709 = vpow2.f32 %v7096_v45  ;;  %v6971_v46 = vsub.f32 %v17022_v23, %v6839_v25  ;;  %7267 = vadd.xlane.f32.xlu0 %v7266_v20  ;;  %v6845_v34 = vpop.xlane.xlu1 %6844 }
 0x580   : > { %12711 = vpow2.f32 %v7034_v8  ;;  %v6973_v23 = vsub.f32 %v17029_v60, %v6845_v34  ;;  %v7098_v60 = vmul.f32 1.442695, %v6988_v47  ;;  %v19277_v34 = vld [vmem:[#allocation87_spill] sm:$0xff] }
 0x581   : > { %v17288_v28 = vpop.eup %12705  ;;  %v7064_v54 = vmul.f32 1.442695, %v6971_v46  ;;  %v19276_v46 = vld [vmem:[#allocation85_spill] sm:$0xff] }
 0x582   : > { %v7218_v35 = vsel %vm6749_vm2, %v17288_v28, 0.0  ;;  %v7068_v8 = vmul.f32 1.442695, %v6973_v23 }
 0x583   : > { %12713 = vpow2.f32 %v7064_v54  ;;  %7219 = vadd.xlane.f32.xlu0 %v7218_v35  ;;  %v19278_v35 = vld [vmem:[#allocation78_spill] sm:$0xff] }
 0x584   : > { %12715 = vpow2.f32 %v7066_v31  ;;  %v6989_v31 = vsub.f32 %v19276_v46, %v6893_v40 }
 0x585   : > { %v17293_v24 = vpop.eup %12707  ;;  %12717 = vpow2.f32 %v7036_v36  ;;  %v6991_v36 = vsub.f32 %v19278_v35, %v19277_v34  ;;  %v19283_v34 = vld [vmem:[#allocation22_spill] sm:$0xff] }
 0x586   : > { %v7173_v25 = vsel %vm6749_vm2, %v17293_v24, 0.0  ;;  %12719 = vpow2.f32 %v7068_v8  ;;  %v7100_v23 = vmul.f32 1.442695, %v6989_v31 }
 0x587   : > { %7174 = vadd.xlane.f32.xlu0 %v7173_v25  ;;  %12721 = vpow2.f32 %v7098_v60  ;;  %v7104_v0 = vmul.f32 1.442695, %v6991_v36  ;;  %v17341_v36 = vpop.xlane.xlu0 %6934 }
 0x588   : > { %12723 = vpow2.f32 %v7100_v23  ;;  %19284 = vst [vmem:[#allocation182_spill] sm:$0xff] %v17341_v36  ;;  %v17343_v23 = vpop.permute.xlu1 %12390 }
 0x589   : > { %v17298_v56 = vpop.eup %12709  ;;  %12725 = vpow2.f32 %v7104_v0  ;;  %v19286_v0 = vld [vmem:[#allocation19_spill] sm:$0xff] }
 0x58a   : > { %19274 = vst [vmem:[#allocation77_spill] sm:$0xff] %v17298_v56  ;;  %v7269_v9 = vsel %vm6749_vm2, %v17298_v56, 0.0  ;;  %v17304_v45 = vpop.eup %12711 }
 0x58b   : > { %7270 = vadd.xlane.f32.xlu1 %v7269_v9  ;;  %v7176_v22 = vsel %vm6749_vm2, %v17304_v45, 0.0 }
 0x58d   : > { %v17306_v20 = vpop.eup %12713 }
 0x58e   : > { %v7221_v30 = vsel %vm6749_vm2, %v17306_v20, 0.0  ;;  %v17313_v54 = vpop.eup %12715 }
 0x58f   : > { %7177 = vadd.xlane.f32.xlu1 %v7176_v22  ;;  %7222 = vadd.xlane.f32.xlu0 %v7221_v30  ;;  %v7224_v25 = vsel %vm6749_vm2, %v17313_v54, 0.0  ;;  %v17319_v40 = vpop.eup %12717 }
 0x590   : > { %v7179_v47 = vsel %vm6749_vm2, %v17319_v40, 0.0  ;;  %v17323_v8 = vpop.eup %12719 }
 0x591   : > { %19279 = vst [vmem:[#allocation90_spill] sm:$0xff] %v17323_v8  ;;  %v7227_v9 = vsel %vm6749_vm2, %v17323_v8, 0.0  ;;  %v17327_v60 = vpop.eup %12721 }
 0x592   : > { %19280 = vst [vmem:[#allocation48_spill] sm:$0xff] %v17327_v60  ;;  %v7272_v46 = vsel %vm6749_vm2, %v17327_v60, 0.0  ;;  %v17331_v31 = vpop.eup %12723 }
 0x593   : > { %7225 = vadd.xlane.f32.xlu1 %v7224_v25  ;;  %19281 = vst [vmem:[#allocation73_spill] sm:$0xff] %v17331_v31  ;;  %v7275_v22 = vsel %vm6749_vm2, %v17331_v31, 0.0  ;;  %v17335_v30 = vpop.eup %12725  ;;  %v19285_v25 = vld [vmem:[#allocation57_spill] sm:$0xff]  ;;  %v17349_v31 = vpop.permute.xlu1 %12395 }
 0x594   : > { %19282 = vst [vmem:[#allocation40_spill] sm:$0xff] %v17335_v30  ;;  %v7281_v35 = vsel %vm6749_vm2, %v17335_v30, 0.0  ;;  %v19288_v30 = vld [vmem:[#allocation26_spill] sm:$0xff] }
 0x597   : > { %7180 = vadd.xlane.f32.xlu1 %v7179_v47  ;;  %v6990_v47 = vsub.f32 %v19286_v0, %v19285_v25  ;;  %v17353_v60 = vpop.permute.xlu1 %12405 }
 0x59b   : > { %7228 = vadd.xlane.f32.xlu1 %v7227_v9  ;;  %v17347_v9 = vpop.xlane.xlu0 %6940 }
 0x59c   : > { %19287 = vst [vmem:[#allocation92_spill] sm:$0xff] %v17347_v9  ;;  %v19291_v9 = vld [vmem:[#allocation86_spill] sm:$0xff] }
 0x59d   : > { %v6992_v32 = vsub.f32 %v19292_v62, %v19291_v9 }
 0x59f   : > { %7273 = vadd.xlane.f32.xlu1 %v7272_v46  ;;  %v7102_v46 = vmul.f32 1.442695, %v6990_v47  ;;  %v7106_v61 = vmul.f32 1.442695, %v6992_v32  ;;  %v19295_v32 = vld [vmem:[#allocation25_spill] sm:$0xff] }
 0x5a1   : > { %12727 = vpow2.f32 %v7102_v46 }
 0x5a3   : > { %7276 = vadd.xlane.f32.xlu1 %v7275_v22  ;;  %v17351_v22 = vpop.permute.xlu0 %12400 }
 0x5a5   : > { %12410 = vrot.lane.b32.xlu0 %v19283_v34, %s13086_s21 }
 0x5a7   : > { %7282 = vadd.xlane.f32.xlu1 %v7281_v35 }
 0x5ab   : > { %v17361_v25 = vpop.eup %12727 }
 0x5ac   : > { %19289 = vst [vmem:[#allocation98_spill] sm:$0xff] %v17361_v25  ;;  %v7278_v46 = vsel %vm6749_vm2, %v17361_v25, 0.0 }
 0x5b8   : > { %12420 = vrot.lane.b32.xlu1 %v19288_v30, %s13086_s21  ;;  %v19299_v30 = vld [vmem:[#allocation27_spill] sm:$0xff] }
 0x5bb   : > { %v17357_v35 = vpop.xlane.xlu0 %7231 }
 0x5bc   : > { %v7136_v56 = vpop.xlane.xlu1 %7135 }
 0x5bd   : > { %12729 = vrcp.f32 %v7136_v56 }
 0x5bf   : > { %v17359_v36 = vpop.xlane.xlu0 %7183 }
 0x5c0   : > { %v7142_v0 = vpop.xlane.xlu1 %7141 }
 0x5c1   : > { %12731 = vrcp.f32 %v7142_v0 }
 0x5c3   : > { %v7139_v47 = vpop.xlane.xlu0 %7138 }
 0x5c4   : > { %12733 = vrcp.f32 %v7139_v47  ;;  %v17365_v41 = vpop.xlane.xlu1 %7237  ;;  %7279 = vadd.xlane.f32.xlu0 %v7278_v46 }
 0x5c5   : > { %19290 = vst [vmem:[#allocation72_spill] sm:$0xff] %v17365_v41 }
 0x5c7   : > { %v12730_v42 = vpop.eup %12729  ;;  %v17369_v26 = vpop.xlane.xlu0 %7234 }
 0x5c8   : > { %v17371_v56 = vpop.xlane.xlu1 %7189  ;;  %v7327_v17 = vmul.f32 %v12730_v42, %v17080_v44  ;;  %v19294_v44 = vld [vmem:[#allocation21_spill] sm:$0xff] }
 0x5ca   : > { %11404 = vmatprep.mubr.msk.f32.mxu0 %vm6749_vm2, %v7327_v17 }
 0x5cb   : > { %v12732_v0 = vpop.eup %12731  ;;  %v17375_v21 = vpop.xlane.xlu0 %7186 }
 0x5cc   : > { %v7145_v47 = vpop.xlane.xlu1 %7144  ;;  %v7331_v25 = vmul.f32 %v12732_v0, %v17093_v27 }
 0x5cd   : > { %12735 = vrcp.f32 %v7145_v47 }
 0x5ce   : > { %v12734_v46 = vpop.eup %12733  ;;  %12737 = vpow2.f32 %v7106_v61  ;;  %11411 = vmatprep.mubr.msk.f32.mxu1 %vm6749_vm2, %v7331_v25 }
 0x5cf   : > { %v7148_v62 = vpop.xlane.xlu0 %7147  ;;  %v7329_v9 = vmul.f32 %v12734_v46, %v17099_v13  ;;  %v19297_v46 = vld [vmem:[#allocation24_spill] sm:$0xff] }
 0x5d0   : > { %12739 = vrcp.f32 %v7148_v62  ;;  %v17380_v8 = vpop.xlane.xlu1 %7240  ;;  %v19298_v62 = vld [vmem:[#allocation23_spill] sm:$0xff] }
 0x5d1   : > { %19293 = vst [vmem:[#allocation43_spill] sm:$0xff] %v17380_v8  ;;  %11405 = vmatmul.mubr.msk.f32.vlgmr.msra.gmra.mrb[76].mxu0 %vm6749_vm2, %v7329_v9 }
 0x5d2   : > { %12011 = vmatpush3.bf16.msra.mxu0 %v19294_v44 }
 0x5d3   : > { %12017 = vmatprep.subr.bf16.mxu0 %v19295_v32  ;;  %v17385_v17 = vpop.xlane.xlu0 %7243 }
 0x5d4   : > { %v17387_v27 = vpop.xlane.xlu1 %7192 }
 0x5d7   : > { %v12736_v42 = vpop.eup %12735  ;;  %v17389_v61 = vpop.xlane.xlu0 %7195 }
 0x5d8   : > { %v17391_v25 = vpop.eup %12737  ;;  %v7154_v0 = vpop.xlane.xlu1 %7153  ;;  %v7333_v13 = vmul.f32 %v12736_v42, %v17125_v3 }
 0x5d9   : > { %19296 = vst [vmem:[#allocation34_spill] sm:$0xff] %v17391_v25  ;;  %12741 = vrcp.f32 %v7154_v0  ;;  %v7284_v44 = vsel %vm6749_vm2, %v17391_v25, 0.0 }
 0x5da   : > { %v12740_v47 = vpop.eup %12739  ;;  %11412 = vmatmul.mubr.msk.f32.vlgmr.msra.gmra.mrb[100].mxu1 %vm6749_vm2, %v7333_v13  ;;  %12415 = vrot.lane.b32.xlu0 %v19297_v46, %s13086_s21  ;;  %v19301_v13 = vld [vmem:[#allocation161_spill] sm:$0xff] }
 0x5db   : > { %12015 = vmatpush3.bf16.msra.mxu1 %v19298_v62  ;;  %v7151_v9 = vpop.xlane.xlu0 %7150  ;;  %v7335_v8 = vmul.f32 %v12740_v47, %v17131_v5  ;;  %v6993_v62 = vsub.f32 %v19301_v13, %v17078_v48 }
 0x5dc   : > { %12021 = vmatprep.subr.bf16.mxu1 %v19299_v30  ;;  %12743 = vrcp.f32 %v7151_v9  ;;  %v17402_v41 = vpop.xlane.xlu1 %7201  ;;  %7285 = vadd.xlane.f32.xlu1 %v7284_v44 }
 0x5dd   : > { %11418 = vmatprep.mubr.msk.f32.mxu0 %vm6749_vm2, %v7335_v8  ;;  %v7108_v9 = vmul.f32 1.442695, %v6993_v62  ;;  %v19307_v62 = vld [vmem:[#allocation30_spill] sm:$0xff] }
 0x5df   : > { %v17405_v3 = vpop.xlane.xlu0 %7246 }
 0x5e0   : > { %19300 = vst [vmem:[#allocation96_spill] sm:$0xff] %v17405_v3  ;;  %v7157_v42 = vpop.xlane.xlu1 %7156 }
 0x5e1   : > { %12745 = vrcp.f32 %v7157_v42  ;;  %v19303_v42 = vld [vmem:[#allocation29_spill] sm:$0xff] }
 0x5e3   : > { %v12742_v0 = vpop.eup %12741  ;;  %v17409_v46 = vpop.xlane.xlu0 %7198 }
 0x5e4   : > { %v17411_v25 = vpop.xlane.xlu1 %7204  ;;  %v7339_v5 = vmul.f32 %v12742_v0, %v17161_v52 }
 0x5e6   : > { %v12744_v47 = vpop.eup %12743  ;;  %11425 = vmatprep.mubr.msk.f32.mxu1 %vm6749_vm2, %v7339_v5 }
 0x5e7   : > { %v7337_v8 = vmul.f32 %v12744_v47, %v17167_v1  ;;  %v17416_v44 = vpop.xlane.xlu0 %7249  ;;  %v19306_v1 = vld [vmem:[#allocation15_spill] sm:$0xff] }
 0x5e8   : > { %19302 = vst [vmem:[#allocation101_spill] sm:$0xff] %v17416_v44  ;;  %v7166_v3 = vpop.xlane.xlu1 %7165 }
 0x5e9   : > { %12747 = vrcp.f32 %v7166_v3  ;;  %11419 = vmatmul.mubr.msk.f32.vlgmr.msra.gmra.mrb[78].mxu0 %vm6749_vm2, %v7337_v8 }
 0x5ea   : > { %12019 = vmatpush3.bf16.msra.mxu0 %v19295_v32  ;;  %12749 = vpow2.f32 %v7108_v9 }
 0x5eb   : > { %v12746_v48 = vpop.eup %12745  ;;  %12025 = vmatprep.subr.bf16.mxu0 %v19303_v42  ;;  %v17421_v13 = vpop.xlane.xlu0 %7252 }
 0x5ec   : > { %19304 = vst [vmem:[#allocation187_spill] sm:$0xff] %v17421_v13  ;;  %v7341_v52 = vmul.f32 %v12746_v48, %v17181_v57  ;;  %v17424_v0 = vpop.xlane.xlu1 %7261 }
 0x5ed   : > { %19305 = vst [vmem:[#allocation49_spill] sm:$0xff] %v17424_v0  ;;  %12430 = vrot.lane.b32.xlu1 %v19306_v1, %s13087_s23 }
 0x5ee   : > { %11426 = vmatmul.mubr.msk.f32.vlgmr.msra.gmra.mrb[102].mxu1 %vm6749_vm2, %v7341_v52 }
 0x5ef   : > { %12023 = vmatpush3.bf16.msra.mxu1 %v19299_v30  ;;  %v7160_v3 = vpop.xlane.xlu0 %7159 }
 0x5f0   : > { %12029 = vmatprep.subr.bf16.mxu1 %v19307_v62  ;;  %12751 = vrcp.f32 %v7160_v3  ;;  %v17431_v32 = vpop.xlane.xlu1 %7213  ;;  %v19308_v3 = vld [vmem:[#allocation81_spill] sm:$0xff] }
 0x5f1   : > { %v6994_v0 = vsub.f32 %v19308_v3, %v17070_v14 }
 0x5f3   : > { %v12748_v5 = vpop.eup %12747  ;;  %v17433_v47 = vpop.xlane.xlu0 %7255 }
 0x5f4   : > { %v7347_v57 = vmul.f32 %v12748_v5, %v17202_v37  ;;  %v17436_v9 = vpop.eup %12749  ;;  %v7110_v37 = vmul.f32 1.442695, %v6994_v0  ;;  %v12398_v5 = vunpack.i.h.bf16 %v17349_v31 }
 0x5f5   : > { %v7169_v8 = vpop.xlane.xlu1 %7168  ;;  %v7287_v30 = vsel %vm6749_vm2, %v17436_v9, 0.0 }
 0x5f6   : > { %12753 = vrcp.f32 %v7169_v8  ;;  %11439 = vmatprep.mubr.msk.f32.mxu1 %vm6749_vm2, %v7347_v57  ;;  %v12397_v57 = vunpack.i.l.bf16 %v17349_v31 }
 0x5f7   : > { %v7208_v48 = vpop.xlane.xlu0 %7207 }
 0x5f8   : > { %v17451_v3 = vpack.c.bf16 %v12398_v5, %v12397_v57 }
 0x5f9   : > { %7288 = vadd.xlane.f32.xlu0 %v7287_v30 }
 0x5fa   : > { %v12752_v52 = vpop.eup %12751 }
 0x5fb   : > { %v7163_v13 = vpop.xlane.xlu0 %7162  ;;  %v7343_v1 = vmul.f32 %v12752_v52, %v17218_v11  ;;  %v12393_v11 = vunpack.i.h.bf16 %v17343_v23  ;;  %v17464_v52 = vpop.xlane.xlu1 %7264 }
 0x5fc   : > { %12755 = vrcp.f32 %v7163_v13  ;;  %v12392_v13 = vunpack.i.l.bf16 %v17343_v23  ;;  %v19309_v23 = vld [vmem:[#allocation28_spill] sm:$0xff] }
 0x5fd   : > { %11432 = vmatprep.mubr.msk.f32.mxu0 %vm6749_vm2, %v7343_v1  ;;  %12757 = vpow2.f32 %v7110_v37 }
 0x5ff   : > { %v17447_v8 = vpop.xlane.xlu0 %7258  ;;  %v17471_v57 = vpop.xlane.xlu1 %7216 }
 0x600   : > { %v12754_v44 = vpop.eup %12753 }
 0x601   : > { %v7349_v30 = vmul.f32 %v12754_v44, %v17240_v12  ;;  %v12032_v12 = vpack.c.bf16 %v12393_v11, %v12392_v13  ;;  %v19310_v11 = vld [vmem:[#allocation173_spill] sm:$0xff] }
 0x602   : > { %v6995_v13 = vsub.f32 %v19310_v11, %v17143_v10  ;;  %v12403_v10 = vunpack.i.h.bf16 %v17351_v22 }
 0x603   : > { %11440 = vmatmul.mubr.msk.f32.vlgmr.msra.gmra.mrb[104].mxu1 %vm6749_vm2, %v7349_v30  ;;  %v7211_v14 = vpop.xlane.xlu0 %7210 }
 0x604   : > { %12031 = vmatpush3.bf16.msra.mxu1 %v19307_v62 }
 0x605   : > { %12037 = vmatprep.subr.bf16.mxu1 %v17451_v3 }
 0x606   : > { %v12756_v31 = vpop.eup %12755 }
 0x607   : > { %v7345_v0 = vmul.f32 %v12756_v31, %v17246_v49  ;;  %v17462_v62 = vpop.eup %12757 }
 0x608   : > { %v7172_v1 = vpop.xlane.xlu0 %7171  ;;  %v7290_v49 = vsel %vm6749_vm2, %v17462_v62, 0.0 }
 0x609   : > { %12759 = vrcp.f32 %v7172_v1  ;;  %11433 = vmatmul.mubr.msk.f32.vlgmr.msra.gmra.mrb[80].mxu0 %vm6749_vm2, %v7345_v0  ;;  %v7112_v0 = vmul.f32 1.442695, %v6995_v13 }
 0x60a   : > { %12027 = vmatpush3.bf16.msra.mxu0 %v19303_v42  ;;  %12761 = vrcp.f32 %v17359_v36 }
 0x60b   : > { %12033 = vmatprep.subr.bf16.mxu0 %v12032_v12 }
 0x60c   : > { %v17460_v44 = vpop.xlane.xlu0 %7267 }
 0x60f   : > { %12425 = vrot.lane.b32.xlu0 %v19309_v23, %s13086_s21 }
 0x610   : > { %v7220_v37 = vpop.xlane.xlu0 %7219 }
 0x611   : > { %7291 = vadd.xlane.f32.xlu1 %v7290_v49  ;;  %v12402_v49 = vunpack.i.l.bf16 %v17351_v22 }
 0x613   : > { %v12760_v5 = vpop.eup %12759  ;;  %v12040_v22 = vpack.c.bf16 %v12403_v10, %v12402_v49 }
 0x614   : > { %v7175_v42 = vpop.xlane.xlu0 %7174  ;;  %v7351_v30 = vmul.f32 %v12760_v5, %v17276_v7  ;;  %v12762_v7 = vpop.eup %12761 }
 0x615   : > { %12763 = vrcp.f32 %v7175_v42 }
 0x616   : > { %11446 = vmatprep.mubr.msk.f32.mxu0 %vm6749_vm2, %v7351_v30  ;;  %12765 = vrcp.f32 %v17375_v21 }
 0x617   : > { %12767 = vrcp.f32 %v17389_v61 }
 0x618   : > { %v17479_v31 = vpop.xlane.xlu1 %7270  ;;  %12769 = vrcp.f32 %v17409_v46 }
 0x619   : > { %12771 = vrcp.f32 %v7208_v48  ;;  %v7359_v48 = vmul.f32 %v12762_v7, %v17088_v2 }
 0x61c   : > { %v7178_v36 = vpop.xlane.xlu1 %7177  ;;  %v17482_v1 = vpop.xlane.xlu0 %7222 }
 0x61d   : > { %12773 = vrcp.f32 %v7178_v36 }
 0x61e   : > { %12775 = vpow2.f32 %v7112_v0  ;;  %v19311_v0 = vld [vmem:[#allocation18_spill] sm:$0xff] }
 0x61f   : > { %v12764_v5 = vpop.eup %12763  ;;  %12777 = vrcp.f32 %v7211_v14 }
 0x620   : > { %12779 = vrcp.f32 %v7220_v37  ;;  %v7353_v21 = vmul.f32 %v12764_v5, %v17293_v24  ;;  %v17487_v61 = vpop.xlane.xlu1 %7225  ;;  %v12411_v42 = vpop.permute.xlu0 %12410 }
 0x621   : > { %v12766_v46 = vpop.eup %12765  ;;  %v12413_v11 = vunpack.i.h.bf16 %v12411_v42  ;;  %v12412_v13 = vunpack.i.l.bf16 %v12411_v42  ;;  %12781 = vrcp.f32 %v17371_v56  ;;  %v12408_v42 = vunpack.i.h.bf16 %v17353_v60 }
 0x622   : > { %v12768_v30 = vpop.eup %12767  ;;  %12440 = vrot.lane.b32.xlu1 %v19311_v0, %s13087_s23  ;;  %11447 = vmatmul.mubr.msk.f32.vlgmr.msra.gmra.mrb[82].mxu0 %vm6749_vm2, %v7353_v21  ;;  %v7361_v14 = vmul.f32 %v12766_v46, %v17121_v29  ;;  %v12407_v46 = vunpack.i.l.bf16 %v17353_v60 }
 0x623   : > { %12035 = vmatpush3.bf16.msra.mxu0 %v12032_v12  ;;  %11460 = vmatprep.mubr.msk.f32.mxu0 %vm6749_vm2, %v7359_v48  ;;  %v12770_v37 = vpop.eup %12769  ;;  %v7367_v2 = vmul.f32 %v12768_v30, %v17155_v50  ;;  %v12048_v7 = vpack.c.bf16 %v12413_v11, %v12412_v13 }
 0x624   : > { %12041 = vmatprep.subr.bf16.mxu0 %v12040_v22  ;;  %v7181_v24 = vpop.xlane.xlu1 %7180  ;;  %v12772_v36 = vpop.eup %12771  ;;  %v7369_v29 = vmul.f32 %v12770_v37, %v17187_v19  ;;  %v12044_v60 = vpack.c.bf16 %v12408_v42, %v12407_v46  ;;  %v19315_v46 = vld [vmem:[#allocation82_spill] sm:$0xff] }
 0x625   : > { %12783 = vrcp.f32 %v7181_v24  ;;  %v7375_v49 = vmul.f32 %v12772_v36, %v17236_v38 }
 0x626   : > { %11461 = vmatmul.mubr.msk.f32.vlgmr.msra.gmra.mrb[84].mxu0 %vm6749_vm2, %v7361_v14  ;;  %12785 = vrcp.f32 %v17387_v27 }
 0x627   : > { %v12774_v5 = vpop.eup %12773  ;;  %12043 = vmatpush3.bf16.msra.mxu0 %v12040_v22  ;;  %11474 = vmatprep.mubr.msk.f32.mxu0 %vm6749_vm2, %v7367_v2  ;;  %12787 = vrcp.f32 %v17402_v41 }
 0x628   : > { %v17500_v12 = vpop.eup %12775  ;;  %12049 = vmatprep.subr.bf16.mxu0 %v12048_v7  ;;  %v17504_v56 = vpop.xlane.xlu1 %7228  ;;  %v7355_v50 = vmul.f32 %v12774_v5, %v17304_v45  ;;  %12789 = vrcp.f32 %v17411_v25 }
 0x629   : > { %v12778_v10 = vpop.eup %12777  ;;  %12791 = vrcp.f32 %v17431_v32  ;;  %v7293_v45 = vsel %vm6749_vm2, %v17500_v12, 0.0 }
 0x62a   : > { %v12780_v21 = vpop.eup %12779  ;;  %11453 = vmatprep.mubr.msk.f32.mxu1 %vm6749_vm2, %v7355_v50  ;;  %11475 = vmatmul.mubr.msk.f32.vlgmr.msra.gmra.mrb[86].mxu0 %vm6749_vm2, %v7369_v29  ;;  %v7377_v19 = vmul.f32 %v12778_v10, %v17268_v18  ;;  %v19312_v18 = vld [vmem:[#allocation38_spill] sm:$0xff]  ;;  %12793 = vrcp.f32 %v17482_v1  ;;  %v19314_v50 = vld [vmem:[#allocation55_spill] sm:$0xff] }
 0x62b   : > { %12051 = vmatpush3.bf16.msra.mxu0 %v12048_v7  ;;  %11488 = vmatprep.mubr.msk.f32.mxu0 %vm6749_vm2, %v7375_v49  ;;  %v7383_v38 = vmul.f32 %v12780_v21, %v17288_v28  ;;  %v12782_v27 = vpop.eup %12781  ;;  %v6996_v32 = vsub.f32 %v19312_v18, %v17105_v59  ;;  %12795 = vrcp.f32 %v17357_v35  ;;  %v6997_v10 = vsub.f32 %v19314_v50, %v17157_v51  ;;  %v19323_v50 = vld [vmem:[#allocation47_spill] sm:$0xff] }
 0x62c   : > { %v17514_v41 = vpop.xlane.xlu1 %7273  ;;  %v7363_v28 = vmul.f32 %v12782_v27, %v17115_v33 }
 0x62d   : > { %v7114_v59 = vmul.f32 1.442695, %v6996_v32 }
 0x62e   : > { %7294 = vadd.xlane.f32.xlu0 %v7293_v45  ;;  %11489 = vmatmul.mubr.msk.f32.vlgmr.msra.gmra.mrb[88].mxu0 %vm6749_vm2, %v7377_v19 }
 0x62f   : > { %v12784_v25 = vpop.eup %12783  ;;  %11502 = vmatprep.mubr.msk.f32.mxu0 %vm6749_vm2, %v7383_v38  ;;  %12797 = vpow2.f32 %v7114_v59 }
 0x630   : > { %v7357_v48 = vmul.f32 %v12784_v25, %v17319_v40  ;;  %v17526_v30 = vpop.xlane.xlu1 %7276  ;;  %v12786_v11 = vpop.eup %12785  ;;  %12799 = vrcp.f32 %v17471_v57  ;;  %v6998_v25 = vsub.f32 %v19315_v46, %v17149_v58 }
 0x631   : > { %v12788_v13 = vpop.eup %12787  ;;  %v7365_v40 = vmul.f32 %v12786_v11, %v17147_v4  ;;  %12801 = vrcp.f32 %v17487_v61 }
 0x632   : > { %11454 = vmatmul.mubr.msk.f32.vlgmr.msra.gmra.mrb[106].mxu1 %vm6749_vm2, %v7357_v48  ;;  %v12790_v24 = vpop.eup %12789  ;;  %v7371_v33 = vmul.f32 %v12788_v13, %v17171_v6 }
 0x633   : > { %12039 = vmatpush3.bf16.msra.mxu1 %v17451_v3  ;;  %11467 = vmatprep.mubr.msk.f32.mxu1 %vm6749_vm2, %v7363_v28  ;;  %v12792_v14 = vpop.eup %12791  ;;  %v7373_v35 = vmul.f32 %v12790_v24, %v17191_v15 }
 0x634   : > { %12045 = vmatprep.subr.bf16.mxu1 %v12044_v60  ;;  %v17535_v22 = vpop.xlane.xlu1 %7282  ;;  %v7379_v4 = vmul.f32 %v12792_v14, %v17222_v16  ;;  %v12794_v6 = vpop.eup %12793  ;;  %v19313_v16 = vld [vmem:[#allocation17_spill] sm:$0xff] }
 0x635   : > { %v12796_v36 = vpop.eup %12795  ;;  %v7385_v7 = vmul.f32 %v12794_v6, %v17306_v20 }
 0x636   : > { %11468 = vmatmul.mubr.msk.f32.vlgmr.msra.gmra.mrb[108].mxu1 %vm6749_vm2, %v7365_v40  ;;  %v7391_v5 = vmul.f32 %v12796_v36, %v17076_v43  ;;  %v7116_v43 = vmul.f32 1.442695, %v6997_v10  ;;  %v19317_v40 = vld [vmem:[#allocation94_spill] sm:$0xff] }
 0x637   : > { %12047 = vmatpush3.bf16.msra.mxu1 %v12044_v60  ;;  %11481 = vmatprep.mubr.msk.f32.mxu1 %vm6749_vm2, %v7371_v33  ;;  %v6999_v24 = vsub.f32 %v19317_v40, %v17230_v63  ;;  %v19320_v63 = vld [vmem:[#allocation90_spill] sm:$0xff]  ;;  %v19330_v40 = vld [vmem:[#allocation43_spill] sm:$0xff] }
 0x638   : > { %v12421_v3 = vpop.permute.xlu1 %12420  ;;  %12803 = vpow2.f32 %v7116_v43  ;;  %v19324_v43 = vld [vmem:[#allocation96_spill] sm:$0xff] }
 0x639   : > { %v12423_v1 = vunpack.i.h.bf16 %v12421_v3  ;;  %v12422_v37 = vunpack.i.l.bf16 %v12421_v3  ;;  %v17547_v15 = vpop.eup %12797  ;;  %12805 = vrcp.f32 %v17369_v26 }
 0x63a   : > { %11482 = vmatmul.mubr.msk.f32.vlgmr.msra.gmra.mrb[110].mxu1 %vm6749_vm2, %v7373_v35  ;;  %v7296_v29 = vsel %vm6749_vm2, %v17547_v15, 0.0  ;;  %v12800_v38 = vpop.eup %12799  ;;  %12807 = vrcp.f32 %v17385_v17  ;;  %v19316_v17 = vld [vmem:[#allocation20_spill] sm:$0xff] }
 0x63b   : > { %v12056_v2 = vpack.c.bf16 %v12423_v1, %v12422_v37  ;;  %11495 = vmatprep.mubr.msk.f32.mxu1 %vm6749_vm2, %v7379_v4  ;;  %v12802_v27 = vpop.eup %12801  ;;  %v7381_v51 = vmul.f32 %v12800_v38, %v17261_v55  ;;  %v7118_v55 = vmul.f32 1.442695, %v6998_v25  ;;  %v19319_v1 = vld [vmem:[#allocation26_spill] sm:$0xff]  ;;  %v19325_v25 = vld [vmem:[#allocation172_spill] sm:$0xff] }
 0x63c   : > { %v7387_v57 = vmul.f32 %v12802_v27, %v17313_v54 }
 0x63d   : > { %12057 = vmatprep.subr.bf16.mxu0 %v12056_v2  ;;  %12809 = vpow2.f32 %v7118_v55 }
 0x63e   : > { %12059 = vmatpush3.bf16.msra.mxu0 %v12056_v2  ;;  %12811 = vrcp.f32 %v17504_v56  ;;  %v19321_v56 = vld [vmem:[#allocation160_spill] sm:$0xff] }
 0x641   : > { %11503 = vmatmul.mubr.msk.f32.vlgmr.msra.gmra.mrb[90].mxu0 %vm6749_vm2, %v7385_v7 }
 0x642   : > { %11516 = vmatprep.mubr.msk.f32.mxu0 %vm6749_vm2, %v7391_v5  ;;  %v17565_v61 = vpop.eup %12803 }
 0x643   : > { %v7299_v42 = vsel %vm6749_vm2, %v17565_v61, 0.0  ;;  %v12806_v28 = vpop.eup %12805 }
 0x644   : > { %12435 = vrot.lane.b32.xlu0 %v19313_v16, %s13087_s23  ;;  %v12808_v13 = vpop.eup %12807  ;;  %v7393_v60 = vmul.f32 %v12806_v28, %v17111_v53  ;;  %v19318_v53 = vld [vmem:[#allocation72_spill] sm:$0xff] }
 0x645   : > { %v7399_v58 = vmul.f32 %v12808_v13, %v17141_v39  ;;  %12813 = vrcp.f32 %v19318_v53  ;;  %v7120_v39 = vmul.f32 1.442695, %v6999_v24  ;;  %v19327_v28 = vld [vmem:[#allocation24_spill] sm:$0xff]  ;;  %v19331_v24 = vld [vmem:[#allocation101_spill] sm:$0xff] }
 0x646   : > { %7297 = vadd.xlane.f32.xlu1 %v7296_v29  ;;  %v19322_v29 = vld [vmem:[#allocation33_spill] sm:$0xff] }
 0x647   : > { %v17579_v26 = vpop.eup %12809  ;;  %12815 = vpow2.f32 %v7120_v39  ;;  %v7000_v10 = vsub.f32 %v19323_v50, %v19322_v29  ;;  %v19333_v29 = vld [vmem:[#allocation66_spill] sm:$0xff] }
 0x648   : > { %v7302_v59 = vsel %vm6749_vm2, %v17579_v26, 0.0  ;;  %v12812_v4 = vpop.eup %12811  ;;  %12817 = vrcp.f32 %v19324_v43 }
 0x649   : > { %v7389_v6 = vmul.f32 %v12812_v4, %v19320_v63  ;;  %12819 = vrcp.f32 %v17433_v47  ;;  %v19332_v63 = vld [vmem:[#allocation15_spill] sm:$0xff] }
 0x64f   : > { %v12814_v2 = vpop.eup %12813 }
 0x650   : > { %v7395_v36 = vmul.f32 %v12814_v2, %v19321_v56 }
 0x651   : > { %v17558_v20 = vpop.xlane.xlu0 %7279  ;;  %v17597_v7 = vpop.eup %12815 }
 0x652   : > { %v7305_v5 = vsel %vm6749_vm2, %v17597_v7, 0.0 }
 0x655   : > { %v12416_v49 = vpop.permute.xlu0 %12415 }
 0x656   : > { %v12418_v21 = vunpack.i.h.bf16 %v12416_v49  ;;  %v12417_v19 = vunpack.i.l.bf16 %v12416_v49  ;;  %v7122_v49 = vmul.f32 1.442695, %v7000_v10  ;;  %v19334_v10 = vld [vmem:[#allocation84_spill] sm:$0xff] }
 0x657   : > { %12450 = vrot.lane.b32.xlu1 %v19283_v34, %s13087_s23 }
 0x658   : > { %v12052_v45 = vpack.c.bf16 %v12418_v21, %v12417_v19  ;;  %12821 = vpow2.f32 %v7122_v49 }
 0x659   : > { %12823 = vrcp.f32 %v19330_v40 }
 0x65a   : > { %12053 = vmatprep.subr.bf16.mxu1 %v12052_v45  ;;  %12825 = vrcp.f32 %v19331_v24 }
 0x65b   : > { %12055 = vmatpush3.bf16.msra.mxu1 %v12052_v45 }
 0x65e   : > { %11496 = vmatmul.mubr.msk.f32.vlgmr.msra.gmra.mrb[112].mxu1 %vm6749_vm2, %v7381_v51 }
 0x65f   : > { %11509 = vmatprep.mubr.msk.f32.mxu1 %vm6749_vm2, %v7387_v57 }
 0x663   : > { %7300 = vadd.xlane.f32.xlu0 %v7299_v42  ;;  %v12818_v42 = vpop.eup %12817 }
 0x664   : > { %v12820_v46 = vpop.eup %12819  ;;  %v7401_v55 = vmul.f32 %v12818_v42, %v19325_v25  ;;  %v19338_v25 = vld [vmem:[#allocation41_spill] sm:$0xff] }
 0x669   : > { %v17574_v18 = vpop.xlane.xlu1 %7285 }
 0x66d   : > { %v12431_v54 = vpop.permute.xlu1 %12430 }
 0x66e   : > { %v12433_v32 = vunpack.i.h.bf16 %v12431_v54  ;;  %v12432_v48 = vunpack.i.l.bf16 %v12431_v54  ;;  %v19326_v54 = vld [vmem:[#allocation46_spill] sm:$0xff] }
 0x66f   : > { %v7407_v47 = vmul.f32 %v12820_v46, %v19326_v54  ;;  %v19337_v46 = vld [vmem:[#allocation177_spill] sm:$0xff] }
 0x670   : > { %v12064_v11 = vpack.c.bf16 %v12433_v32, %v12432_v48  ;;  %v17615_v32 = vpop.eup %12821 }
 0x671   : > { %v7308_v13 = vsel %vm6749_vm2, %v17615_v32, 0.0 }
 0x672   : > { %12065 = vmatprep.subr.bf16.mxu0 %v12064_v11 }
 0x673   : > { %12067 = vmatpush3.bf16.msra.mxu0 %v12064_v11 }
 0x676   : > { %11517 = vmatmul.mubr.msk.f32.vlgmr.msra.gmra.mrb[92].mxu0 %vm6749_vm2, %v7393_v60  ;;  %v19328_v60 = vld [vmem:[#allocation88_spill] sm:$0xff] }
 0x677   : > { %11530 = vmatprep.mubr.msk.f32.mxu0 %vm6749_vm2, %v7399_v58  ;;  %v19329_v58 = vld [vmem:[#allocation62_spill] sm:$0xff] }
 0x679   : > { %12445 = vrot.lane.b32.xlu0 %v19316_v17, %s13087_s23 }
 0x67b   : > { %7303 = vadd.xlane.f32.xlu1 %v7302_v59  ;;  %v7001_v59 = vsub.f32 %v19329_v58, %v19328_v60  ;;  %v19339_v60 = vld [vmem:[#allocation92_spill] sm:$0xff]  ;;  %v19340_v58 = vld [vmem:[#allocation169_spill] sm:$0xff] }
 0x67d   : > { %v7124_v53 = vmul.f32 1.442695, %v7001_v59  ;;  %v7005_v59 = vsub.f32 %v19340_v58, %v19339_v60 }
 0x67f   : > { %12827 = vpow2.f32 %v7124_v53 }
 0x680   : > { %12829 = vrcp.f32 %v17447_v8 }
 0x681   : > { %12831 = vrcp.f32 %v17460_v44 }
 0x686   : > { %v17590_v33 = vpop.xlane.xlu0 %7288 }
 0x68a   : > { %v12426_v14 = vpop.permute.xlu0 %12425 }
 0x68b   : > { %v12428_v35 = vunpack.i.h.bf16 %v12426_v14  ;;  %v12427_v3 = vunpack.i.l.bf16 %v12426_v14 }
 0x68c   : > { %12460 = vrot.lane.b32.xlu1 %v19319_v1, %s13087_s23 }
 0x68d   : > { %v12060_v37 = vpack.c.bf16 %v12428_v35, %v12427_v3 }
 0x68f   : > { %12061 = vmatprep.subr.bf16.mxu1 %v12060_v37 }
 0x690   : > { %12063 = vmatpush3.bf16.msra.mxu1 %v12060_v37 }
 0x693   : > { %11510 = vmatmul.mubr.msk.f32.vlgmr.msra.gmra.mrb[114].mxu1 %vm6749_vm2, %v7389_v6 }
 0x694   : > { %11523 = vmatprep.mubr.msk.f32.mxu1 %vm6749_vm2, %v7395_v36  ;;  %v12824_v36 = vpop.eup %12823 }
 0x695   : > { %v7397_v50 = vmul.f32 %v12824_v36, %v19333_v29  ;;  %v19341_v36 = vld [vmem:[#allocation50_spill] sm:$0xff]  ;;  %v19342_v29 = vld [vmem:[#allocation165_spill] sm:$0xff] }
 0x698   : > { %7306 = vadd.xlane.f32.xlu0 %v7305_v5  ;;  %v12826_v5 = vpop.eup %12825 }
 0x699   : > { %v7403_v43 = vmul.f32 %v12826_v5, %v19334_v10  ;;  %v17645_v49 = vpop.eup %12827 }
 0x69a   : > { %v12830_v44 = vpop.eup %12829 }
 0x69b   : > { %v7409_v5 = vmul.f32 %v12830_v44, %v19341_v36 }
 0x69e   : > { %v17606_v21 = vpop.xlane.xlu1 %7291 }
 0x6a2   : > { %v12441_v19 = vpop.permute.xlu1 %12440 }
 0x6a3   : > { %v12443_v45 = vunpack.i.h.bf16 %v12441_v19  ;;  %v12442_v38 = vunpack.i.l.bf16 %v12441_v19  ;;  %v7311_v19 = vsel %vm6749_vm2, %v17645_v49, 0.0 }
 0x6a4   : > { %v17608_v27 = vpop.f32.mrb[76].mxu0 }
 0x6a5   : > { %v12072_v51 = vpack.c.bf16 %v12443_v45, %v12442_v38  ;;  %v17610_v57 = vpop.f32.mrb[77].mxu0  ;;  %v19335_v45 = vld [vmem:[#allocation106_spill] sm:$0xff] }
 0x6a6   : > { %v19336_v38 = vld [vmem:[#allocation170_spill] sm:$0xff] }
 0x6a7   : > { %12073 = vmatprep.subr.bf16.mxu0 %v12072_v51 }
 0x6a8   : > { %12075 = vmatpush3.bf16.msra.mxu0 %v12072_v51  ;;  %v7002_v51 = vsub.f32 %v19336_v38, %v19335_v45 }
 0x6aa   : > { %v7126_v42 = vmul.f32 1.442695, %v7002_v51  ;;  %v19343_v51 = vld [vmem:[#allocation182_spill] sm:$0xff] }
 0x6ab   : > { %11531 = vmatmul.mubr.msk.f32.vlgmr.msra.gmra.mrb[94].mxu0 %vm6749_vm2, %v7401_v55  ;;  %v7004_v55 = vsub.f32 %v19338_v25, %v19337_v46 }
 0x6ac   : > { %11544 = vmatprep.mubr.msk.f32.mxu0 %vm6749_vm2, %v7407_v47  ;;  %12833 = vpow2.f32 %v7126_v42  ;;  %v19344_v42 = vld [vmem:[#allocation178_spill] sm:$0xff] }
 0x6ad   : > { %v17618_v48 = vpop.f32.mrb[100].mxu1  ;;  %v7003_v46 = vsub.f32 %v19344_v42, %v19343_v51 }
 0x6ae   : > { %v17620_v11 = vpop.f32.mrb[101].mxu1  ;;  %12455 = vrot.lane.b32.xlu0 %v19327_v28, %s13087_s23 }
 0x6af   : > { %v7128_v60 = vmul.f32 1.442695, %v7003_v46 }
 0x6b0   : > { %7309 = vadd.xlane.f32.xlu1 %v7308_v13  ;;  %v7130_v13 = vmul.f32 1.442695, %v7004_v55  ;;  %v19345_v55 = vld [vmem:[#allocation187_spill] sm:$0xff] }
 0x6b2   : > { %12835 = vpow2.f32 %v7130_v13  ;;  %v19346_v13 = vld [vmem:[#allocation49_spill] sm:$0xff] }
 0x6bb   : > { %v17630_v39 = vpop.xlane.xlu0 %7294 }
 0x6bc   : > { %v17632_v14 = vpop.f32.mrb[78].mxu0 }
 0x6bd   : > { %v17634_v35 = vpop.f32.mrb[79].mxu0 }
 0x6bf   : > { %v12436_v3 = vpop.permute.xlu0 %12435 }
 0x6c0   : > { %v12438_v37 = vunpack.i.h.bf16 %v12436_v3  ;;  %v12437_v4 = vunpack.i.l.bf16 %v12436_v3 }
 0x6c1   : > { %v17636_v2 = vpop.f32.mrb[102].mxu1  ;;  %12470 = vrot.lane.b32.xlu1 %v19332_v63, %s13088_s9 }
 0x6c2   : > { %v12068_v6 = vpack.c.bf16 %v12438_v37, %v12437_v4  ;;  %v17640_v56 = vpop.f32.mrb[103].mxu1  ;;  %v7132_v37 = vmul.f32 1.442695, %v7005_v59  ;;  %v12832_v4 = vpop.eup %12831 }
 0x6c3   : > { %v17671_v10 = vpop.eup %12833 }
 0x6c4   : > { %12069 = vmatprep.subr.bf16.mxu1 %v12068_v6  ;;  %12837 = vpow2.f32 %v7132_v37 }
 0x6c5   : > { %12071 = vmatpush3.bf16.msra.mxu1 %v12068_v6  ;;  %12839 = vrcp.f32 %v19345_v55 }
 0x6c6   : > { %12841 = vrcp.f32 %v19346_v13 }
 0x6c7   : > { %12843 = vpow2.f32 %v7128_v60 }
 0x6c8   : > { %11524 = vmatmul.mubr.msk.f32.vlgmr.msra.gmra.mrb[116].mxu1 %vm6749_vm2, %v7397_v50  ;;  %v7415_v50 = vmul.f32 %v12832_v4, %v19342_v29  ;;  %v19347_v29 = vld [vmem:[#allocation89_spill] sm:$0xff]  ;;  %12845 = vrcp.f32 %v17479_v31 }
 0x6c9   : > { %11537 = vmatprep.mubr.msk.f32.mxu1 %vm6749_vm2, %v7403_v43  ;;  %v7314_v43 = vsel %vm6749_vm2, %v17671_v10, 0.0  ;;  %12847 = vrcp.f32 %v17558_v20 }
 0x6ca   : > { %12849 = vrcp.f32 %v17464_v52 }
 0x6cb   : > { %12851 = vrcp.f32 %v17514_v41  ;;  %v19353_v41 = vld [vmem:[#allocation48_spill] sm:$0xff] }
 0x6cc   : > { %12853 = vrcp.f32 %v17535_v22 }
 0x6cd   : > { %7312 = vadd.xlane.f32.xlu0 %v7311_v19  ;;  %v17678_v19 = vpop.eup %12835  ;;  %12855 = vrcp.f32 %v17606_v21 }
 0x6ce   : > { %v7320_v45 = vsel %vm6749_vm2, %v17678_v19, 0.0  ;;  %v17682_v38 = vpop.eup %12837  ;;  %12857 = vrcp.f32 %v17526_v30 }
 0x6cf   : > { %v7323_v25 = vsel %vm6749_vm2, %v17682_v38, 0.0  ;;  %v12840_v37 = vpop.eup %12839  ;;  %12859 = vrcp.f32 %v17574_v18 }
 0x6d0   : > { %v12842_v4 = vpop.eup %12841  ;;  %12861 = vrcp.f32 %v17630_v39 }
 0x6d1   : > { %v17701_v46 = vpop.eup %12843 }
 0x6d2   : > { %v7317_v60 = vsel %vm6749_vm2, %v17701_v46, 0.0 }
 0x6d3   : > { %v17656_v54 = vpop.xlane.xlu1 %7297 }
 0x6d6   : > { %v17658_v47 = vpop.f32.mrb[104].mxu1 }
 0x6d7   : > { %v17662_v40 = vpop.f32.mrb[105].mxu1  ;;  %v12451_v24 = vpop.permute.xlu1 %12450 }
 0x6d8   : > { %v12453_v53 = vunpack.i.h.bf16 %v12451_v24  ;;  %v12452_v8 = vunpack.i.l.bf16 %v12451_v24 }
 0x6da   : > { %v12080_v3 = vpack.c.bf16 %v12453_v53, %v12452_v8 }
 0x6dc   : > { %v17664_v63 = vpop.f32.mrb[80].mxu0  ;;  %12081 = vmatprep.subr.bf16.mxu0 %v12080_v3 }
 0x6dd   : > { %v17666_v6 = vpop.f32.mrb[81].mxu0  ;;  %12083 = vmatpush3.bf16.msra.mxu0 %v12080_v3 }
 0x6e0   : > { %11545 = vmatmul.mubr.msk.f32.vlgmr.msra.gmra.mrb[96].mxu0 %vm6749_vm2, %v7409_v5 }
 0x6e1   : > { %11558 = vmatprep.mubr.msk.f32.mxu0 %vm6749_vm2, %v7415_v50  ;;  %v7405_v50 = vmul.f32 %v12840_v37, %v19347_v29 }
 0x6e3   : > { %12465 = vrot.lane.b32.xlu0 %v19309_v23, %s13087_s23 }
 0x6e5   : > { %7315 = vadd.xlane.f32.xlu1 %v7314_v43 }
 0x6e9   : > { %7321 = vadd.xlane.f32.xlu1 %v7320_v45  ;;  %v19348_v45 = vld [vmem:[#allocation91_spill] sm:$0xff] }
 0x6ea   : > { %v7411_v51 = vmul.f32 %v12842_v4, %v19348_v45 }
 0x6ed   : > { %7324 = vadd.xlane.f32.xlu1 %v7323_v25 }
 0x6f0   : > { %v17690_v58 = vpop.xlane.xlu0 %7300 }
 0x6f4   : > { %v12446_v59 = vpop.permute.xlu0 %12445 }
 0x6f5   : > { %v12448_v24 = vunpack.i.h.bf16 %v12446_v59  ;;  %v12447_v53 = vunpack.i.l.bf16 %v12446_v59  ;;  %v17692_v8 = vpop.f32.mrb[82].mxu0 }
 0x6f6   : > { %v17694_v3 = vpop.f32.mrb[83].mxu0 }
 0x6f7   : > { %v12076_v44 = vpack.c.bf16 %v12448_v24, %v12447_v53 }
 0x6f9   : > { %v11462_v36 = vpop.f32.mrb[84].mxu0  ;;  %12077 = vmatprep.subr.bf16.mxu1 %v12076_v44 }
 0x6fa   : > { %v8174_v5 = vpop.f32.mrb[85].mxu0  ;;  %12079 = vmatpush3.bf16.msra.mxu1 %v12076_v44 }
 0x6fb   : > { %v12509_v43 = vpack.i.bf16 %v11462_v36, %v8174_v5 }
 0x6fd   : > { %v17698_v42 = vpop.f32.mrb[86].mxu0  ;;  %11538 = vmatmul.mubr.msk.f32.vlgmr.msra.gmra.mrb[118].mxu1 %vm6749_vm2, %v7405_v50 }
 0x6fe   : > { %12480 = vrot.lane.b32.xlu1 %v19311_v0, %s13088_s9  ;;  %v17705_v25 = vpop.f32.mrb[87].mxu0  ;;  %11551 = vmatprep.mubr.msk.f32.mxu1 %vm6749_vm2, %v7411_v51  ;;  %v12846_v51 = vpop.eup %12845 }
 0x6ff   : > { %v12848_v20 = vpop.eup %12847 }
 0x701   : > { %v17710_v13 = vpop.f32.mrb[88].mxu0 }
 0x702   : > { %7318 = vadd.xlane.f32.xlu0 %v7317_v60  ;;  %12495 = vrot.lane.b32.xlu1 %v19327_v28, %s13088_s9  ;;  %v17716_v59 = vpop.f32.mrb[89].mxu0  ;;  %v19350_v60 = vld [vmem:[#allocation77_spill] sm:$0xff] }
 0x703   : > { %v7417_v0 = vmul.f32 %v12846_v51, %v19350_v60  ;;  %v12850_v51 = vpop.eup %12849 }
 0x705   : > { %v17720_v24 = vpop.f32.mrb[106].mxu1 }
 0x706   : > { %19349 = vst [vmem:[#allocation45_spill] sm:$0xff] %v17720_v24  ;;  %v17723_v53 = vpop.f32.mrb[107].mxu1  ;;  %12505 = vrot.lane.b32.xlu1 %v19309_v23, %s13088_s9 }
 0x708   : > { %v17728_v44 = vpop.xlane.xlu1 %7303 }
 0x709   : > { %v17730_v37 = vpop.f32.mrb[108].mxu1  ;;  %12863 = vrcp.f32 %v17728_v44 }
 0x70a   : > { %v8255_v28 = vpop.f32.mrb[109].mxu1  ;;  %12865 = vrcp.f32 %v17590_v33 }
 0x70b   : > { %v12524_v4 = vpack.i.bf16 %v17730_v37, %v8255_v28  ;;  %v19351_v37 = vld [vmem:[#allocation98_spill] sm:$0xff]  ;;  %12867 = vrcp.f32 %v17656_v54 }
 0x70c   : > { %v12461_v36 = vpop.permute.xlu1 %12460  ;;  %v7423_v28 = vmul.f32 %v12848_v20, %v19351_v37  ;;  %12869 = vrcp.f32 %v17690_v58 }
 0x70d   : > { %v12463_v5 = vunpack.i.h.bf16 %v12461_v36  ;;  %v12462_v29 = vunpack.i.l.bf16 %v12461_v36  ;;  %v17733_v50 = vpop.f32.mrb[110].mxu1 }
 0x70e   : > { %v17735_v31 = vpop.f32.mrb[111].mxu1 }
 0x70f   : > { %v12088_v45 = vpack.c.bf16 %v12463_v5, %v12462_v29  ;;  %v12554_v23 = vpack.i.bf16 %v17733_v50, %v17735_v31 }
 0x711   : > { %12089 = vmatprep.subr.bf16.mxu0 %v12088_v45 }
 0x712   : > { %12091 = vmatpush3.bf16.msra.mxu0 %v12088_v45 }
 0x714   : > { %v17740_v55 = vpop.f32.mrb[90].mxu0 }
 0x715   : > { %v17743_v24 = vpop.f32.mrb[91].mxu0  ;;  %11559 = vmatmul.mubr.msk.f32.vlgmr.msra.gmra.mrb[98].mxu0 %vm6749_vm2, %v7417_v0 }
 0x716   : > { %v12599_v36 = vpack.i.bf16 %v17740_v55, %v17743_v24  ;;  %11572 = vmatprep.mubr.msk.f32.mxu0 %vm6749_vm2, %v7423_v28 }
 0x718   : > { %12475 = vrot.lane.b32.xlu0 %v19313_v16, %s13088_s9 }
 0x71c   : > { %12485 = vrot.lane.b32.xlu0 %v19316_v17, %s13088_s9  ;;  %v12852_v17 = vpop.eup %12851 }
 0x71d   : > { %v7419_v60 = vmul.f32 %v12852_v17, %v19353_v41  ;;  %v19354_v17 = vld [vmem:[#allocation40_spill] sm:$0xff] }
 0x720   : > { %12490 = vrot.lane.b32.xlu0 %v19283_v34, %s13088_s9  ;;  %v19352_v34 = vld [vmem:[#allocation42_spill] sm:$0xff] }
 0x721   : > { %v7413_v20 = vmul.f32 %v12850_v51, %v19352_v34 }
 0x724   : > { %12500 = vrot.lane.b32.xlu0 %v19319_v1, %s13088_s9 }
 0x725   : > { %v17759_v0 = vpop.xlane.xlu0 %7306 }
 0x728   : > { %12510 = vrot.lane.b32.xlu0 %v12509_v43, %s13088_s9 }
 0x729   : > { %v12456_v5 = vpop.permute.xlu0 %12455 }
 0x72a   : > { %v12458_v29 = vunpack.i.h.bf16 %v12456_v5  ;;  %v12457_v16 = vunpack.i.l.bf16 %v12456_v5 }
 0x72c   : > { %v12084_v45 = vpack.c.bf16 %v12458_v29, %v12457_v16 }
 0x72e   : > { %12085 = vmatprep.subr.bf16.mxu1 %v12084_v45 }
 0x72f   : > { %12087 = vmatpush3.bf16.msra.mxu1 %v12084_v45  ;;  %v12854_v45 = vpop.eup %12853 }
 0x730   : > { %v12856_v51 = vpop.eup %12855  ;;  %v7425_v34 = vmul.f32 %v12854_v45, %v19354_v17  ;;  %v19356_v17 = vld [vmem:[#allocation34_spill] sm:$0xff] }
 0x731   : > { %v17763_v52 = vpop.f32.mrb[112].mxu1  ;;  %v7431_v41 = vmul.f32 %v12856_v51, %v17462_v62  ;;  %v12858_v62 = vpop.eup %12857 }
 0x732   : > { %v17766_v37 = vpop.f32.mrb[113].mxu1  ;;  %11552 = vmatmul.mubr.msk.f32.vlgmr.msra.gmra.mrb[120].mxu1 %vm6749_vm2, %v7413_v20 }
 0x733   : > { %11565 = vmatprep.mubr.msk.f32.mxu1 %vm6749_vm2, %v7419_v60  ;;  %v19359_v50 = vpack.i.bf16 %v17763_v52, %v17766_v37 }
 0x73d   : > { %v7310_v43 = vpop.xlane.xlu1 %7309 }
 0x73e   : > { %12871 = vrcp.f32 %v7310_v43 }
 0x73f   : > { %12873 = vrcp.f32 %v17759_v0 }
 0x741   : > { %v12471_v28 = vpop.permute.xlu1 %12470 }
 0x742   : > { %v12473_v5 = vunpack.i.h.bf16 %v12471_v28  ;;  %v12472_v29 = vunpack.i.l.bf16 %v12471_v28 }
 0x744   : > { %v12096_v16 = vpack.c.bf16 %v12473_v5, %v12472_v29 }
 0x746   : > { %12097 = vmatprep.subr.bf16.mxu0 %v12096_v16 }
 0x747   : > { %12099 = vmatpush3.bf16.msra.mxu0 %v12096_v16  ;;  %v12860_v16 = vpop.eup %12859 }
 0x749   : > { %v11518_v20 = vpop.f32.mrb[92].mxu0 }
 0x74a   : > { %v8822_v1 = vpop.f32.mrb[93].mxu0  ;;  %11573 = vmatmul.mubr.msk.f32.vlgmr.msra.gmra.mrb[100].mxu0 %vm6749_vm2, %v7425_v34  ;;  %v7427_v34 = vmul.f32 %v12860_v16, %v19356_v17 }
 0x74b   : > { %v12514_v22 = vpack.i.bf16 %v11518_v20, %v8822_v1  ;;  %11586 = vmatprep.mubr.msk.f32.mxu0 %vm6749_vm2, %v7431_v41  ;;  %v19355_v1 = vld [vmem:[#allocation73_spill] sm:$0xff] }
 0x74c   : > { %v7421_v45 = vmul.f32 %v12858_v62, %v19355_v1  ;;  %v12862_v1 = vpop.eup %12861 }
 0x74d   : > { %12515 = vrot.lane.b32.xlu1 %v12514_v22, %s13087_s23  ;;  %v7433_v39 = vmul.f32 %v12862_v1, %v17500_v12 }
 0x751   : > { %12525 = vrot.lane.b32.xlu1 %v12524_v4, %s13088_s9 }
 0x75a   : > { %v7313_v21 = vpop.xlane.xlu0 %7312 }
 0x75b   : > { %12875 = vrcp.f32 %v7313_v21 }
 0x75e   : > { %v12466_v60 = vpop.permute.xlu0 %12465 }
 0x75f   : > { %v12468_v28 = vunpack.i.h.bf16 %v12466_v60  ;;  %v12467_v5 = vunpack.i.l.bf16 %v12466_v60 }
 0x761   : > { %v12092_v29 = vpack.c.bf16 %v12468_v28, %v12467_v5 }
 0x763   : > { %12093 = vmatprep.subr.bf16.mxu1 %v12092_v29 }
 0x764   : > { %12095 = vmatpush3.bf16.msra.mxu1 %v12092_v29 }
 0x766   : > { %v17783_v51 = vpop.f32.mrb[114].mxu1 }
 0x767   : > { %v17786_v4 = vpop.f32.mrb[115].mxu1  ;;  %11566 = vmatmul.mubr.msk.f32.vlgmr.msra.gmra.mrb[122].mxu1 %vm6749_vm2, %v7421_v45  ;;  %v12864_v45 = vpop.eup %12863 }
 0x768   : > { %11579 = vmatprep.mubr.msk.f32.mxu1 %vm6749_vm2, %v7427_v34  ;;  %v7439_v44 = vmul.f32 %v12864_v45, %v17579_v26  ;;  %v19360_v52 = vpack.i.bf16 %v17783_v51, %v17786_v4 }
 0x772   : > { %v7316_v18 = vpop.xlane.xlu1 %7315 }
 0x773   : > { %12877 = vrcp.f32 %v7316_v18 }
 0x776   : > { %v7322_v20 = vpop.xlane.xlu1 %7321 }
 0x777   : > { %12879 = vrcp.f32 %v7322_v20 }
 0x77a   : > { %v7325_v41 = vpop.xlane.xlu1 %7324 }
 0x77b   : > { %12881 = vrcp.f32 %v7325_v41 }
 0x77e   : > { %v12481_v22 = vpop.permute.xlu1 %12480  ;;  %v17794_v60 = vpop.f32.mrb[94].mxu0 }
 0x77f   : > { %v12483_v28 = vunpack.i.h.bf16 %v12481_v22  ;;  %v12482_v5 = vunpack.i.l.bf16 %v12481_v22  ;;  %v17796_v29 = vpop.f32.mrb[95].mxu0 }
 0x780   : > { %v12544_v62 = vpack.i.bf16 %v17794_v60, %v17796_v29 }
 0x781   : > { %v12104_v16 = vpack.c.bf16 %v12483_v28, %v12482_v5  ;;  %v12866_v5 = vpop.eup %12865 }
 0x782   : > { %v12496_v34 = vpop.permute.xlu1 %12495  ;;  %v12868_v33 = vpop.eup %12867  ;;  %v7429_v43 = vmul.f32 %v12866_v5, %v17436_v9 }
 0x783   : > { %12105 = vmatprep.subr.bf16.mxu0 %v12104_v16  ;;  %v12497_v1 = vunpack.i.l.bf16 %v12496_v34 }
 0x784   : > { %12107 = vmatpush3.bf16.msra.mxu0 %v12104_v16  ;;  %v12498_v16 = vunpack.i.h.bf16 %v12496_v34  ;;  %v7435_v34 = vmul.f32 %v12868_v33, %v17547_v15 }
 0x786   : > { %v12506_v58 = vpop.permute.xlu1 %12505  ;;  %v12116_v21 = vpack.c.bf16 %v12498_v16, %v12497_v1 }
 0x787   : > { %11587 = vmatmul.mubr.msk.f32.vlgmr.msra.gmra.mrb[102].mxu0 %vm6749_vm2, %v7433_v39 }
 0x788   : > { %11600 = vmatprep.mubr.msk.f32.mxu0 %vm6749_vm2, %v7439_v44  ;;  %v12870_v44 = vpop.eup %12869 }
 0x789   : > { %v12872_v41 = vpop.eup %12871 }
 0x78f   : > { %v7319_v17 = vpop.xlane.xlu0 %7318 }
 0x790   : > { %12883 = vrcp.f32 %v7319_v17  ;;  %v12874_v17 = vpop.eup %12873 }
 0x791   : > { %v12876_v5 = vpop.eup %12875 }
 0x792   : > { %v12878_v1 = vpop.eup %12877 }
 0x793   : > { %v12476_v22 = vpop.permute.xlu0 %12475 }
 0x794   : > { %v12478_v28 = vunpack.i.h.bf16 %v12476_v22  ;;  %v12477_v12 = vunpack.i.l.bf16 %v12476_v22 }
 0x796   : > { %v12100_v26 = vpack.c.bf16 %v12478_v28, %v12477_v12  ;;  %v12508_v28 = vunpack.i.h.bf16 %v12506_v58  ;;  %v12507_v12 = vunpack.i.l.bf16 %v12506_v58  ;;  %v7443_v58 = vmul.f32 %v12872_v41, %v17615_v32 }
 0x797   : > { %v12486_v45 = vpop.permute.xlu0 %12485 }
 0x798   : > { %v12488_v54 = vunpack.i.h.bf16 %v12486_v45  ;;  %v12487_v39 = vunpack.i.l.bf16 %v12486_v45  ;;  %12101 = vmatprep.subr.bf16.mxu1 %v12100_v26  ;;  %v12124_v33 = vpack.c.bf16 %v12508_v28, %v12507_v12 }
 0x799   : > { %12103 = vmatpush3.bf16.msra.mxu1 %v12100_v26  ;;  %v7437_v26 = vmul.f32 %v12870_v44, %v17565_v61  ;;  %v7445_v61 = vmul.f32 %v12876_v5, %v17645_v49  ;;  %v10290_v5 = vld [vmem:[#allocation7 + $0x10] sm:$0xff] }
 0x79a   : > { %v12108_v0 = vpack.c.bf16 %v12488_v54, %v12487_v39 }
 0x79b   : > { %v12491_v18 = vpop.permute.xlu0 %12490  ;;  %v17809_v22 = vpop.f32.mrb[116].mxu1 }
 0x79c   : > { %v12493_v20 = vunpack.i.h.bf16 %v12491_v18  ;;  %v12492_v30 = vunpack.i.l.bf16 %v12491_v18  ;;  %v17812_v45 = vpop.f32.mrb[117].mxu1  ;;  %11580 = vmatmul.mubr.msk.f32.vlgmr.msra.gmra.mrb[124].mxu1 %vm6749_vm2, %v7429_v43  ;;  %12109 = vmatprep.subr.bf16.mxu1 %v12108_v0  ;;  %v12880_v43 = vpop.eup %12879  ;;  %v7447_v18 = vmul.f32 %v12878_v1, %v17671_v10 }
 0x79d   : > { %v12529_v9 = vpack.i.bf16 %v17809_v22, %v17812_v45  ;;  %12111 = vmatpush3.bf16.msra.mxu1 %v12108_v0  ;;  %11593 = vmatprep.mubr.msk.f32.mxu1 %vm6749_vm2, %v7435_v34  ;;  %v7441_v0 = vmul.f32 %v12874_v17, %v17597_v7  ;;  %v12882_v44 = vpop.eup %12881  ;;  %v7451_v32 = vmul.f32 %v12880_v43, %v17678_v19  ;;  %v10288_v17 = vld [vmem:[#allocation7] sm:$0xff]  ;;  %v10295_v43 = vld [vmem:[#allocation7 + $0x38] sm:$0xff] }
 0x79e   : > { %v12112_v15 = vpack.c.bf16 %v12493_v20, %v12492_v30  ;;  %12117 = vmatprep.subr.bf16.mxu1 %v12116_v21  ;;  %v12884_v34 = vpop.eup %12883  ;;  %v7453_v7 = vmul.f32 %v12882_v44, %v17682_v38  ;;  %v19358_v22 = vpack.i.bf16 %v17710_v13, %v17716_v59 }
 0x79f   : > { %v12501_v16 = vpop.permute.xlu0 %12500  ;;  %v7449_v49 = vmul.f32 %v12884_v34, %v17701_v46  ;;  %v10297_v34 = vld [vmem:[#allocation7 + $0x48] sm:$0xff] }
 0x7a0   : > { %v12503_v54 = vunpack.i.h.bf16 %v12501_v16  ;;  %v12502_v39 = vunpack.i.l.bf16 %v12501_v16  ;;  %11594 = vmatmul.mubr.msk.f32.vlgmr.msra.gmra.mrb[126].mxu1 %vm6749_vm2, %v7437_v26  ;;  %12113 = vmatprep.subr.bf16.mxu0 %v12112_v15  ;;  %v10289_v26 = vld [vmem:[#allocation7 + $0x8] sm:$0xff]  ;;  %v10291_v16 = vld [vmem:[#allocation7 + $0x18] sm:$0xff] }
 0x7a1   : > { %12115 = vmatpush3.bf16.msra.mxu0 %v12112_v15  ;;  %12119 = vmatpush3.bf16.msra.mxu1 %v12116_v21  ;;  %v12128_v15 = vpack.c.bf16 %v10289_v26, %v10288_v17  ;;  %v12132_v1 = vpack.c.bf16 %v10291_v16, %v10290_v5  ;;  %v10301_v17 = vld [vmem:[#allocation7 + $0x68] sm:$0xff]  ;;  %v10303_v5 = vld [vmem:[#allocation7 + $0x78] sm:$0xff] }
 0x7a2   : > { %v12120_v30 = vpack.c.bf16 %v12503_v54, %v12502_v39  ;;  %11607 = vmatprep.mubr.msk.f32.mxu1 %vm6749_vm2, %v7443_v58  ;;  %12125 = vmatprep.subr.bf16.mxu1 %v12124_v33  ;;  %v10293_v54 = vld [vmem:[#allocation7 + $0x28] sm:$0xff]  ;;  %v10294_v58 = vld [vmem:[#allocation7 + $0x30] sm:$0xff] }
 0x7a3   : > { %v12511_v31 = vpop.permute.xlu0 %12510 }
 0x7a4   : > { %11601 = vmatmul.mubr.msk.f32.vlgmr.msra.gmra.mrb[104].mxu0 %vm6749_vm2, %v7441_v0  ;;  %11608 = vmatmul.mubr.msk.f32.vlgmr.msra.gmra.mrb[128].mxu1 %vm6749_vm2, %v7445_v61  ;;  %v12140_v0 = vpack.c.bf16 %v10295_v43, %v10294_v58  ;;  %v12513_v55 = vunpack.i.h.bf16 %v12511_v31  ;;  %v12512_v24 = vunpack.i.l.bf16 %v12511_v31 }
 0x7a5   : > { %12121 = vmatprep.subr.bf16.mxu0 %v12120_v30  ;;  %11614 = vmatprep.mubr.msk.f32.mxu0 %vm6749_vm2, %v7447_v18  ;;  %v10296_v18 = vld [vmem:[#allocation7 + $0x40] sm:$0xff] }
 0x7a6   : > { %12123 = vmatpush3.bf16.msra.mxu0 %v12120_v30  ;;  %12127 = vmatpush3.bf16.msra.mxu1 %v12124_v33  ;;  %v10292_v33 = vld [vmem:[#allocation7 + $0x20] sm:$0xff]  ;;  %v10239_v29 = vsel %vm4092_vm0, %v17608_v27, %v12513_v55 }
 0x7a7   : > { %11621 = vmatprep.mubr.msk.f32.mxu1 %vm6749_vm2, %v7451_v32  ;;  %12129 = vmatprep.subr.bf16.mxu0 %v12128_v15  ;;  %v12136_v39 = vpack.c.bf16 %v10293_v54, %v10292_v33  ;;  %v12144_v32 = vpack.c.bf16 %v10297_v34, %v10296_v18 }
 0x7a9   : > { %11615 = vmatmul.mubr.msk.f32.vlgmr.msra.gmra.mrb[106].mxu0 %vm6749_vm2, %v7449_v49  ;;  %11622 = vmatmul.mubr.msk.f32.vlgmr.msra.gmra.mrb[130].mxu1 %vm6749_vm2, %v7453_v7  ;;  %v10298_v7 = vld [vmem:[#allocation7 + $0x50] sm:$0xff]  ;;  %v10299_v49 = vld [vmem:[#allocation7 + $0x58] sm:$0xff]  ;;  %vm10254_vm2 = vcmask 523264  }
 0x7aa   : > { %12131 = vmatpush3.bf16.msra.mxu0 %v12128_v15  ;;  %v10302_v15 = vld [vmem:[#allocation7 + $0x70] sm:$0xff] }
 0x7ab   : > { %12133 = vmatprep.subr.bf16.mxu0 %v12132_v1  ;;  %v12156_v16 = vpack.c.bf16 %v10303_v5, %v10302_v15 }
 0x7ae   : > { %12135 = vmatpush3.bf16.msra.mxu0 %v12132_v1 }
 0x7af   : > { %12137 = vmatprep.subr.bf16.mxu0 %v12136_v39 }
 0x7b2   : > { %12139 = vmatpush3.bf16.msra.mxu0 %v12136_v39  ;;  %v19357_v39 = vpack.i.bf16 %v17698_v42, %v17705_v25 }
 0x7b3   : > { %v17834_v10 = vpop.f32.mrb[96].mxu0  ;;  %12141 = vmatprep.subr.bf16.mxu0 %v12140_v0 }
 0x7b4   : > { %v17836_v21 = vpop.f32.mrb[97].mxu0 }
 0x7b5   : > { %v12574_v28 = vpack.i.bf16 %v17834_v10, %v17836_v21  ;;  %v10238_v21 = vsel %vm4092_vm0, %v17610_v57, %v12512_v24 }
 0x7b6   : > { %12143 = vmatpush3.bf16.msra.mxu0 %v12140_v0 }
 0x7b7   : > { %12145 = vmatprep.subr.bf16.mxu0 %v12144_v32 }
 0x7ba   : > { %12147 = vmatpush3.bf16.msra.mxu0 %v12144_v32 }
 0x7d0   : > { %v11539_v19 = vpop.f32.mrb[118].mxu1 }
 0x7d1   : > { %v9065_v12 = vpop.f32.mrb[119].mxu1 }
 0x7d2   : > { %v12559_v20 = vpack.i.bf16 %v11539_v19, %v9065_v12  ;;  %v12148_v19 = vpack.c.bf16 %v10299_v49, %v10298_v7  ;;  %v10300_v12 = vld [vmem:[#allocation7 + $0x60] sm:$0xff] }
 0x7d3   : > { %v12152_v26 = vpack.c.bf16 %v10301_v17, %v10300_v12 }
 0x7d4   : > { %12149 = vmatprep.subr.bf16.mxu0 %v12148_v19 }
 0x7d5   : > { %12151 = vmatpush3.bf16.msra.mxu0 %v12148_v19 }
 0x7d6   : > { %12153 = vmatprep.subr.bf16.mxu0 %v12152_v26 }
 0x7d9   : > { %12155 = vmatpush3.bf16.msra.mxu0 %v12152_v26 }
 0x7da   : > { %12157 = vmatprep.subr.bf16.mxu0 %v12156_v16 }
 0x7dd   : > { %12159 = vmatpush3.bf16.msra.mxu0 %v12156_v16 }
 0x7e8   : > { %v17840_v41 = vpop.f32.mrb[98].mxu0 }
 0x7e9   : > { %v17842_v38 = vpop.f32.mrb[99].mxu0 }
 0x7ea   : > { %v12604_v46 = vpack.i.bf16 %v17840_v41, %v17842_v38 }
 0x805   : > { %v17846_v61 = vpop.f32.mrb[120].mxu1 }
 0x806   : > { %v9227_v30 = vpop.f32.mrb[121].mxu1 }
 0x807   : > { %v12589_v44 = vpack.i.bf16 %v17846_v61, %v9227_v30 }
 0x81d   : > { %v11574_v1 = vpop.f32.mrb[100].mxu0 }
 0x81e   : > { %v9470_v33 = vpop.f32.mrb[101].mxu0 }
 0x81f   : > { %v12519_v54 = vpack.i.bf16 %v11574_v1, %v9470_v33 }
 0x821   : > { %12520 = vrot.lane.b32.xlu0 %v12519_v54, %s13086_s21 }
 0x825   : > { %12530 = vrot.lane.b32.xlu0 %v12529_v9, %s13087_s23 }
 0x829   : > { %12535 = vrot.lane.b32.xlu0 %v19357_v39, %s13088_s9 }
 0x83a   : > { %v11567_v58 = vpop.f32.mrb[122].mxu1 }
 0x83b   : > { %v9389_v43 = vpop.f32.mrb[123].mxu1 }
 0x83c   : > { %v12619_v0 = vpack.i.bf16 %v11567_v58, %v9389_v43 }
 0x85a   : > { %v11588_v61 = vpop.f32.mrb[102].mxu0 }
 0x85b   : > { %v9632_v30 = vpop.f32.mrb[103].mxu0 }
 0x85c   : > { %v12549_v18 = vpack.i.bf16 %v11588_v61, %v9632_v30 }
 0x85e   : > { %12550 = vrot.lane.b32.xlu0 %v12549_v18, %s13086_s21 }
 0x862   : > { %12560 = vrot.lane.b32.xlu0 %v12559_v20, %s13087_s23 }
 0x866   : > { %12570 = vrot.lane.b32.xlu0 %v19358_v22, %s13088_s9 }
 0x86f   : > { %v11581_v45 = vpop.f32.mrb[124].mxu1 }
 0x870   : > { %v9551_v9 = vpop.f32.mrb[125].mxu1 }
 0x871   : > { %v12539_v34 = vpack.i.bf16 %v11581_v45, %v9551_v9 }
 0x873   : > { %v11595_v42 = vpop.f32.mrb[126].mxu1  ;;  %12540 = vrot.lane.b32.xlu1 %v12539_v34, %s13086_s21 }
 0x874   : > { %v9713_v25 = vpop.f32.mrb[127].mxu1 }
 0x875   : > { %v12564_v32 = vpack.i.bf16 %v11595_v42, %v9713_v25 }
 0x877   : > { %v11609_v7 = vpop.f32.mrb[128].mxu1  ;;  %12545 = vrot.lane.b32.xlu1 %v12544_v62, %s13087_s23  ;;  %v11602_v20 = vpop.f32.mrb[104].mxu0 }
 0x878   : > { %v9794_v49 = vpop.f32.mrb[105].mxu0  ;;  %v9875_v19 = vpop.f32.mrb[129].mxu1 }
 0x879   : > { %v12579_v12 = vpack.i.bf16 %v11602_v20, %v9794_v49  ;;  %v12594_v13 = vpack.i.bf16 %v11609_v7, %v9875_v19 }
 0x87b   : > { %12555 = vrot.lane.b32.xlu1 %v12554_v23, %s13088_s9  ;;  %12580 = vrot.lane.b32.xlu0 %v12579_v12, %s13086_s21  ;;  %v12516_v23 = vpop.permute.xlu1 %12515 }
 0x87c   : > { %v11623_v59 = vpop.f32.mrb[130].mxu1  ;;  %v11616_v17 = vpop.f32.mrb[106].mxu0  ;;  %v12517_v60 = vunpack.i.l.bf16 %v12516_v23 }
 0x87d   : > { %v9956_v26 = vpop.f32.mrb[107].mxu0  ;;  %v10037_v15 = vpop.f32.mrb[131].mxu1 }
 0x87e   : > { %v12609_v5 = vpack.i.bf16 %v11616_v17, %v9956_v26  ;;  %v12624_v16 = vpack.i.bf16 %v11623_v59, %v10037_v15 }
 0x87f   : > { %12565 = vrot.lane.b32.xlu1 %v12564_v32, %s13086_s21  ;;  %12590 = vrot.lane.b32.xlu0 %v12589_v44, %s13087_s23  ;;  %v12526_v44 = vpop.permute.xlu1 %12525 }
 0x880   : > { %v12528_v1 = vunpack.i.h.bf16 %v12526_v44  ;;  %v12527_v33 = vunpack.i.l.bf16 %v12526_v44 }
 0x882   : > { %v10240_v61 = vsel %vm4092_vm0, %v17620_v11, %v12527_v33  ;;  %v10241_v30 = vsel %vm4092_vm0, %v17618_v48, %v12528_v1 }
 0x883   : > { %12575 = vrot.lane.b32.xlu1 %v12574_v28, %s13087_s23  ;;  %12600 = vrot.lane.b32.xlu0 %v12599_v36, %s13088_s9  ;;  %v12518_v36 = vunpack.i.h.bf16 %v12516_v23  ;;  %v10255_v28 = vsel %vm10254_vm2, %v10238_v21, %v12517_v60 }
 0x885   : > { %v10256_v41 = vsel %vm10254_vm2, %v10239_v29, %v12518_v36 }
 0x887   : > { %12585 = vrot.lane.b32.xlu1 %v19359_v50, %s13088_s9  ;;  %12610 = vrot.lane.b32.xlu0 %v12609_v5, %s13086_s21 }
 0x88b   : > { %12595 = vrot.lane.b32.xlu1 %v12594_v13, %s13086_s21  ;;  %12620 = vrot.lane.b32.xlu0 %v12619_v0, %s13087_s23 }
 0x88f   : > { %12605 = vrot.lane.b32.xlu1 %v12604_v46, %s13087_s23 }
 0x893   : > { %12615 = vrot.lane.b32.xlu1 %v19360_v52, %s13088_s9  ;;  %v12521_v37 = vpop.permute.xlu0 %12520 }
 0x894   : > { %v12523_v62 = vunpack.i.h.bf16 %v12521_v37  ;;  %v12522_v10 = vunpack.i.l.bf16 %v12521_v37 }
 0x896   : > { %v10272_v38 = vsel %vm10271_vm7, %v10255_v28, %v12522_v10  ;;  %v10273_v46 = vsel %vm10271_vm7, %v10256_v41, %v12523_v62 }
 0x897   : > { %12625 = vrot.lane.b32.xlu1 %v12624_v16, %s13086_s21  ;;  %11656 = vmatprep.mubr.f32.mxu0 %v10272_v38  ;;  %v12531_v51 = vpop.permute.xlu0 %12530  ;;  %s13005_s21 = scalar_lea.vmem %s13004_s8, 4096 }
 0x898   : > { %11657 = vmatmul.mubr.f32.vlgmr.msra.gmra.mrb[108].mxu0 %v10273_v46  ;;  %v12533_v54 = vunpack.i.h.bf16 %v12531_v51  ;;  %v12532_v57 = vunpack.i.l.bf16 %v12531_v51  ;;  %p13007_p2 = scmp.lt.s32.totalorder %s13005_s21, %s12999_s29 }
 0x89a   : > { %v10257_v45 = vsel %vm10254_vm2, %v10240_v61, %v12532_v57  ;;  %v10258_v9 = vsel %vm10254_vm2, %v10241_v30, %v12533_v54  ;;  %p13008_p1 = por %p13007_p2, %p13006_p12 }
 0x89b   : > { %v12536_v4 = vpop.permute.xlu0 %12535 }
 0x89c   : > { %v12538_v18 = vunpack.i.h.bf16 %v12536_v4  ;;  %v12537_v22 = vunpack.i.l.bf16 %v12536_v4  ;;  %p13009_p4 = pnand %p13008_p1, %p13002_p7 }
 0x89e   : > { %v10242_v48 = vsel %vm4092_vm0, %v17634_v35, %v12537_v22  ;;  %v10243_v19 = vsel %vm4092_vm0, %v17632_v14, %v12538_v18 }
 0x8d0   : > { %v12551_v27 = vpop.permute.xlu0 %12550 }
 0x8d1   : > { %v12553_v11 = vunpack.i.h.bf16 %v12551_v27  ;;  %v12552_v49 = vunpack.i.l.bf16 %v12551_v27 }
 0x8d4   : > { %v12561_v39 = vpop.permute.xlu0 %12560 }
 0x8d5   : > { %v12563_v50 = vunpack.i.h.bf16 %v12561_v39  ;;  %v12562_v31 = vunpack.i.l.bf16 %v12561_v39 }
 0x8d8   : > { %v12571_v32 = vpop.permute.xlu0 %12570 }
 0x8d9   : > { %v12573_v36 = vunpack.i.h.bf16 %v12571_v32  ;;  %v12572_v60 = vunpack.i.l.bf16 %v12571_v32 }
 0x8db   : > { %v10246_v38 = vsel %vm4092_vm0, %v17666_v6, %v12572_v60  ;;  %v10247_v46 = vsel %vm4092_vm0, %v17664_v63, %v12573_v36 }
 0x8e5   : > { %v12541_v58 = vpop.permute.xlu1 %12540 }
 0x8e6   : > { %v12543_v43 = vunpack.i.h.bf16 %v12541_v58  ;;  %v12542_v0 = vunpack.i.l.bf16 %v12541_v58 }
 0x8e8   : > { %v10274_v34 = vsel %vm10271_vm7, %v10257_v45, %v12542_v0  ;;  %v10275_v42 = vsel %vm10271_vm7, %v10258_v9, %v12543_v43 }
 0x8e9   : > { %v12546_v25 = vpop.permute.xlu1 %12545  ;;  %11659 = vmatprep.mubr.f32.mxu0 %v10274_v34 }
 0x8ea   : > { %v12548_v7 = vunpack.i.h.bf16 %v12546_v25  ;;  %v12547_v20 = vunpack.i.l.bf16 %v12546_v25  ;;  %11660 = vmatmul.mubr.f32.gmra.mrb[110].mxu0 %v10275_v42 }
 0x8ec   : > { %v10259_v12 = vsel %vm10254_vm2, %v10242_v48, %v12547_v20  ;;  %v10260_v13 = vsel %vm10254_vm2, %v10243_v19, %v12548_v7 }
 0x8ed   : > { %v12556_v59 = vpop.permute.xlu1 %12555  ;;  %v10276_v17 = vsel %vm10271_vm7, %v10259_v12, %v12552_v49  ;;  %v10277_v26 = vsel %vm10271_vm7, %v10260_v13, %v12553_v11  ;;  %v12581_v16 = vpop.permute.xlu0 %12580 }
 0x8ee   : > { %v12558_v15 = vunpack.i.h.bf16 %v12556_v59  ;;  %v12557_v5 = vunpack.i.l.bf16 %v12556_v59  ;;  %11662 = vmatprep.mubr.f32.mxu0 %v10276_v17  ;;  %v12583_v28 = vunpack.i.h.bf16 %v12581_v16  ;;  %v12582_v41 = vunpack.i.l.bf16 %v12581_v16 }
 0x8ef   : > { %11663 = vmatmul.mubr.f32.gmra.mrb[112].mxu0 %v10277_v26 }
 0x8f0   : > { %v10244_v35 = vsel %vm4092_vm0, %v17640_v56, %v12557_v5  ;;  %v10245_v14 = vsel %vm4092_vm0, %v17636_v2, %v12558_v15  ;;  %v19361_v15 = vld [vmem:[#allocation45_spill] sm:$0xff] }
 0x8f1   : > { %v12566_v23 = vpop.permute.xlu1 %12565  ;;  %v10261_v52 = vsel %vm10254_vm2, %v10244_v35, %v12562_v31  ;;  %v10262_v37 = vsel %vm10254_vm2, %v10245_v14, %v12563_v50  ;;  %v12591_v29 = vpop.permute.xlu0 %12590 }
 0x8f2   : > { %v12568_v55 = vunpack.i.h.bf16 %v12566_v23  ;;  %v12567_v24 = vunpack.i.l.bf16 %v12566_v23  ;;  %v12593_v39 = vunpack.i.h.bf16 %v12591_v29  ;;  %v12592_v58 = vunpack.i.l.bf16 %v12591_v29 }
 0x8f4   : > { %v10278_v62 = vsel %vm10271_vm7, %v10261_v52, %v12567_v24  ;;  %v10279_v10 = vsel %vm10271_vm7, %v10262_v37, %v12568_v55 }
 0x8f5   : > { %v12576_v56 = vpop.permute.xlu1 %12575  ;;  %11665 = vmatprep.mubr.f32.mxu0 %v10278_v62  ;;  %v12601_v33 = vpop.permute.xlu0 %12600 }
 0x8f6   : > { %v12578_v21 = vunpack.i.h.bf16 %v12576_v56  ;;  %v12577_v2 = vunpack.i.l.bf16 %v12576_v56  ;;  %11666 = vmatmul.mubr.f32.gmra.mrb[114].mxu0 %v10279_v10  ;;  %v12603_v30 = vunpack.i.h.bf16 %v12601_v33  ;;  %v12602_v18 = vunpack.i.l.bf16 %v12601_v33 }
 0x8f8   : > { %v10263_v51 = vsel %vm10254_vm2, %v10246_v38, %v12577_v2  ;;  %v10264_v4 = vsel %vm10254_vm2, %v10247_v46, %v12578_v21  ;;  %v10250_v20 = vsel %vm4092_vm0, %v17694_v3, %v12602_v18  ;;  %v10251_v11 = vsel %vm4092_vm0, %v17692_v8, %v12603_v30 }
 0x8f9   : > { %v12586_v27 = vpop.permute.xlu1 %12585  ;;  %v10280_v44 = vsel %vm10271_vm7, %v10263_v51, %v12582_v41  ;;  %v10281_v1 = vsel %vm10271_vm7, %v10264_v4, %v12583_v28  ;;  %v12611_v9 = vpop.permute.xlu0 %12610 }
 0x8fa   : > { %v12588_v54 = vunpack.i.h.bf16 %v12586_v27  ;;  %v12587_v57 = vunpack.i.l.bf16 %v12586_v27  ;;  %11668 = vmatprep.mubr.f32.mxu0 %v10280_v44  ;;  %v12613_v32 = vunpack.i.h.bf16 %v12611_v9  ;;  %v12612_v7 = vunpack.i.l.bf16 %v12611_v9 }
 0x8fb   : > { %11669 = vmatmul.mubr.f32.gmra.mrb[116].mxu0 %v10281_v1 }
 0x8fc   : > { %v10248_v6 = vsel %vm4092_vm0, %v17662_v40, %v12587_v57  ;;  %v10249_v63 = vsel %vm4092_vm0, %v17658_v47, %v12588_v54 }
 0x8fd   : > { %v12596_v43 = vpop.permute.xlu1 %12595  ;;  %v10265_v22 = vsel %vm10254_vm2, %v10248_v6, %v12592_v58  ;;  %v10266_v45 = vsel %vm10254_vm2, %v10249_v63, %v12593_v39  ;;  %v12621_v59 = vpop.permute.xlu0 %12620 }
 0x8fe   : > { %v12598_v0 = vunpack.i.h.bf16 %v12596_v43  ;;  %v12597_v61 = vunpack.i.l.bf16 %v12596_v43  ;;  %v12623_v5 = vunpack.i.h.bf16 %v12621_v59  ;;  %v12622_v16 = vunpack.i.l.bf16 %v12621_v59 }
 0x900   : > { %v10282_v34 = vsel %vm10271_vm7, %v10265_v22, %v12597_v61  ;;  %v10283_v42 = vsel %vm10271_vm7, %v10266_v45, %v12598_v0 }
 0x901   : > { %v12606_v40 = vpop.permute.xlu1 %12605  ;;  %11671 = vmatprep.mubr.f32.mxu0 %v10282_v34 }
 0x902   : > { %v12608_v25 = vunpack.i.h.bf16 %v12606_v40  ;;  %v12607_v47 = vunpack.i.l.bf16 %v12606_v40  ;;  %11672 = vmatmul.mubr.f32.gmra.mrb[118].mxu0 %v10283_v42 }
 0x904   : > { %v10267_v49 = vsel %vm10254_vm2, %v10250_v20, %v12607_v47  ;;  %v10268_v48 = vsel %vm10254_vm2, %v10251_v11, %v12608_v25 }
 0x905   : > { %v12616_v19 = vpop.permute.xlu1 %12615  ;;  %v10284_v12 = vsel %vm10271_vm7, %v10267_v49, %v12612_v7  ;;  %v10285_v13 = vsel %vm10271_vm7, %v10268_v48, %v12613_v32 }
 0x906   : > { %v12618_v17 = vunpack.i.h.bf16 %v12616_v19  ;;  %v12617_v26 = vunpack.i.l.bf16 %v12616_v19  ;;  %11674 = vmatprep.mubr.f32.mxu0 %v10284_v12 }
 0x907   : > { %11675 = vmatmul.mubr.f32.gmra.mrb[120].mxu0 %v10285_v13 }
 0x908   : > { %v10252_v3 = vsel %vm4092_vm0, %v17723_v53, %v12617_v26  ;;  %v10253_v8 = vsel %vm4092_vm0, %v19361_v15, %v12618_v17 }
 0x909   : > { %v12626_v35 = vpop.permute.xlu1 %12625  ;;  %v10269_v31 = vsel %vm10254_vm2, %v10252_v3, %v12622_v16  ;;  %v10270_v23 = vsel %vm10254_vm2, %v10253_v8, %v12623_v5 }
 0x90a   : > { %v12628_v14 = vunpack.i.h.bf16 %v12626_v35  ;;  %v12627_v50 = vunpack.i.l.bf16 %v12626_v35 }
 0x90c   : > { %v10286_v55 = vsel %vm10271_vm7, %v10269_v31, %v12627_v50  ;;  %v10287_v24 = vsel %vm10271_vm7, %v10270_v23, %v12628_v14 }
 0x90d   : > { %11677 = vmatprep.mubr.f32.mxu0 %v10286_v55 }
 0x90e   : > { %11678 = vmatmul.mubr.f32.gmra.mrb[122].mxu0 %v10287_v24 }
 0x96b   : > { %v11658_v36 = vpop.f32.mrb[108].mxu0 }
 0x96c   : > { %10450 = vst [vmem:[%s17966_s14 + $0x8] sm:$0xff] %v11658_v36  ;;  %v10370_v53 = vpop.f32.mrb[109].mxu0 }
 0x96d   : > { %10449 = vst [vmem:[%s17966_s14] sm:$0xff] %v10370_v53 }
 0x9bd   : > { %v11661_v60 = vpop.f32.mrb[110].mxu0 }
 0x9be   : > { %10452 = vst [vmem:[%s17966_s14 + $0x18] sm:$0xff] %v11661_v60  ;;  %v10380_v52 = vpop.f32.mrb[111].mxu0 }
 0x9bf   : > { %10451 = vst [vmem:[%s17966_s14 + $0x10] sm:$0xff] %v10380_v52 }
 0x9c2   : > { %v11664_v37 = vpop.f32.mrb[112].mxu0 }
 0x9c3   : > { %10454 = vst [vmem:[%s17966_s14 + $0x28] sm:$0xff] %v11664_v37  ;;  %v10390_v29 = vpop.f32.mrb[113].mxu0 }
 0x9c4   : > { %10453 = vst [vmem:[%s17966_s14 + $0x20] sm:$0xff] %v10390_v29 }
 0x9c9   : > { %v11667_v62 = vpop.f32.mrb[114].mxu0 }
 0x9ca   : > { %10456 = vst [vmem:[%s17966_s14 + $0x38] sm:$0xff] %v11667_v62  ;;  %v10400_v10 = vpop.f32.mrb[115].mxu0 }
 0x9cb   : > { %10455 = vst [vmem:[%s17966_s14 + $0x30] sm:$0xff] %v10400_v10 }
 0x9ce   : > { %v11670_v56 = vpop.f32.mrb[116].mxu0 }
 0x9cf   : > { %10458 = vst [vmem:[%s17966_s14 + $0x48] sm:$0xff] %v11670_v56  ;;  %v10410_v21 = vpop.f32.mrb[117].mxu0 }
 0x9d0   : > { %10457 = vst [vmem:[%s17966_s14 + $0x40] sm:$0xff] %v10410_v21 }
 0x9d5   : > { %v11673_v2 = vpop.f32.mrb[118].mxu0 }
 0x9d6   : > { %10460 = vst [vmem:[%s17966_s14 + $0x58] sm:$0xff] %v11673_v2  ;;  %v10420_v28 = vpop.f32.mrb[119].mxu0 }
 0x9d7   : > { %10459 = vst [vmem:[%s17966_s14 + $0x50] sm:$0xff] %v10420_v28 }
 0x9da   : > { %v11676_v41 = vpop.f32.mrb[120].mxu0 }
 0x9db   : > { %10462 = vst [vmem:[%s17966_s14 + $0x68] sm:$0xff] %v11676_v41  ;;  %v10430_v38 = vpop.f32.mrb[121].mxu0 }
 0x9dc   : > { %10461 = vst [vmem:[%s17966_s14 + $0x60] sm:$0xff] %v10430_v38 }
 0x9e1   : > { %v11679_v46 = vpop.f32.mrb[122].mxu0 }
 0x9e2   : > { %10464 = vst [vmem:[%s17966_s14 + $0x78] sm:$0xff] %v11679_v46  ;;  %v10440_v51 = vpop.f32.mrb[123].mxu0 }
 0x9e3   : > { %10463 = vst [vmem:[%s17966_s14 + $0x70] sm:$0xff] %v10440_v51 }
 0x9e4   : > { %13012 = shalt.err (!%p13009_p4)
}
 0x9e5   : > { %s13013_s23 = scalar_lea.hbm %s17987_s13, 2048  ;;  %s13017_s6 = scalar_lea.hbm %s18039_s4, 4096 }
 0x9e6   : > { %p13014_p9 = scmp.ne.s32.totalorder %s17987_s13, %s13013_s23  ;;  %p13018_p8 = scmp.lt.u32.totalorder %s17987_s13, %s18039_s4 }
 0x9e7   : > { %p13019_p13 = scmp.lt.u32.totalorder %s13017_s6, %s13013_s23  ;;  %p13021_p10 = scmp.lt.u32.totalorder %s13013_s23, %s17987_s13 }
 0x9e8   : > { %p13015_p0 = pnand %p13014_p9, %p13266_p5 }
 0x9e9   : > { %p13020_p6 = por %p13019_p13, %p13018_p8 }
 0x9ea   : > { %p13016_p11 = pneg %p13015_p0 }
 0x9eb   : > { %p13022_p3 = por %p13021_p10, %p13020_p6 }
 0x9ed   : > { %p13023_p7 = pnand %p13022_p3, %p13016_p11 }
 0x9ef   : > { %13026 = shalt.err (!%p13023_p7)
}
 0x9f0   : > { %s13094_s14 = smov 128   ;;  %s13095_s30 = smov 8  }
 0x9f1   : > { %12190 = dma.vmem_to_hbm [thread:$0]  (%p13266_p5), %s17989_s26, 2048, %s17987_s13, %s10466_s20, %s13094_s14, %s13094_s14, %s13095_s30  }
 0x9f2 PF: > { %s10495_s5 = sand.u32 1, %s13061_s15   ;;  %p19362_p12 = scmp.ne.s32.totalorder %s18375_s22, 0 }
 0x9f3   : > { %p19363_p2 = scmp.ge.s32.totalorder %s13073_s18, 2  ;;  %s10496_s28 = scalar_lea.sflag [#allocation4], %s10495_s5 }
 0x9f5   : > { %p12207_p1 = pnand %p19363_p2, %p19362_p12 }
 0x9f7   : > { %13056 = dma.done.wait (!%p12207_p1), %s10496_s28, 2048  }
 0x9f8   : > { %13058 = vsyncadd (!%p12207_p1), %s10496_s28, 4294965248  ;;  %p19_p4 = scmp.ge.s32.totalorder %s13252_s12, 4   ;;  %s19364_s15 = smov %s13065_s16 }
 0x9f9   : > { %s19365_s16 = smov %s13069_s17  ;;  %s19366_s17 = smov %s13262_s24 }
 0x9fa   : > { %s19367_s18 = smov %s13252_s12  ;;  %21 = sbr.rel (!%p19_p4) target bundleno = 7 (0x7), region = 93 }
 0xa01   :  { %10501 = vsyncpa [#allocation3], 1 }
 0xa02   :  { %10503 = vsyncpa [#allocation3 + $0x1], 1 }
 0xa03   :  { %10504 = vsyncpa [#allocation6], 1 }
 0xa04   :  { %10505 = vsyncpa [#allocation9], 1 }
 0xa05   :  { %10506 = vsyncpa [#allocation4], 1 }
 0xa06   :  { %10508 = vsyncpa [#allocation4 + $0x1], 1 }

</bundles_post_ra>
